<compile_context>
chip_gen: v6e
topology: v6e:2x2x1
jax: 0.10.0
libtpu: 0.0.40
codegen_flags: <defaults>
</compile_context>

<pallas_src>
import functools
import math

import jax
import jax.numpy as jnp
from jax.experimental import pallas as pl
from jax.experimental.pallas import tpu as pltpu


def _nbytes(shape, dtype):
    return math.prod(shape) * jnp.dtype(dtype).itemsize


def _pick_batch_tile(n, hw_out, target_m=512):
    """Pick a batch tile so M = bt*ho*wo is MXU-friendly while keeping >= 2 grid
    steps (megacore balance) where the batch allows; bt always divides n."""
    divisors = [d for d in range(1, n + 1) if n % d == 0]
    cands = [d for d in divisors if n // d >= 2] or divisors
    for d in cands:
        if d * hw_out >= target_m:
            return d
    return cands[-1]


def _basic_block_kernel(*refs, bt, ho, wo, cin, planes, stride, sc_pad):
    """Fused: relu( bn2(conv2( relu(bn1(conv1(x))) )) + shortcut(x) ).

    stride == 1 refs: (x, w1, b1, w2, b2, o, xpad_scratch, y1pad_scratch)
    stride == 2 refs: (x00, x01, x10, x11, w1, b1, w2, b2, o, y1pad_scratch)
      x blocks : bf16 activations (parity-split of the padded input for stride 2)
      w1/w2    : (9, cin, planes)/(9, planes, planes) bf16, BN scale folded in
      b1/b2    : (1, planes) f32 folded BN biases
      o        : (bt, ho, wo, planes) f32
    """
    ns = 1 if stride == 1 else 4
    x_refs = refs[:ns]
    w1_ref, b1_ref, w2_ref, b2_ref = refs[ns:ns + 4]
    o_ref = refs[ns + 4]
    scratch = refs[ns + 5:]
    if stride == 1:
        xpad_ref, y1pad_ref = scratch
    else:
        (y1pad_ref,) = scratch

    m = bt * ho * wo

    # ---------------- conv1 + folded BN1 + ReLU ------------------------------
    if stride == 1:
        # Build the 1-px halo in VMEM (no wrapper-side jnp.pad HBM pass).
        xv = x_refs[0][...]                                    # (bt, ho, wo, cin) bf16
        xpad_ref[...] = jnp.zeros(xpad_ref.shape, xpad_ref.dtype)
        xpad_ref[:, 1:ho + 1, 1:wo + 1, :] = xv

        def conv1_tap(kh, kw):
            return xpad_ref[:, kh:kh + ho, kw:kw + wo, :]
    else:
        # Every stride-2 tap is a unit-stride slice of one parity piece.
        def conv1_tap(kh, kw):
            p = x_refs[(kh % 2) * 2 + (kw % 2)]
            return p[:, kh // 2:kh // 2 + ho, kw // 2:kw // 2 + wo, :]

    acc1 = jnp.zeros((m, planes), jnp.float32)
    for kh in range(3):
        for kw in range(3):
            tap = conv1_tap(kh, kw).reshape(m, cin)
            acc1 = acc1 + jnp.dot(tap, w1_ref[kh * 3 + kw],
                                  preferred_element_type=jnp.float32)
    out1 = jnp.maximum(acc1 + b1_ref[...], 0.0).astype(jnp.bfloat16)

    # conv1 activation stays resident in VMEM with a 1-px halo for conv2.
    y1pad_ref[...] = jnp.zeros(y1pad_ref.shape, y1pad_ref.dtype)
    y1pad_ref[:, 1:ho + 1, 1:wo + 1, :] = out1.reshape(bt, ho, wo, planes)

    # ---------------- conv2 + folded BN2 -------------------------------------
    acc2 = jnp.zeros((m, planes), jnp.float32)
    for kh in range(3):
        for kw in range(3):
            tap = y1pad_ref[:, kh:kh + ho, kw:kw + wo, :].reshape(m, planes)
            acc2 = acc2 + jnp.dot(tap, w2_ref[kh * 3 + kw],
                                  preferred_element_type=jnp.float32)
    acc2 = acc2 + b2_ref[...]

    # ---------------- residual (derived in-kernel, no extra HBM operand) -----
    if stride == 1:
        acc2 = acc2 + xv.reshape(m, cin).astype(jnp.float32)       # identity
    else:
        # option 'A': x[:, ::2, ::2, :] == parity piece (1,1) of the padded x,
        # zero-padded by planes//4 channels on each side.
        sc = x_refs[3][:, 0:ho, 0:wo, :].reshape(m, cin).astype(jnp.float32)
        sc = jnp.pad(sc, ((0, 0), (sc_pad, planes - cin - sc_pad)))
        acc2 = acc2 + sc

    # Single-pass epilogue: ReLU + cast + store (channel-dense output).
    o_ref[...] = jnp.maximum(acc2, 0.0).reshape(bt, ho, wo, planes).astype(o_ref.dtype)


def _fold_bn(gamma, beta, mean, var, eps=1e-5):
    scale = gamma / jnp.sqrt(var + eps)
    bias = beta - mean * scale
    return scale, bias


def init_basic_block_params(key, in_planes, planes):
    ks = jax.random.split(key, 10)
    fan1 = in_planes * 9
    fan2 = planes * 9
    w1 = jax.random.normal(ks[0], (planes, in_planes, 3, 3), jnp.float32) * (2.0 / fan1) ** 0.5
    w2 = jax.random.normal(ks[1], (planes, planes, 3, 3), jnp.float32) * (2.0 / fan2) ** 0.5

    def bn_params(kg, kb, km, kv, c):
        gamma = 1.0 + 0.1 * jax.random.normal(kg, (c,), jnp.float32)
        beta = 0.1 * jax.random.normal(kb, (c,), jnp.float32)
        mean = 0.1 * jax.random.normal(km, (c,), jnp.float32)
        var = jax.random.uniform(kv, (c,), jnp.float32, minval=0.5, maxval=1.5)
        return gamma, beta, mean, var

    return {
        "w1": w1,
        "w2": w2,
        "bn1": bn_params(ks[2], ks[3], ks[4], ks[5], planes),
        "bn2": bn_params(ks[6], ks[7], ks[8], ks[9], planes),
    }


def basic_block_forward(x_nchw, params, *, stride=1, option="A"):
    """Mirrors BasicBlock.forward: relu(bn2(conv2(relu(bn1(conv1(x))))) + shortcut(x))."""
    n, cin, h, w = x_nchw.shape
    planes = params["w1"].shape[0]
    if stride not in (1, 2):
        raise NotImplementedError("only stride 1 or 2 supported")

    needs_downsample = (stride != 1) or (cin != planes)
    if needs_downsample:
        if option != "A":
            # TODO(synk): option 'B' (1x1 conv + BN) shortcut not implemented.
            raise NotImplementedError("option 'B' shortcut not implemented")
        if stride != 2:
            # A stride-1 channel-changing option-'A' shortcut would change the
            # spatial size and cannot match the conv path (invalid in PyTorch too).
            raise NotImplementedError("option 'A' shortcut requires stride == 2")
        assert h % 2 == 0 and w % 2 == 0, "stride-2 path assumes even H/W"
        assert cin + 2 * (planes // 4) == planes, "option 'A' channel pad mismatch"

    s1, b1 = _fold_bn(*params["bn1"])
    s2, b2 = _fold_bn(*params["bn2"])

    # One wrapper pass: NCHW -> NHWC + bf16 cast (MXU operand dtype).
    x = jnp.transpose(x_nchw, (0, 2, 3, 1)).astype(jnp.bfloat16)

    ho = (h - 1) // stride + 1
    wo = (w - 1) // stride + 1

    if stride == 1:
        x_parts = [x]
    else:
        # Parity split of the spatially padded input so every stride-2 tap (and
        # the option-'A' shortcut) is a unit-stride in-kernel slice.
        xp = jnp.pad(x, ((0, 0), (1, 1), (1, 1), (0, 0)))
        x_parts = [xp[:, ph::2, pw::2, :] for ph in (0, 1) for pw in (0, 1)]

    # Fold BN scale into the conv weights: (P @ W) * s == P @ (W * s).
    def fold_w(w_oihw, scale):
        o, i = w_oihw.shape[0], w_oihw.shape[1]
        wm = jnp.transpose(w_oihw, (2, 3, 1, 0)).reshape(9, i, o)   # (tap, in, out)
        return (wm * scale.reshape(1, 1, o)).astype(jnp.bfloat16)

    w1 = fold_w(params["w1"], s1)
    w2 = fold_w(params["w2"], s2)
    b1m = b1.reshape(1, planes).astype(jnp.float32)
    b2m = b2.reshape(1, planes).astype(jnp.float32)

    bt = _pick_batch_tile(n, ho * wo)
    grid = (n // bt,)

    in_specs = [pl.BlockSpec((bt,) + xs.shape[1:], lambda i: (i, 0, 0, 0))
                for xs in x_parts]
    in_specs += [
        pl.BlockSpec(w1.shape, lambda i: (0, 0, 0)),
        pl.BlockSpec(b1m.shape, lambda i: (0, 0)),
        pl.BlockSpec(w2.shape, lambda i: (0, 0, 0)),
        pl.BlockSpec(b2m.shape, lambda i: (0, 0)),
    ]
    out_specs = pl.BlockSpec((bt, ho, wo, planes), lambda i: (i, 0, 0, 0))

    scratch_shapes = []
    if stride == 1:
        scratch_shapes.append(pltpu.VMEM((bt, ho + 2, wo + 2, cin), jnp.bfloat16))
    scratch_shapes.append(pltpu.VMEM((bt, ho + 2, wo + 2, planes), jnp.bfloat16))

    kernel = functools.partial(
        _basic_block_kernel, bt=bt, ho=ho, wo=wo, cin=cin, planes=planes,
        stride=stride, sc_pad=planes // 4)

    # VMEM budget: double-buffered blocks + scratch + f32 accumulator headroom.
    blk_bytes = sum(_nbytes((bt,) + xs.shape[1:], jnp.bfloat16) for xs in x_parts)
    blk_bytes += _nbytes(w1.shape, jnp.bfloat16) + _nbytes(w2.shape, jnp.bfloat16)
    blk_bytes += _nbytes(b1m.shape, jnp.float32) + _nbytes(b2m.shape, jnp.float32)
    blk_bytes += _nbytes((bt, ho, wo, planes), jnp.float32)
    scr_bytes = _nbytes((bt, ho + 2, wo + 2, planes), jnp.bfloat16)
    if stride == 1:
        scr_bytes += _nbytes((bt, ho + 2, wo + 2, cin), jnp.bfloat16)
    tmp_bytes = 6 * bt * ho * wo * planes * 4
    vmem_limit = int(min(max(2 * blk_bytes + scr_bytes + tmp_bytes + (4 << 20),
                             16 << 20), 64 << 20))

    out = pl.pallas_call(
        kernel,
        out_shape=jax.ShapeDtypeStruct((n, ho, wo, planes), jnp.float32),
        grid_spec=pltpu.PrefetchScalarGridSpec(
            num_scalar_prefetch=0,
            grid=grid,
            in_specs=in_specs,
            out_specs=out_specs,
            scratch_shapes=scratch_shapes),
        compiler_params=pltpu.CompilerParams(
            dimension_semantics=("parallel",),
            vmem_limit_bytes=vmem_limit),
    )(*x_parts, w1, b1m, w2, b2m)

    return jnp.transpose(out, (0, 3, 1, 2))                        # NHWC -> NCHW


# ----------------------- pure-JAX reference (for checking) -----------------------

def _ref_conv3x3(x_nhwc, w_oihw, stride):
    return jax.lax.conv_general_dilated(
        x_nhwc, jnp.transpose(w_oihw, (2, 3, 1, 0)),
        window_strides=(stride, stride), padding=((1, 1), (1, 1)),
        dimension_numbers=("NHWC", "HWIO", "NHWC"))


def basic_block_reference(x_nchw, params, *, stride=1, option="A"):
    in_planes = x_nchw.shape[1]
    planes = params["w1"].shape[0]
    x = jnp.transpose(x_nchw, (0, 2, 3, 1)).astype(jnp.float32)
    s1, b1 = _fold_bn(*params["bn1"])
    s2, b2 = _fold_bn(*params["bn2"])
    out = jnp.maximum(_ref_conv3x3(x, params["w1"], stride) * s1 + b1, 0.0)
    out = _ref_conv3x3(out, params["w2"], 1) * s2 + b2
    if stride != 1 or in_planes != planes:
        sc = x[:, ::2, ::2, :]
        pad = planes // 4
        sc = jnp.pad(sc, ((0, 0), (0, 0), (0, 0), (pad, pad)))
    else:
        sc = x
    out = jnp.maximum(out + sc, 0.0)
    return jnp.transpose(out, (0, 3, 1, 2))


if __name__ == "__main__":
    key = jax.random.PRNGKey(0)
    kx, kp1, kp2 = jax.random.split(key, 3)

    x = jax.random.normal(kx, (2, 4, 16, 16), jnp.float32)

    # Case 1: identity shortcut (in_planes == planes, stride == 1)
    params_id = init_basic_block_params(kp1, in_planes=4, planes=4)
    y_id = jax.block_until_ready(basic_block_forward(x, params_id, stride=1, option="A"))
    y_id_ref = basic_block_reference(x, params_id, stride=1, option="A")
    assert y_id.shape == (2, 4, 16, 16), y_id.shape
    assert bool(jnp.all(y_id >= 0.0))
    assert bool(jnp.allclose(y_id, y_id_ref, rtol=5e-2, atol=5e-2)), \
        float(jnp.max(jnp.abs(y_id - y_id_ref)))

    # Case 2: option 'A' downsampling shortcut (stride=2, planes=8)
    params_ds = init_basic_block_params(kp2, in_planes=4, planes=8)
    y_ds = jax.block_until_ready(basic_block_forward(x, params_ds, stride=2, option="A"))
    y_ds_ref = basic_block_reference(x, params_ds, stride=2, option="A")
    assert y_ds.shape == (2, 8, 8, 8), y_ds.shape
    assert bool(jnp.all(y_ds >= 0.0))
    assert bool(jnp.allclose(y_ds, y_ds_ref, rtol=5e-2, atol=5e-2)), \
        float(jnp.max(jnp.abs(y_ds - y_ds_ref)))

    print("KERNEL_OK")
</pallas_src>

<mosaic_0001>
module attributes {stable_mosaic.version = 11 : i64} {
  func.func @_basic_block_kernel(%arg0: i32, %arg1: memref<1x16x16x4xbf16, #tpu.memory_space<vmem>>, %arg2: memref<9x4x4xbf16, #tpu.memory_space<vmem>>, %arg3: memref<1x4xf32, #tpu.memory_space<vmem>>, %arg4: memref<9x4x4xbf16, #tpu.memory_space<vmem>>, %arg5: memref<1x4xf32, #tpu.memory_space<vmem>>, %arg6: memref<1x16x16x4xf32, #tpu.memory_space<vmem>>, %arg7: memref<1x18x18x4xbf16, #tpu.memory_space<vmem>>, %arg8: memref<1x18x18x4xbf16, #tpu.memory_space<vmem>>) attributes {dimension_semantics = [#tpu.dimension_semantics<parallel>], iteration_bounds = array<i64: 2>, scalar_prefetch = 0 : i64, scratch_operands = 2 : i64, tpu.core_type = #tpu.core_type<tc>, window_params = [{transform_indices = @transform_0, window_bounds = array<i64: 1, 16, 16, 4>}, {pipeline_mode = #tpu.pipeline_mode<synchronous>, transform_indices = @transform_1, window_bounds = array<i64: 9, 4, 4>}, {pipeline_mode = #tpu.pipeline_mode<synchronous>, transform_indices = @transform_2, window_bounds = array<i64: 1, 4>}, {pipeline_mode = #tpu.pipeline_mode<synchronous>, transform_indices = @transform_3, window_bounds = array<i64: 9, 4, 4>}, {pipeline_mode = #tpu.pipeline_mode<synchronous>, transform_indices = @transform_4, window_bounds = array<i64: 1, 4>}, {transform_indices = @transform_5, window_bounds = array<i64: 1, 16, 16, 4>}]} {
    %c0 = arith.constant 0 : index
    %c0_0 = arith.constant 0 : index
    %c0_1 = arith.constant 0 : index
    %c0_2 = arith.constant 0 : index
    %0 = vector.load %arg1[%c0, %c0_0, %c0_1, %c0_2] : memref<1x16x16x4xbf16, #tpu.memory_space<vmem>>, vector<1x16x16x4xbf16>
    %cst = arith.constant 0.000000e+00 : bf16
    %1 = vector.broadcast %cst : bf16 to vector<1x18x18x4xbf16>
    %c0_3 = arith.constant 0 : index
    %c0_4 = arith.constant 0 : index
    %c0_5 = arith.constant 0 : index
    %c0_6 = arith.constant 0 : index
    %2 = vector.load %arg7[%c0_3, %c0_4, %c0_5, %c0_6] : memref<1x18x18x4xbf16, #tpu.memory_space<vmem>>, vector<1x18x18x4xbf16>
    tpu.vector_store %arg7[%c0_3, %c0_4, %c0_5, %c0_6], %1 {strides = array<i32>} : memref<1x18x18x4xbf16, #tpu.memory_space<vmem>>, vector<1x18x18x4xbf16>,
    %c0_7 = arith.constant 0 : index
    %c1 = arith.constant 1 : index
    %c1_8 = arith.constant 1 : index
    %c0_9 = arith.constant 0 : index
    %3 = vector.load %arg7[%c0_7, %c1, %c1_8, %c0_9] : memref<1x18x18x4xbf16, #tpu.memory_space<vmem>>, vector<1x16x16x4xbf16>
    tpu.vector_store %arg7[%c0_7, %c1, %c1_8, %c0_9], %0 {strides = array<i32>} : memref<1x18x18x4xbf16, #tpu.memory_space<vmem>>, vector<1x16x16x4xbf16>,
    %cst_10 = arith.constant 0.000000e+00 : f32
    %4 = vector.broadcast %cst_10 : f32 to vector<256x4xf32>
    %c0_11 = arith.constant 0 : index
    %c0_12 = arith.constant 0 : index
    %c0_13 = arith.constant 0 : index
    %c0_14 = arith.constant 0 : index
    %5 = vector.load %arg7[%c0_11, %c0_12, %c0_13, %c0_14] : memref<1x18x18x4xbf16, #tpu.memory_space<vmem>>, vector<1x16x16x4xbf16>
    %6 = vector.shape_cast %5 : vector<1x16x16x4xbf16> to vector<256x4xbf16>
    %c0_15 = arith.constant 0 : index
    %c0_16 = arith.constant 0 : index
    %c0_17 = arith.constant 0 : index
    %7 = vector.load %arg2[%c0_15, %c0_16, %c0_17] : memref<9x4x4xbf16, #tpu.memory_space<vmem>>, vector<1x4x4xbf16>
    %8 = vector.shape_cast %7 : vector<1x4x4xbf16> to vector<4x4xbf16>
    %cst_18 = arith.constant dense<0.000000e+00> : vector<256x4xf32>
    %9 = tpu.matmul %6, %8, %cst_18 {dimension_numbers = #tpu.dot_dimension_numbers<[1], [0], [0], [1], [0, 0, 1, 1], [], []>} : vector<256x4xbf16>, vector<4x4xbf16>, vector<256x4xf32> -> vector<256x4xf32>
    %10 = arith.addf %4, %9 : vector<256x4xf32>
    %c0_19 = arith.constant 0 : index
    %c0_20 = arith.constant 0 : index
    %c1_21 = arith.constant 1 : index
    %c0_22 = arith.constant 0 : index
    %11 = vector.load %arg7[%c0_19, %c0_20, %c1_21, %c0_22] : memref<1x18x18x4xbf16, #tpu.memory_space<vmem>>, vector<1x16x16x4xbf16>
    %12 = vector.shape_cast %11 : vector<1x16x16x4xbf16> to vector<256x4xbf16>
    %c1_23 = arith.constant 1 : index
    %c0_24 = arith.constant 0 : index
    %c0_25 = arith.constant 0 : index
    %13 = vector.load %arg2[%c1_23, %c0_24, %c0_25] : memref<9x4x4xbf16, #tpu.memory_space<vmem>>, vector<1x4x4xbf16>
    %14 = vector.shape_cast %13 : vector<1x4x4xbf16> to vector<4x4xbf16>
    %cst_26 = arith.constant dense<0.000000e+00> : vector<256x4xf32>
    %15 = tpu.matmul %12, %14, %cst_26 {dimension_numbers = #tpu.dot_dimension_numbers<[1], [0], [0], [1], [0, 0, 1, 1], [], []>} : vector<256x4xbf16>, vector<4x4xbf16>, vector<256x4xf32> -> vector<256x4xf32>
    %16 = arith.addf %10, %15 : vector<256x4xf32>
    %c0_27 = arith.constant 0 : index
    %c0_28 = arith.constant 0 : index
    %c2 = arith.constant 2 : index
    %c0_29 = arith.constant 0 : index
    %17 = vector.load %arg7[%c0_27, %c0_28, %c2, %c0_29] : memref<1x18x18x4xbf16, #tpu.memory_space<vmem>>, vector<1x16x16x4xbf16>
    %18 = vector.shape_cast %17 : vector<1x16x16x4xbf16> to vector<256x4xbf16>
    %c2_30 = arith.constant 2 : index
    %c0_31 = arith.constant 0 : index
    %c0_32 = arith.constant 0 : index
    %19 = vector.load %arg2[%c2_30, %c0_31, %c0_32] : memref<9x4x4xbf16, #tpu.memory_space<vmem>>, vector<1x4x4xbf16>
    %20 = vector.shape_cast %19 : vector<1x4x4xbf16> to vector<4x4xbf16>
    %cst_33 = arith.constant dense<0.000000e+00> : vector<256x4xf32>
    %21 = tpu.matmul %18, %20, %cst_33 {dimension_numbers = #tpu.dot_dimension_numbers<[1], [0], [0], [1], [0, 0, 1, 1], [], []>} : vector<256x4xbf16>, vector<4x4xbf16>, vector<256x4xf32> -> vector<256x4xf32>
    %22 = arith.addf %16, %21 : vector<256x4xf32>
    %c0_34 = arith.constant 0 : index
    %c1_35 = arith.constant 1 : index
    %c0_36 = arith.constant 0 : index
    %c0_37 = arith.constant 0 : index
    %23 = vector.load %arg7[%c0_34, %c1_35, %c0_36, %c0_37] : memref<1x18x18x4xbf16, #tpu.memory_space<vmem>>, vector<1x16x16x4xbf16>
    %24 = vector.shape_cast %23 : vector<1x16x16x4xbf16> to vector<256x4xbf16>
    %c3 = arith.constant 3 : index
    %c0_38 = arith.constant 0 : index
    %c0_39 = arith.constant 0 : index
    %25 = vector.load %arg2[%c3, %c0_38, %c0_39] : memref<9x4x4xbf16, #tpu.memory_space<vmem>>, vector<1x4x4xbf16>
    %26 = vector.shape_cast %25 : vector<1x4x4xbf16> to vector<4x4xbf16>
    %cst_40 = arith.constant dense<0.000000e+00> : vector<256x4xf32>
    %27 = tpu.matmul %24, %26, %cst_40 {dimension_numbers = #tpu.dot_dimension_numbers<[1], [0], [0], [1], [0, 0, 1, 1], [], []>} : vector<256x4xbf16>, vector<4x4xbf16>, vector<256x4xf32> -> vector<256x4xf32>
    %28 = arith.addf %22, %27 : vector<256x4xf32>
    %c0_41 = arith.constant 0 : index
    %c1_42 = arith.constant 1 : index
    %c1_43 = arith.constant 1 : index
    %c0_44 = arith.constant 0 : index
    %29 = vector.load %arg7[%c0_41, %c1_42, %c1_43, %c0_44] : memref<1x18x18x4xbf16, #tpu.memory_space<vmem>>, vector<1x16x16x4xbf16>
    %30 = vector.shape_cast %29 : vector<1x16x16x4xbf16> to vector<256x4xbf16>
    %c4 = arith.constant 4 : index
    %c0_45 = arith.constant 0 : index
    %c0_46 = arith.constant 0 : index
    %31 = vector.load %arg2[%c4, %c0_45, %c0_46] : memref<9x4x4xbf16, #tpu.memory_space<vmem>>, vector<1x4x4xbf16>
    %32 = vector.shape_cast %31 : vector<1x4x4xbf16> to vector<4x4xbf16>
    %cst_47 = arith.constant dense<0.000000e+00> : vector<256x4xf32>
    %33 = tpu.matmul %30, %32, %cst_47 {dimension_numbers = #tpu.dot_dimension_numbers<[1], [0], [0], [1], [0, 0, 1, 1], [], []>} : vector<256x4xbf16>, vector<4x4xbf16>, vector<256x4xf32> -> vector<256x4xf32>
    %34 = arith.addf %28, %33 : vector<256x4xf32>
    %c0_48 = arith.constant 0 : index
    %c1_49 = arith.constant 1 : index
    %c2_50 = arith.constant 2 : index
    %c0_51 = arith.constant 0 : index
    %35 = vector.load %arg7[%c0_48, %c1_49, %c2_50, %c0_51] : memref<1x18x18x4xbf16, #tpu.memory_space<vmem>>, vector<1x16x16x4xbf16>
    %36 = vector.shape_cast %35 : vector<1x16x16x4xbf16> to vector<256x4xbf16>
    %c5 = arith.constant 5 : index
    %c0_52 = arith.constant 0 : index
    %c0_53 = arith.constant 0 : index
    %37 = vector.load %arg2[%c5, %c0_52, %c0_53] : memref<9x4x4xbf16, #tpu.memory_space<vmem>>, vector<1x4x4xbf16>
    %38 = vector.shape_cast %37 : vector<1x4x4xbf16> to vector<4x4xbf16>
    %cst_54 = arith.constant dense<0.000000e+00> : vector<256x4xf32>
    %39 = tpu.matmul %36, %38, %cst_54 {dimension_numbers = #tpu.dot_dimension_numbers<[1], [0], [0], [1], [0, 0, 1, 1], [], []>} : vector<256x4xbf16>, vector<4x4xbf16>, vector<256x4xf32> -> vector<256x4xf32>
    %40 = arith.addf %34, %39 : vector<256x4xf32>
    %c0_55 = arith.constant 0 : index
    %c2_56 = arith.constant 2 : index
    %c0_57 = arith.constant 0 : index
    %c0_58 = arith.constant 0 : index
    %41 = vector.load %arg7[%c0_55, %c2_56, %c0_57, %c0_58] : memref<1x18x18x4xbf16, #tpu.memory_space<vmem>>, vector<1x16x16x4xbf16>
    %42 = vector.shape_cast %41 : vector<1x16x16x4xbf16> to vector<256x4xbf16>
    %c6 = arith.constant 6 : index
    %c0_59 = arith.constant 0 : index
    %c0_60 = arith.constant 0 : index
    %43 = vector.load %arg2[%c6, %c0_59, %c0_60] : memref<9x4x4xbf16, #tpu.memory_space<vmem>>, vector<1x4x4xbf16>
    %44 = vector.shape_cast %43 : vector<1x4x4xbf16> to vector<4x4xbf16>
    %cst_61 = arith.constant dense<0.000000e+00> : vector<256x4xf32>
    %45 = tpu.matmul %42, %44, %cst_61 {dimension_numbers = #tpu.dot_dimension_numbers<[1], [0], [0], [1], [0, 0, 1, 1], [], []>} : vector<256x4xbf16>, vector<4x4xbf16>, vector<256x4xf32> -> vector<256x4xf32>
    %46 = arith.addf %40, %45 : vector<256x4xf32>
    %c0_62 = arith.constant 0 : index
    %c2_63 = arith.constant 2 : index
    %c1_64 = arith.constant 1 : index
    %c0_65 = arith.constant 0 : index
    %47 = vector.load %arg7[%c0_62, %c2_63, %c1_64, %c0_65] : memref<1x18x18x4xbf16, #tpu.memory_space<vmem>>, vector<1x16x16x4xbf16>
    %48 = vector.shape_cast %47 : vector<1x16x16x4xbf16> to vector<256x4xbf16>
    %c7 = arith.constant 7 : index
    %c0_66 = arith.constant 0 : index
    %c0_67 = arith.constant 0 : index
    %49 = vector.load %arg2[%c7, %c0_66, %c0_67] : memref<9x4x4xbf16, #tpu.memory_space<vmem>>, vector<1x4x4xbf16>
    %50 = vector.shape_cast %49 : vector<1x4x4xbf16> to vector<4x4xbf16>
    %cst_68 = arith.constant dense<0.000000e+00> : vector<256x4xf32>
    %51 = tpu.matmul %48, %50, %cst_68 {dimension_numbers = #tpu.dot_dimension_numbers<[1], [0], [0], [1], [0, 0, 1, 1], [], []>} : vector<256x4xbf16>, vector<4x4xbf16>, vector<256x4xf32> -> vector<256x4xf32>
    %52 = arith.addf %46, %51 : vector<256x4xf32>
    %c0_69 = arith.constant 0 : index
    %c2_70 = arith.constant 2 : index
    %c2_71 = arith.constant 2 : index
    %c0_72 = arith.constant 0 : index
    %53 = vector.load %arg7[%c0_69, %c2_70, %c2_71, %c0_72] : memref<1x18x18x4xbf16, #tpu.memory_space<vmem>>, vector<1x16x16x4xbf16>
    %54 = vector.shape_cast %53 : vector<1x16x16x4xbf16> to vector<256x4xbf16>
    %c8 = arith.constant 8 : index
    %c0_73 = arith.constant 0 : index
    %c0_74 = arith.constant 0 : index
    %55 = vector.load %arg2[%c8, %c0_73, %c0_74] : memref<9x4x4xbf16, #tpu.memory_space<vmem>>, vector<1x4x4xbf16>
    %56 = vector.shape_cast %55 : vector<1x4x4xbf16> to vector<4x4xbf16>
    %cst_75 = arith.constant dense<0.000000e+00> : vector<256x4xf32>
    %57 = tpu.matmul %54, %56, %cst_75 {dimension_numbers = #tpu.dot_dimension_numbers<[1], [0], [0], [1], [0, 0, 1, 1], [], []>} : vector<256x4xbf16>, vector<4x4xbf16>, vector<256x4xf32> -> vector<256x4xf32>
    %58 = arith.addf %52, %57 : vector<256x4xf32>
    %c0_76 = arith.constant 0 : index
    %c0_77 = arith.constant 0 : index
    %59 = vector.load %arg3[%c0_76, %c0_77] : memref<1x4xf32, #tpu.memory_space<vmem>>, vector<1x4xf32>
    %60 = vector.broadcast %59 : vector<1x4xf32> to vector<256x4xf32>
    %61 = arith.addf %58, %60 : vector<256x4xf32>
    %cst_78 = arith.constant 0.000000e+00 : f32
    %62 = vector.broadcast %cst_78 : f32 to vector<256x4xf32>
    %63 = arith.maximumf %61, %62 : vector<256x4xf32>
    %64 = arith.truncf %63 : vector<256x4xf32> to vector<256x4xbf16>
    %cst_79 = arith.constant 0.000000e+00 : bf16
    %65 = vector.broadcast %cst_79 : bf16 to vector<1x18x18x4xbf16>
    %c0_80 = arith.constant 0 : index
    %c0_81 = arith.constant 0 : index
    %c0_82 = arith.constant 0 : index
    %c0_83 = arith.constant 0 : index
    %66 = vector.load %arg8[%c0_80, %c0_81, %c0_82, %c0_83] : memref<1x18x18x4xbf16, #tpu.memory_space<vmem>>, vector<1x18x18x4xbf16>
    tpu.vector_store %arg8[%c0_80, %c0_81, %c0_82, %c0_83], %65 {strides = array<i32>} : memref<1x18x18x4xbf16, #tpu.memory_space<vmem>>, vector<1x18x18x4xbf16>,
    %67 = vector.shape_cast %64 : vector<256x4xbf16> to vector<1x16x16x4xbf16>
    %c0_84 = arith.constant 0 : index
    %c1_85 = arith.constant 1 : index
    %c1_86 = arith.constant 1 : index
    %c0_87 = arith.constant 0 : index
    %68 = vector.load %arg8[%c0_84, %c1_85, %c1_86, %c0_87] : memref<1x18x18x4xbf16, #tpu.memory_space<vmem>>, vector<1x16x16x4xbf16>
    tpu.vector_store %arg8[%c0_84, %c1_85, %c1_86, %c0_87], %67 {strides = array<i32>} : memref<1x18x18x4xbf16, #tpu.memory_space<vmem>>, vector<1x16x16x4xbf16>,
    %cst_88 = arith.constant 0.000000e+00 : f32
    %69 = vector.broadcast %cst_88 : f32 to vector<256x4xf32>
    %c0_89 = arith.constant 0 : index
    %c0_90 = arith.constant 0 : index
    %c0_91 = arith.constant 0 : index
    %c0_92 = arith.constant 0 : index
    %70 = vector.load %arg8[%c0_89, %c0_90, %c0_91, %c0_92] : memref<1x18x18x4xbf16, #tpu.memory_space<vmem>>, vector<1x16x16x4xbf16>
    %71 = vector.shape_cast %70 : vector<1x16x16x4xbf16> to vector<256x4xbf16>
    %c0_93 = arith.constant 0 : index
    %c0_94 = arith.constant 0 : index
    %c0_95 = arith.constant 0 : index
    %72 = vector.load %arg4[%c0_93, %c0_94, %c0_95] : memref<9x4x4xbf16, #tpu.memory_space<vmem>>, vector<1x4x4xbf16>
    %73 = vector.shape_cast %72 : vector<1x4x4xbf16> to vector<4x4xbf16>
    %cst_96 = arith.constant dense<0.000000e+00> : vector<256x4xf32>
    %74 = tpu.matmul %71, %73, %cst_96 {dimension_numbers = #tpu.dot_dimension_numbers<[1], [0], [0], [1], [0, 0, 1, 1], [], []>} : vector<256x4xbf16>, vector<4x4xbf16>, vector<256x4xf32> -> vector<256x4xf32>
    %75 = arith.addf %69, %74 : vector<256x4xf32>
    %c0_97 = arith.constant 0 : index
    %c0_98 = arith.constant 0 : index
    %c1_99 = arith.constant 1 : index
    %c0_100 = arith.constant 0 : index
    %76 = vector.load %arg8[%c0_97, %c0_98, %c1_99, %c0_100] : memref<1x18x18x4xbf16, #tpu.memory_space<vmem>>, vector<1x16x16x4xbf16>
    %77 = vector.shape_cast %76 : vector<1x16x16x4xbf16> to vector<256x4xbf16>
    %c1_101 = arith.constant 1 : index
    %c0_102 = arith.constant 0 : index
    %c0_103 = arith.constant 0 : index
    %78 = vector.load %arg4[%c1_101, %c0_102, %c0_103] : memref<9x4x4xbf16, #tpu.memory_space<vmem>>, vector<1x4x4xbf16>
    %79 = vector.shape_cast %78 : vector<1x4x4xbf16> to vector<4x4xbf16>
    %cst_104 = arith.constant dense<0.000000e+00> : vector<256x4xf32>
    %80 = tpu.matmul %77, %79, %cst_104 {dimension_numbers = #tpu.dot_dimension_numbers<[1], [0], [0], [1], [0, 0, 1, 1], [], []>} : vector<256x4xbf16>, vector<4x4xbf16>, vector<256x4xf32> -> vector<256x4xf32>
    %81 = arith.addf %75, %80 : vector<256x4xf32>
    %c0_105 = arith.constant 0 : index
    %c0_106 = arith.constant 0 : index
    %c2_107 = arith.constant 2 : index
    %c0_108 = arith.constant 0 : index
    %82 = vector.load %arg8[%c0_105, %c0_106, %c2_107, %c0_108] : memref<1x18x18x4xbf16, #tpu.memory_space<vmem>>, vector<1x16x16x4xbf16>
    %83 = vector.shape_cast %82 : vector<1x16x16x4xbf16> to vector<256x4xbf16>
    %c2_109 = arith.constant 2 : index
    %c0_110 = arith.constant 0 : index
    %c0_111 = arith.constant 0 : index
    %84 = vector.load %arg4[%c2_109, %c0_110, %c0_111] : memref<9x4x4xbf16, #tpu.memory_space<vmem>>, vector<1x4x4xbf16>
    %85 = vector.shape_cast %84 : vector<1x4x4xbf16> to vector<4x4xbf16>
    %cst_112 = arith.constant dense<0.000000e+00> : vector<256x4xf32>
    %86 = tpu.matmul %83, %85, %cst_112 {dimension_numbers = #tpu.dot_dimension_numbers<[1], [0], [0], [1], [0, 0, 1, 1], [], []>} : vector<256x4xbf16>, vector<4x4xbf16>, vector<256x4xf32> -> vector<256x4xf32>
    %87 = arith.addf %81, %86 : vector<256x4xf32>
    %c0_113 = arith.constant 0 : index
    %c1_114 = arith.constant 1 : index
    %c0_115 = arith.constant 0 : index
    %c0_116 = arith.constant 0 : index
    %88 = vector.load %arg8[%c0_113, %c1_114, %c0_115, %c0_116] : memref<1x18x18x4xbf16, #tpu.memory_space<vmem>>, vector<1x16x16x4xbf16>
    %89 = vector.shape_cast %88 : vector<1x16x16x4xbf16> to vector<256x4xbf16>
    %c3_117 = arith.constant 3 : index
    %c0_118 = arith.constant 0 : index
    %c0_119 = arith.constant 0 : index
    %90 = vector.load %arg4[%c3_117, %c0_118, %c0_119] : memref<9x4x4xbf16, #tpu.memory_space<vmem>>, vector<1x4x4xbf16>
    %91 = vector.shape_cast %90 : vector<1x4x4xbf16> to vector<4x4xbf16>
    %cst_120 = arith.constant dense<0.000000e+00> : vector<256x4xf32>
    %92 = tpu.matmul %89, %91, %cst_120 {dimension_numbers = #tpu.dot_dimension_numbers<[1], [0], [0], [1], [0, 0, 1, 1], [], []>} : vector<256x4xbf16>, vector<4x4xbf16>, vector<256x4xf32> -> vector<256x4xf32>
    %93 = arith.addf %87, %92 : vector<256x4xf32>
    %c0_121 = arith.constant 0 : index
    %c1_122 = arith.constant 1 : index
    %c1_123 = arith.constant 1 : index
    %c0_124 = arith.constant 0 : index
    %94 = vector.load %arg8[%c0_121, %c1_122, %c1_123, %c0_124] : memref<1x18x18x4xbf16, #tpu.memory_space<vmem>>, vector<1x16x16x4xbf16>
    %95 = vector.shape_cast %94 : vector<1x16x16x4xbf16> to vector<256x4xbf16>
    %c4_125 = arith.constant 4 : index
    %c0_126 = arith.constant 0 : index
    %c0_127 = arith.constant 0 : index
    %96 = vector.load %arg4[%c4_125, %c0_126, %c0_127] : memref<9x4x4xbf16, #tpu.memory_space<vmem>>, vector<1x4x4xbf16>
    %97 = vector.shape_cast %96 : vector<1x4x4xbf16> to vector<4x4xbf16>
    %cst_128 = arith.constant dense<0.000000e+00> : vector<256x4xf32>
    %98 = tpu.matmul %95, %97, %cst_128 {dimension_numbers = #tpu.dot_dimension_numbers<[1], [0], [0], [1], [0, 0, 1, 1], [], []>} : vector<256x4xbf16>, vector<4x4xbf16>, vector<256x4xf32> -> vector<256x4xf32>
    %99 = arith.addf %93, %98 : vector<256x4xf32>
    %c0_129 = arith.constant 0 : index
    %c1_130 = arith.constant 1 : index
    %c2_131 = arith.constant 2 : index
    %c0_132 = arith.constant 0 : index
    %100 = vector.load %arg8[%c0_129, %c1_130, %c2_131, %c0_132] : memref<1x18x18x4xbf16, #tpu.memory_space<vmem>>, vector<1x16x16x4xbf16>
    %101 = vector.shape_cast %100 : vector<1x16x16x4xbf16> to vector<256x4xbf16>
    %c5_133 = arith.constant 5 : index
    %c0_134 = arith.constant 0 : index
    %c0_135 = arith.constant 0 : index
    %102 = vector.load %arg4[%c5_133, %c0_134, %c0_135] : memref<9x4x4xbf16, #tpu.memory_space<vmem>>, vector<1x4x4xbf16>
    %103 = vector.shape_cast %102 : vector<1x4x4xbf16> to vector<4x4xbf16>
    %cst_136 = arith.constant dense<0.000000e+00> : vector<256x4xf32>
    %104 = tpu.matmul %101, %103, %cst_136 {dimension_numbers = #tpu.dot_dimension_numbers<[1], [0], [0], [1], [0, 0, 1, 1], [], []>} : vector<256x4xbf16>, vector<4x4xbf16>, vector<256x4xf32> -> vector<256x4xf32>
    %105 = arith.addf %99, %104 : vector<256x4xf32>
    %c0_137 = arith.constant 0 : index
    %c2_138 = arith.constant 2 : index
    %c0_139 = arith.constant 0 : index
    %c0_140 = arith.constant 0 : index
    %106 = vector.load %arg8[%c0_137, %c2_138, %c0_139, %c0_140] : memref<1x18x18x4xbf16, #tpu.memory_space<vmem>>, vector<1x16x16x4xbf16>
    %107 = vector.shape_cast %106 : vector<1x16x16x4xbf16> to vector<256x4xbf16>
    %c6_141 = arith.constant 6 : index
    %c0_142 = arith.constant 0 : index
    %c0_143 = arith.constant 0 : index
    %108 = vector.load %arg4[%c6_141, %c0_142, %c0_143] : memref<9x4x4xbf16, #tpu.memory_space<vmem>>, vector<1x4x4xbf16>
    %109 = vector.shape_cast %108 : vector<1x4x4xbf16> to vector<4x4xbf16>
    %cst_144 = arith.constant dense<0.000000e+00> : vector<256x4xf32>
    %110 = tpu.matmul %107, %109, %cst_144 {dimension_numbers = #tpu.dot_dimension_numbers<[1], [0], [0], [1], [0, 0, 1, 1], [], []>} : vector<256x4xbf16>, vector<4x4xbf16>, vector<256x4xf32> -> vector<256x4xf32>
    %111 = arith.addf %105, %110 : vector<256x4xf32>
    %c0_145 = arith.constant 0 : index
    %c2_146 = arith.constant 2 : index
    %c1_147 = arith.constant 1 : index
    %c0_148 = arith.constant 0 : index
    %112 = vector.load %arg8[%c0_145, %c2_146, %c1_147, %c0_148] : memref<1x18x18x4xbf16, #tpu.memory_space<vmem>>, vector<1x16x16x4xbf16>
    %113 = vector.shape_cast %112 : vector<1x16x16x4xbf16> to vector<256x4xbf16>
    %c7_149 = arith.constant 7 : index
    %c0_150 = arith.constant 0 : index
    %c0_151 = arith.constant 0 : index
    %114 = vector.load %arg4[%c7_149, %c0_150, %c0_151] : memref<9x4x4xbf16, #tpu.memory_space<vmem>>, vector<1x4x4xbf16>
    %115 = vector.shape_cast %114 : vector<1x4x4xbf16> to vector<4x4xbf16>
    %cst_152 = arith.constant dense<0.000000e+00> : vector<256x4xf32>
    %116 = tpu.matmul %113, %115, %cst_152 {dimension_numbers = #tpu.dot_dimension_numbers<[1], [0], [0], [1], [0, 0, 1, 1], [], []>} : vector<256x4xbf16>, vector<4x4xbf16>, vector<256x4xf32> -> vector<256x4xf32>
    %117 = arith.addf %111, %116 : vector<256x4xf32>
    %c0_153 = arith.constant 0 : index
    %c2_154 = arith.constant 2 : index
    %c2_155 = arith.constant 2 : index
    %c0_156 = arith.constant 0 : index
    %118 = vector.load %arg8[%c0_153, %c2_154, %c2_155, %c0_156] : memref<1x18x18x4xbf16, #tpu.memory_space<vmem>>, vector<1x16x16x4xbf16>
    %119 = vector.shape_cast %118 : vector<1x16x16x4xbf16> to vector<256x4xbf16>
    %c8_157 = arith.constant 8 : index
    %c0_158 = arith.constant 0 : index
    %c0_159 = arith.constant 0 : index
    %120 = vector.load %arg4[%c8_157, %c0_158, %c0_159] : memref<9x4x4xbf16, #tpu.memory_space<vmem>>, vector<1x4x4xbf16>
    %121 = vector.shape_cast %120 : vector<1x4x4xbf16> to vector<4x4xbf16>
    %cst_160 = arith.constant dense<0.000000e+00> : vector<256x4xf32>
    %122 = tpu.matmul %119, %121, %cst_160 {dimension_numbers = #tpu.dot_dimension_numbers<[1], [0], [0], [1], [0, 0, 1, 1], [], []>} : vector<256x4xbf16>, vector<4x4xbf16>, vector<256x4xf32> -> vector<256x4xf32>
    %123 = arith.addf %117, %122 : vector<256x4xf32>
    %c0_161 = arith.constant 0 : index
    %c0_162 = arith.constant 0 : index
    %124 = vector.load %arg5[%c0_161, %c0_162] : memref<1x4xf32, #tpu.memory_space<vmem>>, vector<1x4xf32>
    %125 = vector.broadcast %124 : vector<1x4xf32> to vector<256x4xf32>
    %126 = arith.addf %123, %125 : vector<256x4xf32>
    %127 = vector.shape_cast %0 : vector<1x16x16x4xbf16> to vector<256x4xbf16>
    %128 = arith.extf %127 : vector<256x4xbf16> to vector<256x4xf32>
    %129 = arith.addf %126, %128 : vector<256x4xf32>
    %cst_163 = arith.constant 0.000000e+00 : f32
    %130 = vector.broadcast %cst_163 : f32 to vector<256x4xf32>
    %131 = arith.maximumf %129, %130 : vector<256x4xf32>
    %132 = vector.shape_cast %131 : vector<256x4xf32> to vector<1x16x16x4xf32>
    %c0_164 = arith.constant 0 : index
    %c0_165 = arith.constant 0 : index
    %c0_166 = arith.constant 0 : index
    %c0_167 = arith.constant 0 : index
    %133 = vector.load %arg6[%c0_164, %c0_165, %c0_166, %c0_167] : memref<1x16x16x4xf32, #tpu.memory_space<vmem>>, vector<1x16x16x4xf32>
    tpu.vector_store %arg6[%c0_164, %c0_165, %c0_166, %c0_167], %132 {strides = array<i32>} : memref<1x16x16x4xf32, #tpu.memory_space<vmem>>, vector<1x16x16x4xf32>,
    return
  }
  func.func @transform_0(%arg0: i32) -> (i32, i32, i32, i32) {
    %c0_i32 = arith.constant 0 : i32
    %c0_i32_0 = arith.constant 0 : i32
    %c0_i32_1 = arith.constant 0 : i32
    %c0_i32_2 = arith.constant 0 : i32
    return %arg0, %c0_i32, %c0_i32_0, %c0_i32_1 : i32, i32, i32, i32
  }
  func.func @transform_1(%arg0: i32) -> (i32, i32, i32) {
    %c0_i32 = arith.constant 0 : i32
    %c0_i32_0 = arith.constant 0 : i32
    %c0_i32_1 = arith.constant 0 : i32
    %c0_i32_2 = arith.constant 0 : i32
    return %c0_i32, %c0_i32_0, %c0_i32_1 : i32, i32, i32
  }
  func.func @transform_2(%arg0: i32) -> (i32, i32) {
    %c0_i32 = arith.constant 0 : i32
    %c0_i32_0 = arith.constant 0 : i32
    %c0_i32_1 = arith.constant 0 : i32
    return %c0_i32, %c0_i32_0 : i32, i32
  }
  func.func @transform_3(%arg0: i32) -> (i32, i32, i32) {
    %c0_i32 = arith.constant 0 : i32
    %c0_i32_0 = arith.constant 0 : i32
    %c0_i32_1 = arith.constant 0 : i32
    %c0_i32_2 = arith.constant 0 : i32
    return %c0_i32, %c0_i32_0, %c0_i32_1 : i32, i32, i32
  }
  func.func @transform_4(%arg0: i32) -> (i32, i32) {
    %c0_i32 = arith.constant 0 : i32
    %c0_i32_0 = arith.constant 0 : i32
    %c0_i32_1 = arith.constant 0 : i32
    return %c0_i32, %c0_i32_0 : i32, i32
  }
  func.func @transform_5(%arg0: i32) -> (i32, i32, i32, i32) {
    %c0_i32 = arith.constant 0 : i32
    %c0_i32_0 = arith.constant 0 : i32
    %c0_i32_1 = arith.constant 0 : i32
    %c0_i32_2 = arith.constant 0 : i32
    return %arg0, %c0_i32, %c0_i32_0, %c0_i32_1 : i32, i32, i32, i32
  }
}

</mosaic_0001>

<bundles_post_ra>
// kernel: tpu_custom_call.1
= control target key start
LH: loop header
LB: loop body
LE: loop exit
PB: predicated region body
PF: predicated region fallthrough
CT: control target
= control target key end

     0   :  { %s12638_s18 = smov 0   ;;  %s17610_s0 = inlined_call_operand.vmem [shape: bf16[2,16,16,4], index: 0, kind: input, shape index: {}]   ;;  %s17611_s1 = inlined_call_operand.vmem [shape: bf16[9,4,4], index: 1, kind: input, shape index: {}]   ;;  %s17612_s2 = inlined_call_operand.vmem [shape: f32[1,4], index: 2, kind: input, shape index: {}]   ;;  %s17613_s3 = inlined_call_operand.vmem [shape: bf16[9,4,4], index: 3, kind: input, shape index: {}]   ;;  %s17614_s4 = inlined_call_operand.vmem [shape: f32[1,4], index: 4, kind: input, shape index: {}]   ;;  %s17615_s5 = inlined_call_operand.vmem [shape: f32[2,16,16,4], index: 5, kind: output, shape index: {}]  }
   0x1 LB: > { %s10739_s19 = sadd.s32 4294967295, %s12605_s18   ;;  %p10743_p0 = scmp.ge.s32.totalorder %s12605_s18, 1  ;;  %s12605_s18 = sphi %s12638_s18, %s15_s18  }
   0x2   : > { %p187_p1 = scmp.lt.s32.totalorder %s12605_s18, 3 }
   0x4   : > { %p188_p2 = pnand %p10743_p0, %p187_p1 }
   0x6   : > { %191 = sbr.rel (%p188_p2) target bundleno = 1225 (0x4c9), region = 40 }
   0xb   : > { %v10748_v0 = vld [vmem:[%s17611_s1 + $0x2] sm:$0x3]  ;;  %vm1290_vm0 = vcmask 1041408   ;;  %v787_v1 = vld [vmem:[%s17611_s1] sm:$0x3]  ;;  %vm258_vm1 = vcmask 27648  }
   0xc   : > { %12424 = vmatprep.subr.msk.bf16.mxu0 %vm1290_vm0, %v10748_v0  ;;  %v1292_v2 = vsel %vm1290_vm0, %v10748_v0, 0  ;;  %12425 = vmatprep.subr.msk.bf16.mxu1 %vm1290_vm0, %v787_v1  ;;  %v1584_v3 = vsel %vm1290_vm0, %v787_v1, 0  ;;  %vm261_vm2 = vcmask 24576   ;;  %v12659_v4 = vld [vmem:[%s17611_s1 + $0x4] sm:$0x3]  ;;  %v12607_v5 = vmov 0  }
   0xd   : > { %11813 = vmatpush3.bf16.msra.mxu0 %v1292_v2  ;;  %11847 = vmatpush3.bf16.msra.mxu1 %v1584_v3  ;;  %259 = vst.msk [vmem:[#allocation2] sm:$0xf] %vm258_vm1, %v12607_v5  ;;  %260 = vst.msk [vmem:[#allocation2 + $0x4] sm:$0xf] %vm258_vm1, %v12607_v5  ;;  %p215_p3 = scmp.lt.s32.totalorder %s10739_s19, 1  ;;  %vm1241_vm5 = vcmask 31744  }
   0xe   : > { %262 = vst.msk [vmem:[#allocation2 + $0x8] sm:$0x1] %vm261_vm2, %v12607_v5  ;;  %265 = vst.msk [vmem:[#allocation2 + $0x14] sm:$0x1] %vm261_vm2, %v12607_v5  ;;  %12426 = vmatprep.subr.msk.bf16.mxu0 %vm1290_vm0, %v12659_v4  ;;  %vm804_vm3 = vsmask.f32 3328 }
   0xf   : > { %263 = vst.msk [vmem:[#allocation2 + $0xc] sm:$0xf] %vm258_vm1, %v12607_v5  ;;  %264 = vst.msk [vmem:[#allocation2 + $0x10] sm:$0xf] %vm258_vm1, %v12607_v5  ;;  %s18020_s19 = smov (!%p215_p3, %s10739_s19), 1  ;;  %v12895_v18 = vsel %vm1290_vm0, %v12659_v4, 0 }
  0x10   : > { %266 = vst.msk [vmem:[#allocation2 + $0x18] sm:$0xf] %vm258_vm1, %v12607_v5  ;;  %267 = vst.msk [vmem:[#allocation2 + $0x1c] sm:$0xf] %vm258_vm1, %v12607_v5  ;;  %s11472_s26 = sshll.u32 %s18020_s19, 7  ;;  %v17646_v24 = vmov 0 }
  0x11   : > { %268 = vst.msk [vmem:[#allocation2 + $0x20] sm:$0x1] %vm261_vm2, %v12607_v5  ;;  %271 = vst.msk [vmem:[#allocation2 + $0x2c] sm:$0x1] %vm261_vm2, %v12607_v5  ;;  %vm805_vm4 = vsmask.f32 7440  ;;  %s12889_s29 = scalar_lea.vmem %s17610_s0, %s11472_s26 }
  0x12   : > { %269 = vst.msk [vmem:[#allocation2 + $0x24] sm:$0xf] %vm258_vm1, %v12607_v5  ;;  %270 = vst.msk [vmem:[#allocation2 + $0x28] sm:$0xf] %vm258_vm1, %v12607_v5  ;;  %vm314_vm6 = vsmask.f32 256 }
  0x13   : > { %272 = vst.msk [vmem:[#allocation2 + $0x30] sm:$0xf] %vm258_vm1, %v12607_v5  ;;  %273 = vst.msk [vmem:[#allocation2 + $0x34] sm:$0xf] %vm258_vm1, %v12607_v5  ;;  %v226_v6 = vld [vmem:[%s12889_s29] sm:$0xf] }
  0x14   : > { %274 = vst.msk [vmem:[#allocation2 + $0x38] sm:$0x1] %vm261_vm2, %v12607_v5  ;;  %277 = vst.msk [vmem:[#allocation2 + $0x44] sm:$0x1] %vm261_vm2, %v12607_v5  ;;  %vm315_vm7 = vsmask.f32 4368 }
  0x15   : > { %275 = vst.msk [vmem:[#allocation2 + $0x3c] sm:$0xf] %vm258_vm1, %v12607_v5  ;;  %276 = vst.msk [vmem:[#allocation2 + $0x40] sm:$0xf] %vm258_vm1, %v12607_v5  ;;  %vm639_vm8 = vsmask.f32 7938 }
  0x16   : > { %278 = vst.msk [vmem:[#allocation2 + $0x48] sm:$0xf] %vm258_vm1, %v12607_v5  ;;  %279 = vst.msk [vmem:[#allocation2 + $0x4c] sm:$0xf] %vm258_vm1, %v12607_v5  ;;  %v755_v7 = vld [vmem:[#allocation2] sm:$0xf] }
  0x17   : > { %280 = vst.msk [vmem:[#allocation2 + $0x50] sm:$0x1] %vm261_vm2, %v12607_v5  ;;  %283 = vst.msk [vmem:[#allocation2 + $0x5c] sm:$0x1] %vm261_vm2, %v12607_v5  ;;  %v756_v8 = vld [vmem:[#allocation2 + $0x4] sm:$0xf] }
  0x18   : > { %281 = vst.msk [vmem:[#allocation2 + $0x54] sm:$0xf] %vm258_vm1, %v12607_v5  ;;  %282 = vst.msk [vmem:[#allocation2 + $0x58] sm:$0xf] %vm258_vm1, %v12607_v5  ;;  %v788_v9 = vld [vmem:[#allocation2 + $0x8] sm:$0x1]  ;;  %v10781_v16 = vcombine.low %v755_v7, %v756_v8 }
  0x19   : > { %284 = vst.msk [vmem:[#allocation2 + $0x60] sm:$0xf] %vm258_vm1, %v12607_v5  ;;  %285 = vst.msk [vmem:[#allocation2 + $0x64] sm:$0xf] %vm258_vm1, %v12607_v5  ;;  %v808_v10 = vshrl.u32 %v755_v7, 16  ;;  %v811_v11 = vshll.u32 %v755_v7, 16 }
  0x1a   : > { %286 = vst.msk [vmem:[#allocation2 + $0x68] sm:$0x1] %vm261_vm2, %v12607_v5  ;;  %289 = vst.msk [vmem:[#allocation2 + $0x74] sm:$0x1] %vm261_vm2, %v12607_v5  ;;  %v817_v12 = vshll.u32 %v756_v8, 16  ;;  %v821_v13 = vshrl.u32 %v756_v8, 16  ;;  %11848 = vmatprep.mubr.msk.bf16.mxu1 %vm1241_vm5, %v10781_v16 }
  0x1b   : > { %287 = vst.msk [vmem:[#allocation2 + $0x6c] sm:$0xf] %vm258_vm1, %v12607_v5  ;;  %288 = vst.msk [vmem:[#allocation2 + $0x70] sm:$0xf] %vm258_vm1, %v12607_v5  ;;  %v227_v14 = vld [vmem:[%s12889_s29 + $0x4] sm:$0xf] }
  0x1c   : > { %290 = vst.msk [vmem:[#allocation2 + $0x78] sm:$0xf] %vm258_vm1, %v12607_v5  ;;  %291 = vst.msk [vmem:[#allocation2 + $0x7c] sm:$0xf] %vm258_vm1, %v12607_v5  ;;  %v827_v15 = vshll.u32 %v788_v9, 16  ;;  %v318_v17 = vshrl.u32 %v226_v6, 16 }
  0x1d   : > { %292 = vst.msk [vmem:[#allocation2 + $0x80] sm:$0x1] %vm261_vm2, %v12607_v5  ;;  %295 = vst.msk [vmem:[#allocation2 + $0x8c] sm:$0x1] %vm261_vm2, %v12607_v5  ;;  %v228_v19 = vld [vmem:[%s12889_s29 + $0x8] sm:$0xf] }
  0x1e   : > { %293 = vst.msk [vmem:[#allocation2 + $0x84] sm:$0xf] %vm258_vm1, %v12607_v5  ;;  %294 = vst.msk [vmem:[#allocation2 + $0x88] sm:$0xf] %vm258_vm1, %v12607_v5  ;;  %v810_v20 = vrot.slane %v808_v10, 4  ;;  %v813_v21 = vrot.slane %v811_v11, 5 }
  0x1f   : > { %296 = vst.msk [vmem:[#allocation2 + $0x90] sm:$0xf] %vm258_vm1, %v12607_v5  ;;  %297 = vst.msk [vmem:[#allocation2 + $0x94] sm:$0xf] %vm258_vm1, %v12607_v5  ;;  %v819_v22 = vrot.slane %v817_v12, 5  ;;  %v823_v23 = vrot.slane %v821_v13, 4 }
  0x20   : > { %298 = vst.msk [vmem:[#allocation2 + $0x98] sm:$0x1] %vm261_vm2, %v12607_v5  ;;  %301 = vst.msk [vmem:[#allocation2 + $0xa4] sm:$0x1] %vm261_vm2, %v12607_v5  ;;  %v829_v25 = vrot.slane %v827_v15, 5  ;;  %v320_v26 = vrot.slane %v318_v17, 7  ;;  %v814_v30 = vor.u32 %v813_v21, %v810_v20 }
  0x21   : > { %299 = vst.msk [vmem:[#allocation2 + $0x9c] sm:$0xf] %vm258_vm1, %v12607_v5  ;;  %300 = vst.msk [vmem:[#allocation2 + $0xa0] sm:$0xf] %vm258_vm1, %v12607_v5  ;;  %v321_v27 = vshll.u32 %v226_v6, 16  ;;  %v326_v28 = vshrl.u32 %v227_v14, 16  ;;  %v824_v31 = vor.u32 %v823_v23, %v819_v22 }
  0x22   : > { %302 = vst.msk [vmem:[#allocation2 + $0xa8] sm:$0xf] %vm258_vm1, %v12607_v5  ;;  %303 = vst.msk [vmem:[#allocation2 + $0xac] sm:$0xf] %vm258_vm1, %v12607_v5  ;;  %v229_v29 = vld [vmem:[%s12889_s29 + $0xc] sm:$0xf] }
  0x23   : > { %304 = vst.msk [vmem:[#allocation2 + $0xb0] sm:$0x1] %vm261_vm2, %v12607_v5  ;;  %307 = vst.msk [vmem:[#allocation2 + $0xbc] sm:$0x1] %vm261_vm2, %v12607_v5  ;;  %v329_v32 = vshll.u32 %v227_v14, 16  ;;  %v17649_v33 = vmov 0  ;;  %v323_v37 = vor.u32 %v321_v27, %v320_v26 }
  0x24   : > { %305 = vst.msk [vmem:[#allocation2 + $0xb4] sm:$0xf] %vm258_vm1, %v12607_v5  ;;  %306 = vst.msk [vmem:[#allocation2 + $0xb8] sm:$0xf] %vm258_vm1, %v12607_v5  ;;  %v641_v34 = vld [vmem:[#allocation2 + $0xc] sm:$0xf] }
  0x25   : > { %308 = vst.msk [vmem:[#allocation2 + $0xc0] sm:$0xf] %vm258_vm1, %v12607_v5  ;;  %309 = vst.msk [vmem:[#allocation2 + $0xc4] sm:$0xf] %vm258_vm1, %v12607_v5  ;;  %v335_v35 = vshrl.u32 %v228_v19, 16  ;;  %v17652_v36 = vmov 0 }
  0x26   : > { %310 = vst.msk [vmem:[#allocation2 + $0xc8] sm:$0x1] %vm261_vm2, %v12607_v5  ;;  %313 = vst.msk [vmem:[#allocation2 + $0xd4] sm:$0x1] %vm261_vm2, %v12607_v5  ;;  %v324_v38 = vrot.slane %v320_v26, 4  ;;  %v328_v39 = vrot.slane %v326_v28, 7 }
  0x27   : > { %311 = vst.msk [vmem:[#allocation2 + $0xcc] sm:$0xf] %vm258_vm1, %v12607_v5  ;;  %312 = vst.msk [vmem:[#allocation2 + $0xd0] sm:$0xf] %vm258_vm1, %v12607_v5  ;;  %v647_v40 = vld [vmem:[#allocation2 + $0x14] sm:$0x1] }
  0x28   : > { %5400 = vst.msk [vmem:[#allocation3] sm:$0xf] %vm258_vm1, %v12607_v5  ;;  %5401 = vst.msk [vmem:[#allocation3 + $0x4] sm:$0xf] %vm258_vm1, %v12607_v5  ;;  %v338_v41 = vshll.u32 %v228_v19, 16  ;;  %v815_v42 = vrot.slane %v814_v30, 4  ;;  %v331_v48 = vor.u32 %v329_v32, %v328_v39 }
  0x29   : > { %5402 = vst.msk [vmem:[#allocation3 + $0x8] sm:$0x1] %vm261_vm2, %v12607_v5  ;;  %5405 = vst.msk [vmem:[#allocation3 + $0x14] sm:$0x1] %vm261_vm2, %v12607_v5  ;;  %v825_v43 = vrot.slane %v824_v31, 4  ;;  %v17655_v44 = vmov 0 }
  0x2a   : > { %5403 = vst.msk [vmem:[#allocation3 + $0xc] sm:$0xf] %vm258_vm1, %v12607_v5  ;;  %5404 = vst.msk [vmem:[#allocation3 + $0x10] sm:$0xf] %vm258_vm1, %v12607_v5  ;;  %v337_v45 = vrot.slane %v335_v35, 7  ;;  %v343_v46 = vshrl.u32 %v229_v29, 16 }
  0x2b   : > { %5406 = vst.msk [vmem:[#allocation3 + $0x18] sm:$0xf] %vm258_vm1, %v12607_v5  ;;  %5407 = vst.msk [vmem:[#allocation3 + $0x1c] sm:$0xf] %vm258_vm1, %v12607_v5  ;;  %v650_v47 = vld [vmem:[#allocation2 + $0x18] sm:$0xf] }
  0x2c   : > { %5408 = vst.msk [vmem:[#allocation3 + $0x20] sm:$0x1] %vm261_vm2, %v12607_v5  ;;  %5411 = vst.msk [vmem:[#allocation3 + $0x2c] sm:$0x1] %vm261_vm2, %v12607_v5  ;;  %v333_v49 = vrot.slane %v328_v39, 4  ;;  %v346_v51 = vshll.u32 %v229_v29, 16  ;;  %v340_v56 = vor.u32 %v338_v41, %v337_v45 }
  0x2d   : > { %5409 = vst.msk [vmem:[#allocation3 + $0x24] sm:$0xf] %vm258_vm1, %v12607_v5  ;;  %5410 = vst.msk [vmem:[#allocation3 + $0x28] sm:$0xf] %vm258_vm1, %v12607_v5  ;;  %v230_v52 = vld [vmem:[%s12889_s29 + $0x10] sm:$0xf] }
  0x2e   : > { %5412 = vst.msk [vmem:[#allocation3 + $0x30] sm:$0xf] %vm258_vm1, %v12607_v5  ;;  %5413 = vst.msk [vmem:[#allocation3 + $0x34] sm:$0xf] %vm258_vm1, %v12607_v5  ;;  %v231_v53 = vld [vmem:[%s12889_s29 + $0x14] sm:$0xf] }
  0x2f   : > { %5414 = vst.msk [vmem:[#allocation3 + $0x38] sm:$0x1] %vm261_vm2, %v12607_v5  ;;  %5417 = vst.msk [vmem:[#allocation3 + $0x44] sm:$0x1] %vm261_vm2, %v12607_v5  ;;  %v341_v57 = vrot.slane %v337_v45, 4  ;;  %v345_v62 = vrot.slane %v343_v46, 7 }
  0x30   : > { %5415 = vst.msk [vmem:[#allocation3 + $0x3c] sm:$0xf] %vm258_vm1, %v12607_v5  ;;  %5416 = vst.msk [vmem:[#allocation3 + $0x40] sm:$0xf] %vm258_vm1, %v12607_v5  ;;  %v232_v58 = vld [vmem:[%s12889_s29 + $0x18] sm:$0xf] }
  0x31   : > { %5418 = vst.msk [vmem:[#allocation3 + $0x48] sm:$0xf] %vm258_vm1, %v12607_v5  ;;  %5419 = vst.msk [vmem:[#allocation3 + $0x4c] sm:$0xf] %vm258_vm1, %v12607_v5  ;;  %v233_v63 = vld [vmem:[%s12889_s29 + $0x1c] sm:$0xf] }
  0x32   : > { %5420 = vst.msk [vmem:[#allocation3 + $0x50] sm:$0x1] %vm261_vm2, %v12607_v5  ;;  %5423 = vst.msk [vmem:[#allocation3 + $0x5c] sm:$0x1] %vm261_vm2, %v12607_v5  ;;  %v654_v1 = vld [vmem:[#allocation2 + $0x20] sm:$0x1] }
  0x33   : > { %5421 = vst.msk [vmem:[#allocation3 + $0x54] sm:$0xf] %vm258_vm1, %v12607_v5  ;;  %5422 = vst.msk [vmem:[#allocation3 + $0x58] sm:$0xf] %vm258_vm1, %v12607_v5  ;;  %v352_v2 = vshrl.u32 %v230_v52, 16  ;;  %v355_v3 = vshll.u32 %v230_v52, 16 }
  0x34   : > { %5424 = vst.msk [vmem:[#allocation3 + $0x60] sm:$0xf] %vm258_vm1, %v12607_v5  ;;  %5425 = vst.msk [vmem:[#allocation3 + $0x64] sm:$0xf] %vm258_vm1, %v12607_v5  ;;  %v360_v4 = vshrl.u32 %v231_v53, 16  ;;  %v350_v6 = vrot.slane %v345_v62, 4 }
  0x35   : > { %5426 = vst.msk [vmem:[#allocation3 + $0x68] sm:$0x1] %vm261_vm2, %v12607_v5  ;;  %5429 = vst.msk [vmem:[#allocation3 + $0x74] sm:$0x1] %vm261_vm2, %v12607_v5  ;;  %v363_v7 = vshll.u32 %v231_v53, 16  ;;  %v369_v8 = vshrl.u32 %v232_v58, 16 }
  0x36   : > { %5427 = vst.msk [vmem:[#allocation3 + $0x6c] sm:$0xf] %vm258_vm1, %v12607_v5  ;;  %5428 = vst.msk [vmem:[#allocation3 + $0x70] sm:$0xf] %vm258_vm1, %v12607_v5  ;;  %v354_v9 = vrot.slane %v352_v2, 7  ;;  %v362_v10 = vrot.slane %v360_v4, 7 }
  0x37   : > { %5430 = vst.msk [vmem:[#allocation3 + $0x78] sm:$0xf] %vm258_vm1, %v12607_v5  ;;  %5431 = vst.msk [vmem:[#allocation3 + $0x7c] sm:$0xf] %vm258_vm1, %v12607_v5  ;;  %v372_v11 = vshll.u32 %v232_v58, 16  ;;  %v377_v12 = vshrl.u32 %v233_v63, 16 }
  0x38   : > { %5432 = vst.msk [vmem:[#allocation3 + $0x80] sm:$0x1] %vm261_vm2, %v12607_v5  ;;  %5435 = vst.msk [vmem:[#allocation3 + $0x8c] sm:$0x1] %vm261_vm2, %v12607_v5  ;;  %v12943_v13 = vld [vmem:[%s12889_s29 + $0x20] sm:$0xf]  ;;  %v357_v20 = vor.u32 %v355_v3, %v354_v9 }
  0x39   : > { %5433 = vst.msk [vmem:[#allocation3 + $0x84] sm:$0xf] %vm258_vm1, %v12607_v5  ;;  %5434 = vst.msk [vmem:[#allocation3 + $0x88] sm:$0xf] %vm258_vm1, %v12607_v5  ;;  %v657_v16 = vld [vmem:[#allocation2 + $0x24] sm:$0xf] }
  0x3a   : > { %5436 = vst.msk [vmem:[#allocation3 + $0x90] sm:$0xf] %vm258_vm1, %v12607_v5  ;;  %5437 = vst.msk [vmem:[#allocation3 + $0x94] sm:$0xf] %vm258_vm1, %v12607_v5  ;;  %v371_v17 = vrot.slane %v369_v8, 7  ;;  %v380_v19 = vshll.u32 %v233_v63, 16 }
  0x3b   : > { %5438 = vst.msk [vmem:[#allocation3 + $0x98] sm:$0x1] %vm261_vm2, %v12607_v5  ;;  %5441 = vst.msk [vmem:[#allocation3 + $0xa4] sm:$0x1] %vm261_vm2, %v12607_v5  ;;  %v358_v21 = vrot.slane %v354_v9, 4  ;;  %v367_v23 = vrot.slane %v362_v10, 4 }
  0x3c   : > { %5439 = vst.msk [vmem:[#allocation3 + $0x9c] sm:$0xf] %vm258_vm1, %v12607_v5  ;;  %5440 = vst.msk [vmem:[#allocation3 + $0xa0] sm:$0xf] %vm258_vm1, %v12607_v5  ;;  %v664_v26 = vld [vmem:[#allocation2 + $0x30] sm:$0xf]  ;;  %v374_v28 = vor.u32 %v372_v11, %v371_v17 }
  0x3d   : > { %5442 = vst.msk [vmem:[#allocation3 + $0xa8] sm:$0xf] %vm258_vm1, %v12607_v5  ;;  %5443 = vst.msk [vmem:[#allocation3 + $0xac] sm:$0xf] %vm258_vm1, %v12607_v5  ;;  %v375_v29 = vrot.slane %v371_v17, 4  ;;  %v379_v30 = vrot.slane %v377_v12, 7 }
  0x3e   : > { %5444 = vst.msk [vmem:[#allocation3 + $0xb0] sm:$0x1] %vm261_vm2, %v12607_v5  ;;  %5447 = vst.msk [vmem:[#allocation3 + $0xbc] sm:$0x1] %vm261_vm2, %v12607_v5  ;;  %v386_v31 = vshrl.u32 %v12943_v13, 16  ;;  %vm1795_vm13 = vcmask 1042432  }
  0x3f   : > { %5445 = vst.msk [vmem:[#allocation3 + $0xb4] sm:$0xf] %vm258_vm1, %v12607_v5  ;;  %5446 = vst.msk [vmem:[#allocation3 + $0xb8] sm:$0xf] %vm258_vm1, %v12607_v5  ;;  %vm1796_vm14 = vcmask 1046532   ;;  %s11473_s27 = sshll.u32 %s18020_s19, 8 }
  0x40   : > { %5448 = vst.msk [vmem:[#allocation3 + $0xc0] sm:$0xf] %vm258_vm1, %v12607_v5  ;;  %5449 = vst.msk [vmem:[#allocation3 + $0xc4] sm:$0xf] %vm258_vm1, %v12607_v5  ;;  %s17368_s30 = scalar_lea.vmem %s17615_s5, %s11473_s27 }
  0x41   : > { %5450 = vst.msk [vmem:[#allocation3 + $0xc8] sm:$0x1] %vm261_vm2, %v12607_v5  ;;  %5453 = vst.msk [vmem:[#allocation3 + $0xd4] sm:$0x1] %vm261_vm2, %v12607_v5 }
  0x42   : > { %5451 = vst.msk [vmem:[#allocation3 + $0xcc] sm:$0xf] %vm258_vm1, %v12607_v5  ;;  %5452 = vst.msk [vmem:[#allocation3 + $0xd0] sm:$0xf] %vm258_vm1, %v12607_v5  ;;  %v348_v5 = vor.u32 %v346_v51, %v345_v62 }
  0x43   : > { %vm12900_vm9 = vmor %vm804_vm3, %vm805_vm4 }
  0x44   : > { %v17647_v24 = vsel %vm12900_vm9, 4294967295, %v17646_v24  ;;  %vm12908_vm10 = vmand %vm258_vm1, %vm639_vm8  ;;  %v820_v54 = vsel %vm12900_vm9, %v815_v42, %v819_v22  ;;  %v830_v55 = vsel %vm12900_vm9, %v825_v43, %v829_v25  ;;  %v365_v22 = vor.u32 %v363_v7, %v362_v10  ;;  %v661_v25 = vld [vmem:[#allocation2 + $0x2c] sm:$0x1] }
  0x45   : > { %17648 = vst [vmem:[#allocation4_spill] sm:$0xff] %v17647_v24  ;;  %v17650_v33 = vsel %vm12908_vm10, 4294967295, %v17649_v33  ;;  %vm12914_vm11 = vmor %vm314_vm6, %vm315_vm7  ;;  %v642_v50 = vsel %vm12908_vm10, %v323_v37, %v641_v34  ;;  %v10749_v59 = vcombine.low %v820_v54, %v830_v55  ;;  %v651_v0 = vsel %vm12908_vm10, %v340_v56, %v650_v47 }
  0x46   : > { %17651 = vst [vmem:[#allocation5_spill] sm:$0xff] %v17650_v33  ;;  %v17653_v36 = vsel %vm12914_vm11, 4294967295, %v17652_v36  ;;  %vm12920_vm12 = vmand %vm261_vm2, %vm314_vm6  ;;  %v332_v60 = vsel %vm12914_vm11, %v324_v38, %v331_v48  ;;  %v349_v14 = vsel %vm12914_vm11, %v341_v57, %v348_v5  ;;  %v366_v35 = vsel %vm12914_vm11, %v358_v21, %v365_v22  ;;  %v668_v38 = vld [vmem:[#allocation2 + $0x38] sm:$0x1] }
  0x47   : > { %17654 = vst [vmem:[#allocation6_spill] sm:$0xff] %v17653_v36  ;;  %v17656_v44 = vsel %vm12920_vm12, 4294967295, %v17655_v44  ;;  %643 = vst [vmem:[#allocation2 + $0xc] sm:$0xf] %v642_v50  ;;  %v648_v61 = vsel %vm12920_vm12, %v333_v49, %v647_v40  ;;  %11814 = vmatprep.mubr.msk.bf16.mxu0 %vm1241_vm5, %v10749_v59  ;;  %v655_v15 = vsel %vm12920_vm12, %v350_v6, %v654_v1  ;;  %v384_v43 = vrot.slane %v379_v30, 4 }
  0x48   : > { %17657 = vst [vmem:[#allocation7_spill] sm:$0xff] %v17656_v44  ;;  %644 = vst.msk [vmem:[#allocation2 + $0x10] sm:$0xf] %vm258_vm1, %v332_v60  ;;  %v658_v37 = vsel %vm12908_vm10, %v357_v20, %v657_v16  ;;  %v662_v41 = vsel %vm12920_vm12, %v367_v23, %v661_v25  ;;  %v382_v42 = vor.u32 %v380_v19, %v379_v30 }
  0x49   : > { %649 = vst [vmem:[#allocation2 + $0x14] sm:$0x1] %v648_v61  ;;  %652 = vst [vmem:[#allocation2 + $0x18] sm:$0xf] %v651_v0  ;;  %v665_v45 = vsel %vm12908_vm10, %v374_v28, %v664_v26  ;;  %v669_v0 = vsel %vm12920_vm12, %v384_v43, %v668_v38 }
  0x4a   : > { %653 = vst.msk [vmem:[#allocation2 + $0x1c] sm:$0xf] %vm258_vm1, %v349_v14  ;;  %656 = vst [vmem:[#allocation2 + $0x20] sm:$0x1] %v655_v15  ;;  %v383_v63 = vsel %vm12914_vm11, %v375_v29, %v382_v42 }
  0x4b   : > { %659 = vst [vmem:[#allocation2 + $0x24] sm:$0xf] %v658_v37  ;;  %660 = vst.msk [vmem:[#allocation2 + $0x28] sm:$0xf] %vm258_vm1, %v366_v35 }
  0x4c   : > { %663 = vst [vmem:[#allocation2 + $0x2c] sm:$0x1] %v662_v41  ;;  %666 = vst [vmem:[#allocation2 + $0x30] sm:$0xf] %v665_v45 }
  0x4d   : > { %667 = vst.msk [vmem:[#allocation2 + $0x34] sm:$0xf] %vm258_vm1, %v383_v63  ;;  %670 = vst [vmem:[#allocation2 + $0x38] sm:$0x1] %v669_v0  ;;  %v235_v0 = vld [vmem:[%s12889_s29 + $0x24] sm:$0xf] }
  0x4e   : > { %v757_v27 = vld [vmem:[#allocation2 + $0xc] sm:$0xf]  ;;  %vm13251_vm15 = vmor %vm1795_vm13, %vm1796_vm14 }
  0x4f   : > { %v832_v32 = vshrl.u32 %v757_v27, 16  ;;  %v835_v34 = vshll.u32 %v757_v27, 16  ;;  %v12955_v39 = vld [vmem:[#allocation2 + $0x10] sm:$0xf] }
  0x50   : > { %v12957_v40 = vld [vmem:[#allocation2 + $0x14] sm:$0x1]  ;;  %v841_v48 = vshll.u32 %v12955_v39, 16  ;;  %v845_v49 = vshrl.u32 %v12955_v39, 16  ;;  %v759_v50 = vld [vmem:[#allocation2 + $0x18] sm:$0xf]  ;;  %v10782_v54 = vcombine.low %v757_v27, %v12955_v39 }
  0x51   : > { %v834_v46 = vrot.slane %v832_v32, 4  ;;  %v837_v47 = vrot.slane %v835_v34, 5  ;;  %v851_v51 = vshll.u32 %v12957_v40, 16  ;;  %v1807_v52 = vrot.slane %v12955_v39, 5  ;;  %v760_v60 = vld [vmem:[#allocation2 + $0x1c] sm:$0xf] }
  0x52   : > { %v1810_v53 = vrot.slane %v12957_v40, 5  ;;  %v843_v56 = vrot.slane %v841_v48, 5  ;;  %v847_v57 = vrot.slane %v845_v49, 4  ;;  %v856_v58 = vshrl.u32 %v759_v50, 16  ;;  %11849 = vmatmul.mubr.msk.bf16.vlgmr.msra.gmra.mxu1 %vm1241_vm5, %v10782_v54  ;;  %v790_v61 = vld [vmem:[#allocation2 + $0x20] sm:$0x1] }
  0x53   : > { %v838_v55 = vor.u32 %v837_v47, %v834_v46  ;;  %v853_v59 = vrot.slane %v851_v51, 5  ;;  %v859_v62 = vshll.u32 %v759_v50, 16  ;;  %v865_v4 = vshll.u32 %v760_v60, 16  ;;  %v761_v12 = vld [vmem:[#allocation2 + $0x24] sm:$0xf] }
  0x54   : > { %v848_v2 = vor.u32 %v847_v57, %v843_v56  ;;  %v858_v3 = vrot.slane %v856_v58, 4  ;;  %v869_v6 = vshrl.u32 %v760_v60, 16  ;;  %v875_v7 = vshll.u32 %v790_v61, 16  ;;  %v762_v14 = vld [vmem:[#allocation2 + $0x28] sm:$0xf] }
  0x55   : > { %v839_v1 = vrot.slane %v838_v55, 4  ;;  %v861_v5 = vrot.slane %v859_v62, 5  ;;  %v10783_v8 = vcombine.low %v759_v50, %v760_v60  ;;  %v867_v11 = vrot.slane %v865_v4, 5  ;;  %v791_v19 = vld [vmem:[#allocation2 + $0x2c] sm:$0x1] }
  0x56   : > { %v849_v10 = vrot.slane %v848_v2, 4  ;;  %v871_v16 = vrot.slane %v869_v6, 4  ;;  %v877_v17 = vrot.slane %v875_v7, 5  ;;  %v880_v20 = vshrl.u32 %v761_v12, 16  ;;  %v763_v26 = vld [vmem:[#allocation2 + $0x30] sm:$0xf] }
  0x57   : > { %v844_v9 = vsel %vm12900_vm9, %v839_v1, %v843_v56  ;;  %v862_v15 = vor.u32 %v861_v5, %v858_v3  ;;  %11852 = vmatprep.mubr.msk.bf16.mxu1 %vm1241_vm5, %v10783_v8  ;;  %v883_v22 = vshll.u32 %v761_v12, 16  ;;  %v889_v23 = vshll.u32 %v762_v14, 16  ;;  %v764_v43 = vld [vmem:[#allocation2 + $0x34] sm:$0xf]  ;;  %v792_v49 = vld [vmem:[#allocation2 + $0x38] sm:$0x1] }
  0x58   : > { %v854_v21 = vsel %vm12900_vm9, %v849_v10, %v853_v59  ;;  %v893_v25 = vshrl.u32 %v762_v14, 16  ;;  %v872_v29 = vor.u32 %v871_v16, %v867_v11  ;;  %v882_v30 = vrot.slane %v880_v20, 4  ;;  %v236_v5 = vld [vmem:[%s12889_s29 + $0x28] sm:$0xf]  ;;  %v671_v10 = vld [vmem:[#allocation2 + $0x3c] sm:$0xf] }
  0x59   : > { %v10750_v27 = vcombine.low %v844_v9, %v854_v21  ;;  %v863_v28 = vrot.slane %v862_v15, 4  ;;  %v885_v32 = vrot.slane %v883_v22, 5  ;;  %v891_v34 = vrot.slane %v889_v23, 5 }
  0x5a   : > { %v895_v35 = vrot.slane %v893_v25, 4  ;;  %v899_v37 = vshll.u32 %v791_v19, 16  ;;  %v873_v41 = vrot.slane %v872_v29, 4  ;;  %v10784_v42 = vcombine.low %v761_v12, %v762_v14 }
  0x5b   : > { %11815 = vmatmul.mubr.msk.bf16.vlgmr.msra.gmra.mxu0 %vm1241_vm5, %v10750_v27  ;;  %v868_v38 = vsel %vm12900_vm9, %v863_v28, %v867_v11  ;;  %v904_v45 = vshrl.u32 %v763_v26, 16  ;;  %v886_v46 = vor.u32 %v885_v32, %v882_v30  ;;  %v907_v50 = vshll.u32 %v763_v26, 16  ;;  %v237_v11 = vld [vmem:[%s12889_s29 + $0x2c] sm:$0xf]  ;;  %v675_v28 = vld [vmem:[#allocation2 + $0x44] sm:$0x1] }
  0x5c   : > { %11881 = vmatpush3.bf16.msra.mxu0 %v12895_v18  ;;  %v896_v47 = vor.u32 %v895_v35, %v891_v34  ;;  %v901_v48 = vrot.slane %v899_v37, 5  ;;  %v878_v51 = vsel %vm12900_vm9, %v873_v41, %v877_v17  ;;  %11853 = vmatmul.mubr.msk.bf16.gmra.mxu1 %vm1241_vm5, %v10784_v42  ;;  %v913_v55 = vshll.u32 %v764_v43, 16  ;;  %v238_v17 = vld [vmem:[%s12889_s29 + $0x30] sm:$0xf]  ;;  %v678_v30 = vld [vmem:[#allocation2 + $0x48] sm:$0xf] }
  0x5d   : > { %v906_v54 = vrot.slane %v904_v45, 4  ;;  %v917_v56 = vshrl.u32 %v764_v43, 16  ;;  %v10751_v57 = vcombine.low %v868_v38, %v878_v51  ;;  %v887_v58 = vrot.slane %v886_v46, 4  ;;  %v682_v41 = vld [vmem:[#allocation2 + $0x50] sm:$0x1] }
  0x5e   : > { %v897_v59 = vrot.slane %v896_v47, 4  ;;  %v909_v60 = vrot.slane %v907_v50, 5  ;;  %v915_v18 = vrot.slane %v913_v55, 5  ;;  %v923_v62 = vshll.u32 %v792_v49, 16  ;;  %v239_v42 = vld [vmem:[%s12889_s29 + $0x34] sm:$0xf] }
  0x5f   : > { %v919_v61 = vrot.slane %v917_v56, 4  ;;  %v10785_v63 = vcombine.low %v763_v26, %v764_v43  ;;  %11818 = vmatprep.mubr.msk.bf16.mxu0 %vm1241_vm5, %v10751_v57  ;;  %v892_v1 = vsel %vm12900_vm9, %v887_v58, %v891_v34  ;;  %v388_v4 = vrot.slane %v386_v31, 7  ;;  %v685_v55 = vld [vmem:[#allocation2 + $0x54] sm:$0xf]  ;;  %v241_v56 = vld [vmem:[%s12889_s29 + $0x3c] sm:$0xf] }
  0x60   : > { %v902_v2 = vsel %vm12900_vm9, %v897_v59, %v901_v48  ;;  %v910_v3 = vor.u32 %v909_v60, %v906_v54  ;;  %v925_v8 = vrot.slane %v923_v62, 5  ;;  %v389_v9 = vshll.u32 %v12943_v13, 16  ;;  %v240_v48 = vld [vmem:[%s12889_s29 + $0x38] sm:$0xf] }
  0x61   : > { %v10752_v6 = vcombine.low %v892_v1, %v902_v2  ;;  %v920_v7 = vor.u32 %v919_v61, %v915_v18  ;;  %11856 = vmatprep.mubr.msk.bf16.mxu1 %vm1241_vm5, %v10785_v63  ;;  %v392_v14 = vrot.slane %v388_v4, 4  ;;  %v394_v15 = vshrl.u32 %v235_v0, 16  ;;  %v13027_v1 = vld [vmem:[%s12889_s29 + $0x44] sm:$0xf] }
  0x62   : > { %v911_v12 = vrot.slane %v910_v3, 4  ;;  %v397_v16 = vshll.u32 %v235_v0, 16  ;;  %v391_v20 = vor.u32 %v389_v9, %v388_v4  ;;  %v403_v31 = vshrl.u32 %v236_v5, 16  ;;  %v689_v4 = vld [vmem:[#allocation2 + $0x5c] sm:$0x1] }
  0x63   : > { %11819 = vmatmul.mubr.msk.bf16.gmra.mxu0 %vm1241_vm5, %v10752_v6  ;;  %v921_v19 = vrot.slane %v920_v7, 4  ;;  %v406_v21 = vshll.u32 %v236_v5, 16  ;;  %v396_v23 = vrot.slane %v394_v15, 7  ;;  %v411_v25 = vshrl.u32 %v237_v11, 16  ;;  %v692_v9 = vld [vmem:[#allocation2 + $0x60] sm:$0xf] }
  0x64   : > { %v916_v22 = vsel %vm12900_vm9, %v911_v12, %v915_v18  ;;  %v414_v13 = vshll.u32 %v237_v11, 16  ;;  %v672_v27 = vsel %vm12908_vm10, %v391_v20, %v671_v10  ;;  %v405_v29 = vrot.slane %v403_v31, 7  ;;  %v13020_v18 = vld [vmem:[%s12889_s29 + $0x40] sm:$0xf] }
  0x65   : > { %v926_v26 = vsel %vm12900_vm9, %v921_v19, %v925_v8  ;;  %v420_v32 = vshrl.u32 %v238_v17, 16  ;;  %v399_v35 = vor.u32 %v397_v16, %v396_v23  ;;  %v401_v37 = vrot.slane %v396_v23, 4  ;;  %673 = vst [vmem:[#allocation2 + $0x3c] sm:$0xf] %v672_v27 }
  0x66   : > { %v10753_v34 = vcombine.low %v916_v22, %v926_v26  ;;  %v413_v38 = vrot.slane %v411_v25, 7  ;;  %v408_v43 = vor.u32 %v406_v21, %v405_v29  ;;  %v409_v45 = vrot.slane %v405_v29, 4  ;;  %v13042_v26 = vld [vmem:[%s17611_s1 + $0x6] sm:$0x3] }
  0x67   : > { %v422_v46 = vrot.slane %v420_v32, 7  ;;  %v423_v47 = vshll.u32 %v238_v17, 16  ;;  %v400_v49 = vsel %vm12914_vm11, %v392_v14, %v399_v35  ;;  %v676_v50 = vsel %vm12920_vm12, %v401_v37, %v675_v28  ;;  %12427 = vmatprep.subr.msk.bf16.mxu1 %vm1290_vm0, %v13042_v26 }
  0x68   : > { %11822 = vmatprep.mubr.msk.bf16.mxu0 %vm1241_vm5, %v10753_v34  ;;  %v416_v51 = vor.u32 %v414_v13, %v413_v38  ;;  %v418_v54 = vrot.slane %v413_v38, 4  ;;  %674 = vst.msk [vmem:[#allocation2 + $0x40] sm:$0xf] %vm258_vm1, %v400_v49  ;;  %677 = vst [vmem:[#allocation2 + $0x44] sm:$0x1] %v676_v50  ;;  %v679_v57 = vsel %vm12908_vm10, %v408_v43, %v678_v30  ;;  %v428_v60 = vshrl.u32 %v239_v42, 16 }
  0x69   : > { %v425_v58 = vor.u32 %v423_v47, %v422_v46  ;;  %v426_v59 = vrot.slane %v422_v46, 4  ;;  %680 = vst [vmem:[#allocation2 + $0x48] sm:$0xf] %v679_v57  ;;  %v431_v63 = vshll.u32 %v239_v42, 16  ;;  %v437_v0 = vshrl.u32 %v240_v48, 16 }
  0x6a   : > { %v417_v61 = vsel %vm12914_vm11, %v409_v45, %v416_v51  ;;  %v683_v62 = vsel %vm12920_vm12, %v418_v54, %v682_v41  ;;  %v430_v2 = vrot.slane %v428_v60, 7  ;;  %v440_v5 = vshll.u32 %v240_v48, 16  ;;  %v696_v60 = vld [vmem:[#allocation2 + $0x68] sm:$0x1] }
  0x6b   : > { %681 = vst.msk [vmem:[#allocation2 + $0x4c] sm:$0xf] %vm258_vm1, %v417_v61  ;;  %684 = vst [vmem:[#allocation2 + $0x50] sm:$0x1] %v683_v62  ;;  %v686_v3 = vsel %vm12908_vm10, %v425_v58, %v685_v55  ;;  %v445_v6 = vshrl.u32 %v241_v56, 16  ;;  %v439_v7 = vrot.slane %v437_v0, 7 }
  0x6c   : > { %687 = vst [vmem:[#allocation2 + $0x54] sm:$0xf] %v686_v3  ;;  %v448_v8 = vshll.u32 %v241_v56, 16  ;;  %v454_v10 = vshrl.u32 %v13020_v18, 16  ;;  %v457_v11 = vshll.u32 %v13020_v18, 16  ;;  %v433_v14 = vor.u32 %v431_v63, %v430_v2 }
  0x6d   : > { %v765_v12 = vld [vmem:[#allocation2 + $0x3c] sm:$0xf]  ;;  %v435_v15 = vrot.slane %v430_v2, 4  ;;  %v447_v16 = vrot.slane %v445_v6, 7  ;;  %v462_v17 = vshrl.u32 %v13027_v1, 16  ;;  %v442_v31 = vor.u32 %v440_v5, %v439_v7 }
  0x6e   : > { %v928_v19 = vshrl.u32 %v765_v12, 16  ;;  %v931_v20 = vshll.u32 %v765_v12, 16  ;;  %v443_v21 = vrot.slane %v439_v7, 4  ;;  %v434_v22 = vsel %vm12914_vm11, %v426_v59, %v433_v14  ;;  %v13072_v2 = vld [vmem:[%s17611_s1 + $0x8] sm:$0x3] }
  0x6f   : > { %v690_v23 = vsel %vm12920_vm12, %v435_v15, %v689_v4  ;;  %v450_v25 = vor.u32 %v448_v8, %v447_v16  ;;  %v452_v13 = vrot.slane %v447_v16, 4  ;;  %v13044_v27 = vld [vmem:[#allocation2 + $0x40] sm:$0xf]  ;;  %v13046_v28 = vld [vmem:[#allocation2 + $0x44] sm:$0x1]  ;;  %v693_v32 = vsel %vm12908_vm10, %v442_v31, %v692_v9  ;;  %12428 = vmatprep.subr.msk.bf16.mxu0 %vm1290_vm0, %v13072_v2 }
  0x70   : > { %v930_v29 = vrot.slane %v928_v19, 4  ;;  %v933_v30 = vrot.slane %v931_v20, 5  ;;  %688 = vst.msk [vmem:[#allocation2 + $0x58] sm:$0xf] %vm258_vm1, %v434_v22  ;;  %691 = vst [vmem:[#allocation2 + $0x5c] sm:$0x1] %v690_v23  ;;  %v10786_v38 = vcombine.low %v765_v12, %v13044_v27 }
  0x71   : > { %v937_v34 = vshll.u32 %v13044_v27, 16  ;;  %v941_v35 = vshrl.u32 %v13044_v27, 16  ;;  %v947_v37 = vshll.u32 %v13046_v28, 16  ;;  %v767_v41 = vld [vmem:[#allocation2 + $0x48] sm:$0xf]  ;;  %v451_v48 = vsel %vm12914_vm11, %v443_v21, %v450_v25 }
  0x72   : > { %694 = vst [vmem:[#allocation2 + $0x60] sm:$0xf] %v693_v32  ;;  %v934_v42 = vor.u32 %v933_v30, %v930_v29  ;;  %v13057_v43 = vld [vmem:[#allocation2 + $0x4c] sm:$0xf]  ;;  %v13059_v45 = vld [vmem:[#allocation2 + $0x50] sm:$0x1]  ;;  %11857 = vmatmul.mubr.msk.bf16.gmra.mxu1 %vm1241_vm5, %v10786_v38  ;;  %v697_v14 = vsel %vm12920_vm12, %v452_v13, %v696_v60 }
  0x73   : > { %v952_v46 = vshrl.u32 %v767_v41, 16  ;;  %v955_v47 = vshll.u32 %v767_v41, 16  ;;  %v939_v49 = vrot.slane %v937_v34, 5  ;;  %v943_v50 = vrot.slane %v941_v35, 4  ;;  %v769_v55 = vld [vmem:[#allocation2 + $0x54] sm:$0xf] }
  0x74   : > { %v949_v51 = vrot.slane %v947_v37, 5  ;;  %v961_v54 = vshll.u32 %v13057_v43, 16  ;;  %695 = vst.msk [vmem:[#allocation2 + $0x64] sm:$0xf] %vm258_vm1, %v451_v48  ;;  %v935_v56 = vrot.slane %v934_v42, 4  ;;  %v965_v59 = vshrl.u32 %v13057_v43, 16 }
  0x75   : > { %v954_v57 = vrot.slane %v952_v46, 4  ;;  %v957_v58 = vrot.slane %v955_v47, 5  ;;  %v944_v61 = vor.u32 %v943_v50, %v939_v49  ;;  %v971_v63 = vshll.u32 %v13059_v45, 16  ;;  %698 = vst [vmem:[#allocation2 + $0x68] sm:$0x1] %v697_v14 }
  0x76   : > { %v963_v62 = vrot.slane %v961_v54, 5  ;;  %v10787_v0 = vcombine.low %v767_v41, %v13057_v43  ;;  %v967_v4 = vrot.slane %v965_v59, 4  ;;  %v976_v5 = vshrl.u32 %v769_v55, 16  ;;  %v699_v59 = vld [vmem:[#allocation2 + $0x6c] sm:$0xf] }
  0x77   : > { %v958_v3 = vor.u32 %v957_v58, %v954_v57  ;;  %v940_v6 = vsel %vm12900_vm9, %v935_v56, %v939_v49  ;;  %v945_v7 = vrot.slane %v944_v61, 4  ;;  %v973_v8 = vrot.slane %v971_v63, 5  ;;  %v13079_v9 = vld [vmem:[#allocation2 + $0x58] sm:$0xf]  ;;  %v13081_v12 = vld [vmem:[#allocation2 + $0x5c] sm:$0x1] }
  0x78   : > { %11860 = vmatprep.mubr.msk.bf16.mxu1 %vm1241_vm5, %v10787_v0  ;;  %v968_v16 = vor.u32 %v967_v4, %v963_v62  ;;  %v978_v19 = vrot.slane %v976_v5, 4  ;;  %v979_v20 = vshll.u32 %v769_v55, 16  ;;  %v985_v22 = vshll.u32 %v13079_v9, 16  ;;  %v245_v14 = vld [vmem:[%s12889_s29 + $0x4c] sm:$0xf] }
  0x79   : > { %v959_v15 = vrot.slane %v958_v3, 4  ;;  %v771_v31 = vld [vmem:[#allocation2 + $0x60] sm:$0xf]  ;;  %v950_v21 = vsel %vm12900_vm9, %v945_v7, %v949_v51  ;;  %v989_v23 = vshrl.u32 %v13079_v9, 16  ;;  %v995_v25 = vshll.u32 %v13081_v12, 16 }
  0x7a   : > { %v10754_v29 = vcombine.low %v940_v6, %v950_v21  ;;  %v969_v13 = vrot.slane %v968_v16, 4  ;;  %v981_v32 = vrot.slane %v979_v20, 5  ;;  %v987_v35 = vrot.slane %v985_v22, 5  ;;  %v703_v7 = vld [vmem:[#allocation2 + $0x74] sm:$0x1] }
  0x7b   : > { %v964_v30 = vsel %vm12900_vm9, %v959_v15, %v963_v62  ;;  %v13092_v34 = vld [vmem:[#allocation2 + $0x64] sm:$0xf]  ;;  %v991_v37 = vrot.slane %v989_v23, 4  ;;  %v997_v38 = vrot.slane %v995_v25, 5  ;;  %v10788_v41 = vcombine.low %v769_v55, %v13079_v9  ;;  %v246_v20 = vld [vmem:[%s12889_s29 + $0x50] sm:$0xf] }
  0x7c   : > { %11823 = vmatmul.mubr.msk.bf16.gmra.mxu0 %vm1241_vm5, %v10754_v29  ;;  %v974_v42 = vsel %vm12900_vm9, %v969_v13, %v973_v8  ;;  %v982_v46 = vor.u32 %v981_v32, %v978_v19  ;;  %v1000_v47 = vshrl.u32 %v771_v31, 16  ;;  %v1003_v48 = vshll.u32 %v771_v31, 16  ;;  %v13103_v61 = vld [vmem:[#allocation2 + $0x68] sm:$0x1] }
  0x7d   : > { %v10755_v49 = vcombine.low %v964_v30, %v974_v42  ;;  %v992_v50 = vor.u32 %v991_v37, %v987_v35  ;;  %11861 = vmatmul.mubr.msk.bf16.gmra.mxu1 %vm1241_vm5, %v10788_v41  ;;  %v1009_v51 = vshll.u32 %v13092_v34, 16  ;;  %v1013_v54 = vshrl.u32 %v13092_v34, 16  ;;  %v244_v8 = vld [vmem:[%s12889_s29 + $0x48] sm:$0xf]  ;;  %v247_v37 = vld [vmem:[%s12889_s29 + $0x54] sm:$0xf] }
  0x7e   : > { %v983_v56 = vrot.slane %v982_v46, 4  ;;  %v1002_v57 = vrot.slane %v1000_v47, 4  ;;  %v1005_v55 = vrot.slane %v1003_v48, 5  ;;  %v10789_v58 = vcombine.low %v771_v31, %v13092_v34 }
  0x7f   : > { %11826 = vmatprep.mubr.msk.bf16.mxu0 %vm1241_vm5, %v10755_v49  ;;  %v993_v60 = vrot.slane %v992_v50, 4  ;;  %v1011_v62 = vrot.slane %v1009_v51, 5  ;;  %v1015_v63 = vrot.slane %v1013_v54, 4  ;;  %v456_v0 = vrot.slane %v454_v10, 7 }
  0x80   : > { %v988_v3 = vsel %vm12900_vm9, %v983_v56, %v987_v35  ;;  %v1006_v4 = vor.u32 %v1005_v55, %v1002_v57  ;;  %v1019_v5 = vshll.u32 %v13103_v61, 16  ;;  %11864 = vmatprep.mubr.msk.bf16.mxu1 %vm1241_vm5, %v10789_v58  ;;  %v464_v6 = vrot.slane %v462_v17, 7  ;;  %v706_v35 = vld [vmem:[#allocation2 + $0x78] sm:$0xf]  ;;  %v710_v56 = vld [vmem:[#allocation2 + $0x80] sm:$0x1] }
  0x81   : > { %v998_v15 = vsel %vm12900_vm9, %v993_v60, %v997_v38  ;;  %v1016_v16 = vor.u32 %v1015_v63, %v1011_v62  ;;  %v459_v10 = vor.u32 %v457_v11, %v456_v0  ;;  %v460_v19 = vrot.slane %v456_v0, 4  ;;  %v248_v38 = vld [vmem:[%s12889_s29 + $0x58] sm:$0xf]  ;;  %v249_v63 = vld [vmem:[%s12889_s29 + $0x5c] sm:$0xf] }
  0x82   : > { %v10756_v31 = vcombine.low %v988_v3, %v998_v15  ;;  %v1007_v21 = vrot.slane %v1006_v4, 4  ;;  %v1021_v22 = vrot.slane %v1019_v5, 5  ;;  %v465_v23 = vshll.u32 %v13027_v1, 16  ;;  %v713_v4 = vld [vmem:[#allocation2 + $0x84] sm:$0xf] }
  0x83   : > { %v1017_v17 = vrot.slane %v1016_v16, 4  ;;  %v469_v25 = vrot.slane %v464_v6, 4  ;;  %v700_v29 = vsel %vm12908_vm10, %v459_v10, %v699_v59  ;;  %v471_v30 = vshrl.u32 %v244_v8, 16  ;;  %v717_v16 = vld [vmem:[#allocation2 + $0x8c] sm:$0x1] }
  0x84   : > { %11827 = vmatmul.mubr.msk.bf16.gmra.mxu0 %vm1241_vm5, %v10756_v31  ;;  %v1012_v18 = vsel %vm12900_vm9, %v1007_v21, %v1011_v62  ;;  %v467_v11 = vor.u32 %v465_v23, %v464_v6  ;;  %701 = vst [vmem:[#allocation2 + $0x6c] sm:$0xf] %v700_v29  ;;  %v474_v13 = vshll.u32 %v244_v8, 16  ;;  %v479_v32 = vshrl.u32 %v245_v14, 16  ;;  %v720_v10 = vld [vmem:[#allocation2 + $0x90] sm:$0xf] }
  0x85   : > { %v1022_v1 = vsel %vm12900_vm9, %v1017_v17, %v1021_v22  ;;  %v704_v41 = vsel %vm12920_vm12, %v469_v25, %v703_v7  ;;  %v473_v42 = vrot.slane %v471_v30, 7  ;;  %v482_v46 = vshll.u32 %v245_v14, 16  ;;  %v13147_v30 = vld [vmem:[%s12889_s29 + $0x60] sm:$0xf] }
  0x86   : > { %v10757_v47 = vcombine.low %v1012_v18, %v1022_v1  ;;  %v468_v48 = vsel %vm12914_vm11, %v460_v19, %v467_v11  ;;  %705 = vst [vmem:[#allocation2 + $0x74] sm:$0x1] %v704_v41  ;;  %v481_v49 = vrot.slane %v479_v32, 7  ;;  %v488_v50 = vshrl.u32 %v246_v20, 16 }
  0x87   : > { %702 = vst.msk [vmem:[#allocation2 + $0x70] sm:$0xf] %vm258_vm1, %v468_v48  ;;  %v476_v51 = vor.u32 %v474_v13, %v473_v42  ;;  %v477_v54 = vrot.slane %v473_v42, 4  ;;  %v491_v57 = vshll.u32 %v246_v20, 16  ;;  %v496_v55 = vshrl.u32 %v247_v37, 16 }
  0x88   : > { %11830 = vmatprep.mubr.msk.bf16.mxu0 %vm1241_vm5, %v10757_v47  ;;  %v484_v58 = vor.u32 %v482_v46, %v481_v49  ;;  %v486_v59 = vrot.slane %v481_v49, 4  ;;  %v490_v60 = vrot.slane %v488_v50, 7  ;;  %v499_v62 = vshll.u32 %v247_v37, 16  ;;  %v724_v50 = vld [vmem:[#allocation2 + $0x98] sm:$0x1] }
  0x89   : > { %v707_v0 = vsel %vm12908_vm10, %v476_v51, %v706_v35  ;;  %v498_v3 = vrot.slane %v496_v55, 7  ;;  %v505_v5 = vshrl.u32 %v248_v38, 16  ;;  %v508_v6 = vshll.u32 %v248_v38, 16 }
  0x8a   : > { %v485_v7 = vsel %vm12914_vm11, %v477_v54, %v484_v58  ;;  %708 = vst [vmem:[#allocation2 + $0x78] sm:$0xf] %v707_v0  ;;  %v711_v8 = vsel %vm12920_vm12, %v486_v59, %v710_v56  ;;  %v493_v14 = vor.u32 %v491_v57, %v490_v60  ;;  %v494_v15 = vrot.slane %v490_v60, 4 }
  0x8b   : > { %v773_v19 = vld [vmem:[#allocation2 + $0x6c] sm:$0xf]  ;;  %709 = vst.msk [vmem:[#allocation2 + $0x7c] sm:$0xf] %vm258_vm1, %v485_v7  ;;  %712 = vst [vmem:[#allocation2 + $0x80] sm:$0x1] %v711_v8  ;;  %v501_v20 = vor.u32 %v499_v62, %v498_v3 }
  0x8c   : > { %v503_v31 = vrot.slane %v498_v3, 4  ;;  %v507_v21 = vrot.slane %v505_v5, 7  ;;  %v513_v22 = vshrl.u32 %v249_v63, 16  ;;  %v1024_v23 = vshrl.u32 %v773_v19, 16 }
  0x8d   : > { %v1027_v17 = vshll.u32 %v773_v19, 16  ;;  %v714_v25 = vsel %vm12908_vm10, %v493_v14, %v713_v4  ;;  %v516_v29 = vshll.u32 %v249_v63, 16  ;;  %v13149_v18 = vld [vmem:[#allocation2 + $0x74] sm:$0x1]  ;;  %v502_v11 = vsel %vm12914_vm11, %v494_v15, %v501_v20 }
  0x8e   : > { %715 = vst [vmem:[#allocation2 + $0x84] sm:$0xf] %v714_v25  ;;  %v718_v13 = vsel %vm12920_vm12, %v503_v31, %v717_v16  ;;  %v510_v32 = vor.u32 %v508_v6, %v507_v21  ;;  %v511_v35 = vrot.slane %v507_v21, 4  ;;  %v13155_v37 = vld [vmem:[#allocation2 + $0x70] sm:$0xf]  ;;  %v1026_v38 = vrot.slane %v1024_v23, 4 }
  0x8f   : > { %v1029_v1 = vrot.slane %v1027_v17, 5  ;;  %v1043_v41 = vshll.u32 %v13149_v18, 16  ;;  %716 = vst.msk [vmem:[#allocation2 + $0x88] sm:$0xf] %vm258_vm1, %v502_v11  ;;  %719 = vst [vmem:[#allocation2 + $0x8c] sm:$0x1] %v718_v13  ;;  %v10790_v48 = vcombine.low %v773_v19, %v13155_v37 }
  0x90   : > { %v515_v42 = vrot.slane %v513_v22, 7  ;;  %v1033_v46 = vshll.u32 %v13155_v37, 16  ;;  %v1037_v47 = vshrl.u32 %v13155_v37, 16  ;;  %v721_v49 = vsel %vm12908_vm10, %v510_v32, %v720_v10 }
  0x91   : > { %v1030_v51 = vor.u32 %v1029_v1, %v1026_v38  ;;  %v1045_v54 = vrot.slane %v1043_v41, 5  ;;  %722 = vst [vmem:[#allocation2 + $0x90] sm:$0xf] %v721_v49  ;;  %11865 = vmatmul.mubr.msk.bf16.gmra.mxu1 %vm1241_vm5, %v10790_v48  ;;  %v775_v59 = vld [vmem:[#allocation2 + $0x78] sm:$0xf]  ;;  %v522_v60 = vshrl.u32 %v13147_v30, 16 }
  0x92   : > { %v518_v56 = vor.u32 %v516_v29, %v515_v42  ;;  %v520_v57 = vrot.slane %v515_v42, 4  ;;  %v1035_v55 = vrot.slane %v1033_v46, 5  ;;  %v1039_v58 = vrot.slane %v1037_v47, 4  ;;  %v13167_v0 = vld [vmem:[#allocation2 + $0x7c] sm:$0xf] }
  0x93   : > { %v525_v62 = vshll.u32 %v13147_v30, 16  ;;  %v1031_v63 = vrot.slane %v1030_v51, 4  ;;  %v13169_v3 = vld [vmem:[#allocation2 + $0x80] sm:$0x1]  ;;  %v1048_v4 = vshrl.u32 %v775_v59, 16  ;;  %v1051_v8 = vshll.u32 %v775_v59, 16 }
  0x94   : > { %v519_v5 = vsel %vm12914_vm11, %v511_v35, %v518_v56  ;;  %v725_v6 = vsel %vm12920_vm12, %v520_v57, %v724_v50  ;;  %v1040_v7 = vor.u32 %v1039_v58, %v1035_v55  ;;  %v1057_v14 = vshll.u32 %v13167_v0, 16 }
  0x95   : > { %v1061_v15 = vshrl.u32 %v13167_v0, 16  ;;  %723 = vst.msk [vmem:[#allocation2 + $0x94] sm:$0xf] %vm258_vm1, %v519_v5  ;;  %726 = vst [vmem:[#allocation2 + $0x98] sm:$0x1] %v725_v6  ;;  %v1036_v16 = vsel %vm12900_vm9, %v1031_v63, %v1035_v55  ;;  %v1050_v10 = vrot.slane %v1048_v4, 4  ;;  %v10791_v20 = vcombine.low %v775_v59, %v13167_v0 }
  0x96   : > { %v1067_v19 = vshll.u32 %v13169_v3, 16  ;;  %v777_v31 = vld [vmem:[#allocation2 + $0x84] sm:$0xf]  ;;  %v1041_v21 = vrot.slane %v1040_v7, 4  ;;  %v1053_v22 = vrot.slane %v1051_v8, 5  ;;  %v1059_v23 = vrot.slane %v1057_v14, 5 }
  0x97   : > { %v1063_v17 = vrot.slane %v1061_v15, 4  ;;  %v13182_v25 = vld [vmem:[#allocation2 + $0x88] sm:$0xf]  ;;  %11868 = vmatprep.mubr.msk.bf16.mxu1 %vm1241_vm5, %v10791_v20  ;;  %v13185_v11 = vld [vmem:[#allocation2 + $0x8c] sm:$0x1]  ;;  %v1072_v13 = vshrl.u32 %v777_v31, 16 }
  0x98   : > { %v1069_v29 = vrot.slane %v1067_v19, 5  ;;  %v1075_v32 = vshll.u32 %v777_v31, 16  ;;  %v1081_v35 = vshll.u32 %v13182_v25, 16  ;;  %v1046_v38 = vsel %vm12900_vm9, %v1041_v21, %v1045_v54  ;;  %v779_v46 = vld [vmem:[#allocation2 + $0x90] sm:$0xf] }
  0x99   : > { %v1054_v1 = vor.u32 %v1053_v22, %v1050_v10  ;;  %v1064_v41 = vor.u32 %v1063_v17, %v1059_v23  ;;  %v1085_v42 = vshrl.u32 %v13182_v25, 16  ;;  %v10758_v47 = vcombine.low %v1036_v16, %v1046_v38  ;;  %v252_v38 = vld [vmem:[%s12889_s29 + $0x68] sm:$0xf] }
  0x9a   : > { %v1074_v48 = vrot.slane %v1072_v13, 4  ;;  %v1077_v49 = vrot.slane %v1075_v32, 5  ;;  %v1083_v50 = vrot.slane %v1081_v35, 5  ;;  %v1091_v55 = vshll.u32 %v13185_v11, 16  ;;  %v727_v35 = vld [vmem:[#allocation2 + $0x9c] sm:$0xf] }
  0x9b   : > { %v1055_v51 = vrot.slane %v1054_v1, 4  ;;  %v1065_v56 = vrot.slane %v1064_v41, 4  ;;  %v1087_v57 = vrot.slane %v1085_v42, 4  ;;  %11831 = vmatmul.mubr.msk.bf16.gmra.mxu0 %vm1241_vm5, %v10758_v47  ;;  %v10792_v59 = vcombine.low %v777_v31, %v13182_v25 }
  0x9c   : > { %v1078_v58 = vor.u32 %v1077_v49, %v1074_v48  ;;  %v13194_v54 = vld [vmem:[#allocation2 + $0x94] sm:$0xf]  ;;  %v13196_v63 = vld [vmem:[#allocation2 + $0x98] sm:$0x1]  ;;  %v1096_v4 = vshrl.u32 %v779_v46, 16  ;;  %v1099_v5 = vshll.u32 %v779_v46, 16 }
  0x9d   : > { %v1060_v6 = vsel %vm12900_vm9, %v1055_v51, %v1059_v23  ;;  %v1070_v7 = vsel %vm12900_vm9, %v1065_v56, %v1069_v29  ;;  %v1088_v8 = vor.u32 %v1087_v57, %v1083_v50  ;;  %v1093_v14 = vrot.slane %v1091_v55, 5  ;;  %11869 = vmatmul.mubr.msk.bf16.gmra.mxu1 %vm1241_vm5, %v10792_v59  ;;  %v251_v23 = vld [vmem:[%s12889_s29 + $0x64] sm:$0xf]  ;;  %v253_v48 = vld [vmem:[%s12889_s29 + $0x6c] sm:$0xf] }
  0x9e   : > { %v10759_v15 = vcombine.low %v1060_v6, %v1070_v7  ;;  %v1079_v16 = vrot.slane %v1078_v58, 4  ;;  %v1098_v10 = vrot.slane %v1096_v4, 4  ;;  %v1101_v19 = vrot.slane %v1099_v5, 5  ;;  %v254_v56 = vld [vmem:[%s12889_s29 + $0x70] sm:$0xf] }
  0x9f   : > { %v1089_v20 = vrot.slane %v1088_v8, 4  ;;  %v1105_v31 = vshll.u32 %v13194_v54, 16  ;;  %v1109_v21 = vshrl.u32 %v13194_v54, 16  ;;  %v1115_v22 = vshll.u32 %v13196_v63, 16  ;;  %v255_v59 = vld [vmem:[%s12889_s29 + $0x74] sm:$0xf] }
  0xa0   : > { %11834 = vmatprep.mubr.msk.bf16.mxu0 %vm1241_vm5, %v10759_v15  ;;  %v1084_v17 = vsel %vm12900_vm9, %v1079_v16, %v1083_v50  ;;  %v1102_v29 = vor.u32 %v1101_v19, %v1098_v10  ;;  %v10793_v13 = vcombine.low %v779_v46, %v13194_v54  ;;  %v524_v32 = vrot.slane %v522_v60, 7  ;;  %v734_v10 = vld [vmem:[#allocation2 + $0xa8] sm:$0xf] }
  0xa1   : > { %v1094_v1 = vsel %vm12900_vm9, %v1089_v20, %v1093_v14  ;;  %v1107_v41 = vrot.slane %v1105_v31, 5  ;;  %v1111_v42 = vrot.slane %v1109_v21, 4  ;;  %v1117_v47 = vrot.slane %v1115_v22, 5 }
  0xa2   : > { %v10760_v49 = vcombine.low %v1084_v17, %v1094_v1  ;;  %v1103_v51 = vrot.slane %v1102_v29, 4  ;;  %11872 = vmatprep.mubr.msk.bf16.mxu1 %vm1241_vm5, %v10793_v13  ;;  %v527_v46 = vor.u32 %v525_v62, %v524_v32  ;;  %v528_v50 = vrot.slane %v524_v32, 4  ;;  %v731_v62 = vld [vmem:[#allocation2 + $0xa4] sm:$0x1]  ;;  %v738_v29 = vld [vmem:[#allocation2 + $0xb0] sm:$0x1] }
  0xa3   : > { %v1112_v60 = vor.u32 %v1111_v42, %v1107_v41  ;;  %v530_v57 = vshrl.u32 %v251_v23, 16  ;;  %v533_v55 = vshll.u32 %v251_v23, 16  ;;  %v539_v58 = vshrl.u32 %v252_v38, 16 }
  0xa4   : > { %11835 = vmatmul.mubr.msk.bf16.gmra.mxu0 %vm1241_vm5, %v10760_v49  ;;  %v1108_v4 = vsel %vm12900_vm9, %v1103_v51, %v1107_v41  ;;  %v728_v5 = vsel %vm12908_vm10, %v527_v46, %v727_v35  ;;  %v542_v6 = vshll.u32 %v252_v38, 16  ;;  %v547_v7 = vshrl.u32 %v253_v48, 16  ;;  %v741_v49 = vld [vmem:[#allocation2 + $0xb4] sm:$0xf] }
  0xa5   : > { %v1113_v8 = vrot.slane %v1112_v60, 4  ;;  %v532_v30 = vrot.slane %v530_v57, 7  ;;  %729 = vst [vmem:[#allocation2 + $0x9c] sm:$0xf] %v728_v5  ;;  %v541_v14 = vrot.slane %v539_v58, 7  ;;  %v550_v15 = vshll.u32 %v253_v48, 16 }
  0xa6   : > { %v549_v16 = vrot.slane %v547_v7, 7  ;;  %v556_v19 = vshrl.u32 %v254_v56, 16  ;;  %v559_v20 = vshll.u32 %v254_v56, 16  ;;  %v564_v31 = vshrl.u32 %v255_v59, 16  ;;  %v745_v60 = vld [vmem:[#allocation2 + $0xbc] sm:$0x1] }
  0xa7   : > { %v1118_v21 = vsel %vm12900_vm9, %v1113_v8, %v1117_v47  ;;  %v535_v22 = vor.u32 %v533_v55, %v532_v30  ;;  %v537_v23 = vrot.slane %v532_v30, 4  ;;  %v544_v17 = vor.u32 %v542_v6, %v541_v14  ;;  %v1747_v47 = vld [vmem:[#allocation2] sm:$0xe]  ;;  %v13244_v57 = vld [vmem:[%s17611_s1 + $0xa] sm:$0x3] }
  0xa8   : > { %v10761_v13 = vcombine.low %v1108_v4, %v1118_v21  ;;  %v545_v32 = vrot.slane %v541_v14, 4  ;;  %v552_v35 = vor.u32 %v550_v15, %v549_v16  ;;  %v554_v38 = vrot.slane %v549_v16, 4  ;;  %v1748_v5 = vld [vmem:[#allocation2 + $0xc] sm:$0xe]  ;;  %v12546_v16 = vld [vmem:[#allocation2 + $0x4] sm:$0xf] }
  0xa9   : > { %v536_v1 = vsel %vm12914_vm11, %v528_v50, %v535_v22  ;;  %v732_v41 = vsel %vm12920_vm12, %v537_v23, %v731_v62  ;;  %v735_v42 = vsel %vm12908_vm10, %v544_v17, %v734_v10  ;;  %v558_v48 = vrot.slane %v556_v19, 7  ;;  %v13265_v22 = vld [vmem:[#allocation2 + $0x8] sm:$0x1] }
  0xaa   : > { %11838 = vmatprep.mubr.msk.bf16.mxu0 %vm1241_vm5, %v10761_v13  ;;  %730 = vst.msk [vmem:[#allocation2 + $0xa0] sm:$0xf] %vm258_vm1, %v536_v1  ;;  %733 = vst [vmem:[#allocation2 + $0xa4] sm:$0x1] %v732_v41  ;;  %v553_v51 = vsel %vm12914_vm11, %v545_v32, %v552_v35  ;;  %v739_v46 = vsel %vm12920_vm12, %v554_v38, %v738_v29  ;;  %v566_v50 = vrot.slane %v564_v31, 7  ;;  %v567_v56 = vshll.u32 %v255_v59, 16 }
  0xab   : > { %736 = vst [vmem:[#allocation2 + $0xa8] sm:$0xf] %v735_v42  ;;  %737 = vst.msk [vmem:[#allocation2 + $0xac] sm:$0xf] %vm258_vm1, %v553_v51  ;;  %v561_v55 = vor.u32 %v559_v20, %v558_v48  ;;  %v562_v58 = vrot.slane %v558_v48, 4  ;;  %v2367_v4 = vsel %vm1290_vm0, %v13042_v26, 0 }
  0xac   : > { %740 = vst [vmem:[#allocation2 + $0xb0] sm:$0x1] %v739_v46  ;;  %v781_v6 = vld [vmem:[#allocation2 + $0x9c] sm:$0xf]  ;;  %v569_v7 = vor.u32 %v567_v56, %v566_v50  ;;  %v571_v8 = vrot.slane %v566_v50, 4  ;;  %11915 = vmatpush3.bf16.msra.mxu1 %v2367_v4  ;;  %v10813_v59 = vrot.slane %v1747_v47, 9 }
  0xad   : > { %v1120_v30 = vshrl.u32 %v781_v6, 16  ;;  %v1123_v62 = vshll.u32 %v781_v6, 16  ;;  %v742_v14 = vsel %vm12908_vm10, %v561_v55, %v741_v49  ;;  %v17658_v15 = vmov 0  ;;  %v13255_v26 = vld [vmem:[#allocation2 + $0x18] sm:$0xe]  ;;  %12429 = vmatprep.subr.msk.bf16.mxu1 %vm1290_vm0, %v13244_v57 }
  0xae   : > { %v17659_v15 = vsel %vm13251_vm15, 4294967295, %v17658_v15  ;;  %v1800_v10 = vrot.slane %v12546_v16, 5  ;;  %v570_v19 = vsel %vm12914_vm11, %v562_v58, %v569_v7  ;;  %743 = vst [vmem:[#allocation2 + $0xb4] sm:$0xf] %v742_v14  ;;  %v746_v20 = vsel %vm12920_vm12, %v571_v8, %v745_v60 }
  0xaf   : > { %17660 = vst [vmem:[#allocation8_spill] sm:$0xff] %v17659_v15  ;;  %v10814_v31 = vrot.slane %v1748_v5, 9  ;;  %v1809_v21 = vrot.slane %v1807_v52, 4  ;;  %v1803_v23 = vrot.slane %v13265_v22, 5  ;;  %v1122_v17 = vrot.slane %v1120_v30, 4 }
  0xb0   : > { %v1125_v29 = vrot.slane %v1123_v62, 5  ;;  %744 = vst.msk [vmem:[#allocation2 + $0xb8] sm:$0xf] %vm258_vm1, %v570_v19  ;;  %747 = vst [vmem:[#allocation2 + $0xbc] sm:$0x1] %v746_v20  ;;  %v1802_v13 = vrot.slane %v1800_v10, 4 }
  0xb1   : > { %v13273_v32 = vsel %vm13251_vm15, %v10814_v31, %v1807_v52  ;;  %v13279_v35 = vsel %vm13251_vm15, %v1809_v21, %v1810_v53  ;;  %v13283_v38 = vsel %vm1290_vm0, %v13072_v2, 0  ;;  %v10815_v1 = vrot.slane %v13255_v26, 9  ;;  %v13286_v41 = vld [vmem:[#allocation2 + $0xa0] sm:$0xf]  ;;  %v13288_v42 = vld [vmem:[#allocation2 + $0xa4] sm:$0x1] }
  0xb2   : > { %v1126_v39 = vor.u32 %v1125_v29, %v1122_v17  ;;  %v783_v48 = vld [vmem:[#allocation2 + $0xa8] sm:$0xf]  ;;  %v13292_v52 = vsel %vm13251_vm15, %v10813_v59, %v1800_v10  ;;  %v10831_v40 = vcombine.low %v13273_v32, %v13279_v35  ;;  %v1129_v53 = vshll.u32 %v13286_v41, 16  ;;  %v13300_v51 = vld [vmem:[#allocation2 + $0xac] sm:$0xf] }
  0xb3   : > { %v1133_v2 = vshrl.u32 %v13286_v41, 16  ;;  %v1139_v49 = vshll.u32 %v13288_v42, 16  ;;  %v10794_v47 = vcombine.low %v781_v6, %v13286_v41  ;;  %v13302_v50 = vld [vmem:[#allocation2 + $0xb0] sm:$0x1]  ;;  %v1144_v56 = vshrl.u32 %v783_v48, 16 }
  0xb4   : > { %v1127_v46 = vrot.slane %v1126_v39, 4  ;;  %v1147_v60 = vshll.u32 %v783_v48, 16  ;;  %v1153_v55 = vshll.u32 %v13300_v51, 16  ;;  %v1131_v58 = vrot.slane %v1129_v53, 5  ;;  %v12553_v26 = vld [vmem:[#allocation2 + $0x38] sm:$0x1] }
  0xb5   : > { %v1135_v4 = vrot.slane %v1133_v2, 4  ;;  %v1141_v5 = vrot.slane %v1139_v49, 5  ;;  %11873 = vmatmul.mubr.msk.bf16.gmra.mxu1 %vm1241_vm5, %v10794_v47  ;;  %v1157_v7 = vshrl.u32 %v13300_v51, 16  ;;  %v1146_v8 = vrot.slane %v1144_v56, 4  ;;  %v785_v62 = vld [vmem:[#allocation2 + $0xb4] sm:$0xf] }
  0xb6   : > { %v1149_v59 = vrot.slane %v1147_v60, 5  ;;  %v1155_v30 = vrot.slane %v1153_v55, 5  ;;  %v1163_v6 = vshll.u32 %v13302_v50, 16  ;;  %v1132_v14 = vsel %vm12900_vm9, %v1127_v46, %v1131_v58 }
  0xb7   : > { %v1136_v16 = vor.u32 %v1135_v4, %v1131_v58  ;;  %v1159_v10 = vrot.slane %v1157_v7, 4  ;;  %v10795_v19 = vcombine.low %v783_v48, %v13300_v51  ;;  %v13311_v20 = vld [vmem:[#allocation2 + $0xb8] sm:$0xf]  ;;  %v13313_v31 = vld [vmem:[#allocation2 + $0xbc] sm:$0x1]  ;;  %v1168_v29 = vshrl.u32 %v785_v62, 16 }
  0xb8   : > { %v1150_v21 = vor.u32 %v1149_v59, %v1146_v8  ;;  %v1165_v17 = vrot.slane %v1163_v6, 5  ;;  %v1171_v39 = vshll.u32 %v785_v62, 16  ;;  %v1177_v49 = vshll.u32 %v13311_v20, 16  ;;  %v12466_v8 = vld [vmem:[#allocation2 + $0xc] sm:$0xff]  }
  0xb9   : > { %v1137_v53 = vrot.slane %v1136_v16, 4  ;;  %v1160_v2 = vor.u32 %v1159_v10, %v1155_v30  ;;  %11876 = vmatprep.mubr.msk.bf16.mxu1 %vm1241_vm5, %v10795_v19  ;;  %v1181_v47 = vshrl.u32 %v13311_v20, 16  ;;  %v1170_v56 = vrot.slane %v1168_v29, 4  ;;  %v1750_v19 = vld [vmem:[#allocation2 + $0x24] sm:$0xe] }
  0xba   : > { %v1151_v46 = vrot.slane %v1150_v21, 4  ;;  %v1173_v60 = vrot.slane %v1171_v39, 5  ;;  %v1187_v48 = vshll.u32 %v13313_v31, 16  ;;  %v1179_v4 = vrot.slane %v1177_v49, 5 }
  0xbb   : > { %v1142_v55 = vsel %vm12900_vm9, %v1137_v53, %v1141_v5  ;;  %v1161_v58 = vrot.slane %v1160_v2, 4  ;;  %v1183_v7 = vrot.slane %v1181_v47, 4  ;;  %v1804_v10 = vsel %vm13251_vm15, %v1802_v13, %v1803_v23  ;;  %v1751_v53 = vld [vmem:[#allocation2 + $0x30] sm:$0xe]  ;;  %v12549_v47 = vld [vmem:[#allocation2 + $0x20] sm:$0x1] }
  0xbc   : > { %v10762_v59 = vcombine.low %v1132_v14, %v1142_v55  ;;  %v1156_v6 = vsel %vm12900_vm9, %v1151_v46, %v1155_v30  ;;  %v1174_v16 = vor.u32 %v1173_v60, %v1170_v56  ;;  %v1189_v5 = vrot.slane %v1187_v48, 5  ;;  %v12548_v30 = vld [vmem:[#allocation2 + $0x1c] sm:$0xf]  ;;  %v12550_v13 = vld [vmem:[#allocation2 + $0x28] sm:$0xf] }
  0xbd   : > { %v1166_v21 = vsel %vm12900_vm9, %v1161_v58, %v1165_v17  ;;  %v1184_v29 = vor.u32 %v1183_v7, %v1179_v4  ;;  %v10796_v39 = vcombine.low %v785_v62, %v13311_v20  ;;  %v1814_v49 = vrot.slane %v12548_v30, 5  ;;  %v12551_v17 = vld [vmem:[#allocation2 + $0x2c] sm:$0x1]  ;;  %v1752_v48 = vld [vmem:[#allocation2 + $0x3c] sm:$0xe]  ;;  %v12468_v30 = vld [vmem:[#allocation2 + $0x24] sm:$0xff]  }
  0xbe   : > { %11839 = vmatmul.mubr.msk.bf16.gmra.mxu0 %vm1241_vm5, %v10762_v59  ;;  %v10763_v14 = vcombine.low %v1156_v6, %v1166_v21  ;;  %v1175_v2 = vrot.slane %v1174_v16, 4  ;;  %v1817_v22 = vrot.slane %v12549_v47, 5  ;;  %v10816_v23 = vrot.slane %v1750_v19, 9  ;;  %v12552_v19 = vld [vmem:[#allocation2 + $0x34] sm:$0xf] }
  0xbf   : > { %v1185_v46 = vrot.slane %v1184_v29, 4  ;;  %11877 = vmatmul.mubr.msk.bf16.gmra.mxu1 %vm1241_vm5, %v10796_v39  ;;  %v1821_v56 = vrot.slane %v12550_v13, 5  ;;  %v1824_v60 = vrot.slane %v12551_v17, 5  ;;  %v13340_v55 = vsel %vm13251_vm15, %v10815_v1, %v1814_v49  ;;  %v1753_v29 = vld [vmem:[#allocation2 + $0x48] sm:$0xe] }
  0xc0   : > { %11842 = vmatprep.mubr.msk.bf16.mxu0 %vm1241_vm5, %v10763_v14  ;;  %v1180_v62 = vsel %vm12900_vm9, %v1175_v2, %v1179_v4  ;;  %11916 = vmatprep.mubr.msk.bf16.mxu1 %vm1241_vm5, %v12466_v8  ;;  %v1816_v58 = vrot.slane %v1814_v49, 4  ;;  %v10817_v7 = vrot.slane %v1751_v53, 9  ;;  %v10830_v6 = vcombine.low %v13292_v52, %v1804_v10  ;;  %v1754_v14 = vld [vmem:[#allocation2 + $0x54] sm:$0xe]  ;;  %v12467_v2 = vld [vmem:[#allocation2 + $0x18] sm:$0xff]  }
  0xc1   : > { %v1190_v59 = vsel %vm12900_vm9, %v1185_v46, %v1189_v5  ;;  %v1823_v16 = vrot.slane %v1821_v56, 4  ;;  %v1828_v21 = vrot.slane %v12552_v19, 5  ;;  %v1831_v39 = vrot.slane %v12553_v26, 5  ;;  %v1755_v13 = vld [vmem:[#allocation2 + $0x60] sm:$0xe] }
  0xc2   : > { %v10764_v4 = vcombine.low %v1180_v62, %v1190_v59  ;;  %v13347_v8 = vsel %vm13251_vm15, %v1816_v58, %v1817_v22  ;;  %v10818_v1 = vrot.slane %v1752_v48, 9  ;;  %v13353_v52 = vsel %vm13251_vm15, %v10816_v23, %v1821_v56  ;;  %v1756_v58 = vld [vmem:[#allocation2 + $0x6c] sm:$0xe] }
  0xc3   : > { %v10832_v53 = vcombine.low %v13340_v55, %v13347_v8  ;;  %v13357_v10 = vsel %vm13251_vm15, %v1823_v16, %v1824_v60  ;;  %v1830_v5 = vrot.slane %v1828_v21, 4  ;;  %v13361_v49 = vsel %vm13251_vm15, %v10817_v7, %v1828_v21  ;;  %v1757_v21 = vld [vmem:[#allocation2 + $0x78] sm:$0xe] }
  0xc4   : > { %v1835_v47 = vrot.slane %v13044_v27, 5  ;;  %v1838_v22 = vrot.slane %v13046_v28, 5  ;;  %v10819_v46 = vrot.slane %v1753_v29, 9  ;;  %v1842_v56 = vrot.slane %v13057_v43, 5 }
  0xc5   : > { %v13367_v23 = vsel %vm13251_vm15, %v1830_v5, %v1831_v39  ;;  %v1845_v17 = vrot.slane %v13059_v45, 5  ;;  %v10820_v60 = vrot.slane %v1754_v14, 9  ;;  %v10833_v48 = vcombine.low %v13353_v52, %v13357_v10  ;;  %v1758_v39 = vld [vmem:[#allocation2 + $0x84] sm:$0xe] }
  0xc6   : > { %11843 = vmatmul.mubr.msk.bf16.gmra.mxu0 %vm1241_vm5, %v10764_v4  ;;  %v13376_v27 = vsel %vm13251_vm15, %v10818_v1, %v1835_v47  ;;  %v1837_v28 = vrot.slane %v1835_v47, 4  ;;  %v1849_v62 = vrot.slane %v13079_v9, 5  ;;  %v13383_v43 = vsel %vm13251_vm15, %v10819_v46, %v1842_v56  ;;  %v12469_v46 = vld [vmem:[#allocation2 + $0x30] sm:$0xff]  }
  0xc7   : > { %11882 = vmatprep.mubr.msk.bf16.mxu0 %vm1241_vm5, %v10830_v6  ;;  %11917 = vmatmul.mubr.msk.bf16.vlgmr.msra.gmra.mxu1 %vm1241_vm5, %v12467_v2  ;;  %v1844_v45 = vrot.slane %v1842_v56, 4  ;;  %v1852_v7 = vrot.slane %v13081_v12, 5  ;;  %v10821_v59 = vrot.slane %v1755_v13, 9  ;;  %v10834_v16 = vcombine.low %v13361_v49, %v13367_v23  ;;  %v12470_v13 = vld [vmem:[#allocation2 + $0x3c] sm:$0xff]  }
  0xc8   : > { %11920 = vmatprep.mubr.msk.bf16.mxu1 %vm1241_vm5, %v12468_v30  ;;  %v13391_v9 = vsel %vm13251_vm15, %v1837_v28, %v1838_v22  ;;  %v1851_v6 = vrot.slane %v1849_v62, 4  ;;  %v1856_v19 = vrot.slane %v13092_v34, 5  ;;  %v13400_v12 = vsel %vm13251_vm15, %v10820_v60, %v1849_v62  ;;  %v1759_v22 = vld [vmem:[#allocation2 + $0x90] sm:$0xe] }
  0xc9   : > { %v13396_v29 = vsel %vm13251_vm15, %v1844_v45, %v1845_v17  ;;  %v1859_v4 = vrot.slane %v13103_v61, 5  ;;  %v10822_v26 = vrot.slane %v1756_v58, 9  ;;  %v10835_v1 = vcombine.low %v13376_v27, %v13391_v9  ;;  %v1760_v45 = vld [vmem:[#allocation2 + $0x9c] sm:$0xe] }
  0xca   : > { %v10836_v14 = vcombine.low %v13383_v43, %v13396_v29  ;;  %v13409_v34 = vsel %vm13251_vm15, %v1851_v6, %v1852_v7  ;;  %v1858_v2 = vrot.slane %v1856_v19, 4  ;;  %v13413_v5 = vsel %vm13251_vm15, %v10821_v59, %v1856_v19  ;;  %v13433_v7 = vld [vmem:[%s17611_s1 + $0xc] sm:$0x3]  ;;  %v1762_v19 = vld [vmem:[#allocation2 + $0xb4] sm:$0xe] }
  0xcb   : > { %v1863_v30 = vrot.slane %v13155_v37, 5  ;;  %v1866_v61 = vrot.slane %v13149_v18, 5  ;;  %v10823_v47 = vrot.slane %v1757_v21, 9  ;;  %v10837_v56 = vcombine.low %v13400_v12, %v13409_v34 }
  0xcc   : > { %v1870_v17 = vrot.slane %v13167_v0, 5  ;;  %v1873_v60 = vrot.slane %v13169_v3, 5  ;;  %v10824_v28 = vrot.slane %v1758_v39, 9  ;;  %v13423_v62 = vsel %vm13251_vm15, %v1858_v2, %v1859_v4 }
  0xcd   : > { %v13427_v37 = vsel %vm13251_vm15, %v10822_v26, %v1863_v30  ;;  %v1865_v18 = vrot.slane %v1863_v30, 4  ;;  %v1877_v58 = vrot.slane %v13182_v25, 5  ;;  %v1880_v59 = vrot.slane %v13185_v11, 5  ;;  %v1761_v11 = vld [vmem:[#allocation2 + $0xa8] sm:$0xe] }
  0xce   : > { %11883 = vmatmul.mubr.msk.bf16.vlgmr.msra.gmra.mxu0 %vm1241_vm5, %v10831_v40  ;;  %v13441_v0 = vsel %vm13251_vm15, %v10823_v47, %v1870_v17  ;;  %v1872_v3 = vrot.slane %v1870_v17, 4  ;;  %v10825_v6 = vrot.slane %v1759_v22, 9  ;;  %v1884_v40 = vrot.slane %v13194_v54, 5  ;;  %v12471_v47 = vld [vmem:[#allocation2 + $0x48] sm:$0xff]  }
  0xcf   : > { %11949 = vmatpush3.bf16.msra.mxu0 %v13283_v38  ;;  %11886 = vmatprep.mubr.msk.bf16.mxu0 %vm1241_vm5, %v10832_v53  ;;  %v13451_v25 = vsel %vm13251_vm15, %v1865_v18, %v1866_v61  ;;  %v13455_v32 = vsel %vm13251_vm15, %v10824_v28, %v1877_v58  ;;  %v1879_v35 = vrot.slane %v1877_v58, 4  ;;  %v1887_v8 = vrot.slane %v13196_v63, 5  ;;  %v256_v61 = vld [vmem:[%s12889_s29 + $0x78] sm:$0xf]  ;;  %v257_v18 = vld [vmem:[%s12889_s29 + $0x7c] sm:$0xf] }
  0xd0   : > { %11921 = vmatmul.mubr.msk.bf16.gmra.mxu1 %vm1241_vm5, %v12469_v46  ;;  %v10839_v38 = vcombine.low %v13427_v37, %v13451_v25  ;;  %v13463_v55 = vsel %vm13251_vm15, %v1872_v3, %v1873_v60  ;;  %v10826_v53 = vrot.slane %v1760_v45, 9  ;;  %12430 = vmatprep.subr.msk.bf16.mxu0 %vm1290_vm0, %v13433_v7  ;;  %v13477_v4 = vsel %vm13251_vm15, %v10825_v6, %v1884_v40  ;;  %v12472_v58 = vld [vmem:[#allocation2 + $0x54] sm:$0xff]   ;;  %v2575_v25 = vld [vmem:[#allocation2 + $0x40] sm:$0xf] }
  0xd1   : > { %11924 = vmatprep.mubr.msk.bf16.mxu1 %vm1241_vm5, %v12470_v13  ;;  %v10840_v54 = vcombine.low %v13441_v0, %v13463_v55  ;;  %v13473_v21 = vsel %vm13251_vm15, %v1879_v35, %v1880_v59  ;;  %v1886_v63 = vrot.slane %v1884_v40, 4  ;;  %v1891_v39 = vrot.slane %v13286_v41, 5  ;;  %v2562_v59 = vld [vmem:[#allocation2 + $0xc] sm:$0xf]  ;;  %v13664_v55 = vld [vmem:[#allocation2 + $0x44] sm:$0x1] }
  0xd2   : > { %v10841_v26 = vcombine.low %v13455_v32, %v13473_v21  ;;  %v1894_v2 = vrot.slane %v13288_v42, 5  ;;  %v10827_v30 = vrot.slane %v1761_v11, 9  ;;  %v1898_v46 = vrot.slane %v13300_v51, 5  ;;  %v13515_v11 = vld [vmem:[#allocation2 + $0x10] sm:$0xf] }
  0xd3   : > { %v13486_v22 = vsel %vm13251_vm15, %v1886_v63, %v1887_v8  ;;  %v1901_v13 = vrot.slane %v13302_v50, 5  ;;  %v10828_v17 = vrot.slane %v1762_v19, 9  ;;  %v13494_v41 = vsel %vm13251_vm15, %v10826_v53, %v1891_v39  ;;  %v11010_v8 = vld [vmem:[%s17611_s1 + $0xe] sm:$0x3]  ;;  %v748_v53 = vld [vmem:[#allocation2 + $0xc0] sm:$0xf] }
  0xd4   : > { %v10842_v60 = vcombine.low %v13477_v4, %v13486_v22  ;;  %v1893_v42 = vrot.slane %v1891_v39, 4  ;;  %v1905_v28 = vrot.slane %v13311_v20, 5  ;;  %v13500_v45 = vsel %vm13251_vm15, %v10827_v30, %v1898_v46  ;;  %v13539_v63 = vld [vmem:[#allocation2 + $0x14] sm:$0x1] }
  0xd5   : > { %v1900_v51 = vrot.slane %v1898_v46, 4  ;;  %v1908_v50 = vrot.slane %v13313_v31, 5  ;;  %v573_v3 = vshrl.u32 %v256_v61, 16  ;;  %v576_v40 = vshll.u32 %v256_v61, 16  ;;  %v13546_v46 = vld [vmem:[#allocation2 + $0x1c] sm:$0xf] }
  0xd6   : > { %11887 = vmatmul.mubr.msk.bf16.gmra.mxu0 %vm1241_vm5, %v10833_v48  ;;  %v13509_v6 = vsel %vm13251_vm15, %v1893_v42, %v1894_v2  ;;  %v13513_v20 = vsel %vm13251_vm15, %v10828_v17, %v1905_v28  ;;  %v1907_v35 = vrot.slane %v1905_v28, 4  ;;  %v581_v48 = vshrl.u32 %v257_v18, 16  ;;  %v13550_v28 = vld [vmem:[#allocation2 + $0x20] sm:$0x1] }
  0xd7   : > { %11890 = vmatprep.mubr.msk.bf16.mxu0 %vm1241_vm5, %v10834_v16  ;;  %v10843_v31 = vcombine.low %v13494_v41, %v13509_v6  ;;  %v13525_v52 = vsel %vm13251_vm15, %v1900_v51, %v1901_v13  ;;  %v575_v10 = vrot.slane %v573_v3, 7  ;;  %v584_v16 = vshll.u32 %v257_v18, 16  ;;  %v12473_v18 = vld [vmem:[#allocation2 + $0x60] sm:$0xff]  }
  0xd8   : > { %11925 = vmatmul.mubr.msk.bf16.gmra.mxu1 %vm1241_vm5, %v12471_v47  ;;  %v13535_v23 = vsel %vm13251_vm15, %v1907_v35, %v1908_v50  ;;  %v3563_v19 = vsel %vm1290_vm0, %v13244_v57, 0  ;;  %v13544_v61 = vrot.slane %v581_v48, 7  ;;  %v2565_v47 = vld [vmem:[#allocation2 + $0x18] sm:$0xf]  ;;  %v2611_v13 = vshrl.u32 %v2562_v59, 16  ;;  %v12474_v48 = vld [vmem:[#allocation2 + $0x6c] sm:$0xff]  }
  0xd9   : > { %11928 = vmatprep.mubr.msk.bf16.mxu1 %vm1241_vm5, %v12472_v58  ;;  %v578_v2 = vor.u32 %v576_v40, %v575_v10  ;;  %v579_v30 = vrot.slane %v575_v10, 4  ;;  %11983 = vmatpush3.bf16.msra.mxu1 %v3563_v19  ;;  %v2614_v17 = vshll.u32 %v2562_v59, 16  ;;  %v2620_v42 = vshll.u32 %v13515_v11, 16 }
  0xda   : > { %v2624_v57 = vshrl.u32 %v13515_v11, 16  ;;  %12431 = vmatprep.subr.msk.bf16.mxu1 %vm1290_vm0, %v11010_v8  ;;  %v10838_v58 = vcombine.low %v13413_v5, %v13423_v62  ;;  %v586_v51 = vor.u32 %v584_v16, %v13544_v61  ;;  %v2630_v3 = vshll.u32 %v13539_v63, 16 }
  0xdb   : > { %v749_v50 = vsel %vm12908_vm10, %v578_v2, %v748_v53  ;;  %v2613_v59 = vrot.slane %v2611_v13, 4  ;;  %v2616_v35 = vrot.slane %v2614_v17, 5  ;;  %v2622_v40 = vrot.slane %v2620_v42, 5  ;;  %v3288_v17 = vld [vmem:[#allocation2 + $0xc] sm:$0xe] }
  0xdc   : > { %750 = vst [vmem:[#allocation2 + $0xc0] sm:$0xf] %v749_v50  ;;  %v2626_v10 = vrot.slane %v2624_v57, 4  ;;  %v587_v8 = vsel %vm12914_vm11, %v579_v30, %v586_v51  ;;  %v588_v19 = vrot.slane %v13544_v61, 4  ;;  %v2635_v39 = vshrl.u32 %v2565_v47, 16 }
  0xdd   : > { %v2638_v49 = vshll.u32 %v2565_v47, 16  ;;  %751 = vst.msk [vmem:[#allocation2 + $0xc4] sm:$0xf] %vm258_vm1, %v587_v8  ;;  %v2617_v16 = vor.u32 %v2616_v35, %v2613_v59  ;;  %v2644_v2 = vshll.u32 %v13546_v46, 16  ;;  %v2648_v13 = vshrl.u32 %v13546_v46, 16 }
  0xde   : > { %11891 = vmatmul.mubr.msk.bf16.gmra.mxu0 %vm1241_vm5, %v10835_v1  ;;  %v2627_v53 = vor.u32 %v2626_v10, %v2622_v40  ;;  %v2632_v30 = vrot.slane %v2630_v3, 5  ;;  %v2637_v47 = vrot.slane %v2635_v39, 4  ;;  %v2654_v27 = vshll.u32 %v13550_v28, 16  ;;  %v3289_v50 = vld [vmem:[#allocation2 + $0x18] sm:$0xe] }
  0xdf   : > { %11894 = vmatprep.mubr.msk.bf16.mxu0 %vm1241_vm5, %v10836_v14  ;;  %v2640_v42 = vrot.slane %v2638_v49, 5  ;;  %v2618_v9 = vrot.slane %v2617_v16, 4  ;;  %v2646_v57 = vrot.slane %v2644_v2, 5  ;;  %v2650_v51 = vrot.slane %v2648_v13, 4  ;;  %v2568_v49 = vld [vmem:[#allocation2 + $0x24] sm:$0xf] }
  0xe0   : > { %11929 = vmatmul.mubr.msk.bf16.gmra.mxu1 %vm1241_vm5, %v12473_v18  ;;  %v2628_v1 = vrot.slane %v2627_v53, 4  ;;  %v13578_v43 = vsel %vm1290_vm0, %v13433_v7, 0  ;;  %v10928_v29 = vrot.slane %v3288_v17, 9  ;;  %v3354_v14 = vrot.slane %v13515_v11, 5  ;;  %v12475_v39 = vld [vmem:[#allocation2 + $0x78] sm:$0xff]  }
  0xe1   : > { %11932 = vmatprep.mubr.msk.bf16.mxu1 %vm1241_vm5, %v12474_v48  ;;  %v2641_v59 = vor.u32 %v2640_v42, %v2637_v47  ;;  %v2623_v18 = vsel %vm12900_vm9, %v2618_v9, %v2622_v40  ;;  %v2651_v3 = vor.u32 %v2650_v51, %v2646_v57  ;;  %v2656_v35 = vrot.slane %v2654_v27, 5  ;;  %v13584_v8 = vld [vmem:[#allocation2 + $0x28] sm:$0xf]  ;;  %v13592_v2 = vld [vmem:[#allocation2 + $0x2c] sm:$0x1] }
  0xe2   : > { %v3357_v10 = vrot.slane %v13539_v63, 5  ;;  %v12476_v48 = vld [vmem:[#allocation2 + $0x84] sm:$0xff]   ;;  %v2633_v16 = vsel %vm12900_vm9, %v2628_v1, %v2632_v30  ;;  %v13590_v53 = vsel %vm13251_vm15, %v10928_v29, %v3354_v14  ;;  %v3356_v11 = vrot.slane %v3354_v14, 4  ;;  %v2571_v47 = vld [vmem:[#allocation2 + $0x30] sm:$0xf] }
  0xe3   : > { %v2642_v7 = vrot.slane %v2641_v59, 4  ;;  %v2652_v13 = vrot.slane %v2651_v3, 4  ;;  %v10929_v40 = vrot.slane %v3289_v50, 9  ;;  %v3361_v17 = vrot.slane %v13546_v46, 5  ;;  %v13602_v1 = vld [vmem:[#allocation2 + $0x34] sm:$0xf] }
  0xe4   : > { %v3364_v63 = vrot.slane %v13550_v28, 5  ;;  %v13600_v30 = vsel %vm13251_vm15, %v3356_v11, %v3357_v10  ;;  %v2659_v27 = vshrl.u32 %v2568_v49, 16  ;;  %v2662_v9 = vshll.u32 %v2568_v49, 16  ;;  %v13614_v50 = vld [vmem:[#allocation2 + $0x38] sm:$0x1] }
  0xe5   : > { %v2647_v42 = vsel %vm12900_vm9, %v2642_v7, %v2646_v57  ;;  %v13608_v46 = vcombine.low %v2623_v18, %v2633_v16  ;;  %v2657_v28 = vsel %vm12900_vm9, %v2652_v13, %v2656_v35  ;;  %v10945_v57 = vcombine.low %v13590_v53, %v13600_v30  ;;  %v3290_v35 = vld [vmem:[#allocation2 + $0x24] sm:$0xe] }
  0xe6   : > { %11895 = vmatmul.mubr.msk.bf16.gmra.mxu0 %vm1241_vm5, %v10837_v56  ;;  %v3363_v51 = vrot.slane %v3361_v17, 4  ;;  %v13622_v12 = vsel %vm13251_vm15, %v10929_v40, %v3361_v17  ;;  %v2661_v34 = vrot.slane %v2659_v27, 4  ;;  %v2664_v56 = vrot.slane %v2662_v9, 5 }
  0xe7   : > { %11898 = vmatprep.mubr.msk.bf16.mxu0 %vm1241_vm5, %v10838_v58  ;;  %v2668_v59 = vshll.u32 %v13584_v8, 16  ;;  %v13626_v29 = vcombine.low %v2647_v42, %v2657_v28  ;;  %v2672_v14 = vshrl.u32 %v13584_v8, 16  ;;  %v2678_v49 = vshll.u32 %v13592_v2, 16  ;;  %v3291_v28 = vld [vmem:[#allocation2 + $0x30] sm:$0xe] }
  0xe8   : > { %11933 = vmatmul.mubr.msk.bf16.gmra.mxu1 %vm1241_vm5, %v12475_v39  ;;  %v2683_v18 = vshrl.u32 %v2571_v47, 16  ;;  %v13633_v5 = vsel %vm13251_vm15, %v3363_v51, %v3364_v63  ;;  %v2665_v62 = vor.u32 %v2664_v56, %v2661_v34  ;;  %v2686_v3 = vshll.u32 %v2571_v47, 16  ;;  %v12478_v47 = vld [vmem:[#allocation2 + $0x9c] sm:$0xff]  }
  0xe9   : > { %11936 = vmatprep.mubr.msk.bf16.mxu1 %vm1241_vm5, %v12476_v48  ;;  %v2670_v58 = vrot.slane %v2668_v59, 5  ;;  %v2674_v10 = vrot.slane %v2672_v14, 4  ;;  %v2680_v16 = vrot.slane %v2678_v49, 5  ;;  %v2692_v7 = vshll.u32 %v13602_v1, 16  ;;  %v12477_v48 = vld [vmem:[#allocation2 + $0x90] sm:$0xff]  }
  0xea   : > { %v2685_v39 = vrot.slane %v2683_v18, 4  ;;  %v2666_v11 = vrot.slane %v2665_v62, 4  ;;  %v2688_v13 = vrot.slane %v2686_v3, 5  ;;  %v2696_v40 = vshrl.u32 %v13602_v1, 16  ;;  %v2574_v14 = vld [vmem:[#allocation2 + $0x3c] sm:$0xf] }
  0xeb   : > { %v2702_v17 = vshll.u32 %v13614_v50, 16  ;;  %v2675_v42 = vor.u32 %v2674_v10, %v2670_v58  ;;  %v2694_v27 = vrot.slane %v2692_v7, 5  ;;  %v10930_v63 = vrot.slane %v3290_v35, 9 }
  0xec   : > { %v3368_v9 = vrot.slane %v13584_v8, 5  ;;  %v10946_v51 = vcombine.low %v13622_v12, %v13633_v5  ;;  %v2671_v34 = vsel %vm12900_vm9, %v2666_v11, %v2670_v58  ;;  %v2689_v56 = vor.u32 %v2688_v13, %v2685_v39  ;;  %v2577_v11 = vld [vmem:[#allocation2 + $0x48] sm:$0xf] }
  0xed   : > { %v2698_v59 = vrot.slane %v2696_v40, 4  ;;  %v2676_v49 = vrot.slane %v2675_v42, 4  ;;  %v2704_v18 = vrot.slane %v2702_v17, 5  ;;  %v3371_v8 = vrot.slane %v13592_v2, 5  ;;  %v13676_v42 = vld [vmem:[#allocation2 + $0x50] sm:$0x1] }
  0xee   : > { %11899 = vmatmul.mubr.msk.bf16.gmra.mxu0 %vm1241_vm5, %v10839_v38  ;;  %v3370_v62 = vrot.slane %v3368_v9, 4  ;;  %v2690_v3 = vrot.slane %v2689_v56, 4  ;;  %v13654_v35 = vsel %vm13251_vm15, %v10930_v63, %v3368_v9  ;;  %v3375_v37 = vrot.slane %v13602_v1, 5 }
  0xef   : > { %11902 = vmatprep.mubr.msk.bf16.mxu0 %vm1241_vm5, %v10840_v54  ;;  %v2699_v58 = vor.u32 %v2698_v59, %v2694_v27  ;;  %v2681_v38 = vsel %vm12900_vm9, %v2676_v49, %v2680_v16  ;;  %v10931_v0 = vrot.slane %v3291_v28, 9  ;;  %v2707_v54 = vshrl.u32 %v2574_v14, 16  ;;  %v13672_v16 = vld [vmem:[#allocation2 + $0x4c] sm:$0xf] }
  0xf0   : > { %11937 = vmatmul.mubr.msk.bf16.gmra.mxu1 %vm1241_vm5, %v12477_v48  ;;  %v13662_v2 = vsel %vm13251_vm15, %v3370_v62, %v3371_v8  ;;  %v13667_v10 = vcombine.low %v2671_v34, %v2681_v38  ;;  %v2695_v1 = vsel %vm12900_vm9, %v2690_v3, %v2694_v27  ;;  %v3378_v7 = vrot.slane %v13614_v50, 5  ;;  %v12479_v50 = vld [vmem:[#allocation2 + $0xa8] sm:$0xff]  }
  0xf1   : > { %11940 = vmatprep.mubr.msk.bf16.mxu1 %vm1241_vm5, %v12478_v47  ;;  %v2700_v39 = vrot.slane %v2699_v58, 4  ;;  %v10947_v13 = vcombine.low %v13654_v35, %v13662_v2  ;;  %v3377_v40 = vrot.slane %v3375_v37, 4  ;;  %v2709_v17 = vrot.slane %v2707_v54, 4  ;;  %v3292_v47 = vld [vmem:[#allocation2 + $0x3c] sm:$0xe] }
  0xf2   : > { %v2710_v48 = vshll.u32 %v2574_v14, 16  ;;  %v2716_v9 = vshll.u32 %v2575_v25, 16  ;;  %v2720_v28 = vshrl.u32 %v2575_v25, 16  ;;  %v2726_v27 = vshll.u32 %v13664_v55, 16  ;;  %v12480_v14 = vld [vmem:[#allocation2 + $0xb4] sm:$0xff]  }
  0xf3   : > { %v2705_v63 = vsel %vm12900_vm9, %v2700_v39, %v2704_v18  ;;  %v13685_v56 = vsel %vm13251_vm15, %v10931_v0, %v3375_v37  ;;  %v2731_v49 = vshrl.u32 %v2577_v11, 16  ;;  %v13689_v62 = vsel %vm13251_vm15, %v3377_v40, %v3378_v7 }
  0xf4   : > { %v13681_v34 = vcombine.low %v2695_v1, %v2705_v63  ;;  %v2712_v59 = vrot.slane %v2710_v48, 5  ;;  %v2718_v18 = vrot.slane %v2716_v9, 5  ;;  %v2722_v8 = vrot.slane %v2720_v28, 4 }
  0xf5   : > { %v2728_v3 = vrot.slane %v2726_v27, 5  ;;  %v2733_v38 = vrot.slane %v2731_v49, 4  ;;  %v2734_v54 = vshll.u32 %v2577_v11, 16  ;;  %v2740_v37 = vshll.u32 %v13672_v16, 16  ;;  %v3293_v11 = vld [vmem:[#allocation2 + $0x48] sm:$0xe] }
  0xf6   : > { %11903 = vmatmul.mubr.msk.bf16.gmra.mxu0 %vm1241_vm5, %v10841_v26  ;;  %v2713_v58 = vor.u32 %v2712_v59, %v2709_v17  ;;  %v2723_v0 = vor.u32 %v2722_v8, %v2718_v18  ;;  %v2744_v1 = vshrl.u32 %v13672_v16, 16  ;;  %v2750_v39 = vshll.u32 %v13676_v42, 16  ;;  %v2580_v27 = vld [vmem:[#allocation2 + $0x54] sm:$0xf] }
  0xf7   : > { %11906 = vmatprep.mubr.msk.bf16.mxu0 %vm1241_vm5, %v10842_v60  ;;  %v10932_v7 = vrot.slane %v3292_v47, 9  ;;  %v2736_v21 = vrot.slane %v2734_v54, 5  ;;  %v2742_v26 = vrot.slane %v2740_v37, 5  ;;  %v3382_v40 = vrot.slane %v2575_v25, 5  ;;  %v13711_v47 = vld [vmem:[#allocation2 + $0x58] sm:$0xf] }
  0xf8   : > { %11941 = vmatmul.mubr.msk.bf16.gmra.mxu1 %vm1241_vm5, %v12479_v50  ;;  %v2714_v32 = vrot.slane %v2713_v58, 4  ;;  %v2724_v17 = vrot.slane %v2723_v0, 4  ;;  %v2746_v48 = vrot.slane %v2744_v1, 4  ;;  %v2752_v4 = vrot.slane %v2750_v39, 5  ;;  %v12481_v25 = vld [vmem:[#allocation2 + $0xc0] sm:$0xff]  }
  0xf9   : > { %11944 = vmatprep.mubr.msk.bf16.mxu1 %vm1241_vm5, %v12480_v14  ;;  %v3385_v22 = vrot.slane %v13664_v55, 5  ;;  %v2737_v63 = vor.u32 %v2736_v21, %v2733_v38  ;;  %v13709_v9 = vsel %vm13251_vm15, %v10932_v7, %v3382_v40  ;;  %v3384_v28 = vrot.slane %v3382_v40, 4  ;;  %v13716_v14 = vld [vmem:[#allocation2 + $0x5c] sm:$0x1] }
  0xfa   : > { %v2719_v60 = vsel %vm12900_vm9, %v2714_v32, %v2718_v18  ;;  %v2729_v50 = vsel %vm12900_vm9, %v2724_v17, %v2728_v3  ;;  %v2747_v59 = vor.u32 %v2746_v48, %v2742_v26  ;;  %v10933_v49 = vrot.slane %v3293_v11, 9  ;;  %v2585_v17 = vld [vmem:[#allocation2 + $0x68] sm:$0x1]  ;;  %v3294_v48 = vld [vmem:[#allocation2 + $0x54] sm:$0xe] }
  0xfb   : > { %v3389_v55 = vrot.slane %v13672_v16, 5  ;;  %v10948_v18 = vcombine.low %v13685_v56, %v13689_v62  ;;  %v2738_v8 = vrot.slane %v2737_v63, 4  ;;  %v13722_v58 = vsel %vm13251_vm15, %v3384_v28, %v3385_v22  ;;  %v3295_v28 = vld [vmem:[#allocation2 + $0x60] sm:$0xe]  ;;  %v2592_v62 = vld [vmem:[#allocation2 + $0x84] sm:$0xf] }
  0xfc   : > { %v3392_v38 = vrot.slane %v13676_v42, 5  ;;  %v13725_v54 = vcombine.low %v2719_v60, %v2729_v50  ;;  %v2748_v37 = vrot.slane %v2747_v59, 4  ;;  %v10949_v3 = vcombine.low %v13709_v9, %v13722_v58  ;;  %v2583_v42 = vld [vmem:[#allocation2 + $0x60] sm:$0xf] }
  0xfd   : > { %v3391_v0 = vrot.slane %v3389_v55, 4  ;;  %v2743_v16 = vsel %vm12900_vm9, %v2738_v8, %v2742_v26  ;;  %v2755_v1 = vshrl.u32 %v2580_v27, 16  ;;  %v2758_v39 = vshll.u32 %v2580_v27, 16  ;;  %v2584_v26 = vld [vmem:[#allocation2 + $0x64] sm:$0xf] }
  0xfe   : > { %11907 = vmatmul.mubr.msk.bf16.gmra.mxu0 %vm1241_vm5, %v10843_v31  ;;  %v2764_v7 = vshll.u32 %v13711_v47, 16  ;;  %v17661_v32 = vcombine.low %v13500_v45, %v13525_v52  ;;  %v2753_v21 = vsel %vm12900_vm9, %v2748_v37, %v2752_v4  ;;  %v13744_v41 = vsel %vm13251_vm15, %v10933_v49, %v3389_v55 }
  0xff   : > { %v2768_v6 = vshrl.u32 %v13711_v47, 16  ;;  %v2774_v31 = vshll.u32 %v13716_v14, 16  ;;  %v13749_v40 = vcombine.low %v2743_v16, %v2753_v21  ;;  %v13753_v45 = vsel %vm13251_vm15, %v3391_v0, %v3392_v38 }
 0x100   : > { %11910 = vmatprep.mubr.msk.bf16.mxu0 %vm1241_vm5, %v17661_v32  ;;  %11945 = vmatmul.mubr.msk.bf16.gmra.mxu1 %vm1241_vm5, %v12481_v25  ;;  %v2757_v52 = vrot.slane %v2755_v1, 4  ;;  %v2760_v11 = vrot.slane %v2758_v39, 5  ;;  %v2766_v4 = vrot.slane %v2764_v7, 5  ;;  %v2779_v63 = vshrl.u32 %v2583_v42, 16 }
 0x101   : > { %11984 = vmatprep.mubr.msk.bf16.mxu1 %vm1241_vm5, %v10945_v57  ;;  %v2770_v22 = vrot.slane %v2768_v6, 4  ;;  %v2776_v60 = vrot.slane %v2774_v31, 5  ;;  %v2782_v25 = vshll.u32 %v2583_v42, 16  ;;  %v2788_v50 = vshll.u32 %v2584_v26, 16  ;;  %v2586_v31 = vld [vmem:[#allocation2 + $0x6c] sm:$0xf] }
 0x102   : > { %v2761_v27 = vor.u32 %v2760_v11, %v2757_v52  ;;  %v2792_v59 = vshrl.u32 %v2584_v26, 16  ;;  %v2781_v55 = vrot.slane %v2779_v63, 4  ;;  %v2798_v8 = vshll.u32 %v2585_v17, 16  ;;  %v13775_v11 = vld [vmem:[#allocation2 + $0x74] sm:$0x1] }
 0x103   : > { %v2771_v49 = vor.u32 %v2770_v22, %v2766_v4  ;;  %v10934_v38 = vrot.slane %v3294_v48, 9  ;;  %v2784_v0 = vrot.slane %v2782_v25, 5  ;;  %v2790_v16 = vrot.slane %v2788_v50, 5  ;;  %v2589_v63 = vld [vmem:[#allocation2 + $0x78] sm:$0xf] }
 0x104   : > { %v2762_v37 = vrot.slane %v2761_v27, 4  ;;  %v2794_v1 = vrot.slane %v2792_v59, 4  ;;  %v2800_v30 = vrot.slane %v2798_v8, 5  ;;  %v3396_v57 = vrot.slane %v13711_v47, 5  ;;  %v13810_v59 = vld [vmem:[#allocation2 + $0x80] sm:$0x1] }
 0x105   : > { %v2772_v53 = vrot.slane %v2771_v49, 4  ;;  %v3399_v39 = vrot.slane %v13716_v14, 5  ;;  %v17662_v7 = vcombine.low %v13513_v20, %v13535_v23  ;;  %v2785_v32 = vor.u32 %v2784_v0, %v2781_v55  ;;  %v13773_v23 = vld [vmem:[#allocation2 + $0x70] sm:$0xf] }
 0x106   : > { %v2767_v42 = vsel %vm12900_vm9, %v2762_v37, %v2766_v4  ;;  %v2795_v21 = vor.u32 %v2794_v1, %v2790_v16  ;;  %v10935_v6 = vrot.slane %v3295_v28, 9  ;;  %v10950_v47 = vcombine.low %v13744_v41, %v13753_v45  ;;  %v3296_v37 = vld [vmem:[#allocation2 + $0x6c] sm:$0xe] }
 0x107   : > { %11911 = vmatmul.mubr.msk.bf16.gmra.mxu0 %vm1241_vm5, %v17662_v7  ;;  %v2777_v14 = vsel %vm12900_vm9, %v2772_v53, %v2776_v60  ;;  %v3398_v52 = vrot.slane %v3396_v57, 4  ;;  %v3403_v20 = vrot.slane %v2584_v26, 5  ;;  %v2786_v48 = vrot.slane %v2785_v32, 4  ;;  %v13795_v60 = vld [vmem:[#allocation2 + $0x7c] sm:$0xf] }
 0x108   : > { %11950 = vmatprep.mubr.msk.bf16.mxu0 %vm1241_vm5, %v13608_v46  ;;  %11985 = vmatmul.mubr.msk.bf16.vlgmr.msra.gmra.mxu1 %vm1241_vm5, %v10946_v51  ;;  %v2796_v4 = vrot.slane %v2795_v21, 4  ;;  %v13783_v46 = vsel %vm13251_vm15, %v10934_v38, %v3396_v57  ;;  %v3406_v22 = vrot.slane %v2585_v17, 5  ;;  %v13789_v26 = vcombine.low %v2767_v42, %v2777_v14  ;;  %v3297_v14 = vld [vmem:[#allocation2 + $0x78] sm:$0xe] }
 0x109   : > { %11988 = vmatprep.mubr.msk.bf16.mxu1 %vm1241_vm5, %v10947_v13  ;;  %v13793_v12 = vsel %vm13251_vm15, %v3398_v52, %v3399_v39  ;;  %v3405_v5 = vrot.slane %v3403_v20, 4  ;;  %v2803_v51 = vshrl.u32 %v2586_v31, 16  ;;  %v2791_v28 = vsel %vm12900_vm9, %v2786_v48, %v2790_v16 }
 0x10a   : > { %v2801_v17 = vsel %vm12900_vm9, %v2796_v4, %v2800_v30  ;;  %v13803_v35 = vsel %vm13251_vm15, %v10935_v6, %v3403_v20  ;;  %v2806_v2 = vshll.u32 %v2586_v31, 16  ;;  %v10951_v27 = vcombine.low %v13783_v46, %v13793_v12  ;;  %v13822_v30 = vld [vmem:[%s17611_s1 + $0x10] sm:$0x3] }
 0x10b   : > { %v13805_v13 = vcombine.low %v2791_v28, %v2801_v17  ;;  %v2805_v25 = vrot.slane %v2803_v51, 4  ;;  %v2812_v50 = vshll.u32 %v13773_v23, 16  ;;  %v13814_v49 = vsel %vm13251_vm15, %v3405_v5, %v3406_v22  ;;  %v13854_v17 = vld [vmem:[#allocation2 + $0x88] sm:$0xf] }
 0x10c   : > { %v2808_v55 = vrot.slane %v2806_v2, 5  ;;  %v2816_v8 = vshrl.u32 %v13773_v23, 16  ;;  %v2822_v38 = vshll.u32 %v13775_v11, 16  ;;  %v2827_v16 = vshrl.u32 %v2589_v63, 16 }
 0x10d   : > { %v2814_v0 = vrot.slane %v2812_v50, 5  ;;  %v2830_v1 = vshll.u32 %v2589_v63, 16  ;;  %v2836_v53 = vshll.u32 %v13795_v60, 16  ;;  %v2840_v42 = vshrl.u32 %v13795_v60, 16 }
 0x10e   : > { %v2809_v57 = vor.u32 %v2808_v55, %v2805_v25  ;;  %v2818_v39 = vrot.slane %v2816_v8, 4  ;;  %v2824_v7 = vrot.slane %v2822_v38, 5  ;;  %v2829_v32 = vrot.slane %v2827_v16, 4  ;;  %v2594_v8 = vld [vmem:[#allocation2 + $0x8c] sm:$0x1] }
 0x10f   : > { %11951 = vmatmul.mubr.msk.bf16.vlgmr.msra.gmra.mxu0 %vm1241_vm5, %v13626_v29  ;;  %v2832_v21 = vrot.slane %v2830_v1, 5  ;;  %v2838_v6 = vrot.slane %v2836_v53, 5  ;;  %v2846_v31 = vshll.u32 %v13810_v59, 16  ;;  %v2842_v20 = vrot.slane %v2840_v42, 4  ;;  %v2595_v38 = vld [vmem:[#allocation2 + $0x90] sm:$0xf] }
 0x110   : > { %12017 = vmatpush3.bf16.msra.mxu0 %v13578_v43  ;;  %11954 = vmatprep.mubr.msk.bf16.mxu0 %vm1241_vm5, %v13667_v10  ;;  %v2810_v29 = vrot.slane %v2809_v57, 4  ;;  %v2819_v52 = vor.u32 %v2818_v39, %v2814_v0  ;;  %v10936_v48 = vrot.slane %v3296_v37, 9  ;;  %v3410_v4 = vrot.slane %v13773_v23, 5 }
 0x111   : > { %11989 = vmatmul.mubr.msk.bf16.gmra.mxu1 %vm1241_vm5, %v10948_v18  ;;  %12432 = vmatprep.subr.msk.bf16.mxu0 %vm1290_vm0, %v13822_v30  ;;  %v2833_v43 = vor.u32 %v2832_v21, %v2829_v32  ;;  %v2848_v10 = vrot.slane %v2846_v31, 5  ;;  %v3413_v56 = vrot.slane %v13775_v11, 5  ;;  %v2843_v63 = vor.u32 %v2842_v20, %v2838_v6  ;;  %v13889_v21 = vld [vmem:[#allocation2 + $0x98] sm:$0x1] }
 0x112   : > { %11992 = vmatprep.mubr.msk.bf16.mxu1 %vm1241_vm5, %v10949_v3  ;;  %v2815_v18 = vsel %vm12900_vm9, %v2810_v29, %v2814_v0  ;;  %v2820_v22 = vrot.slane %v2819_v52, 4  ;;  %v10937_v5 = vrot.slane %v3297_v14, 9  ;;  %v13847_v28 = vsel %vm13251_vm15, %v10936_v48, %v3410_v4  ;;  %v13875_v53 = vpop.f32.mrf.mxu1 }
 0x113   : > { %v2834_v51 = vrot.slane %v2833_v43, 4  ;;  %v3412_v9 = vrot.slane %v3410_v4, 4  ;;  %v3417_v58 = vrot.slane %v13795_v60, 5  ;;  %v10952_v3 = vcombine.low %v13803_v35, %v13814_v49 }
 0x114   : > { %v2825_v23 = vsel %vm12900_vm9, %v2820_v22, %v2824_v7  ;;  %v2844_v11 = vrot.slane %v2843_v63, 4  ;;  %v2851_v2 = vshrl.u32 %v2592_v62, 16  ;;  %v3420_v60 = vrot.slane %v13810_v59, 5  ;;  %v13881_v7 = vld [vmem:[#allocation2 + $0x94] sm:$0xf]  ;;  %v13900_v43 = vpop.f32.mrf.mxu1 }
 0x115   : > { %v13856_v25 = vcombine.low %v2815_v18, %v2825_v23  ;;  %v2839_v50 = vsel %vm12900_vm9, %v2834_v51, %v2838_v6  ;;  %v13862_v55 = vsel %vm13251_vm15, %v3412_v9, %v3413_v56  ;;  %v13873_v16 = vsel %vm13251_vm15, %v10937_v5, %v3417_v58 }
 0x116   : > { %v2849_v37 = vsel %vm12900_vm9, %v2844_v11, %v2848_v10  ;;  %v10953_v0 = vcombine.low %v13847_v28, %v13862_v55  ;;  %v3419_v1 = vrot.slane %v3417_v58, 4  ;;  %v2853_v59 = vrot.slane %v2851_v2, 4  ;;  %v3299_v28 = vld [vmem:[#allocation2 + $0x90] sm:$0xe]  ;;  %v2598_v2 = vld [vmem:[#allocation2 + $0x9c] sm:$0xf] }
 0x117   : > { %11955 = vmatmul.mubr.msk.bf16.gmra.mxu0 %vm1241_vm5, %v13681_v34  ;;  %v2854_v57 = vshll.u32 %v2592_v62, 16  ;;  %v2860_v34 = vshll.u32 %v13854_v17, 16  ;;  %v2864_v39 = vshrl.u32 %v13854_v17, 16  ;;  %v13887_v42 = vcombine.low %v2839_v50, %v2849_v37  ;;  %v13909_v50 = vpop.f32.mrf.mxu1 }
 0x118   : > { %11958 = vmatprep.mubr.msk.bf16.mxu0 %vm1241_vm5, %v13725_v54  ;;  %v2870_v32 = vshll.u32 %v2594_v8, 16  ;;  %v2875_v6 = vshrl.u32 %v2595_v38, 16  ;;  %v2878_v54 = vshll.u32 %v2595_v38, 16  ;;  %v13897_v31 = vsel %vm13251_vm15, %v3419_v1, %v3420_v60  ;;  %v13919_v38 = vld [vmem:[#allocation2 + $0xa0] sm:$0xf] }
 0x119   : > { %11993 = vmatmul.mubr.msk.bf16.gmra.mxu1 %vm1241_vm5, %v10950_v47  ;;  %v2856_v14 = vrot.slane %v2854_v57, 5  ;;  %v2862_v41 = vrot.slane %v2860_v34, 5  ;;  %v2866_v45 = vrot.slane %v2864_v39, 4  ;;  %v3298_v47 = vld [vmem:[#allocation2 + $0x84] sm:$0xe]  ;;  %v2884_v48 = vshll.u32 %v13881_v7, 16 }
 0x11a   : > { %11996 = vmatprep.mubr.msk.bf16.mxu1 %vm1241_vm5, %v10951_v27  ;;  %v2872_v29 = vrot.slane %v2870_v32, 5  ;;  %v2877_v52 = vrot.slane %v2875_v6, 4  ;;  %v2880_v20 = vrot.slane %v2878_v54, 5  ;;  %v2888_v46 = vshrl.u32 %v13881_v7, 16  ;;  %v13932_v57 = vld [vmem:[#allocation2 + $0xa4] sm:$0x1] }
 0x11b   : > { %v2857_v10 = vor.u32 %v2856_v14, %v2853_v59  ;;  %v2867_v4 = vor.u32 %v2866_v45, %v2862_v41  ;;  %v2894_v12 = vshll.u32 %v13889_v21, 16  ;;  %v2886_v56 = vrot.slane %v2884_v48, 5  ;;  %v13921_v37 = vpop.f32.mrf.mxu0  ;;  %v2601_v14 = vld [vmem:[#allocation2 + $0xa8] sm:$0xf] }
 0x11c   : > { %v2881_v27 = vor.u32 %v2880_v20, %v2877_v52  ;;  %v10938_v62 = vrot.slane %v3298_v47, 9  ;;  %v3424_v18 = vrot.slane %v13854_v17, 5  ;;  %v10954_v22 = vcombine.low %v13873_v16, %v13897_v31 }
 0x11d   : > { %v2858_v63 = vrot.slane %v2857_v10, 4  ;;  %v2868_v5 = vrot.slane %v2867_v4, 4  ;;  %v2890_v51 = vrot.slane %v2888_v46, 4  ;;  %v2896_v58 = vrot.slane %v2894_v12, 5  ;;  %v13945_v52 = vpop.f32.mrf.mxu0  ;;  %v2603_v4 = vld [vmem:[#allocation2 + $0xb0] sm:$0x1] }
 0x11e   : > { %v2882_v9 = vrot.slane %v2881_v27, 4  ;;  %v3426_v23 = vrot.slane %v3424_v18, 4  ;;  %v3427_v11 = vrot.slane %v2594_v8, 5  ;;  %v10939_v1 = vrot.slane %v3299_v28, 9  ;;  %v3300_v46 = vld [vmem:[#allocation2 + $0x9c] sm:$0xe] }
 0x11f   : > { %11959 = vmatmul.mubr.msk.bf16.gmra.mxu0 %vm1241_vm5, %v13749_v40  ;;  %v2863_v17 = vsel %vm12900_vm9, %v2858_v63, %v2862_v41  ;;  %v2873_v55 = vsel %vm12900_vm9, %v2868_v5, %v2872_v29  ;;  %v2891_v60 = vor.u32 %v2890_v51, %v2886_v56  ;;  %v3425_v40 = vsel %vm13251_vm15, %v10938_v62, %v3424_v18  ;;  %v13939_v41 = vpop.f32.mrf.mxu1  ;;  %v2602_v29 = vld [vmem:[#allocation2 + $0xac] sm:$0xf] }
 0x120   : > { %11962 = vmatprep.mubr.msk.bf16.mxu0 %vm1241_vm5, %v13789_v26  ;;  %v13927_v26 = vcombine.low %v2863_v17, %v2873_v55  ;;  %v3428_v8 = vsel %vm13251_vm15, %v3426_v23, %v3427_v11  ;;  %v3431_v59 = vrot.slane %v13881_v7, 5  ;;  %v2887_v34 = vsel %vm12900_vm9, %v2882_v9, %v2886_v56  ;;  %17663 = vst [vmem:[#allocation9_spill] sm:$0xff] %v13939_v41  ;;  %v13963_v17 = vpop.f32.mrf.mxu0 }
 0x121   : > { %11997 = vmatmul.mubr.msk.bf16.gmra.mxu1 %vm1241_vm5, %v10952_v3  ;;  %v2892_v39 = vrot.slane %v2891_v60, 4  ;;  %v3434_v35 = vrot.slane %v13889_v21, 5  ;;  %v2899_v49 = vshrl.u32 %v2598_v2, 16  ;;  %v10955_v3 = vcombine.low %v3425_v40, %v3428_v8  ;;  %v13959_v28 = vpop.f32.mrf.mxu1 }
 0x122   : > { %12000 = vmatprep.mubr.msk.bf16.mxu1 %vm1241_vm5, %v10953_v0  ;;  %v3433_v32 = vrot.slane %v3431_v59, 4  ;;  %v2902_v6 = vshll.u32 %v2598_v2, 16  ;;  %v2908_v54 = vshll.u32 %v13919_v38, 16  ;;  %v2912_v0 = vshrl.u32 %v13919_v38, 16  ;;  %v3301_v2 = vld [vmem:[#allocation2 + $0xa8] sm:$0xe] }
 0x123   : > { %v2897_v7 = vsel %vm12900_vm9, %v2892_v39, %v2896_v58  ;;  %v2901_v45 = vrot.slane %v2899_v49, 4  ;;  %v2918_v47 = vshll.u32 %v13932_v57, 16  ;;  %v13951_v20 = vsel %vm13251_vm15, %v10939_v1, %v3431_v59  ;;  %v2604_v39 = vld [vmem:[#allocation2 + $0xb4] sm:$0xf] }
 0x124   : > { %v13947_v21 = vcombine.low %v2887_v34, %v2897_v7  ;;  %v2904_v48 = vrot.slane %v2902_v6, 5  ;;  %v2910_v10 = vrot.slane %v2908_v54, 5  ;;  %v13955_v12 = vsel %vm13251_vm15, %v3433_v32, %v3434_v35  ;;  %v13979_v35 = vpop.f32.mrf.mxu1  ;;  %v13985_v6 = vpop.f32.mrf.mxu0 }
 0x125   : > { %v2914_v27 = vrot.slane %v2912_v0, 4  ;;  %v2920_v56 = vrot.slane %v2918_v47, 5  ;;  %v2923_v62 = vshrl.u32 %v2601_v14, 16  ;;  %v2926_v63 = vshll.u32 %v2601_v14, 16  ;;  %17664 = vst [vmem:[#allocation10_spill] sm:$0xff] %v13985_v6 }
 0x126   : > { %v2905_v18 = vor.u32 %v2904_v48, %v2901_v45  ;;  %v2932_v5 = vshll.u32 %v2602_v29, 16  ;;  %v2936_v51 = vshrl.u32 %v2602_v29, 16  ;;  %v2942_v23 = vshll.u32 %v2603_v4, 16  ;;  %v2605_v45 = vld [vmem:[#allocation2 + $0xb8] sm:$0xf] }
 0x127   : > { %11963 = vmatmul.mubr.msk.bf16.gmra.mxu0 %vm1241_vm5, %v13805_v13  ;;  %v2915_v9 = vor.u32 %v2914_v27, %v2910_v10  ;;  %v2925_v58 = vrot.slane %v2923_v62, 4  ;;  %v10940_v11 = vrot.slane %v3300_v46, 9  ;;  %v2928_v55 = vrot.slane %v2926_v63, 5  ;;  %v752_v27 = vld [vmem:[#allocation2 + $0xc8] sm:$0x1]  ;;  %v14007_v62 = vpop.f32.mrf.mxu1 }
 0x128   : > { %11966 = vmatprep.mubr.msk.bf16.mxu0 %vm1241_vm5, %v13856_v25  ;;  %v2906_v13 = vrot.slane %v2905_v18, 4  ;;  %v13969_v60 = vrot.slane %v2932_v5, 5  ;;  %v2938_v40 = vrot.slane %v2936_v51, 4  ;;  %v13972_v8 = vrot.slane %v2942_v23, 5  ;;  %v14017_v51 = vld [vmem:[#allocation2 + $0xc4] sm:$0xf] }
 0x129   : > { %12001 = vmatmul.mubr.msk.bf16.gmra.mxu1 %vm1241_vm5, %v10954_v22  ;;  %v2916_v25 = vrot.slane %v2915_v9, 4  ;;  %v3438_v1 = vrot.slane %v13919_v38, 5  ;;  %v3441_v59 = vrot.slane %v13932_v57, 5  ;;  %v2929_v16 = vor.u32 %v2928_v55, %v2925_v58  ;;  %v14019_v9 = vpop.f32.mrf.mxu0 }
 0x12a   : > { %12004 = vmatprep.mubr.msk.bf16.mxu1 %vm1241_vm5, %v10955_v3  ;;  %v2911_v34 = vsel %vm12900_vm9, %v2906_v13, %v2910_v10  ;;  %v2939_v31 = vor.u32 %v2938_v40, %v13969_v60  ;;  %v10941_v22 = vrot.slane %v3301_v2, 9  ;;  %v3445_v38 = vrot.slane %v2602_v29, 5  ;;  %v13999_v29 = vld [vmem:[#allocation2 + $0xbc] sm:$0x1]  ;;  %v3302_v2 = vld [vmem:[#allocation2 + $0xb4] sm:$0xe] }
 0x12b   : > { %v2921_v49 = vsel %vm12900_vm9, %v2916_v25, %v2920_v56  ;;  %v3439_v3 = vsel %vm13251_vm15, %v10940_v11, %v3438_v1  ;;  %v3440_v32 = vrot.slane %v3438_v1, 4  ;;  %v10956_v57 = vcombine.low %v13951_v20, %v13955_v12  ;;  %v2607_v56 = vld [vmem:[#allocation2 + $0xc0] sm:$0xf]  ;;  %v14033_v61 = vpop.f32.mrf.mxu0 }
 0x12c   : > { %v13989_v54 = vrot.slane %v2929_v16, 4  ;;  %v13991_v14 = vrot.slane %v2939_v31, 4  ;;  %v3448_v7 = vrot.slane %v2603_v4, 5  ;;  %v13997_v47 = vsel %vm13251_vm15, %v10941_v22, %v3445_v38  ;;  %v14030_v16 = vpop.f32.mrf.mxu1 }
 0x12d   : > { %v3442_v0 = vsel %vm13251_vm15, %v3440_v32, %v3441_v59  ;;  %v3447_v48 = vrot.slane %v3445_v38, 4  ;;  %v2947_v10 = vshrl.u32 %v2604_v39, 16  ;;  %v10908_v20 = vcombine.low %v2911_v34, %v2921_v49  ;;  %v3303_v34 = vld [vmem:[#allocation2 + $0xc0] sm:$0xe] }
 0x12e   : > { %v2935_v4 = vsel %vm12900_vm9, %v13989_v54, %v13969_v60  ;;  %v10957_v46 = vcombine.low %v3439_v3, %v3442_v0  ;;  %v2950_v12 = vshll.u32 %v2604_v39, 16  ;;  %v2956_v5 = vshll.u32 %v2605_v45, 16 }
 0x12f   : > { %11967 = vmatmul.mubr.msk.bf16.gmra.mxu0 %vm1241_vm5, %v13887_v42  ;;  %v2945_v42 = vsel %vm12900_vm9, %v13991_v14, %v13972_v8  ;;  %v3449_v18 = vsel %vm13251_vm15, %v3447_v48, %v3448_v7  ;;  %v2949_v63 = vrot.slane %v2947_v10, 4  ;;  %v2966_v11 = vshll.u32 %v13999_v29, 16 }
 0x130   : > { %11970 = vmatprep.mubr.msk.bf16.mxu0 %vm1241_vm5, %v13927_v26  ;;  %v10958_v58 = vcombine.low %v13997_v47, %v3449_v18  ;;  %v2952_v23 = vrot.slane %v2950_v12, 5  ;;  %v2960_v26 = vshrl.u32 %v2605_v45, 16  ;;  %v2958_v13 = vrot.slane %v2956_v5, 5  ;;  %v4117_v5 = vld [vmem:[#allocation2 + $0x18] sm:$0xf] }
 0x131   : > { %12005 = vmatmul.mubr.msk.bf16.gmra.mxu1 %vm1241_vm5, %v10956_v57  ;;  %v753_v55 = vsel %vm12920_vm12, %v588_v19, %v752_v27  ;;  %v2971_v60 = vshrl.u32 %v2607_v56, 16  ;;  %v2974_v40 = vshll.u32 %v2607_v56, 16  ;;  %v2968_v1 = vrot.slane %v2966_v11, 5  ;;  %v14053_v27 = vpop.f32.mrf.mxu0 }
 0x132   : > { %12008 = vmatprep.mubr.msk.bf16.mxu1 %vm1241_vm5, %v10957_v46  ;;  %v2953_v25 = vor.u32 %v2952_v23, %v2949_v63  ;;  %v2962_v8 = vrot.slane %v2960_v26, 4  ;;  %754 = vst [vmem:[#allocation2 + $0xc8] sm:$0x1] %v753_v55  ;;  %v2980_v59 = vshll.u32 %v14017_v51, 16  ;;  %v2984_v39 = vshrl.u32 %v14017_v51, 16  ;;  %v14044_v46 = vpop.f32.mrf.mxu1 }
 0x133   : > { %v2973_v31 = vrot.slane %v2971_v60, 4  ;;  %v2976_v22 = vrot.slane %v2974_v40, 5  ;;  %v10942_v49 = vrot.slane %v3302_v2, 9  ;;  %v3452_v38 = vrot.slane %v2605_v45, 5 }
 0x134   : > { %v2954_v3 = vrot.slane %v2953_v25, 4  ;;  %v2963_v19 = vor.u32 %v2962_v8, %v2958_v13  ;;  %v14035_v32 = vrot.slane %v2980_v59, 5  ;;  %v2986_v54 = vrot.slane %v2984_v39, 4  ;;  %v14075_v59 = vpop.f32.mrf.mxu0 }
 0x135   : > { %v2977_v57 = vor.u32 %v2976_v22, %v2973_v31  ;;  %v3455_v14 = vrot.slane %v13999_v29, 5  ;;  %v10943_v7 = vrot.slane %v3303_v34, 9  ;;  %v3453_v48 = vsel %vm13251_vm15, %v10942_v49, %v3452_v38  ;;  %v14084_v49 = vld [vmem:[#allocation2 + $0x28] sm:$0xf] }
 0x136   : > { %v2959_v0 = vsel %vm12900_vm9, %v2954_v3, %v2958_v13  ;;  %v2964_v47 = vrot.slane %v2963_v19, 4  ;;  %v3454_v10 = vrot.slane %v3452_v38, 4  ;;  %v2987_v45 = vor.u32 %v2986_v54, %v14035_v32  ;;  %v14086_v54 = vld [vmem:[#allocation2 + $0x2c] sm:$0x1] }
 0x137   : > { %11971 = vmatmul.mubr.msk.bf16.gmra.mxu0 %vm1241_vm5, %v13947_v21  ;;  %v3459_v29 = vrot.slane %v14017_v51, 5  ;;  %v12554_v21 = vld [vmem:[%s17611_s1 + $0xe] sm:$0x3]  ;;  %v10909_v56 = vcombine.low %v2935_v4, %v2945_v42  ;;  %v14062_v63 = vadd.f32 %v13875_v53, %v13921_v37  ;;  %v14064_v51 = vld [vmem:[#allocation2 + $0x1c] sm:$0xf]  ;;  %v2978_v11 = vrot.slane %v2977_v57, 4 }
 0x138   : > { %11974 = vmatprep.mubr.msk.bf16.mxu0 %vm1241_vm5, %v10908_v20  ;;  %v4648_v12 = vsel %vm1290_vm0, %v12554_v21, 0  ;;  %v2969_v18 = vsel %vm12900_vm9, %v2964_v47, %v2968_v1  ;;  %v3456_v20 = vsel %vm13251_vm15, %v3454_v10, %v3455_v14  ;;  %v2988_v2 = vrot.slane %v2987_v45, 4  ;;  %v14066_v42 = vld [vmem:[#allocation2 + $0x20] sm:$0x1]  ;;  %v4120_v1 = vld [vmem:[#allocation2 + $0x24] sm:$0xf] }
 0x139   : > { %12009 = vmatmul.mubr.msk.bf16.gmra.mxu1 %vm1241_vm5, %v10958_v58  ;;  %v10910_v23 = vcombine.low %v2959_v0, %v2969_v18  ;;  %v2609_v26 = vld [vmem:[#allocation2 + $0xc8] sm:$0x1]  ;;  %v10959_v4 = vcombine.low %v3453_v48, %v3456_v20  ;;  %v14068_v58 = vpop.f32.mrf.mxu1  ;;  %v3460_v55 = vsel %vm13251_vm15, %v10943_v7, %v3459_v29  ;;  %v3461_v60 = vrot.slane %v3459_v29, 4 }
 0x13a   : > { %12051 = vmatpush3.bf16.msra.mxu1 %v4648_v12  ;;  %v2990_v13 = vshll.u32 %v2609_v26, 16  ;;  %v3462_v53 = vrot.slane %v2609_v26, 5  ;;  %v4166_v37 = vshrl.u32 %v4117_v5, 16  ;;  %v4169_v40 = vshll.u32 %v4117_v5, 16  ;;  %v4123_v26 = vld [vmem:[#allocation2 + $0x30] sm:$0xf] }
 0x13b   : > { %12012 = vmatprep.mubr.msk.bf16.mxu1 %vm1241_vm5, %v10959_v4  ;;  %v4175_v25 = vshll.u32 %v14064_v51, 16  ;;  %v4179_v8 = vshrl.u32 %v14064_v51, 16  ;;  %v4185_v22 = vshll.u32 %v14066_v42, 16  ;;  %v14082_v39 = vadd.f32 %v13900_v43, %v13945_v52  ;;  %v14088_v14 = vpop.f32.mrf.mxu1 }
 0x13c   : > { %v2992_v34 = vrot.slane %v2990_v13, 5  ;;  %v3463_v31 = vsel %vm13251_vm15, %v3461_v60, %v3462_v53  ;;  %v4168_v19 = vrot.slane %v4166_v37, 4  ;;  %v4171_v38 = vrot.slane %v4169_v40, 5  ;;  %v14098_v29 = vpop.f32.mrf.mxu0  ;;  %v12482_v60 = vld [vmem:[#allocation2 + $0x18] sm:$0xff]  }
 0x13d   : > { %v10960_v3 = vcombine.low %v3460_v55, %v3463_v31  ;;  %v4177_v57 = vrot.slane %v4175_v25, 5  ;;  %v2983_v7 = vsel %vm12900_vm9, %v2978_v11, %v14035_v32  ;;  %v4181_v52 = vrot.slane %v4179_v8, 4  ;;  %v14105_v11 = vpop.f32.mrf.mxu1  ;;  %v14107_v55 = vld [vmem:[#allocation2 + $0x34] sm:$0xf]  ;;  %v14115_v8 = vld [vmem:[#allocation2 + $0x38] sm:$0x1] }
 0x13e   : > { %v2993_v43 = vsel %vm12900_vm9, %v2988_v2, %v2992_v34  ;;  %v4190_v0 = vshrl.u32 %v4120_v1, 16  ;;  %v4172_v47 = vor.u32 %v4171_v38, %v4168_v19  ;;  %v4187_v48 = vrot.slane %v4185_v22, 5  ;;  %17665 = vst [vmem:[#allocation11_spill] sm:$0xff] %v14105_v11 }
 0x13f   : > { %11975 = vmatmul.mubr.msk.bf16.gmra.mxu0 %vm1241_vm5, %v10909_v56  ;;  %v4193_v10 = vshll.u32 %v4120_v1, 16  ;;  %v4199_v45 = vshll.u32 %v14084_v49, 16  ;;  %v4182_v21 = vor.u32 %v4181_v52, %v4177_v57  ;;  %v4203_v32 = vshrl.u32 %v14084_v49, 16 }
 0x140   : > { %11978 = vmatprep.mubr.msk.bf16.mxu0 %vm1241_vm5, %v10910_v23  ;;  %v4192_v12 = vrot.slane %v4190_v0, 4  ;;  %v4209_v56 = vshll.u32 %v14086_v54, 16  ;;  %v4173_v18 = vrot.slane %v4172_v47, 4  ;;  %v14103_v23 = vpop.f32.mrf.mxu0  ;;  %v10911_v2 = vcombine.low %v2983_v7, %v2993_v43  ;;  %v4126_v7 = vld [vmem:[#allocation2 + $0x3c] sm:$0xf] }
 0x141   : > { %12013 = vmatmul.mubr.msk.bf16.gmra.mxu1 %vm1241_vm5, %v10960_v3  ;;  %v4195_v20 = vrot.slane %v4193_v10, 5  ;;  %v4201_v5 = vrot.slane %v4199_v45, 5  ;;  %v4183_v4 = vrot.slane %v4182_v21, 4  ;;  %v4205_v13 = vrot.slane %v4203_v32, 4  ;;  %v14141_v21 = vld [vmem:[#allocation2 + $0x44] sm:$0x1] }
 0x142   : > { %v4178_v53 = vsel %vm12900_vm9, %v4173_v18, %v4177_v57  ;;  %v4211_v40 = vrot.slane %v4209_v56, 5  ;;  %v14113_v25 = vadd.f32 %v13909_v50, %v13963_v17  ;;  %v14121_v31 = vadd.f32 %v13959_v28, %v14019_v9  ;;  %v14124_v43 = vpop.f32.mrf.mxu0  ;;  %v14126_v50 = vpop.f32.mrf.mxu1  ;;  %v14131_v9 = vld [vmem:[#allocation2 + $0x40] sm:$0xf] }
 0x143   : > { %v4196_v37 = vor.u32 %v4195_v20, %v4192_v12  ;;  %v4188_v1 = vsel %vm12900_vm9, %v4183_v4, %v4187_v48  ;;  %v4206_v34 = vor.u32 %v4205_v13, %v4201_v5  ;;  %v4214_v22 = vshrl.u32 %v4123_v26, 16 }
 0x144   : > { %v11011_v3 = vcombine.low %v4178_v53, %v4188_v1  ;;  %v4217_v38 = vshll.u32 %v4123_v26, 16  ;;  %v4223_v57 = vshll.u32 %v14107_v55, 16  ;;  %v4227_v0 = vshrl.u32 %v14107_v55, 16  ;;  %v14148_v13 = vpop.f32.mrf.mxu1 }
 0x145   : > { %v4197_v19 = vrot.slane %v4196_v37, 4  ;;  %v4207_v17 = vrot.slane %v4206_v34, 4  ;;  %v4216_v52 = vrot.slane %v4214_v22, 4  ;;  %v4233_v28 = vshll.u32 %v14115_v8, 16 }
 0x146   : > { %12052 = vmatprep.mubr.msk.bf16.mxu1 %vm1241_vm5, %v11011_v3  ;;  %v4219_v48 = vrot.slane %v4217_v38, 5  ;;  %v4225_v10 = vrot.slane %v4223_v57, 5  ;;  %v14139_v45 = vadd.f32 %v13979_v35, %v14033_v61  ;;  %v4229_v32 = vrot.slane %v4227_v0, 4  ;;  %v4129_v3 = vld [vmem:[#allocation2 + $0x48] sm:$0xf] }
 0x147   : > { %11979 = vmatmul.mubr.msk.bf16.gmra.mxu0 %vm1241_vm5, %v10911_v2  ;;  %v4202_v47 = vsel %vm12900_vm9, %v4197_v19, %v4201_v5  ;;  %v4212_v12 = vsel %vm12900_vm9, %v4207_v17, %v4211_v40  ;;  %v4235_v56 = vrot.slane %v4233_v28, 5  ;;  %v4238_v18 = vshrl.u32 %v4126_v7, 16  ;;  %v14146_v5 = vpop.f32.mrf.mxu0  ;;  %v12484_v40 = vld [vmem:[#allocation2 + $0x30] sm:$0xff]   ;;  %v14159_v17 = vld [vmem:[#allocation2 + $0x4c] sm:$0xf] }
 0x148   : > { %12018 = vmatprep.mubr.msk.bf16.mxu0 %vm1241_vm5, %v12482_v60  ;;  %v11012_v20 = vcombine.low %v4202_v47, %v4212_v12  ;;  %v4220_v26 = vor.u32 %v4219_v48, %v4216_v52  ;;  %v4241_v2 = vshll.u32 %v4126_v7, 16  ;;  %v4247_v4 = vshll.u32 %v14131_v9, 16  ;;  %v12483_v60 = vld [vmem:[#allocation2 + $0x24] sm:$0xff]   ;;  %v14167_v48 = vld [vmem:[#allocation2 + $0x50] sm:$0x1]  ;;  %v14169_v12 = vpop.f32.mrf.mxu1 }
 0x149   : > { %v4230_v35 = vor.u32 %v4229_v32, %v4225_v10  ;;  %v4240_v61 = vrot.slane %v4238_v18, 4  ;;  %v4251_v53 = vshrl.u32 %v14131_v9, 16  ;;  %v4257_v37 = vshll.u32 %v14141_v21, 16 }
 0x14a   : > { %12053 = vmatmul.mubr.msk.bf16.vlgmr.msra.gmra.mxu1 %vm1241_vm5, %v11012_v20  ;;  %v4221_v1 = vrot.slane %v4220_v26, 4  ;;  %v4243_v34 = vrot.slane %v4241_v2, 5  ;;  %v4249_v22 = vrot.slane %v4247_v4, 5  ;;  %v5118_v19 = vsel %vm1290_vm0, %v13822_v30, 0  ;;  %v11828_v30 = vpop.f32.mrf.mxu0  ;;  %v4132_v26 = vld [vmem:[#allocation2 + $0x54] sm:$0xf] }
 0x14b   : > { %v4231_v38 = vrot.slane %v4230_v35, 4  ;;  %v4253_v57 = vrot.slane %v4251_v53, 4  ;;  %v14157_v7 = vadd.f32 %v14007_v62, %v14053_v27  ;;  %v4259_v28 = vrot.slane %v4257_v37, 5 }
 0x14c   : > { %v4226_v52 = vsel %vm12900_vm9, %v4221_v1, %v4225_v10  ;;  %v4244_v0 = vor.u32 %v4243_v34, %v4240_v61  ;;  %v14165_v47 = vadd.f32 %v14044_v46, %v14098_v29  ;;  %v4262_v32 = vshrl.u32 %v4129_v3, 16  ;;  %v14178_v61 = vld [vmem:[#allocation2 + $0x58] sm:$0xf]  ;;  %v14187_v1 = vld [vmem:[#allocation2 + $0x5c] sm:$0x1]  ;;  %v1376_v34 = vpop.f32.mrf.mxu0 }
 0x14d   : > { %v4236_v62 = vsel %vm12900_vm9, %v4231_v38, %v4235_v56  ;;  %v4254_v27 = vor.u32 %v4253_v57, %v4249_v22  ;;  %v4265_v18 = vshll.u32 %v4129_v3, 16  ;;  %v4271_v46 = vshll.u32 %v14159_v17, 16  ;;  %v14189_v3 = vpop.f32.mrf.mxu1 }
 0x14e   : > { %v11013_v10 = vcombine.low %v4226_v52, %v4236_v62  ;;  %v4245_v20 = vrot.slane %v4244_v0, 4  ;;  %v4275_v29 = vshrl.u32 %v14159_v17, 16  ;;  %v4264_v4 = vrot.slane %v4262_v32, 4 }
 0x14f   : > { %12019 = vmatmul.mubr.msk.bf16.vlgmr.msra.gmra.mxu0 %vm1241_vm5, %v12483_v60  ;;  %v4255_v2 = vrot.slane %v4254_v27, 4  ;;  %v4267_v35 = vrot.slane %v4265_v18, 5  ;;  %v4281_v60 = vshll.u32 %v14167_v48, 16  ;;  %v4273_v53 = vrot.slane %v4271_v46, 5 }
 0x150   : > { %12085 = vmatpush3.bf16.msra.mxu0 %v5118_v19  ;;  %12022 = vmatprep.mubr.msk.bf16.mxu0 %vm1241_vm5, %v12484_v40  ;;  %v4250_v56 = vsel %vm12900_vm9, %v4245_v20, %v4249_v22  ;;  %v4277_v37 = vrot.slane %v4275_v29, 4  ;;  %v14185_v40 = vadd.f32 %v14068_v58, %v14103_v23  ;;  %v12485_v19 = vld [vmem:[#allocation2 + $0x3c] sm:$0xff]   ;;  %v4286_v0 = vshrl.u32 %v4132_v26, 16  ;;  %v12486_v22 = vld [vmem:[#allocation2 + $0x48] sm:$0xff]  }
 0x151   : > { %12056 = vmatprep.mubr.msk.bf16.mxu1 %vm1241_vm5, %v11013_v10  ;;  %v4260_v38 = vsel %vm12900_vm9, %v4255_v2, %v4259_v28  ;;  %v4268_v57 = vor.u32 %v4267_v35, %v4264_v4  ;;  %v4283_v52 = vrot.slane %v4281_v60, 5  ;;  %v4289_v32 = vshll.u32 %v4132_v26, 16  ;;  %v4135_v2 = vld [vmem:[#allocation2 + $0x60] sm:$0xf]  ;;  %v14197_v4 = vpop.f32.mrf.mxu0  ;;  %v14199_v35 = vpop.f32.mrf.mxu1 }
 0x152   : > { %v11014_v62 = vcombine.low %v4250_v56, %v4260_v38  ;;  %v4278_v27 = vor.u32 %v4277_v37, %v4273_v53  ;;  %v4295_v18 = vshll.u32 %v14178_v61, 16  ;;  %v4288_v23 = vrot.slane %v4286_v0, 4  ;;  %v14208_v37 = vld [vmem:[#allocation2 + $0x64] sm:$0xf]  ;;  %v14210_v38 = vld [vmem:[#allocation2 + $0x68] sm:$0x1] }
 0x153   : > { %v4269_v58 = vrot.slane %v4268_v57, 4  ;;  %v4299_v10 = vshrl.u32 %v14178_v61, 16  ;;  %v4305_v20 = vshll.u32 %v14187_v1, 16  ;;  %v4291_v29 = vrot.slane %v4289_v32, 5  ;;  %v1379_v44 = vpop.f32.mrf.mxu0  ;;  %v14221_v36 = vpop.f32.mrf.mxu1 }
 0x154   : > { %12057 = vmatmul.mubr.msk.bf16.gmra.mxu1 %vm1241_vm5, %v11014_v62  ;;  %v4279_v46 = vrot.slane %v4278_v27, 4  ;;  %v4297_v28 = vrot.slane %v4295_v18, 5  ;;  %v14206_v56 = vadd.f32 %v14088_v14, %v14124_v43  ;;  %v4310_v32 = vshrl.u32 %v4135_v2, 16 }
 0x155   : > { %v4274_v26 = vsel %vm12900_vm9, %v4269_v58, %v4273_v53  ;;  %v4301_v60 = vrot.slane %v4299_v10, 4  ;;  %v4292_v0 = vor.u32 %v4291_v29, %v4288_v23  ;;  %v4307_v62 = vrot.slane %v4305_v20, 5 }
 0x156   : > { %17666 = vst [vmem:[#allocation12_spill] sm:$0xff] %v14206_v56  ;;  %v4284_v57 = vsel %vm12900_vm9, %v4279_v46, %v4283_v52  ;;  %v4313_v18 = vshll.u32 %v4135_v2, 16  ;;  %v4319_v43 = vshll.u32 %v14208_v37, 16  ;;  %v4323_v58 = vshrl.u32 %v14208_v37, 16  ;;  %v12487_v52 = vld [vmem:[#allocation2 + $0x54] sm:$0xff]   ;;  %v12488_v2 = vld [vmem:[#allocation2 + $0x60] sm:$0xff]  }
 0x157   : > { %12023 = vmatmul.mubr.msk.bf16.gmra.mxu0 %vm1241_vm5, %v12485_v19  ;;  %v14216_v19 = vadd.f32 %v14126_v50, %v11828_v30  ;;  %v11015_v53 = vcombine.low %v4274_v26, %v4284_v57  ;;  %v4302_v27 = vor.u32 %v4301_v60, %v4297_v28  ;;  %v4293_v14 = vrot.slane %v4292_v0, 4  ;;  %v14227_v46 = vld [vmem:[#allocation2 + $0x70] sm:$0xf]  ;;  %v14231_v0 = vld [vmem:[#allocation2 + $0x74] sm:$0x1] }
 0x158   : > { %12026 = vmatprep.mubr.msk.bf16.mxu0 %vm1241_vm5, %v12486_v22  ;;  %v4329_v10 = vshll.u32 %v14210_v38, 16  ;;  %v4138_v22 = vld [vmem:[#allocation2 + $0x6c] sm:$0xf]  ;;  %v4312_v30 = vrot.slane %v4310_v32, 4  ;;  %v4315_v23 = vrot.slane %v4313_v18, 5  ;;  %v14225_v20 = vadd.f32 %v14148_v13, %v1376_v34 }
 0x159   : > { %17667 = vst [vmem:[#allocation13_spill] sm:$0xff] %v14216_v19  ;;  %12060 = vmatprep.mubr.msk.bf16.mxu1 %vm1241_vm5, %v11015_v53  ;;  %v4303_v50 = vrot.slane %v4302_v27, 4  ;;  %v4298_v29 = vsel %vm12900_vm9, %v4293_v14, %v4297_v28  ;;  %v4321_v26 = vrot.slane %v4319_v43, 5  ;;  %v4325_v60 = vrot.slane %v4323_v58, 4  ;;  %v14237_v28 = vpop.f32.mrf.mxu1 }
 0x15a   : > { %17668 = vst [vmem:[#allocation14_spill] sm:$0xff] %v14225_v20  ;;  %v4331_v57 = vrot.slane %v4329_v10, 5  ;;  %v4316_v27 = vor.u32 %v4315_v23, %v4312_v30  ;;  %v4334_v32 = vshrl.u32 %v4138_v22, 16  ;;  %v4337_v18 = vshll.u32 %v4138_v22, 16  ;;  %v4141_v23 = vld [vmem:[#allocation2 + $0x78] sm:$0xf] }
 0x15b   : > { %v4308_v53 = vsel %vm12900_vm9, %v4303_v50, %v4307_v62  ;;  %v4326_v13 = vor.u32 %v4325_v60, %v4321_v26  ;;  %v4343_v34 = vshll.u32 %v14227_v46, 16  ;;  %v4347_v41 = vshrl.u32 %v14227_v46, 16  ;;  %v11832_v6 = vpop.f32.mrf.mxu0 }
 0x15c   : > { %v11016_v33 = vcombine.low %v4298_v29, %v4308_v53  ;;  %v4317_v14 = vrot.slane %v4316_v27, 4  ;;  %v4336_v43 = vrot.slane %v4334_v32, 4  ;;  %v4339_v58 = vrot.slane %v4337_v18, 5  ;;  %v14250_v32 = vld [vmem:[#allocation2 + $0x7c] sm:$0xf] }
 0x15d   : > { %v4353_v10 = vshll.u32 %v14231_v0, 16  ;;  %v4327_v22 = vrot.slane %v4326_v13, 4  ;;  %v4345_v50 = vrot.slane %v4343_v34, 5  ;;  %v4349_v30 = vrot.slane %v4347_v41, 4  ;;  %v1392_v29 = vpop.f32.mrf.mxu0  ;;  %v14252_v18 = vld [vmem:[#allocation2 + $0x80] sm:$0x1]  ;;  %v14262_v34 = vpop.f32.mrf.mxu1 }
 0x15e   : > { %12061 = vmatmul.mubr.msk.bf16.gmra.mxu1 %vm1241_vm5, %v11016_v33  ;;  %v4322_v60 = vsel %vm12900_vm9, %v4317_v14, %v4321_v26  ;;  %v14248_v27 = vadd.f32 %v14169_v12, %v14197_v4  ;;  %v14257_v41 = vadd.f32 %v14189_v3, %v1379_v44  ;;  %v14260_v13 = vadd.f32 %v14199_v35, %v11832_v6  ;;  %v12489_v14 = vld [vmem:[#allocation2 + $0x6c] sm:$0xff]   ;;  %v4144_v3 = vld [vmem:[#allocation2 + $0x84] sm:$0xf] }
 0x15f   : > { %12027 = vmatmul.mubr.msk.bf16.gmra.mxu0 %vm1241_vm5, %v12487_v52  ;;  %v4340_v52 = vor.u32 %v4339_v58, %v4336_v43  ;;  %v4355_v53 = vrot.slane %v4353_v10, 5  ;;  %v4332_v33 = vsel %vm12900_vm9, %v4327_v22, %v4331_v57  ;;  %v11833_v26 = vpop.f32.mrf.mxu0  ;;  %17672 = vst [vmem:[#allocation18_spill] sm:$0xff] %v14262_v34  ;;  %v12490_v43 = vld [vmem:[#allocation2 + $0x78] sm:$0xff]   ;;  %v4358_v58 = vshrl.u32 %v4141_v23, 16 }
 0x160   : > { %12030 = vmatprep.mubr.msk.bf16.mxu0 %vm1241_vm5, %v12488_v2  ;;  %17669 = vst [vmem:[#allocation15_spill] sm:$0xff] %v14248_v27  ;;  %v4350_v2 = vor.u32 %v4349_v30, %v4345_v50  ;;  %17670 = vst [vmem:[#allocation16_spill] sm:$0xff] %v14257_v41  ;;  %v11017_v12 = vcombine.low %v4322_v60, %v4332_v33  ;;  %v4361_v10 = vshll.u32 %v4141_v23, 16  ;;  %v4367_v27 = vshll.u32 %v14250_v32, 16  ;;  %v14275_v23 = vld [vmem:[#allocation2 + $0x88] sm:$0xf] }
 0x161   : > { %17671 = vst [vmem:[#allocation17_spill] sm:$0xff] %v14260_v13  ;;  %v4341_v4 = vrot.slane %v4340_v52, 4  ;;  %v4371_v57 = vshrl.u32 %v14250_v32, 16  ;;  %v4377_v44 = vshll.u32 %v14252_v18, 16  ;;  %v14267_v22 = vpop.f32.mrf.mxu0  ;;  %v4360_v35 = vrot.slane %v4358_v58, 4  ;;  %v11870_v13 = vpop.f32.mrf.mxu1 }
 0x162   : > { %v4351_v62 = vrot.slane %v4350_v2, 4  ;;  %17673 = vst [vmem:[#allocation19_spill] sm:$0xff] %v14267_v22  ;;  %12064 = vmatprep.mubr.msk.bf16.mxu1 %vm1241_vm5, %v11017_v12  ;;  %v4363_v30 = vrot.slane %v4361_v10, 5  ;;  %v14273_v60 = vadd.f32 %v14221_v36, %v1392_v29  ;;  %v14277_v52 = vld [vmem:[#allocation2 + $0x8c] sm:$0x1]  ;;  %v4369_v2 = vrot.slane %v4367_v27, 5 }
 0x163   : > { %v4346_v6 = vsel %vm12900_vm9, %v4341_v4, %v4345_v50  ;;  %17675 = vst [vmem:[#allocation21_spill] sm:$0xff] %v14277_v52  ;;  %v4373_v34 = vrot.slane %v4371_v57, 4  ;;  %v4379_v22 = vrot.slane %v4377_v44, 5  ;;  %v4382_v4 = vshrl.u32 %v4144_v3, 16  ;;  %v4147_v44 = vld [vmem:[#allocation2 + $0x90] sm:$0xf] }
 0x164   : > { %17674 = vst [vmem:[#allocation20_spill] sm:$0xff] %v14273_v60  ;;  %v4356_v33 = vsel %vm12900_vm9, %v4351_v62, %v4355_v53  ;;  %v4364_v50 = vor.u32 %v4363_v30, %v4360_v35  ;;  %v4385_v58 = vshll.u32 %v4144_v3, 16  ;;  %v4391_v29 = vshll.u32 %v14275_v23, 16  ;;  %v11836_v62 = vpop.f32.mrf.mxu0  ;;  %v14291_v35 = vld [vmem:[#allocation2 + $0x94] sm:$0xf]  ;;  %v1700_v30 = vpop.f32.mrf.mxu1 }
 0x165   : > { %v11018_v12 = vcombine.low %v4346_v6, %v4356_v33  ;;  %v4374_v36 = vor.u32 %v4373_v34, %v4369_v2  ;;  %v4395_v10 = vshrl.u32 %v14275_v23, 16  ;;  %v4401_v60 = vshll.u32 %v14277_v52, 16  ;;  %v12491_v33 = vld [vmem:[#allocation2 + $0x84] sm:$0xff]  }
 0x166   : > { %v4365_v53 = vrot.slane %v4364_v50, 4  ;;  %v4384_v27 = vrot.slane %v4382_v4, 4  ;;  %v4387_v57 = vrot.slane %v4385_v58, 5  ;;  %v4393_v34 = vrot.slane %v4391_v29, 5  ;;  %v14297_v58 = vld [vmem:[#allocation2 + $0x98] sm:$0x1]  ;;  %v1408_v3 = vpop.f32.mrf.mxu0 }
 0x167   : > { %12031 = vmatmul.mubr.msk.bf16.gmra.mxu0 %vm1241_vm5, %v12489_v14  ;;  %12065 = vmatmul.mubr.msk.bf16.gmra.mxu1 %vm1241_vm5, %v11018_v12  ;;  %v14288_v14 = vadd.f32 %v14237_v28, %v11833_v26  ;;  %v4397_v6 = vrot.slane %v4395_v10, 4  ;;  %v4403_v50 = vrot.slane %v4401_v60, 5  ;;  %v14295_v4 = vadd.f32 %v11870_v13, %v11836_v62  ;;  %17678 = vst [vmem:[#allocation24_spill] sm:$0xff] %v14297_v58 }
 0x168   : > { %12034 = vmatprep.mubr.msk.bf16.mxu0 %vm1241_vm5, %v12490_v43  ;;  %v4375_v43 = vrot.slane %v4374_v36, 4  ;;  %v4370_v41 = vsel %vm12900_vm9, %v4365_v53, %v4369_v2  ;;  %v4388_v12 = vor.u32 %v4387_v57, %v4384_v27  ;;  %v12492_v36 = vld [vmem:[#allocation2 + $0x90] sm:$0xff]   ;;  %v4406_v29 = vshrl.u32 %v4147_v44, 16  ;;  %v4150_v53 = vld [vmem:[#allocation2 + $0x9c] sm:$0xf] }
 0x169   : > { %17676 = vst [vmem:[#allocation22_spill] sm:$0xff] %v14288_v14  ;;  %17677 = vst [vmem:[#allocation23_spill] sm:$0xff] %v14295_v4  ;;  %v4398_v26 = vor.u32 %v4397_v6, %v4393_v34  ;;  %v4409_v10 = vshll.u32 %v4147_v44, 16  ;;  %v4415_v19 = vshll.u32 %v14291_v35, 16  ;;  %v4419_v2 = vshrl.u32 %v14291_v35, 16 }
 0x16a   : > { %v4380_v28 = vsel %vm12900_vm9, %v4375_v43, %v4379_v22  ;;  %v4389_v20 = vrot.slane %v4388_v12, 4  ;;  %v4408_v13 = vrot.slane %v4406_v29, 4  ;;  %v4425_v27 = vshll.u32 %v14297_v58, 16  ;;  %v14304_v57 = vld [vmem:[#allocation2 + $0xa0] sm:$0xf]  ;;  %v11871_v22 = vpop.f32.mrf.mxu1 }
 0x16b   : > { %v11019_v14 = vcombine.low %v4370_v41, %v4380_v28  ;;  %v4399_v60 = vrot.slane %v4398_v26, 4  ;;  %v4411_v62 = vrot.slane %v4409_v10, 5  ;;  %17679 = vst [vmem:[#allocation25_spill] sm:$0xff] %v14304_v57  ;;  %v4417_v44 = vrot.slane %v4415_v19, 5  ;;  %v14312_v12 = vld [vmem:[#allocation2 + $0xa4] sm:$0x1] }
 0x16c   : > { %v4394_v41 = vsel %vm12900_vm9, %v4389_v20, %v4393_v34  ;;  %v4421_v43 = vrot.slane %v4419_v2, 4  ;;  %v14310_v6 = vadd.f32 %v1700_v30, %v1408_v3  ;;  %17681 = vst [vmem:[#allocation27_spill] sm:$0xff] %v14312_v12  ;;  %v4427_v29 = vrot.slane %v4425_v27, 5  ;;  %v14320_v2 = vpop.f32.mrf.mxu1 }
 0x16d   : > { %12068 = vmatprep.mubr.msk.bf16.mxu1 %vm1241_vm5, %v11019_v14  ;;  %v4404_v28 = vsel %vm12900_vm9, %v4399_v60, %v4403_v50  ;;  %v4412_v26 = vor.u32 %v4411_v62, %v4408_v13  ;;  %v4430_v10 = vshrl.u32 %v4150_v53, 16  ;;  %v4433_v58 = vshll.u32 %v4150_v53, 16  ;;  %17682 = vst [vmem:[#allocation28_spill] sm:$0xff] %v14320_v2  ;;  %v4153_v50 = vld [vmem:[#allocation2 + $0xa8] sm:$0xf] }
 0x16e   : > { %17680 = vst [vmem:[#allocation26_spill] sm:$0xff] %v14310_v6  ;;  %v11020_v4 = vcombine.low %v4394_v41, %v4404_v28  ;;  %v4422_v14 = vor.u32 %v4421_v43, %v4417_v44  ;;  %v4439_v20 = vshll.u32 %v14304_v57, 16  ;;  %v4443_v3 = vshrl.u32 %v14304_v57, 16  ;;  %v14325_v53 = vld [vmem:[#allocation2 + $0xac] sm:$0xf] }
 0x16f   : > { %12035 = vmatmul.mubr.msk.bf16.gmra.mxu0 %vm1241_vm5, %v12491_v33  ;;  %v11837_v33 = vpop.f32.mrf.mxu0  ;;  %v4413_v19 = vrot.slane %v4412_v26, 4  ;;  %v4432_v34 = vrot.slane %v4430_v10, 4  ;;  %v4449_v30 = vshll.u32 %v14312_v12, 16  ;;  %v4435_v13 = vrot.slane %v4433_v58, 5  ;;  %17684 = vst [vmem:[#allocation30_spill] sm:$0xff] %v14325_v53  ;;  %v12494_v10 = vld [vmem:[#allocation2 + $0xa8] sm:$0xff]  }
 0x170   : > { %12038 = vmatprep.mubr.msk.bf16.mxu0 %vm1241_vm5, %v12492_v36  ;;  %12069 = vmatmul.mubr.msk.bf16.gmra.mxu1 %vm1241_vm5, %v11020_v4  ;;  %v12493_v36 = vld [vmem:[#allocation2 + $0x9c] sm:$0xff]   ;;  %v4423_v60 = vrot.slane %v4422_v14, 4  ;;  %v4441_v62 = vrot.slane %v4439_v20, 5  ;;  %v14323_v27 = vadd.f32 %v11871_v22, %v11837_v33  ;;  %v4445_v28 = vrot.slane %v4443_v3, 4  ;;  %v14330_v2 = vld [vmem:[#allocation2 + $0xb0] sm:$0x1] }
 0x171   : > { %v4418_v43 = vsel %vm12900_vm9, %v4413_v19, %v4417_v44  ;;  %v4451_v26 = vrot.slane %v4449_v30, 5  ;;  %17685 = vst [vmem:[#allocation31_spill] sm:$0xff] %v14330_v2  ;;  %v4436_v14 = vor.u32 %v4435_v13, %v4432_v34  ;;  %v4454_v58 = vshrl.u32 %v4153_v50, 16  ;;  %v4156_v22 = vld [vmem:[#allocation2 + $0xb4] sm:$0xf] }
 0x172   : > { %17683 = vst [vmem:[#allocation29_spill] sm:$0xff] %v14323_v27  ;;  %v4428_v4 = vsel %vm12900_vm9, %v4423_v60, %v4427_v29  ;;  %v4457_v20 = vshll.u32 %v4153_v50, 16  ;;  %v4446_v27 = vor.u32 %v4445_v28, %v4441_v62  ;;  %v4463_v41 = vshll.u32 %v14325_v53, 16  ;;  %v14338_v57 = vld [vmem:[#allocation2 + $0xb8] sm:$0xf] }
 0x173   : > { %v11021_v33 = vcombine.low %v4418_v43, %v4428_v4  ;;  %v4467_v12 = vshrl.u32 %v14325_v53, 16  ;;  %v4437_v44 = vrot.slane %v4436_v14, 4  ;;  %v4456_v19 = vrot.slane %v4454_v58, 4  ;;  %17686 = vst [vmem:[#allocation32_spill] sm:$0xff] %v14338_v57  ;;  %v14344_v4 = vld [vmem:[#allocation2 + $0xbc] sm:$0x1] }
 0x174   : > { %v4459_v3 = vrot.slane %v4457_v20, 5  ;;  %v4473_v30 = vshll.u32 %v14330_v2, 16  ;;  %v4447_v29 = vrot.slane %v4446_v27, 4  ;;  %v4465_v34 = vrot.slane %v4463_v41, 5  ;;  %17687 = vst [vmem:[#allocation33_spill] sm:$0xff] %v14344_v4  ;;  %v14349_v2 = vpop.f32.mrf.mxu0  ;;  %v12495_v53 = vld [vmem:[#allocation2 + $0xb4] sm:$0xff]  }
 0x175   : > { %v11874_v6 = vpop.f32.mrf.mxu1  ;;  %12072 = vmatprep.mubr.msk.bf16.mxu1 %vm1241_vm5, %v11021_v33  ;;  %v4469_v50 = vrot.slane %v4467_v12, 4  ;;  %v4478_v13 = vshrl.u32 %v4156_v22, 16  ;;  %v4442_v43 = vsel %vm12900_vm9, %v4437_v44, %v4441_v62  ;;  %v4481_v14 = vshll.u32 %v4156_v22, 16  ;;  %v4159_v58 = vld [vmem:[#allocation2 + $0xc0] sm:$0xf]  ;;  %17688 = vst [vmem:[#allocation34_spill] sm:$0xff] %v14349_v2 }
 0x176   : > { %v4475_v28 = vrot.slane %v4473_v30, 5  ;;  %v4452_v20 = vsel %vm12900_vm9, %v4447_v29, %v4451_v26  ;;  %v4491_v44 = vshrl.u32 %v14338_v57, 16  ;;  %v4497_v30 = vshll.u32 %v14344_v4, 16  ;;  %v12496_v29 = vld [vmem:[#allocation2 + $0xc0] sm:$0xff]  }
 0x177   : > { %12039 = vmatmul.mubr.msk.bf16.gmra.mxu0 %vm1241_vm5, %v12493_v36  ;;  %v1716_v60 = vpop.f32.mrf.mxu1  ;;  %v4460_v36 = vor.u32 %v4459_v3, %v4456_v19  ;;  %v4470_v33 = vor.u32 %v4469_v50, %v4465_v34  ;;  %v4480_v27 = vrot.slane %v4478_v13, 4  ;;  %v11022_v12 = vcombine.low %v4442_v43, %v4452_v20  ;;  %v14352_v19 = vld [vmem:[#allocation2 + $0xc4] sm:$0xf] }
 0x178   : > { %12042 = vmatprep.mubr.msk.bf16.mxu0 %vm1241_vm5, %v12494_v10  ;;  %v4487_v10 = vshll.u32 %v14338_v57, 16  ;;  %v4483_v62 = vrot.slane %v4481_v14, 5  ;;  %v4502_v50 = vshrl.u32 %v4159_v58, 16  ;;  %v14360_v14 = vld [vmem:[#allocation2 + $0xc8] sm:$0x1]  ;;  %v4505_v20 = vshll.u32 %v4159_v58, 16 }
 0x179   : > { %v11875_v41 = vpop.f32.mrf.mxu1  ;;  %v4461_v52 = vrot.slane %v4460_v36, 4  ;;  %v4471_v22 = vrot.slane %v4470_v33, 4  ;;  %12073 = vmatmul.mubr.msk.bf16.gmra.mxu1 %vm1241_vm5, %v11022_v12  ;;  %v4493_v36 = vrot.slane %v4491_v44, 4  ;;  %17690 = vst [vmem:[#allocation36_spill] sm:$0xff] %v14360_v14  ;;  %v4511_v4 = vshll.u32 %v14352_v19, 16 }
 0x17a   : > { %v4489_v3 = vrot.slane %v4487_v10, 5  ;;  %v4484_v43 = vor.u32 %v4483_v62, %v4480_v27  ;;  %v4499_v10 = vrot.slane %v4497_v30, 5  ;;  %v4504_v2 = vrot.slane %v4502_v50, 4  ;;  %v14371_v44 = vld [vmem:[#allocation2 + $0xd0] sm:$0xf] }
 0x17b   : > { %v14355_v26 = vpop.f32.mrf.mxu1  ;;  %v4466_v13 = vsel %vm12900_vm9, %v4461_v52, %v4465_v34  ;;  %v4476_v33 = vsel %vm12900_vm9, %v4471_v22, %v4475_v28  ;;  %v4507_v52 = vrot.slane %v4505_v20, 5  ;;  %v4513_v27 = vrot.slane %v4511_v4, 5 }
 0x17c   : > { %17689 = vst [vmem:[#allocation35_spill] sm:$0xff] %v14355_v26  ;;  %v4162_v26 = vld [vmem:[#allocation2 + $0xcc] sm:$0xf]  ;;  %v11023_v12 = vcombine.low %v4466_v13, %v4476_v33  ;;  %v4485_v56 = vrot.slane %v4484_v43, 4  ;;  %v4494_v11 = vor.u32 %v4493_v36, %v4489_v3  ;;  %v4515_v28 = vshrl.u32 %v14352_v19, 16 }
 0x17d   : > { %v4521_v62 = vshll.u32 %v14360_v14, 16  ;;  %v4508_v50 = vor.u32 %v4507_v52, %v4504_v2  ;;  %v14378_v43 = vld [vmem:[#allocation2 + $0xd4] sm:$0x1]  ;;  %v4529_v36 = vshll.u32 %v4162_v26, 16 }
 0x17e   : > { %v11840_v57 = vpop.f32.mrf.mxu0  ;;  %12076 = vmatprep.mubr.msk.bf16.mxu1 %vm1241_vm5, %v11023_v12  ;;  %v4495_v30 = vrot.slane %v4494_v11, 4  ;;  %v12497_v12 = vld [vmem:[#allocation2 + $0xcc] sm:$0xff]   ;;  %v4843_v11 = vld [vmem:[#allocation2 + $0x18] sm:$0xe] }
 0x17f   : > { %12043 = vmatmul.mubr.msk.bf16.gmra.mxu0 %vm1241_vm5, %v12495_v53  ;;  %v14366_v34 = vadd.f32 %v11874_v6, %v11840_v57  ;;  %v11878_v58 = vpop.f32.mrf.mxu1  ;;  %v4490_v53 = vsel %vm12900_vm9, %v4485_v56, %v4489_v3  ;;  %v4526_v57 = vshrl.u32 %v4162_v26, 16  ;;  %v4523_v13 = vrot.slane %v4521_v62, 5 }
 0x180   : > { %12046 = vmatprep.mubr.msk.bf16.mxu0 %vm1241_vm5, %v12496_v29  ;;  %v1424_v22 = vpop.f32.mrf.mxu0  ;;  %v4517_v29 = vrot.slane %v4515_v28, 4  ;;  %v4500_v20 = vsel %vm12900_vm9, %v4495_v30, %v4499_v10  ;;  %v4535_v56 = vshll.u32 %v14371_v44, 16  ;;  %v4531_v52 = vrot.slane %v4529_v36, 5 }
 0x181   : > { %17691 = vst [vmem:[#allocation37_spill] sm:$0xff] %v14366_v34  ;;  %v14376_v6 = vadd.f32 %v1716_v60, %v1424_v22  ;;  %v1732_v4 = vpop.f32.mrf.mxu1  ;;  %v4509_v34 = vrot.slane %v4508_v50, 4  ;;  %v4528_v14 = vrot.slane %v4526_v57, 4  ;;  %v11024_v2 = vcombine.low %v4490_v53, %v4500_v20  ;;  %v4844_v50 = vld [vmem:[#allocation2 + $0x24] sm:$0xe] }
 0x182   : > { %v11841_v33 = vpop.f32.mrf.mxu0  ;;  %v4518_v60 = vor.u32 %v4517_v29, %v4513_v27  ;;  %v4537_v26 = vrot.slane %v4535_v56, 5  ;;  %v4539_v10 = vshrl.u32 %v14371_v44, 16  ;;  %v4545_v30 = vshll.u32 %v14378_v43, 16 }
 0x183   : > { %v14383_v3 = vadd.f32 %v11875_v41, %v11841_v33  ;;  %v11879_v28 = vpop.f32.mrf.mxu1  ;;  %12077 = vmatmul.mubr.msk.bf16.gmra.mxu1 %vm1241_vm5, %v11024_v2  ;;  %v4514_v53 = vsel %vm12900_vm9, %v4509_v34, %v4513_v27  ;;  %v4532_v57 = vor.u32 %v4531_v52, %v4528_v14  ;;  %v11043_v36 = vrot.slane %v4843_v11, 9 }
 0x184   : > { %v14386_v22 = vpop.f32.mrf.mxu0  ;;  %v4519_v41 = vrot.slane %v4518_v60, 4  ;;  %v4541_v33 = vrot.slane %v4539_v10, 4  ;;  %v4547_v56 = vrot.slane %v4545_v30, 5  ;;  %v4909_v62 = vrot.slane %v14064_v51, 5  ;;  %v4845_v60 = vld [vmem:[#allocation2 + $0x30] sm:$0xe] }
 0x185   : > { %17692 = vst [vmem:[#allocation38_spill] sm:$0xff] %v14383_v3  ;;  %17693 = vst [vmem:[#allocation39_spill] sm:$0xff] %v14386_v22  ;;  %v14393_v29 = vpop.f32.mrf.mxu1  ;;  %v4912_v22 = vrot.slane %v14066_v42, 5  ;;  %v4533_v34 = vrot.slane %v4532_v57, 4  ;;  %v11044_v27 = vrot.slane %v4844_v50, 9  ;;  %v17695_v42 = vrot.slane %v14084_v49, 5 }
 0x186   : > { %17694 = vst [vmem:[#allocation40_spill] sm:$0xff] %v14393_v29  ;;  %v11844_v20 = vpop.f32.mrf.mxu0  ;;  %v4524_v2 = vsel %vm12900_vm9, %v4519_v41, %v4523_v13  ;;  %v4542_v29 = vor.u32 %v4541_v33, %v4537_v26  ;;  %v4911_v10 = vrot.slane %v4909_v62, 4 }
 0x187   : > { %12047 = vmatmul.mubr.msk.bf16.gmra.mxu0 %vm1241_vm5, %v12497_v12  ;;  %v14398_v3 = vadd.f32 %v11878_v58, %v11844_v20  ;;  %v11918_v14 = vpop.f32.mrf.mxu1  ;;  %v11025_v52 = vcombine.low %v4514_v53, %v4524_v2  ;;  %v4910_v12 = vsel %vm13251_vm15, %v11043_v36, %v4909_v62  ;;  %v4538_v51 = vsel %vm12900_vm9, %v4533_v34, %v4537_v26  ;;  %v4846_v26 = vld [vmem:[#allocation2 + $0x3c] sm:$0xe] }
 0x188   : > { %v1440_v11 = vpop.f32.mrf.mxu0  ;;  %v4917_v58 = vsel %vm13251_vm15, %v11044_v27, %v17695_v42  ;;  %v17696_v13 = vmov %v17695_v42  ;;  %v4543_v41 = vrot.slane %v4542_v29, 4  ;;  %v11045_v62 = vrot.slane %v4845_v60, 9  ;;  %v4847_v29 = vld [vmem:[#allocation2 + $0x48] sm:$0xe]  ;;  %v4848_v42 = vld [vmem:[#allocation2 + $0x54] sm:$0xe] }
 0x189   : > { %v14404_v30 = vadd.f32 %v1732_v4, %v1440_v11  ;;  %v4918_v50 = vrot.slane %v17696_v13, 4  ;;  %v2403_v53 = vpop.f32.mrf.mxu1  ;;  %12080 = vmatprep.mubr.msk.bf16.mxu1 %vm1241_vm5, %v11025_v52  ;;  %v4913_v4 = vsel %vm13251_vm15, %v4911_v10, %v4912_v22  ;;  %v4923_v36 = vrot.slane %v14107_v55, 5 }
 0x18a   : > { %v11845_v57 = vpop.f32.mrf.mxu0  ;;  %v11060_v33 = vcombine.low %v4910_v12, %v4913_v4  ;;  %v17697_v2 = vrot.slane %v14086_v54, 5  ;;  %v4926_v27 = vrot.slane %v14115_v8, 5  ;;  %v4548_v52 = vsel %vm12900_vm9, %v4543_v41, %v4547_v56 }
 0x18b   : > { %v14418_v20 = vadd.f32 %v11879_v28, %v11845_v57  ;;  %v11919_v34 = vpop.f32.mrf.mxu1  ;;  %v4924_v55 = vsel %vm13251_vm15, %v11045_v62, %v4923_v36  ;;  %v4925_v28 = vrot.slane %v4923_v36, 4  ;;  %v4961_v11 = vrot.slane %v14231_v0, 5 }
 0x18c   : > { %v4920_v49 = vsel %vm13251_vm15, %v4918_v50, %v17697_v2  ;;  %v14427_v22 = vpop.f32.mrf.mxu0  ;;  %v11026_v54 = vcombine.low %v4538_v51, %v4548_v52  ;;  %12086 = vmatprep.mubr.msk.bf16.mxu0 %vm1241_vm5, %v11060_v33  ;;  %v11046_v10 = vrot.slane %v4846_v26, 9  ;;  %v4930_v8 = vrot.slane %v14131_v9, 5  ;;  %v4849_v51 = vld [vmem:[#allocation2 + $0x60] sm:$0xe]  ;;  %v4850_v52 = vld [vmem:[#allocation2 + $0x6c] sm:$0xe] }
 0x18d   : > { %v11061_v60 = vcombine.low %v4917_v58, %v4920_v49  ;;  %v14433_v12 = vpop.f32.mrf.mxu1  ;;  %v4927_v56 = vsel %vm13251_vm15, %v4925_v28, %v4926_v27  ;;  %v11047_v58 = vrot.slane %v4847_v29, 9  ;;  %v4937_v50 = vrot.slane %v14159_v17, 5 }
 0x18e   : > { %v11884_v13 = vpop.f32.mrf.mxu0  ;;  %v4940_v0 = vrot.slane %v14167_v48, 5  ;;  %12081 = vmatmul.mubr.msk.bf16.gmra.mxu1 %vm1241_vm5, %v11026_v54  ;;  %v11062_v57 = vcombine.low %v4924_v55, %v4927_v56  ;;  %v4931_v9 = vsel %vm13251_vm15, %v11046_v10, %v4930_v8  ;;  %v4932_v4 = vrot.slane %v4930_v8, 4 }
 0x18f   : > { %12087 = vmatmul.mubr.msk.bf16.vlgmr.msra.gmra.mxu0 %vm1241_vm5, %v11061_v60  ;;  %v2174_v41 = vadd.f32 %v11884_v13, %v14062_v63  ;;  %v4938_v26 = vsel %vm13251_vm15, %v11047_v58, %v4937_v50  ;;  %v4939_v33 = vrot.slane %v4937_v50, 4  ;;  %v11048_v2 = vrot.slane %v4848_v42, 9 }
 0x190   : > { %v2045_v62 = vpop.f32.mrf.mxu0  ;;  %v11922_v36 = vpop.f32.mrf.mxu1  ;;  %v4944_v17 = vrot.slane %v14178_v61, 5  ;;  %12090 = vmatprep.mubr.msk.bf16.mxu0 %vm1241_vm5, %v11062_v57  ;;  %v17698_v63 = vrot.slane %v14141_v21, 5  ;;  %v11049_v29 = vrot.slane %v4849_v51, 9  ;;  %v4951_v8 = vrot.slane %v14208_v37, 5 }
 0x191   : > { %v2172_v48 = vadd.f32 %v2045_v62, %v14082_v39  ;;  %v14449_v49 = vadd.f32 %v11918_v14, %v2174_v41  ;;  %v4941_v54 = vsel %vm13251_vm15, %v4939_v33, %v4940_v0  ;;  %v17699_v56 = vrot.slane %v14187_v1, 5 }
 0x192   : > { %v4934_v27 = vsel %vm13251_vm15, %v4932_v4, %v17698_v63  ;;  %v11885_v60 = vpop.f32.mrf.mxu0  ;;  %v2419_v28 = vpop.f32.mrf.mxu1  ;;  %v4945_v39 = vsel %vm13251_vm15, %v11048_v2, %v4944_v17  ;;  %v4946_v61 = vrot.slane %v4944_v17, 4  ;;  %v11064_v21 = vcombine.low %v4938_v26, %v4941_v54 }
 0x193   : > { %v11063_v55 = vcombine.low %v4931_v9, %v4934_v27  ;;  %v2175_v14 = vadd.f32 %v11885_v60, %v14113_v25  ;;  %v14461_v10 = vadd.f32 %v2403_v53, %v2172_v48  ;;  %v4954_v50 = vrot.slane %v14210_v38, 5  ;;  %v4851_v48 = vld [vmem:[#allocation2 + $0x78] sm:$0xe] }
 0x194   : > { %v14464_v42 = vpop.f32.mrf.mxu0  ;;  %v11923_v13 = vpop.f32.mrf.mxu1  ;;  %v4948_v58 = vsel %vm13251_vm15, %v4946_v61, %v17699_v56  ;;  %v11050_v0 = vrot.slane %v4850_v52, 9  ;;  %v4958_v51 = vrot.slane %v14227_v46, 5  ;;  %v4953_v57 = vrot.slane %v4951_v8, 4 }
 0x195   : > { %v14472_v41 = vadd.f32 %v11919_v34, %v2175_v14  ;;  %v11065_v25 = vcombine.low %v4945_v39, %v4948_v58  ;;  %v4952_v46 = vsel %vm13251_vm15, %v11049_v29, %v4951_v8  ;;  %v4965_v33 = vrot.slane %v14250_v32, 5 }
 0x196   : > { %v11888_v53 = vpop.f32.mrf.mxu0  ;;  %v14475_v37 = vpop.f32.mrf.mxu1  ;;  %v4959_v1 = vsel %vm13251_vm15, %v11050_v0, %v4958_v51  ;;  %v4960_v9 = vrot.slane %v4958_v51, 4  ;;  %v4955_v34 = vsel %vm13251_vm15, %v4953_v57, %v4954_v50  ;;  %v1640_v52 = vadd.f32 %v14030_v16, %v14075_v59 }
 0x197   : > { %12091 = vmatmul.mubr.msk.bf16.gmra.mxu0 %vm1241_vm5, %v11063_v55  ;;  %v2178_v4 = vadd.f32 %v11888_v53, %v14121_v31  ;;  %v11066_v55 = vcombine.low %v4952_v46, %v4955_v34  ;;  %v11051_v39 = vrot.slane %v4851_v48, 9  ;;  %v4967_v32 = vrot.slane %v4965_v33, 4  ;;  %v17702_v46 = vld [vmem:[#allocation21_spill] sm:$0xff] }
 0x198   : > { %12094 = vmatprep.mubr.msk.bf16.mxu0 %vm1241_vm5, %v11064_v21  ;;  %v2061_v38 = vpop.f32.mrf.mxu0  ;;  %v11926_v62 = vpop.f32.mrf.mxu1  ;;  %v4962_v26 = vsel %vm13251_vm15, %v4960_v9, %v4961_v11  ;;  %v4972_v16 = vrot.slane %v14275_v23, 5  ;;  %v4979_v56 = vrot.slane %v14291_v35, 5  ;;  %v4853_v23 = vld [vmem:[#allocation2 + $0x90] sm:$0xe]  ;;  %v4975_v34 = vrot.slane %v17702_v46, 5 }
 0x199   : > { %v2176_v2 = vadd.f32 %v2061_v38, %v14139_v45  ;;  %v14489_v17 = vadd.f32 %v11922_v36, %v2178_v4  ;;  %v11067_v31 = vcombine.low %v4959_v1, %v4962_v26  ;;  %v4968_v45 = vrot.slane %v14252_v18, 5  ;;  %v17701_v1 = vld [vmem:[#allocation12_spill] sm:$0xff] }
 0x19a   : > { %v11889_v63 = vpop.f32.mrf.mxu0  ;;  %v2435_v27 = vpop.f32.mrf.mxu1  ;;  %v4966_v18 = vsel %vm13251_vm15, %v11051_v39, %v4965_v33  ;;  %v4974_v57 = vrot.slane %v4972_v16, 4  ;;  %v17703_v33 = vld [vmem:[#allocation24_spill] sm:$0xff]  ;;  %v4854_v39 = vld [vmem:[#allocation2 + $0x9c] sm:$0xe] }
 0x19b   : > { %v2179_v29 = vadd.f32 %v11889_v63, %v14157_v7  ;;  %v14494_v60 = vadd.f32 %v2419_v28, %v2176_v2  ;;  %v4852_v7 = vld [vmem:[#allocation2 + $0x84] sm:$0xe]  ;;  %v4982_v2 = vrot.slane %v17703_v33, 5  ;;  %v17710_v33 = vld [vmem:[#allocation31_spill] sm:$0xff] }
 0x19c   : > { %v2064_v54 = vpop.f32.mrf.mxu0  ;;  %v11927_v11 = vpop.f32.mrf.mxu1  ;;  %v11052_v53 = vrot.slane %v4852_v7, 9  ;;  %v17706_v7 = vld [vmem:[#allocation30_spill] sm:$0xff] }
 0x19d   : > { %v14497_v36 = vadd.f32 %v2064_v54, %v1640_v52  ;;  %v14499_v61 = vadd.f32 %v11923_v13, %v2179_v29  ;;  %v4969_v13 = vsel %vm13251_vm15, %v4967_v32, %v4968_v45  ;;  %v4976_v54 = vsel %vm13251_vm15, %v4974_v57, %v4975_v34  ;;  %v17705_v32 = vld [vmem:[#allocation25_spill] sm:$0xff] }
 0x19e   : > { %v11892_v14 = vpop.f32.mrf.mxu0  ;;  %v14502_v21 = vpop.f32.mrf.mxu1  ;;  %v11068_v38 = vcombine.low %v4966_v18, %v4969_v13  ;;  %v4986_v45 = vrot.slane %v17705_v32, 5  ;;  %v17707_v18 = vld [vmem:[#allocation14_spill] sm:$0xff] }
 0x19f   : > { %12095 = vmatmul.mubr.msk.bf16.gmra.mxu0 %vm1241_vm5, %v11065_v25  ;;  %v2182_v59 = vadd.f32 %v11892_v14, %v14165_v47  ;;  %v17700_v47 = vld [vmem:[#allocation11_spill] sm:$0xff] }
 0x1a0   : > { %12098 = vmatprep.mubr.msk.bf16.mxu0 %vm1241_vm5, %v11066_v55  ;;  %v2077_v28 = vpop.f32.mrf.mxu0  ;;  %v11930_v8 = vpop.f32.mrf.mxu1  ;;  %v1656_v0 = vadd.f32 %v17700_v47, %v14146_v5  ;;  %v4973_v55 = vsel %vm13251_vm15, %v11052_v53, %v4972_v16  ;;  %v4855_v16 = vld [vmem:[#allocation2 + $0xa8] sm:$0xe]  ;;  %v4988_v46 = vrot.slane %v4986_v45, 4 }
 0x1a1   : > { %v2180_v58 = vadd.f32 %v2077_v28, %v14185_v40  ;;  %v14513_v50 = vadd.f32 %v11926_v62, %v2182_v59  ;;  %v11053_v40 = vrot.slane %v4853_v23, 9  ;;  %v4981_v62 = vrot.slane %v4979_v56, 4  ;;  %v17708_v53 = vld [vmem:[#allocation27_spill] sm:$0xff] }
 0x1a2   : > { %v11893_v51 = vpop.f32.mrf.mxu0  ;;  %v2451_v25 = vpop.f32.mrf.mxu1  ;;  %v4993_v28 = vrot.slane %v17706_v7, 5  ;;  %v11069_v47 = vcombine.low %v4973_v55, %v4976_v54  ;;  %v4989_v57 = vrot.slane %v17708_v53, 5 }
 0x1a3   : > { %v2183_v9 = vadd.f32 %v11893_v51, %v17701_v1  ;;  %v14518_v4 = vadd.f32 %v2435_v27, %v2180_v58  ;;  %v17704_v27 = vld [vmem:[#allocation13_spill] sm:$0xff]  ;;  %v4983_v59 = vsel %vm13251_vm15, %v4981_v62, %v4982_v2  ;;  %v11054_v51 = vrot.slane %v4854_v39, 9  ;;  %v17709_v1 = vld [vmem:[#allocation15_spill] sm:$0xff]  ;;  %v17711_v2 = vld [vmem:[#allocation16_spill] sm:$0xff] }
 0x1a4   : > { %v2080_v35 = vpop.f32.mrf.mxu0  ;;  %v11931_v26 = vpop.f32.mrf.mxu1  ;;  %v4995_v62 = vrot.slane %v4993_v28, 4  ;;  %v4990_v32 = vsel %vm13251_vm15, %v4988_v46, %v4989_v57 }
 0x1a5   : > { %v14522_v48 = vadd.f32 %v2080_v35, %v1656_v0  ;;  %v14524_v5 = vadd.f32 %v11927_v11, %v2183_v9  ;;  %v4987_v39 = vsel %vm13251_vm15, %v11054_v51, %v4986_v45  ;;  %v4857_v45 = vld [vmem:[#allocation2 + $0xc0] sm:$0xe] }
 0x1a6   : > { %v11896_v63 = vpop.f32.mrf.mxu0  ;;  %v14527_v52 = vpop.f32.mrf.mxu1  ;;  %v11071_v57 = vcombine.low %v4987_v39, %v4990_v32 }
 0x1a7   : > { %12099 = vmatmul.mubr.msk.bf16.gmra.mxu0 %vm1241_vm5, %v11067_v31  ;;  %v2186_v29 = vadd.f32 %v11896_v63, %v17704_v27  ;;  %v4980_v31 = vsel %vm13251_vm15, %v11053_v40, %v4979_v56  ;;  %v11055_v40 = vrot.slane %v4855_v16, 9  ;;  %v5007_v16 = vrot.slane %v14352_v19, 5 }
 0x1a8   : > { %12102 = vmatprep.mubr.msk.bf16.mxu0 %vm1241_vm5, %v11068_v38  ;;  %v2093_v11 = vpop.f32.mrf.mxu0  ;;  %v11934_v14 = vpop.f32.mrf.mxu1  ;;  %v11070_v56 = vcombine.low %v4980_v31, %v4983_v59  ;;  %v17713_v31 = vld [vmem:[#allocation32_spill] sm:$0xff] }
 0x1a9   : > { %v2184_v13 = vadd.f32 %v2093_v11, %v17707_v18  ;;  %v14542_v58 = vadd.f32 %v11930_v8, %v2186_v29  ;;  %v4996_v8 = vrot.slane %v17710_v33, 5  ;;  %v4856_v11 = vld [vmem:[#allocation2 + $0xb4] sm:$0xe]  ;;  %v5000_v59 = vrot.slane %v17713_v31, 5 }
 0x1aa   : > { %v11897_v23 = vpop.f32.mrf.mxu0  ;;  %v2467_v0 = vpop.f32.mrf.mxu1  ;;  %v4994_v18 = vsel %vm13251_vm15, %v11055_v40, %v4993_v28 }
 0x1ab   : > { %v2187_v9 = vadd.f32 %v11897_v23, %v17709_v1  ;;  %v14546_v38 = vadd.f32 %v2451_v25, %v2184_v13  ;;  %v17712_v25 = vld [vmem:[#allocation17_spill] sm:$0xff]  ;;  %v4997_v13 = vsel %vm13251_vm15, %v4995_v62, %v4996_v8  ;;  %v17714_v23 = vld [vmem:[#allocation20_spill] sm:$0xff]  ;;  %v5002_v40 = vrot.slane %v5000_v59, 4 }
 0x1ac   : > { %v2096_v34 = vpop.f32.mrf.mxu0  ;;  %v11935_v35 = vpop.f32.mrf.mxu1  ;;  %v11072_v28 = vcombine.low %v4994_v18, %v4997_v13  ;;  %v11057_v8 = vrot.slane %v4857_v45, 9  ;;  %v4858_v18 = vld [vmem:[#allocation2 + $0xcc] sm:$0xe]  ;;  %v5014_v13 = vrot.slane %v14371_v44, 5 }
 0x1ad   : > { %v14550_v63 = vadd.f32 %v2096_v34, %v17711_v2  ;;  %v14552_v27 = vadd.f32 %v11931_v26, %v2187_v9  ;;  %v11056_v9 = vrot.slane %v4856_v11, 9  ;;  %v17716_v34 = vld [vmem:[#allocation22_spill] sm:$0xff]  ;;  %v17718_v11 = vld [vmem:[#allocation23_spill] sm:$0xff]  ;;  %v11058_v44 = vrot.slane %v4858_v18, 9 }
 0x1ae   : > { %v11900_v29 = vpop.f32.mrf.mxu0  ;;  %v14555_v55 = vpop.f32.mrf.mxu1 }
 0x1af   : > { %12103 = vmatmul.mubr.msk.bf16.gmra.mxu0 %vm1241_vm5, %v11069_v47  ;;  %v2190_v54 = vadd.f32 %v11900_v29, %v17712_v25  ;;  %v5009_v29 = vrot.slane %v5007_v16, 4 }
 0x1b0   : > { %12106 = vmatprep.mubr.msk.bf16.mxu0 %vm1241_vm5, %v11070_v56  ;;  %v2109_v26 = vpop.f32.mrf.mxu0  ;;  %v11938_v7 = vpop.f32.mrf.mxu1  ;;  %v17715_v56 = vld [vmem:[#allocation33_spill] sm:$0xff] }
 0x1b1   : > { %v2188_v47 = vadd.f32 %v2109_v26, %v17714_v23  ;;  %v14570_v53 = vadd.f32 %v11934_v14, %v2190_v54  ;;  %v5003_v46 = vrot.slane %v17715_v56, 5  ;;  %v17717_v14 = vld [vmem:[#allocation36_spill] sm:$0xff] }
 0x1b2   : > { %v11901_v51 = vpop.f32.mrf.mxu0  ;;  %v2483_v1 = vpop.f32.mrf.mxu1  ;;  %v5010_v25 = vrot.slane %v17717_v14, 5 }
 0x1b3   : > { %v2191_v33 = vadd.f32 %v11901_v51, %v17716_v34  ;;  %v14574_v2 = vadd.f32 %v2467_v0, %v2188_v47  ;;  %v5001_v0 = vsel %vm13251_vm15, %v11056_v9, %v5000_v59  ;;  %v5004_v26 = vsel %vm13251_vm15, %v5002_v40, %v5003_v46  ;;  %v17719_v51 = vld [vmem:[#allocation26_spill] sm:$0xff] }
 0x1b4   : > { %v14576_v62 = vpop.f32.mrf.mxu0  ;;  %v11939_v19 = vpop.f32.mrf.mxu1  ;;  %v5008_v47 = vsel %vm13251_vm15, %v11057_v8, %v5007_v16  ;;  %v5011_v45 = vsel %vm13251_vm15, %v5009_v29, %v5010_v25  ;;  %v11125_v59 = vld [vmem:[%s17613_s3 + $0x2] sm:$0x3]  ;;  %v11073_v46 = vcombine.low %v5001_v0, %v5004_v26  ;;  %v5016_v29 = vrot.slane %v5014_v13, 4 }
 0x1b5   : > { %v14579_v54 = vadd.f32 %v11935_v35, %v2191_v33  ;;  %v5017_v33 = vrot.slane %v14378_v43, 5  ;;  %12433 = vmatprep.subr.msk.bf16.mxu1 %vm1290_vm0, %v11125_v59  ;;  %v6499_v16 = vsel %vm1290_vm0, %v11125_v59, 0  ;;  %v17722_v59 = vld [vmem:[#allocation38_spill] sm:$0xff] }
 0x1b6   : > { %v11904_v39 = vpop.f32.mrf.mxu0  ;;  %v14582_v32 = vpop.f32.mrf.mxu1  ;;  %12119 = vmatpush3.bf16.msra.mxu1 %v6499_v16 }
 0x1b7   : > { %12107 = vmatmul.mubr.msk.bf16.gmra.mxu0 %vm1241_vm5, %v11071_v57  ;;  %v2194_v31 = vadd.f32 %v11904_v39, %v17718_v11  ;;  %v5018_v26 = vsel %vm13251_vm15, %v5016_v29, %v5017_v33 }
 0x1b8   : > { %12110 = vmatprep.mubr.msk.bf16.mxu0 %vm1241_vm5, %v11072_v28  ;;  %v2125_v35 = vpop.f32.mrf.mxu0  ;;  %v11942_v23 = vpop.f32.mrf.mxu1  ;;  %v17720_v28 = vld [vmem:[#allocation29_spill] sm:$0xff] }
 0x1b9   : > { %v2192_v57 = vadd.f32 %v2125_v35, %v17719_v51  ;;  %v14596_v56 = vadd.f32 %v11938_v7, %v2194_v31  ;;  %v11074_v7 = vcombine.low %v5008_v47, %v5011_v45  ;;  %v17721_v31 = vld [vmem:[#allocation37_spill] sm:$0xff] }
 0x1ba   : > { %v11905_v9 = vpop.f32.mrf.mxu0  ;;  %v2499_v34 = vpop.f32.mrf.mxu1 }
 0x1bb   : > { %v2195_v40 = vadd.f32 %v11905_v9, %v17720_v28  ;;  %v14605_v8 = vadd.f32 %v2483_v1, %v2192_v57  ;;  %v5015_v1 = vsel %vm13251_vm15, %v11058_v44, %v5014_v13 }
 0x1bc   : > { %v14607_v14 = vpop.f32.mrf.mxu0  ;;  %v11943_v25 = vpop.f32.mrf.mxu1  ;;  %v11075_v51 = vcombine.low %v5015_v1, %v5018_v26 }
 0x1bd   : > { %v14609_v39 = vadd.f32 %v11939_v19, %v2195_v40 }
 0x1be   : > { %v11908_v11 = vpop.f32.mrf.mxu0  ;;  %v14612_v43 = vpop.f32.mrf.mxu1 }
 0x1bf   : > { %12111 = vmatmul.mubr.msk.bf16.gmra.mxu0 %vm1241_vm5, %v11073_v46  ;;  %v2198_v0 = vadd.f32 %v11908_v11, %v17721_v31 }
 0x1c0   : > { %12114 = vmatprep.mubr.msk.bf16.mxu0 %vm1241_vm5, %v11074_v7  ;;  %v2141_v18 = vpop.f32.mrf.mxu0  ;;  %v11946_v35 = vpop.f32.mrf.mxu1 }
 0x1c1   : > { %v2196_v19 = vadd.f32 %v2141_v18, %v14376_v6  ;;  %v14621_v47 = vadd.f32 %v11942_v23, %v2198_v0 }
 0x1c2   : > { %v11909_v45 = vpop.f32.mrf.mxu0  ;;  %v2515_v57 = vpop.f32.mrf.mxu1 }
 0x1c3   : > { %v2199_v9 = vadd.f32 %v11909_v45, %v17722_v59  ;;  %v14624_v46 = vadd.f32 %v2499_v34, %v2196_v19 }
 0x1c4   : > { %v14626_v16 = vpop.f32.mrf.mxu0  ;;  %v11947_v28 = vpop.f32.mrf.mxu1 }
 0x1c5   : > { %v14628_v13 = vadd.f32 %v11943_v25, %v2199_v9 }
 0x1c6   : > { %v14631_v33 = vpop.f32.mrf.mxu1 }
 0x1c7   : > { %v11912_v44 = vpop.f32.mrf.mxu0  ;;  %12115 = vmatmul.mubr.msk.bf16.gmra.mxu0 %vm1241_vm5, %v11075_v51 }
 0x1c8   : > { %v2202_v6 = vadd.f32 %v11912_v44, %v14398_v3  ;;  %v14634_v40 = vpop.f32.mrf.mxu1 }
 0x1c9   : > { %v2157_v23 = vpop.f32.mrf.mxu0 }
 0x1ca   : > { %v2200_v7 = vadd.f32 %v2157_v23, %v14404_v30  ;;  %v14637_v29 = vadd.f32 %v11946_v35, %v2202_v6  ;;  %v14639_v11 = vpop.f32.mrf.mxu1 }
 0x1cb   : > { %v11913_v34 = vpop.f32.mrf.mxu0  ;;  %17723 = vst [vmem:[#allocation11_spill] sm:$0xff] %v14639_v11 }
 0x1cc   : > { %v2203_v25 = vadd.f32 %v11913_v34, %v14418_v20  ;;  %v14642_v31 = vadd.f32 %v2515_v57, %v2200_v7  ;;  %v14646_v1 = vpop.f32.mrf.mxu1 }
 0x1cd   : > { %v14644_v0 = vpop.f32.mrf.mxu0  ;;  %17724 = vst [vmem:[#allocation12_spill] sm:$0xff] %v14646_v1 }
 0x1ce   : > { %v14648_v26 = vadd.f32 %v11947_v28, %v2203_v25  ;;  %v14650_v18 = vpop.f32.mrf.mxu1 }
 0x1cf   : > { %v11952_v3 = vpop.f32.mrf.mxu0  ;;  %17725 = vst [vmem:[#allocation21_spill] sm:$0xff] %v14650_v18 }
 0x1d0   : > { %v14653_v30 = vadd.f32 %v11952_v3, %v14449_v49 }
 0x1d1   : > { %v3129_v35 = vpop.f32.mrf.mxu0  ;;  %v14655_v19 = vpop.f32.mrf.mxu1 }
 0x1d2   : > { %17726 = vst [vmem:[#allocation24_spill] sm:$0xff] %v14655_v19  ;;  %v14658_v45 = vadd.f32 %v3129_v35, %v14461_v10 }
 0x1d3   : > { %v11953_v20 = vpop.f32.mrf.mxu0  ;;  %v14660_v51 = vpop.f32.mrf.mxu1 }
 0x1d4   : > { %17727 = vst [vmem:[#allocation13_spill] sm:$0xff] %v14658_v45  ;;  %17728 = vst [vmem:[#allocation25_spill] sm:$0xff] %v14660_v51  ;;  %v14663_v57 = vadd.f32 %v11953_v20, %v14472_v41 }
 0x1d5   : > { %v14665_v59 = vpop.f32.mrf.mxu0  ;;  %v11991_v9 = vpop.f32.mrf.mxu1 }
 0x1d6   : > { %17729 = vst [vmem:[#allocation30_spill] sm:$0xff] %v14663_v57 }
 0x1d7   : > { %v11956_v28 = vpop.f32.mrf.mxu0  ;;  %v14667_v44 = vpop.f32.mrf.mxu1 }
 0x1d8   : > { %17730 = vst [vmem:[#allocation14_spill] sm:$0xff] %v14667_v44  ;;  %v14670_v49 = vadd.f32 %v11956_v28, %v14489_v17 }
 0x1d9   : > { %v3145_v6 = vpop.f32.mrf.mxu0  ;;  %v11994_v23 = vpop.f32.mrf.mxu1 }
 0x1da   : > { %17731 = vst [vmem:[#allocation27_spill] sm:$0xff] %v14670_v49  ;;  %v14673_v10 = vadd.f32 %v3145_v6, %v14494_v60 }
 0x1db   : > { %v11957_v7 = vpop.f32.mrf.mxu0  ;;  %v3631_v34 = vpop.f32.mrf.mxu1 }
 0x1dc   : > { %17732 = vst [vmem:[#allocation15_spill] sm:$0xff] %v14673_v10  ;;  %v3263_v25 = vadd.f32 %v11957_v7, %v14499_v61 }
 0x1dd   : > { %v14676_v41 = vpop.f32.mrf.mxu0  ;;  %v11995_v3 = vpop.f32.mrf.mxu1 }
 0x1de   : > { %v14678_v35 = vadd.f32 %v11991_v9, %v3263_v25 }
 0x1df   : > { %v11960_v20 = vpop.f32.mrf.mxu0  ;;  %v14680_v15 = vpop.f32.mrf.mxu1 }
 0x1e0   : > { %17733 = vst [vmem:[#allocation31_spill] sm:$0xff] %v14680_v15  ;;  %v3266_v17 = vadd.f32 %v11960_v20, %v14513_v50 }
 0x1e1   : > { %v3161_v28 = vpop.f32.mrf.mxu0  ;;  %v11998_v44 = vpop.f32.mrf.mxu1 }
 0x1e2   : > { %v3264_v51 = vadd.f32 %v3161_v28, %v14518_v4  ;;  %v14684_v60 = vadd.f32 %v11994_v23, %v3266_v17 }
 0x1e3   : > { %v11961_v6 = vpop.f32.mrf.mxu0  ;;  %v3647_v10 = vpop.f32.mrf.mxu1 }
 0x1e4   : > { %v3267_v61 = vadd.f32 %v11961_v6, %v14524_v5  ;;  %v14687_v7 = vadd.f32 %v3631_v34, %v3264_v51 }
 0x1e5   : > { %v14689_v19 = vpop.f32.mrf.mxu0  ;;  %v11999_v9 = vpop.f32.mrf.mxu1 }
 0x1e6   : > { %17734 = vst [vmem:[#allocation16_spill] sm:$0xff] %v14689_v19  ;;  %v14691_v25 = vadd.f32 %v11995_v3, %v3267_v61 }
 0x1e7   : > { %v11964_v15 = vpop.f32.mrf.mxu0  ;;  %v14693_v49 = vpop.f32.mrf.mxu1 }
 0x1e8   : > { %17735 = vst [vmem:[#allocation17_spill] sm:$0xff] %v14693_v49  ;;  %v3270_v50 = vadd.f32 %v11964_v15, %v14542_v58 }
 0x1e9   : > { %v3177_v20 = vpop.f32.mrf.mxu0  ;;  %v12002_v4 = vpop.f32.mrf.mxu1 }
 0x1ea   : > { %v3268_v23 = vadd.f32 %v3177_v20, %v14546_v38  ;;  %v14697_v17 = vadd.f32 %v11998_v44, %v3270_v50 }
 0x1eb   : > { %v11965_v28 = vpop.f32.mrf.mxu0  ;;  %v3663_v5 = vpop.f32.mrf.mxu1 }
 0x1ec   : > { %v3271_v51 = vadd.f32 %v11965_v28, %v14552_v27  ;;  %v14700_v34 = vadd.f32 %v3647_v10, %v3268_v23  ;;  %v5999_v10 = vld [vmem:[%s17613_s3] sm:$0x3] }
 0x1ed   : > { %v14702_v6 = vpop.f32.mrf.mxu0  ;;  %v12003_v3 = vpop.f32.mrf.mxu1  ;;  %12434 = vmatprep.subr.msk.bf16.mxu0 %vm1290_vm0, %v5999_v10 }
 0x1ee   : > { %17736 = vst [vmem:[#allocation32_spill] sm:$0xff] %v14702_v6  ;;  %v14704_v61 = vadd.f32 %v11999_v9, %v3271_v51 }
 0x1ef   : > { %v11968_v49 = vpop.f32.mrf.mxu0  ;;  %v14706_v18 = vpop.f32.mrf.mxu1 }
 0x1f0   : > { %17737 = vst [vmem:[#allocation20_spill] sm:$0xff] %v14706_v18  ;;  %v3274_v15 = vadd.f32 %v11968_v49, %v14570_v53  ;;  %v6791_v53 = vsel %vm1290_vm0, %v5999_v10, 0 }
 0x1f1   : > { %v3193_v58 = vpop.f32.mrf.mxu0  ;;  %v12006_v38 = vpop.f32.mrf.mxu1  ;;  %12153 = vmatpush3.bf16.msra.mxu0 %v6791_v53 }
 0x1f2   : > { %v3272_v44 = vadd.f32 %v3193_v58, %v14574_v2  ;;  %v14710_v50 = vadd.f32 %v12002_v4, %v3274_v15  ;;  %v5967_v2 = vld [vmem:[#allocation3] sm:$0xf]  ;;  %v5968_v4 = vld [vmem:[#allocation3 + $0x4] sm:$0xf] }
 0x1f3   : > { %v11969_v20 = vpop.f32.mrf.mxu0  ;;  %v3679_v27 = vpop.f32.mrf.mxu1  ;;  %v11158_v18 = vcombine.low %v5967_v2, %v5968_v4 }
 0x1f4   : > { %v3275_v9 = vadd.f32 %v11969_v20, %v14579_v54  ;;  %v14716_v23 = vadd.f32 %v3663_v5, %v3272_v44 }
 0x1f5   : > { %v14720_v49 = vpop.f32.mrf.mxu0  ;;  %v12007_v28 = vpop.f32.mrf.mxu1  ;;  %12154 = vmatprep.mubr.msk.bf16.mxu0 %vm1241_vm5, %v11158_v18 }
 0x1f6   : > { %17738 = vst [vmem:[#allocation33_spill] sm:$0xff] %v14720_v49  ;;  %v14722_v51 = vadd.f32 %v12003_v3, %v3275_v9 }
 0x1f7   : > { %v11972_v15 = vpop.f32.mrf.mxu0  ;;  %v14724_v58 = vpop.f32.mrf.mxu1 }
 0x1f8   : > { %17739 = vst [vmem:[#allocation22_spill] sm:$0xff] %v14724_v58  ;;  %v3278_v54 = vadd.f32 %v11972_v15, %v14596_v56 }
 0x1f9   : > { %v3209_v5 = vpop.f32.mrf.mxu0  ;;  %v12010_v44 = vpop.f32.mrf.mxu1 }
 0x1fa   : > { %v3276_v20 = vadd.f32 %v3209_v5, %v14605_v8  ;;  %v14729_v10 = vadd.f32 %v12006_v38, %v3278_v54 }
 0x1fb   : > { %v11973_v49 = vpop.f32.mrf.mxu0  ;;  %v3695_v53 = vpop.f32.mrf.mxu1 }
 0x1fc   : > { %v3279_v6 = vadd.f32 %v11973_v49, %v14609_v39  ;;  %v14732_v3 = vadd.f32 %v3679_v27, %v3276_v20  ;;  %v6017_v27 = vshrl.u32 %v5967_v2, 16  ;;  %v6020_v49 = vshll.u32 %v5967_v2, 16 }
 0x1fd   : > { %v14734_v9 = vpop.f32.mrf.mxu0  ;;  %v12011_v58 = vpop.f32.mrf.mxu1 }
 0x1fe   : > { %17740 = vst [vmem:[#allocation36_spill] sm:$0xff] %v14734_v9  ;;  %v14736_v1 = vadd.f32 %v12007_v28, %v3279_v6  ;;  %v6022_v11 = vrot.slane %v6020_v49, 5 }
 0x1ff   : > { %v11976_v56 = vpop.f32.mrf.mxu0  ;;  %v14738_v15 = vpop.f32.mrf.mxu1 }
 0x200   : > { %17741 = vst [vmem:[#allocation23_spill] sm:$0xff] %v14738_v15  ;;  %v3282_v18 = vadd.f32 %v11976_v56, %v14621_v47  ;;  %v6030_v15 = vshrl.u32 %v5968_v4, 16  ;;  %v6019_v56 = vrot.slane %v6017_v27, 4 }
 0x201   : > { %v3225_v57 = vpop.f32.mrf.mxu0  ;;  %v12014_v8 = vpop.f32.mrf.mxu1 }
 0x202   : > { %v3280_v38 = vadd.f32 %v3225_v57, %v14624_v46  ;;  %v14742_v54 = vadd.f32 %v12010_v44, %v3282_v18  ;;  %v6026_v46 = vshll.u32 %v5968_v4, 16  ;;  %v6032_v45 = vrot.slane %v6030_v15, 4 }
 0x203   : > { %v11977_v5 = vpop.f32.mrf.mxu0  ;;  %v3711_v39 = vpop.f32.mrf.mxu1 }
 0x204   : > { %v3283_v20 = vadd.f32 %v11977_v5, %v14628_v13  ;;  %v14745_v9 = vadd.f32 %v3695_v53, %v3280_v38  ;;  %v6028_v2 = vrot.slane %v6026_v46, 5  ;;  %v6000_v38 = vld [vmem:[#allocation3 + $0x8] sm:$0x1] }
 0x205   : > { %v14747_v6 = vpop.f32.mrf.mxu0  ;;  %v12015_v28 = vpop.f32.mrf.mxu1 }
 0x206   : > { %17742 = vst [vmem:[#allocation26_spill] sm:$0xff] %v14747_v6  ;;  %v14749_v19 = vadd.f32 %v12011_v58, %v3283_v20  ;;  %v6023_v6 = vor.u32 %v6022_v11, %v6019_v56  ;;  %v6033_v58 = vor.u32 %v6032_v45, %v6028_v2  ;;  %v6036_v20 = vshll.u32 %v6000_v38, 16 }
 0x207   : > { %v11980_v47 = vpop.f32.mrf.mxu0  ;;  %v14752_v44 = vpop.f32.mrf.mxu1 }
 0x208   : > { %v3286_v57 = vadd.f32 %v11980_v47, %v14637_v29  ;;  %17743 = vst [vmem:[#allocation29_spill] sm:$0xff] %v14752_v44  ;;  %v6024_v47 = vrot.slane %v6023_v6, 4  ;;  %v6034_v46 = vrot.slane %v6033_v58, 4  ;;  %v6038_v15 = vrot.slane %v6036_v20, 5 }
 0x209   : > { %v3241_v18 = vpop.f32.mrf.mxu0 }
 0x20a   : > { %v3284_v13 = vadd.f32 %v3241_v18, %v14642_v31  ;;  %v14755_v53 = vadd.f32 %v12014_v8, %v3286_v57  ;;  %v14760_v4 = vpop.f32.mrf.mxu1  ;;  %v6029_v11 = vsel %vm12900_vm9, %v6024_v47, %v6028_v2  ;;  %v14788_v18 = vld [vmem:[%s17613_s3 + $0x4] sm:$0x3] }
 0x20b   : > { %v11981_v5 = vpop.f32.mrf.mxu0  ;;  %17744 = vst [vmem:[#allocation37_spill] sm:$0xff] %v14788_v18  ;;  %12435 = vmatprep.subr.msk.bf16.mxu1 %vm1290_vm0, %v14788_v18 }
 0x20c   : > { %v3287_v27 = vadd.f32 %v11981_v5, %v14648_v26  ;;  %v14758_v49 = vadd.f32 %v3711_v39, %v3284_v13  ;;  %v14766_v31 = vpop.f32.mrf.mxu1  ;;  %v6039_v26 = vsel %vm12900_vm9, %v6034_v46, %v6038_v15 }
 0x20d   : > { %v14762_v29 = vpop.f32.mrf.mxu0  ;;  %v11126_v39 = vcombine.low %v6029_v11, %v6039_v26 }
 0x20e   : > { %v14764_v44 = vadd.f32 %v12015_v28, %v3287_v27  ;;  %v14774_v45 = vpop.f32.mrf.mxu1 }
 0x20f   : > { %v14768_v8 = vpop.f32.mrf.mxu0  ;;  %12120 = vmatprep.mubr.msk.bf16.mxu1 %vm1241_vm5, %v11126_v39 }
 0x210   : > { %v14778_v6 = vpop.f32.mrf.mxu1 }
 0x211   : > { %v14776_v56 = vpop.f32.mrf.mxu0 }
 0x213   : > { %v14781_v28 = vpop.f32.mrf.mxu0 }
 0x214   : > { %v14790_v2 = vpop.f32.mrf.mxu1 }
 0x215   : > { %v14783_v57 = vpop.f32.mrf.mxu0 }
 0x216   : > { %v14796_v38 = vpop.f32.mrf.mxu1 }
 0x217   : > { %v14794_v13 = vpop.f32.mrf.mxu0 }
 0x218   : > { %v14800_v58 = vpop.f32.mrf.mxu1 }
 0x219   : > { %v14798_v5 = vpop.f32.mrf.mxu0  ;;  %17745 = vst [vmem:[#allocation38_spill] sm:$0xff] %v14800_v58 }
 0x21a   : > { %v14805_v47 = vpop.f32.mrf.mxu1 }
 0x21b   : > { %v12025_v20 = vpop.f32.mrf.mxu0  ;;  %17747 = vst [vmem:[#allocation42_spill] sm:$0xff] %v14805_v47 }
 0x21c   : > { %v14803_v27 = vadd.f32 %v12025_v20, %v14678_v35 }
 0x21d   : > { %v14807_v46 = vpop.f32.mrf.mxu0 }
 0x21e   : > { %17746 = vst [vmem:[#allocation41_spill] sm:$0xff] %v14803_v27  ;;  %v14812_v26 = vpop.f32.mrf.mxu1 }
 0x21f   : > { %v12028_v15 = vpop.f32.mrf.mxu0  ;;  %17749 = vst [vmem:[#allocation44_spill] sm:$0xff] %v14812_v26 }
 0x220   : > { %v14810_v11 = vadd.f32 %v12028_v15, %v14684_v60  ;;  %v14817_v18 = vpop.f32.mrf.mxu1 }
 0x221   : > { %v3990_v39 = vpop.f32.mrf.mxu0  ;;  %17750 = vst [vmem:[#allocation45_spill] sm:$0xff] %v14817_v18 }
 0x222   : > { %17748 = vst [vmem:[#allocation43_spill] sm:$0xff] %v14810_v11  ;;  %v14815_v24 = vadd.f32 %v3990_v39, %v14687_v7  ;;  %v14822_v20 = vpop.f32.mrf.mxu1 }
 0x223   : > { %v12029_v58 = vpop.f32.mrf.mxu0  ;;  %17752 = vst [vmem:[#allocation47_spill] sm:$0xff] %v14822_v20 }
 0x224   : > { %v14820_v35 = vadd.f32 %v12029_v58, %v14691_v25  ;;  %v14826_v27 = vpop.f32.mrf.mxu1 }
 0x225   : > { %v14824_v47 = vpop.f32.mrf.mxu0  ;;  %17753 = vst [vmem:[#allocation48_spill] sm:$0xff] %v14826_v27 }
 0x226   : > { %17751 = vst [vmem:[#allocation46_spill] sm:$0xff] %v14820_v35 }
 0x227   : > { %v12032_v60 = vpop.f32.mrf.mxu0  ;;  %v14831_v11 = vpop.f32.mrf.mxu1 }
 0x228   : > { %v14829_v15 = vadd.f32 %v12032_v60, %v14697_v17  ;;  %17754 = vst [vmem:[#allocation49_spill] sm:$0xff] %v14831_v11 }
 0x229   : > { %v4006_v26 = vpop.f32.mrf.mxu0  ;;  %v14836_v18 = vpop.f32.mrf.mxu1 }
 0x22a   : > { %v14834_v7 = vadd.f32 %v4006_v26, %v14700_v34  ;;  %17756 = vst [vmem:[#allocation51_spill] sm:$0xff] %v14836_v18 }
 0x22b   : > { %v12033_v39 = vpop.f32.mrf.mxu0  ;;  %v14843_v20 = vpop.f32.mrf.mxu1 }
 0x22c   : > { %17755 = vst [vmem:[#allocation50_spill] sm:$0xff] %v14834_v7  ;;  %v14839_v25 = vadd.f32 %v12033_v39, %v14704_v61  ;;  %17758 = vst [vmem:[#allocation53_spill] sm:$0xff] %v14843_v20 }
 0x22d   : > { %v14841_v58 = vpop.f32.mrf.mxu0  ;;  %v14845_v35 = vpop.f32.mrf.mxu1 }
 0x22e   : > { %17757 = vst [vmem:[#allocation52_spill] sm:$0xff] %v14839_v25  ;;  %17759 = vst [vmem:[#allocation54_spill] sm:$0xff] %v14845_v35 }
 0x22f   : > { %v12036_v27 = vpop.f32.mrf.mxu0 }
 0x230   : > { %v14848_v17 = vadd.f32 %v12036_v27, %v14710_v50  ;;  %v14853_v26 = vpop.f32.mrf.mxu1 }
 0x231   : > { %v4022_v60 = vpop.f32.mrf.mxu0  ;;  %17762 = vst [vmem:[#allocation57_spill] sm:$0xff] %v14853_v26 }
 0x232   : > { %17760 = vst [vmem:[#allocation55_spill] sm:$0xff] %v14848_v17  ;;  %v14851_v34 = vadd.f32 %v4022_v60, %v14716_v23  ;;  %v14858_v39 = vpop.f32.mrf.mxu1  ;;  %v17768_v60 = vld [vmem:[#allocation10_spill] sm:$0xff] }
 0x233   : > { %v12037_v18 = vpop.f32.mrf.mxu0  ;;  %17764 = vst [vmem:[#allocation59_spill] sm:$0xff] %v14858_v39  ;;  %v17773_v39 = vld [vmem:[#allocation18_spill] sm:$0xff] }
 0x234   : > { %17761 = vst [vmem:[#allocation56_spill] sm:$0xff] %v14851_v34  ;;  %v14856_v61 = vadd.f32 %v12037_v18, %v14722_v51  ;;  %v14862_v20 = vpop.f32.mrf.mxu1  ;;  %v17769_v34 = vld [vmem:[#allocation9_spill] sm:$0xff] }
 0x235   : > { %v14860_v25 = vpop.f32.mrf.mxu0  ;;  %17765 = vst [vmem:[#allocation60_spill] sm:$0xff] %v14862_v20  ;;  %v1624_v26 = vadd.f32 %v17769_v34, %v17768_v60  ;;  %v17772_v20 = vld [vmem:[#allocation19_spill] sm:$0xff] }
 0x236   : > { %17763 = vst [vmem:[#allocation58_spill] sm:$0xff] %v14856_v61  ;;  %v14867_v27 = vpop.f32.mrf.mxu1  ;;  %v1688_v7 = vadd.f32 %v17773_v39, %v17772_v20  ;;  %v17776_v34 = vld [vmem:[#allocation39_spill] sm:$0xff] }
 0x237   : > { %v12040_v35 = vpop.f32.mrf.mxu0  ;;  %17767 = vst [vmem:[#allocation62_spill] sm:$0xff] %v14867_v27  ;;  %v2173_v18 = vadd.f32 %v14464_v42, %v1624_v26  ;;  %v17775_v27 = vld [vmem:[#allocation28_spill] sm:$0xff]  ;;  %v17777_v60 = vld [vmem:[#allocation35_spill] sm:$0xff] }
 0x238   : > { %v14865_v50 = vadd.f32 %v12040_v35, %v14729_v10  ;;  %v2189_v42 = vadd.f32 %v14576_v62, %v1688_v7 }
 0x239   : > { %v4038_v23 = vpop.f32.mrf.mxu0  ;;  %v14880_v10 = vpop.f32.mrf.mxu1  ;;  %v2531_v20 = vadd.f32 %v14433_v12, %v2173_v18  ;;  %v2539_v12 = vadd.f32 %v14502_v21, %v14522_v48  ;;  %v3728_v21 = vadd.f32 %v14634_v40, %v14653_v30  ;;  %v17779_v48 = vld [vmem:[#allocation13_spill] sm:$0xff]  ;;  %v17788_v40 = vld [vmem:[#allocation15_spill] sm:$0xff] }
 0x23a   : > { %17766 = vst [vmem:[#allocation61_spill] sm:$0xff] %v14865_v50  ;;  %v14872_v17 = vadd.f32 %v4038_v23, %v14732_v3  ;;  %v17774_v50 = vld [vmem:[#allocation34_spill] sm:$0xff]  ;;  %v1720_v3 = vadd.f32 %v17777_v60, %v17776_v34  ;;  %v17778_v23 = vld [vmem:[#allocation40_spill] sm:$0xff]  ;;  %v17789_v30 = vld [vmem:[#allocation25_spill] sm:$0xff] }
 0x23b   : > { %v12041_v51 = vpop.f32.mrf.mxu0  ;;  %v1704_v11 = vadd.f32 %v17775_v27, %v17774_v50  ;;  %v3257_v62 = vadd.f32 %v14665_v59, %v2531_v20  ;;  %v17783_v60 = vld [vmem:[#allocation12_spill] sm:$0xff] }
 0x23c   : > { %17770 = vst [vmem:[#allocation10_spill] sm:$0xff] %v14872_v17  ;;  %v14876_v61 = vadd.f32 %v12041_v51, %v14736_v1  ;;  %v1736_v17 = vadd.f32 %v17778_v23, %v14427_v22  ;;  %v14891_v1 = vpop.f32.mrf.mxu1  ;;  %v2197_v51 = vadd.f32 %v14626_v16, %v1720_v3  ;;  %v2535_v22 = vadd.f32 %v14475_v37, %v14497_v36  ;;  %v17784_v3 = vld [vmem:[#allocation21_spill] sm:$0xff]  ;;  %v17785_v23 = vld [vmem:[#allocation27_spill] sm:$0xff] }
 0x23d   : > { %v14882_v35 = vpop.f32.mrf.mxu0  ;;  %v2193_v39 = vadd.f32 %v14607_v14, %v1704_v11  ;;  %v2543_v14 = vadd.f32 %v14527_v52, %v14550_v63  ;;  %v2547_v16 = vadd.f32 %v14555_v55, %v2189_v42  ;;  %v17780_v52 = vld [vmem:[#allocation11_spill] sm:$0xff]  ;;  %v17781_v55 = vld [vmem:[#allocation16_spill] sm:$0xff] }
 0x23e   : > { %17771 = vst [vmem:[#allocation9_spill] sm:$0xff] %v14876_v61  ;;  %v2201_v50 = vadd.f32 %v14644_v0, %v1736_v17  ;;  %v14900_v27 = vpop.f32.mrf.mxu1  ;;  %v2555_v37 = vadd.f32 %v14612_v43, %v2197_v51  ;;  %v3261_v36 = vadd.f32 %v14676_v41, %v2535_v22  ;;  %v3726_v63 = vadd.f32 %v17780_v52, %v17779_v48  ;;  %v17790_v51 = vld [vmem:[#allocation33_spill] sm:$0xff]  ;;  %v17793_v52 = vld [vmem:[#allocation14_spill] sm:$0xff] }
 0x23f   : > { %v12044_v26 = vpop.f32.mrf.mxu0  ;;  %v2551_v11 = vadd.f32 %v14582_v32, %v2193_v39  ;;  %v3265_v17 = vadd.f32 %v17781_v55, %v2539_v12  ;;  %v17782_v32 = vld [vmem:[#allocation30_spill] sm:$0xff]  ;;  %v3727_v41 = vadd.f32 %v17784_v3, %v3257_v62  ;;  %v3730_v39 = vadd.f32 %v17789_v30, %v17788_v40  ;;  %v17794_v3 = vld [vmem:[#allocation31_spill] sm:$0xff] }
 0x240   : > { %v14897_v61 = vadd.f32 %v12044_v26, %v14742_v54  ;;  %v14913_v0 = vpop.f32.mrf.mxu1  ;;  %v3729_v43 = vadd.f32 %v17783_v60, %v17782_v32  ;;  %v17787_v26 = vld [vmem:[#allocation32_spill] sm:$0xff]  ;;  %v17792_v12 = vld [vmem:[#allocation26_spill] sm:$0xff]  ;;  %v3731_v55 = vadd.f32 %v17793_v52, %v3261_v36  ;;  %v4087_v32 = vadd.f32 %v14768_v8, %v3728_v21 }
 0x241   : > { %v4054_v34 = vpop.f32.mrf.mxu0  ;;  %v4089_v8 = vadd.f32 %v14798_v5, %v3730_v39  ;;  %v17796_v21 = vld [vmem:[#allocation20_spill] sm:$0xff]  ;;  %v17797_v40 = vld [vmem:[#allocation22_spill] sm:$0xff] }
 0x242   : > { %v14906_v7 = vadd.f32 %v4054_v34, %v14745_v9  ;;  %v2559_v9 = vadd.f32 %v14631_v33, %v2201_v50  ;;  %v3269_v33 = vadd.f32 %v17787_v26, %v2543_v14  ;;  %v3273_v50 = vadd.f32 %v17790_v51, %v2547_v16  ;;  %v17791_v34 = vld [vmem:[#allocation36_spill] sm:$0xff]  ;;  %v17795_v26 = vld [vmem:[#allocation17_spill] sm:$0xff] }
 0x243   : > { %v12045_v54 = vpop.f32.mrf.mxu0  ;;  %v14935_v20 = vpop.f32.mrf.mxu1  ;;  %v3277_v22 = vadd.f32 %v17791_v34, %v2551_v11  ;;  %v4085_v16 = vadd.f32 %v14776_v56, %v3726_v63  ;;  %v4088_v11 = vadd.f32 %v14781_v28, %v3729_v43  ;;  %v17798_v63 = vld [vmem:[#allocation23_spill] sm:$0xff] }
 0x244   : > { %v14919_v59 = vadd.f32 %v12045_v54, %v14749_v19  ;;  %v17786_v19 = vld [vmem:[#allocation24_spill] sm:$0xff]  ;;  %v3281_v54 = vadd.f32 %v17792_v12, %v2555_v37  ;;  %v3285_v62 = vadd.f32 %v14762_v29, %v2559_v9  ;;  %v4086_v37 = vadd.f32 %v14783_v57, %v3727_v41  ;;  %v17799_v41 = vld [vmem:[#allocation29_spill] sm:$0xff]  ;;  %v17801_v12 = vld [vmem:[#allocation38_spill] sm:$0xff] }
 0x245   : > { %v14927_v18 = vpop.f32.mrf.mxu0  ;;  %v3732_v42 = vadd.f32 %v17786_v19, %v17785_v23  ;;  %v14945_v60 = vpop.f32.mrf.mxu1  ;;  %v3735_v23 = vadd.f32 %v17794_v3, %v3265_v17  ;;  %v3739_v36 = vadd.f32 %v17795_v26, %v3269_v33  ;;  %v3743_v17 = vadd.f32 %v17796_v21, %v3273_v50  ;;  %v17808_v3 = vld [vmem:[#allocation47_spill] sm:$0xff]  ;;  %v17814_v21 = vld [vmem:[#allocation53_spill] sm:$0xff] }
 0x246   : > { %v3747_v56 = vadd.f32 %v17797_v40, %v3277_v22  ;;  %v3751_v28 = vadd.f32 %v17798_v63, %v3281_v54  ;;  %v4090_v57 = vadd.f32 %v14807_v46, %v3731_v55  ;;  %v3755_v33 = vadd.f32 %v17799_v41, %v3285_v62  ;;  %v17802_v54 = vld [vmem:[#allocation37_spill] sm:$0xff]  ;;  %v15001_v62 = vld [vmem:[%s17612_s2] ss:$0 sm:$0xff]  ;;  %v17816_v41 = vld [vmem:[#allocation55_spill] sm:$0xff] }
 0x247   : > { %v12048_v48 = vpop.f32.mrf.mxu0  ;;  %v4091_v29 = vadd.f32 %v14794_v13, %v3732_v42  ;;  %v14957_v9 = vpop.f32.mrf.mxu1  ;;  %v4813_v13 = vadd.f32 %v14760_v4, %v4087_v32  ;;  %v4094_v5 = vadd.f32 %v14824_v47, %v3735_v23  ;;  %v4814_v39 = vadd.f32 %v14774_v45, %v4088_v11  ;;  %v17800_v4 = vld [vmem:[#allocation41_spill] sm:$0xff]  ;;  %v17807_v32 = vld [vmem:[#allocation46_spill] sm:$0xff] }
 0x248   : > { %v14948_v14 = vadd.f32 %v12048_v48, %v14755_v53  ;;  %v4812_v51 = vadd.f32 %v14778_v6, %v4086_v37  ;;  %v4098_v50 = vadd.f32 %v14841_v58, %v3739_v36  ;;  %v14976_v22 = vadd.f32 %v14796_v38, %v4089_v8  ;;  %v17804_v6 = vld [vmem:[#allocation43_spill] sm:$0xff]  ;;  %v17805_v48 = vld [vmem:[#allocation44_spill] sm:$0xff]  ;;  %v17810_v37 = vld [vmem:[#allocation49_spill] sm:$0xff] }
 0x249   : > { %v4070_v19 = vpop.f32.mrf.mxu0  ;;  %v4783_v42 = vpop.f32.mrf.mxu1  ;;  %v4817_v46 = vadd.f32 %v14790_v2, %v4091_v29  ;;  %v14980_v47 = vadd.f32 %v17801_v12, %v17800_v4  ;;  %v14991_v58 = vadd.f32 %v17805_v48, %v17804_v6  ;;  %v17806_v2 = vld [vmem:[#allocation45_spill] sm:$0xff]  ;;  %v4102_v38 = vadd.f32 %v14860_v25, %v3743_v17  ;;  %v17811_v25 = vld [vmem:[#allocation50_spill] sm:$0xff]  ;;  %v17812_v36 = vld [vmem:[#allocation51_spill] sm:$0xff] }
 0x24a   : > { %v14960_v53 = vadd.f32 %v4070_v19, %v14758_v49  ;;  %v4811_v49 = vadd.f32 %v14766_v31, %v4085_v16  ;;  %v17803_v31 = vld [vmem:[#allocation42_spill] sm:$0xff]  ;;  %v14995_v52 = vadd.f32 %v17806_v2, %v14815_v24  ;;  %v15005_v23 = vadd.f32 %v17808_v3, %v17807_v32  ;;  %v17809_v16 = vld [vmem:[#allocation48_spill] sm:$0xff] }
 0x24b   : > { %v12049_v43 = vpop.f32.mrf.mxu0  ;;  %v14987_v45 = vadd.f32 %v17803_v31, %v4090_v57  ;;  %v15008_v11 = vadd.f32 %v17809_v16, %v4094_v5  ;;  %v15012_v19 = vadd.f32 %v17810_v37, %v14829_v15  ;;  %v15016_v29 = vadd.f32 %v17812_v36, %v17811_v25  ;;  %v17813_v8 = vld [vmem:[#allocation52_spill] sm:$0xff]  ;;  %v17815_v40 = vld [vmem:[#allocation54_spill] sm:$0xff]  ;;  %v17817_v5 = vld [vmem:[#allocation57_spill] sm:$0xff] }
 0x24c   : > { %v4116_v30 = vadd.f32 %v12049_v43, %v14764_v44  ;;  %v14984_v44 = vsel %vm1290_vm0, %v17802_v54, 0  ;;  %v15020_v17 = vadd.f32 %v17814_v21, %v17813_v8  ;;  %v15023_v63 = vadd.f32 %v17815_v40, %v4098_v50  ;;  %v17818_v4 = vld [vmem:[#allocation56_spill] sm:$0xff]  ;;  %v17820_v48 = vld [vmem:[#allocation58_spill] sm:$0xff]  ;;  %v17825_v21 = vld [vmem:[#allocation9_spill] sm:$0xff] }
 0x24d   : > { %v4073_v34 = vpop.f32.mrf.mxu0  ;;  %v4106_v57 = vadd.f32 %v14882_v35, %v3747_v56  ;;  %v15028_v15 = vadd.f32 %v17817_v5, %v17816_v41  ;;  %v17821_v2 = vld [vmem:[#allocation60_spill] sm:$0xff]  ;;  %v17822_v50 = vld [vmem:[#allocation62_spill] sm:$0xff]  ;;  %v17823_v35 = vld [vmem:[#allocation61_spill] sm:$0xff]  ;;  %v4110_v3 = vadd.f32 %v14927_v18, %v3751_v28 }
 0x24e   : > { %v12082_v24 = vpop.f32.mrf.mxu1  ;;  %v15040_v32 = vadd.f32 %v17822_v50, %v4102_v38  ;;  %v15044_v56 = vadd.f32 %v14880_v10, %v17823_v35  ;;  %v17824_v37 = vld [vmem:[#allocation10_spill] sm:$0xff]  ;;  %v15054_v38 = vadd.f32 %v14900_v27, %v17825_v21  ;;  %v15061_v10 = vadd.f32 %v14935_v20, %v14897_v61 }
 0x24f   : > { %v12088_v55 = vpop.f32.mrf.mxu0  ;;  %v15049_v25 = vadd.f32 %v14891_v1, %v17824_v37  ;;  %v15057_v40 = vadd.f32 %v14913_v0, %v4106_v57  ;;  %v4114_v18 = vadd.f32 %v4073_v34, %v3755_v33  ;;  %v15070_v27 = vadd.f32 %v14957_v9, %v14919_v59  ;;  %v5855_v37 = vld [vmem:[#allocation3 + $0xc] sm:$0xf] }
 0x250   : > { %v5283_v26 = vadd.f32 %v12088_v55, %v4813_v13  ;;  %v17819_v13 = vld [vmem:[#allocation59_spill] sm:$0xff]  ;;  %v4796_v54 = vpop.f32.mrf.mxu1  ;;  %v15037_v55 = vadd.f32 %v17821_v2, %v17820_v48  ;;  %v15072_v0 = vadd.f32 %v4783_v42, %v4110_v3  ;;  %v15075_v61 = vadd.f32 %v12082_v24, %v14948_v14  ;;  %v5862_v24 = vld [vmem:[#allocation3 + $0x18] sm:$0xf] }
 0x251   : > { %v5154_v43 = vpop.f32.mrf.mxu0  ;;  %v15032_v12 = vadd.f32 %v17819_v13, %v17818_v4  ;;  %v15078_v33 = vadd.f32 %v4796_v54, %v14960_v53 }
 0x252   : > { %v5322_v31 = vadd.f32 %v15001_v62, %v5283_v26  ;;  %v5281_v6 = vadd.f32 %v5154_v43, %v4811_v49  ;;  %v12083_v26 = vpop.f32.mrf.mxu1 }
 0x253   : > { %v12089_v16 = vpop.f32.mrf.mxu0  ;;  %v15080_v13 = vadd.f32 %v12083_v26, %v4116_v30 }
 0x254   : > { %v5354_v49 = vmax.f32 %v5322_v31, 0.0  ;;  %v5320_v36 = vadd.f32 %v15001_v62, %v5281_v6  ;;  %v5284_v8 = vadd.f32 %v12089_v16, %v4814_v39  ;;  %v4799_v1 = vpop.f32.mrf.mxu1  ;;  %v15066_v39 = vadd.f32 %v14945_v60, %v14906_v7 }
 0x255   : > { %v5157_v28 = vpop.f32.mrf.mxu0  ;;  %v15082_v7 = vadd.f32 %v4799_v1, %v4114_v18 }
 0x256   : > { %v11476_v43 = vpack.c.bf16 %v5354_v49, %v5354_v49  ;;  %v5352_v41 = vmax.f32 %v5320_v36, 0.0  ;;  %v5323_v5 = vadd.f32 %v15001_v62, %v5284_v8  ;;  %v5282_v4 = vadd.f32 %v5157_v28, %v4812_v51 }
 0x257   : > { %v12092_v20 = vpop.f32.mrf.mxu0 }
 0x258   : > { %v5552_v34 = vshrl.u32 %v11476_v43, 16  ;;  %v11474_v57 = vpack.c.bf16 %v5352_v41, %v5352_v41  ;;  %v5355_v51 = vmax.f32 %v5323_v5, 0.0  ;;  %v5321_v60 = vadd.f32 %v15001_v62, %v5282_v4 }
 0x259   : > { %v5287_v59 = vadd.f32 %v12092_v20, %v4817_v46  ;;  %v5170_v9 = vpop.f32.mrf.mxu0  ;;  %v5555_v31 = vshll.u32 %v11476_v43, 16 }
 0x25a   : > { %v5554_v42 = vrot.slane %v5552_v34, 7  ;;  %v5535_v6 = vshrl.u32 %v11474_v57, 16  ;;  %v11477_v14 = vpack.c.bf16 %v5355_v51, %v5355_v51  ;;  %v5538_v48 = vshll.u32 %v11474_v57, 16 }
 0x25b   : > { %v5353_v2 = vmax.f32 %v5321_v60, 0.0  ;;  %v5326_v53 = vadd.f32 %v15001_v62, %v5287_v59  ;;  %v5285_v54 = vadd.f32 %v5170_v9, %v14976_v22  ;;  %v12093_v50 = vpop.f32.mrf.mxu0  ;;  %v5866_v22 = vld [vmem:[#allocation3 + $0x20] sm:$0x1] }
 0x25c   : > { %v5557_v30 = vor.u32 %v5555_v31, %v5554_v42  ;;  %v5558_v35 = vrot.slane %v5554_v42, 4  ;;  %v5537_v3 = vrot.slane %v5535_v6, 7  ;;  %v5560_v16 = vshrl.u32 %v11477_v14, 16 }
 0x25d   : > { %v5563_v26 = vshll.u32 %v11477_v14, 16  ;;  %v11475_v46 = vpack.c.bf16 %v5353_v2, %v5353_v2  ;;  %v5358_v49 = vmax.f32 %v5326_v53, 0.0  ;;  %v5324_v36 = vadd.f32 %v15001_v62, %v5285_v54  ;;  %v5173_v8 = vpop.f32.mrf.mxu0  ;;  %v5859_v54 = vld [vmem:[#allocation3 + $0x14] sm:$0x1] }
 0x25e   : > { %v5863_v18 = vsel %vm12908_vm10, %v5557_v30, %v5862_v24  ;;  %v5540_v28 = vor.u32 %v5538_v48, %v5537_v3  ;;  %v5541_v1 = vrot.slane %v5537_v3, 4  ;;  %v5562_v43 = vrot.slane %v5560_v16, 7 }
 0x25f   : > { %5864 = vst [vmem:[#allocation3 + $0x18] sm:$0xf] %v5863_v18  ;;  %v5543_v41 = vshrl.u32 %v11475_v46, 16  ;;  %v5546_v5 = vshll.u32 %v11475_v46, 16  ;;  %v11480_v4 = vpack.c.bf16 %v5358_v49, %v5358_v49  ;;  %v5356_v20 = vmax.f32 %v5324_v36, 0.0  ;;  %v12096_v34 = vpop.f32.mrf.mxu0 }
 0x260   : > { %v5856_v57 = vsel %vm12908_vm10, %v5540_v28, %v5855_v37  ;;  %v5565_v51 = vor.u32 %v5563_v26, %v5562_v43  ;;  %v5567_v60 = vrot.slane %v5562_v43, 4  ;;  %v5288_v59 = vadd.f32 %v12093_v50, %v14980_v47  ;;  %v5876_v46 = vld [vmem:[#allocation3 + $0x30] sm:$0xf] }
 0x261   : > { %5857 = vst [vmem:[#allocation3 + $0xc] sm:$0xf] %v5856_v57  ;;  %v5545_v9 = vrot.slane %v5543_v41, 7  ;;  %v5586_v42 = vshrl.u32 %v11480_v4, 16  ;;  %v5589_v31 = vshll.u32 %v11480_v4, 16  ;;  %v11478_v6 = vpack.c.bf16 %v5356_v20, %v5356_v20  ;;  %v5186_v14 = vpop.f32.mrf.mxu0 }
 0x262   : > { %v5566_v48 = vsel %vm12914_vm11, %v5558_v35, %v5565_v51  ;;  %v5867_v53 = vsel %vm12920_vm12, %v5567_v60, %v5866_v22  ;;  %v5327_v30 = vadd.f32 %v15001_v62, %v5288_v59  ;;  %v5286_v3 = vadd.f32 %v5173_v8, %v14987_v45 }
 0x263   : > { %5865 = vst.msk [vmem:[#allocation3 + $0x1c] sm:$0xf] %vm258_vm1, %v5566_v48  ;;  %5868 = vst [vmem:[#allocation3 + $0x20] sm:$0x1] %v5867_v53  ;;  %v5548_v47 = vor.u32 %v5546_v5, %v5545_v9  ;;  %v5550_v50 = vrot.slane %v5545_v9, 4  ;;  %v5588_v16 = vrot.slane %v5586_v42, 7  ;;  %v12097_v26 = vpop.f32.mrf.mxu0  ;;  %v5291_v18 = vadd.f32 %v12096_v34, %v14991_v58 }
 0x264   : > { %v5569_v37 = vshrl.u32 %v11478_v6, 16  ;;  %v5572_v49 = vshll.u32 %v11478_v6, 16  ;;  %v5359_v36 = vmax.f32 %v5327_v30, 0.0  ;;  %v5325_v35 = vadd.f32 %v15001_v62, %v5286_v3  ;;  %v5869_v34 = vld [vmem:[#allocation3 + $0x24] sm:$0xf] }
 0x265   : > { %v5549_v28 = vsel %vm12914_vm11, %v5541_v1, %v5548_v47  ;;  %v5860_v45 = vsel %vm12920_vm12, %v5550_v50, %v5859_v54  ;;  %v5591_v8 = vor.u32 %v5589_v31, %v5588_v16  ;;  %v5592_v43 = vrot.slane %v5588_v16, 4  ;;  %v5189_v22 = vpop.f32.mrf.mxu0 }
 0x266   : > { %5858 = vst.msk [vmem:[#allocation3 + $0x10] sm:$0xf] %vm258_vm1, %v5549_v28  ;;  %5861 = vst [vmem:[#allocation3 + $0x14] sm:$0x1] %v5860_v45  ;;  %v5571_v41 = vrot.slane %v5569_v37, 7  ;;  %v11481_v5 = vpack.c.bf16 %v5359_v36, %v5359_v36  ;;  %v5357_v4 = vmax.f32 %v5325_v35, 0.0  ;;  %v5330_v20 = vadd.f32 %v15001_v62, %v5291_v18 }
 0x267   : > { %v5877_v58 = vsel %vm12908_vm10, %v5591_v8, %v5876_v46  ;;  %v5289_v1 = vadd.f32 %v5186_v14, %v14995_v52  ;;  %v5292_v57 = vadd.f32 %v12097_v26, %v15005_v23  ;;  %v5290_v51 = vadd.f32 %v5189_v22, %v15008_v11  ;;  %v12100_v60 = vpop.f32.mrf.mxu0  ;;  %v5880_v23 = vld [vmem:[#allocation3 + $0x38] sm:$0x1] }
 0x268   : > { %5878 = vst [vmem:[#allocation3 + $0x30] sm:$0xf] %v5877_v58  ;;  %v5574_v59 = vor.u32 %v5572_v49, %v5571_v41  ;;  %v5575_v9 = vrot.slane %v5571_v41, 4  ;;  %v5594_v42 = vshrl.u32 %v11481_v5, 16  ;;  %v5597_v31 = vshll.u32 %v11481_v5, 16 }
 0x269   : > { %v11479_v6 = vpack.c.bf16 %v5357_v4, %v5357_v4  ;;  %v5362_v48 = vmax.f32 %v5330_v20, 0.0  ;;  %v5328_v53 = vadd.f32 %v15001_v62, %v5289_v1  ;;  %v5331_v54 = vadd.f32 %v15001_v62, %v5292_v57  ;;  %v5202_v30 = vpop.f32.mrf.mxu0  ;;  %v5873_v41 = vld [vmem:[#allocation3 + $0x2c] sm:$0x1]  ;;  %v5890_v1 = vld [vmem:[#allocation3 + $0x48] sm:$0xf] }
 0x26a   : > { %v5870_v52 = vsel %vm12908_vm10, %v5574_v59, %v5869_v34  ;;  %v5596_v14 = vrot.slane %v5594_v42, 7  ;;  %v5329_v11 = vadd.f32 %v15001_v62, %v5290_v51  ;;  %v5295_v3 = vadd.f32 %v12100_v60, %v15012_v19 }
 0x26b   : > { %5871 = vst [vmem:[#allocation3 + $0x24] sm:$0xf] %v5870_v52  ;;  %v5577_v47 = vshrl.u32 %v11479_v6, 16  ;;  %v5580_v50 = vshll.u32 %v11479_v6, 16  ;;  %v11484_v16 = vpack.c.bf16 %v5362_v48, %v5362_v48  ;;  %v5360_v37 = vmax.f32 %v5328_v53, 0.0  ;;  %v12101_v26 = vpop.f32.mrf.mxu0 }
 0x26c   : > { %v5599_v46 = vor.u32 %v5597_v31, %v5596_v14  ;;  %v5601_v49 = vrot.slane %v5596_v14, 4  ;;  %v5363_v36 = vmax.f32 %v5331_v54, 0.0  ;;  %v5361_v35 = vmax.f32 %v5329_v11, 0.0  ;;  %v5883_v54 = vld [vmem:[#allocation3 + $0x3c] sm:$0xf] }
 0x26d   : > { %v5579_v18 = vrot.slane %v5577_v47, 7  ;;  %v5620_v28 = vshrl.u32 %v11484_v16, 16  ;;  %v5623_v45 = vshll.u32 %v11484_v16, 16  ;;  %v11482_v8 = vpack.c.bf16 %v5360_v37, %v5360_v37  ;;  %v5205_v51 = vpop.f32.mrf.mxu0  ;;  %v11239_v52 = vld [vmem:[%s17613_s3 + $0x6] sm:$0x3] }
 0x26e   : > { %v5600_v22 = vsel %vm12914_vm11, %v5592_v43, %v5599_v46  ;;  %v5881_v19 = vsel %vm12920_vm12, %v5601_v49, %v5880_v23  ;;  %v11485_v5 = vpack.c.bf16 %v5363_v36, %v5363_v36  ;;  %v11483_v4 = vpack.c.bf16 %v5361_v35, %v5361_v35  ;;  %v5894_v11 = vld [vmem:[#allocation3 + $0x50] sm:$0x1]  ;;  %12436 = vmatprep.subr.msk.bf16.mxu0 %vm1290_vm0, %v11239_v52 }
 0x26f   : > { %5879 = vst.msk [vmem:[#allocation3 + $0x34] sm:$0xf] %vm258_vm1, %v5600_v22  ;;  %5882 = vst [vmem:[#allocation3 + $0x38] sm:$0x1] %v5881_v19  ;;  %v5582_v20 = vor.u32 %v5580_v50, %v5579_v18  ;;  %v5584_v58 = vrot.slane %v5579_v18, 4  ;;  %v5622_v34 = vrot.slane %v5620_v28, 7  ;;  %v5334_v16 = vadd.f32 %v15001_v62, %v5295_v3  ;;  %v12104_v49 = vpop.f32.mrf.mxu0 }
 0x270   : > { %v5603_v57 = vshrl.u32 %v11482_v8, 16  ;;  %v5606_v60 = vshll.u32 %v11482_v8, 16  ;;  %v5628_v59 = vshrl.u32 %v11485_v5, 16  ;;  %v5631_v42 = vshll.u32 %v11485_v5, 16  ;;  %v5969_v5 = vld [vmem:[#allocation3 + $0xc] sm:$0xf] }
 0x271   : > { %v5611_v31 = vshrl.u32 %v11483_v4, 16  ;;  %v5583_v43 = vsel %vm12914_vm11, %v5575_v9, %v5582_v20  ;;  %v5874_v6 = vsel %vm12920_vm12, %v5584_v58, %v5873_v41  ;;  %v5625_v48 = vor.u32 %v5623_v45, %v5622_v34  ;;  %v5887_v45 = vld [vmem:[#allocation3 + $0x44] sm:$0x1] }
 0x272   : > { %v5626_v53 = vrot.slane %v5622_v34, 4  ;;  %5872 = vst.msk [vmem:[#allocation3 + $0x28] sm:$0xf] %vm258_vm1, %v5583_v43  ;;  %5875 = vst [vmem:[#allocation3 + $0x2c] sm:$0x1] %v5874_v6  ;;  %v5605_v14 = vrot.slane %v5603_v57, 7  ;;  %v5293_v37 = vadd.f32 %v5202_v30, %v15016_v29  ;;  %v5296_v46 = vadd.f32 %v12101_v26, %v15020_v17  ;;  %v15151_v34 = vpop.f32.mrf.mxu0 }
 0x273   : > { %v5630_v23 = vrot.slane %v5628_v59, 7  ;;  %v5613_v47 = vrot.slane %v5611_v31, 7  ;;  %v5614_v50 = vshll.u32 %v11483_v4, 16  ;;  %v5891_v9 = vsel %vm12908_vm10, %v5625_v48, %v5890_v1  ;;  %v5904_v48 = vld [vmem:[#allocation3 + $0x60] sm:$0xf] }
 0x274   : > { %5892 = vst [vmem:[#allocation3 + $0x48] sm:$0xf] %v5891_v9  ;;  %v5608_v36 = vor.u32 %v5606_v60, %v5605_v14  ;;  %v5609_v35 = vrot.slane %v5605_v14, 4  ;;  %v5366_v19 = vmax.f32 %v5334_v16, 0.0  ;;  %v5332_v41 = vadd.f32 %v15001_v62, %v5293_v37  ;;  %v15158_v14 = vld [vmem:[#allocation3 + $0x10] sm:$0xf] }
 0x275   : > { %v5633_v18 = vor.u32 %v5631_v42, %v5630_v23  ;;  %v5635_v28 = vrot.slane %v5630_v23, 4  ;;  %v5616_v8 = vor.u32 %v5614_v50, %v5613_v47  ;;  %v5618_v22 = vrot.slane %v5613_v47, 4  ;;  %v12105_v50 = vpop.f32.mrf.mxu0 }
 0x276   : > { %v5884_v3 = vsel %vm12908_vm10, %v5608_v36, %v5883_v54  ;;  %v5335_v30 = vadd.f32 %v15001_v62, %v5296_v46  ;;  %v11488_v20 = vpack.c.bf16 %v5366_v19, %v5366_v19  ;;  %v5364_v58 = vmax.f32 %v5332_v41, 0.0 }
 0x277   : > { %v5634_v29 = vsel %vm12914_vm11, %v5626_v53, %v5633_v18  ;;  %v5895_v17 = vsel %vm12920_vm12, %v5635_v28, %v5894_v11  ;;  %5885 = vst [vmem:[#allocation3 + $0x3c] sm:$0xf] %v5884_v3  ;;  %v5617_v26 = vsel %vm12914_vm11, %v5609_v35, %v5616_v8  ;;  %v5888_v4 = vsel %vm12920_vm12, %v5618_v22, %v5887_v45  ;;  %v5897_v28 = vld [vmem:[#allocation3 + $0x54] sm:$0xf] }
 0x278   : > { %5893 = vst.msk [vmem:[#allocation3 + $0x4c] sm:$0xf] %vm258_vm1, %v5634_v29  ;;  %5896 = vst [vmem:[#allocation3 + $0x50] sm:$0x1] %v5895_v17  ;;  %v5367_v1 = vmax.f32 %v5335_v30, 0.0  ;;  %v5294_v57 = vadd.f32 %v5205_v51, %v15023_v63  ;;  %v5299_v60 = vadd.f32 %v12104_v49, %v15028_v15  ;;  %v6041_v59 = vshrl.u32 %v5969_v5, 16 }
 0x279   : > { %5886 = vst.msk [vmem:[#allocation3 + $0x40] sm:$0xf] %vm258_vm1, %v5617_v26  ;;  %5889 = vst [vmem:[#allocation3 + $0x44] sm:$0x1] %v5888_v4  ;;  %v5654_v42 = vshrl.u32 %v11488_v20, 16  ;;  %v5657_v31 = vshll.u32 %v11488_v20, 16  ;;  %v11486_v43 = vpack.c.bf16 %v5364_v58, %v5364_v58  ;;  %v11159_v19 = vcombine.low %v5969_v5, %v15158_v14  ;;  %v5221_v26 = vpop.f32.mrf.mxu0 }
 0x27a   : > { %v6044_v6 = vshll.u32 %v5969_v5, 16  ;;  %v11489_v53 = vpack.c.bf16 %v5367_v1, %v5367_v1  ;;  %v5333_v54 = vadd.f32 %v15001_v62, %v5294_v57  ;;  %v5338_v52 = vadd.f32 %v15001_v62, %v5299_v60  ;;  %v5971_v15 = vld [vmem:[#allocation3 + $0x18] sm:$0xf]  ;;  %v5908_v17 = vld [vmem:[#allocation3 + $0x68] sm:$0x1] }
 0x27b   : > { %v15160_v23 = vrot.slane %v6041_v59, 4  ;;  %v5656_v11 = vrot.slane %v5654_v42, 7  ;;  %v5637_v47 = vshrl.u32 %v11486_v43, 16  ;;  %v5640_v63 = vshll.u32 %v11486_v43, 16  ;;  %12155 = vmatmul.mubr.msk.bf16.vlgmr.msra.gmra.mxu0 %vm1241_vm5, %v11159_v19  ;;  %v15169_v57 = vld [vmem:[#allocation3 + $0x1c] sm:$0xf] }
 0x27c   : > { %v15162_v51 = vrot.slane %v6044_v6, 5  ;;  %v5662_v9 = vshrl.u32 %v11489_v53, 16  ;;  %v5665_v16 = vshll.u32 %v11489_v53, 16  ;;  %v5365_v37 = vmax.f32 %v5333_v54, 0.0  ;;  %v5901_v60 = vld [vmem:[#allocation3 + $0x5c] sm:$0x1] }
 0x27d   : > { %v5370_v46 = vmax.f32 %v5338_v52, 0.0  ;;  %v5659_v49 = vor.u32 %v5657_v31, %v5656_v11  ;;  %v5660_v36 = vrot.slane %v5656_v11, 4  ;;  %v5639_v35 = vrot.slane %v5637_v47, 7  ;;  %v5918_v52 = vld [vmem:[#allocation3 + $0x78] sm:$0xf] }
 0x27e   : > { %v6054_v18 = vshrl.u32 %v15158_v14, 16  ;;  %v5664_v45 = vrot.slane %v5662_v9, 7  ;;  %v11487_v8 = vpack.c.bf16 %v5365_v37, %v5365_v37  ;;  %v6065_v30 = vshrl.u32 %v5971_v15, 16  ;;  %v12108_v9 = vpop.f32.mrf.mxu0 }
 0x27f   : > { %v11492_v22 = vpack.c.bf16 %v5370_v46, %v5370_v46  ;;  %v5905_v41 = vsel %vm12908_vm10, %v5659_v49, %v5904_v48  ;;  %v5642_v3 = vor.u32 %v5640_v63, %v5639_v35  ;;  %v5643_v29 = vrot.slane %v5639_v35, 4  ;;  %v15189_v35 = vld [vmem:[#allocation3 + $0x28] sm:$0xf] }
 0x280   : > { %5906 = vst [vmem:[#allocation3 + $0x60] sm:$0xf] %v5905_v41  ;;  %v5667_v4 = vor.u32 %v5665_v16, %v5664_v45  ;;  %v5669_v20 = vrot.slane %v5664_v45, 4  ;;  %v5645_v58 = vshrl.u32 %v11487_v8, 16  ;;  %v5648_v1 = vshll.u32 %v11487_v8, 16 }
 0x281   : > { %v5898_v5 = vsel %vm12908_vm10, %v5642_v3, %v5897_v28  ;;  %v5688_v59 = vshrl.u32 %v11492_v22, 16  ;;  %v5691_v42 = vshll.u32 %v11492_v22, 16  ;;  %v15173_v31 = vrot.slane %v6065_v30, 4  ;;  %v5973_v16 = vld [vmem:[#allocation3 + $0x24] sm:$0xf] }
 0x282   : > { %5899 = vst [vmem:[#allocation3 + $0x54] sm:$0xf] %v5898_v5  ;;  %v5668_v43 = vsel %vm12914_vm11, %v5660_v36, %v5667_v4  ;;  %v5909_v6 = vsel %vm12920_vm12, %v5669_v20, %v5908_v17  ;;  %v5647_v48 = vrot.slane %v5645_v58, 7  ;;  %v6068_v53 = vshll.u32 %v5971_v15, 16  ;;  %v15211_v58 = vpop.f32.mrf.mxu0 }
 0x283   : > { %5907 = vst.msk [vmem:[#allocation3 + $0x64] sm:$0xf] %vm258_vm1, %v5668_v43  ;;  %5910 = vst [vmem:[#allocation3 + $0x68] sm:$0x1] %v5909_v6  ;;  %v15180_v54 = vrot.slane %v5688_v59, 7  ;;  %v6078_v11 = vshrl.u32 %v15169_v57, 16  ;;  %v11160_v47 = vcombine.low %v5971_v15, %v15169_v57  ;;  %v5297_v63 = vadd.f32 %v15151_v34, %v15032_v12 }
 0x284   : > { %v5650_v37 = vor.u32 %v5648_v1, %v5647_v48  ;;  %v5652_v46 = vrot.slane %v5647_v48, 4  ;;  %v15186_v49 = vrot.slane %v6068_v53, 5  ;;  %v5300_v36 = vadd.f32 %v12105_v50, %v15037_v55  ;;  %v5911_v53 = vld [vmem:[#allocation3 + $0x6c] sm:$0xf] }
 0x285   : > { %v5693_v28 = vor.u32 %v5691_v42, %v15180_v54  ;;  %v5694_v45 = vrot.slane %v15180_v54, 4  ;;  %12158 = vmatprep.mubr.msk.bf16.mxu0 %vm1241_vm5, %v11160_v47  ;;  %v5336_v15 = vadd.f32 %v15001_v62, %v5297_v63  ;;  %v5298_v12 = vadd.f32 %v5221_v26, %v15040_v32 }
 0x286   : > { %v5651_v34 = vsel %vm12914_vm11, %v5643_v29, %v5650_v37  ;;  %v5902_v8 = vsel %vm12920_vm12, %v5652_v46, %v5901_v60  ;;  %v5339_v55 = vadd.f32 %v15001_v62, %v5300_v36  ;;  %v5303_v50 = vadd.f32 %v12108_v9, %v15044_v56  ;;  %v5922_v37 = vld [vmem:[#allocation3 + $0x80] sm:$0x1] }
 0x287   : > { %5900 = vst.msk [vmem:[#allocation3 + $0x58] sm:$0xf] %vm258_vm1, %v5651_v34  ;;  %5903 = vst [vmem:[#allocation3 + $0x5c] sm:$0x1] %v5902_v8  ;;  %v5919_v22 = vsel %vm12908_vm10, %v5693_v28, %v5918_v52  ;;  %v5368_v19 = vmax.f32 %v5336_v15, 0.0  ;;  %v5337_v41 = vadd.f32 %v15001_v62, %v5298_v12  ;;  %v6089_v32 = vshrl.u32 %v5973_v16, 16  ;;  %v12109_v15 = vpop.f32.mrf.mxu0 }
 0x288   : > { %5920 = vst [vmem:[#allocation3 + $0x78] sm:$0xf] %v5919_v22  ;;  %v5371_v3 = vmax.f32 %v5339_v55, 0.0  ;;  %v5342_v29 = vadd.f32 %v15001_v62, %v5303_v50  ;;  %v6092_v17 = vshll.u32 %v5973_v16, 16  ;;  %v6102_v30 = vshrl.u32 %v15189_v35, 16 }
 0x289   : > { %v11490_v26 = vpack.c.bf16 %v5368_v19, %v5368_v19  ;;  %v5369_v4 = vmax.f32 %v5337_v41, 0.0  ;;  %v15208_v56 = vrot.slane %v6089_v32, 4  ;;  %v11161_v20 = vcombine.low %v5973_v16, %v15189_v35  ;;  %v6001_v34 = vld [vmem:[#allocation3 + $0x14] sm:$0x1]  ;;  %v5932_v41 = vld [vmem:[#allocation3 + $0x90] sm:$0xf] }
 0x28a   : > { %v11493_v1 = vpack.c.bf16 %v5371_v3, %v5371_v3  ;;  %v5374_v5 = vmax.f32 %v5342_v29, 0.0  ;;  %v15213_v60 = vrot.slane %v6092_v17, 5  ;;  %v6047_v59 = vor.u32 %v15162_v51, %v15160_v23  ;;  %v5915_v19 = vld [vmem:[#allocation3 + $0x74] sm:$0x1] }
 0x28b   : > { %v5671_v42 = vshrl.u32 %v11490_v26, 16  ;;  %v5674_v43 = vshll.u32 %v11490_v26, 16  ;;  %v11491_v6 = vpack.c.bf16 %v5369_v4, %v5369_v4  ;;  %12159 = vmatmul.mubr.msk.bf16.gmra.mxu0 %vm1241_vm5, %v11161_v20  ;;  %v6050_v48 = vshll.u32 %v15158_v14, 16  ;;  %v5975_v20 = vld [vmem:[#allocation3 + $0x30] sm:$0xf] }
 0x28c   : > { %v5696_v52 = vshrl.u32 %v11493_v1, 16  ;;  %v5699_v47 = vshll.u32 %v11493_v1, 16  ;;  %v11496_v63 = vpack.c.bf16 %v5374_v5, %v5374_v5  ;;  %v6048_v9 = vrot.slane %v6047_v59, 4  ;;  %v15227_v59 = vld [vmem:[#allocation3 + $0x34] sm:$0xf] }
 0x28d   : > { %v5673_v16 = vrot.slane %v5671_v42, 7  ;;  %v5679_v46 = vshrl.u32 %v11491_v6, 16  ;;  %v5682_v36 = vshll.u32 %v11491_v6, 16  ;;  %v6052_v28 = vrot.slane %v6050_v48, 5  ;;  %v5237_v42 = vpop.f32.mrf.mxu0 }
 0x28e   : > { %v5698_v12 = vrot.slane %v5696_v52, 7  ;;  %v5722_v23 = vshrl.u32 %v11496_v63, 16  ;;  %v5725_v51 = vshll.u32 %v11496_v63, 16  ;;  %v6056_v8 = vrot.slane %v6054_v18, 4 }
 0x28f   : > { %v5676_v55 = vor.u32 %v5674_v43, %v5673_v16  ;;  %v5677_v50 = vrot.slane %v5673_v16, 4  ;;  %v5681_v22 = vrot.slane %v5679_v46, 7  ;;  %v6053_v3 = vsel %vm12900_vm9, %v6048_v9, %v6052_v28  ;;  %v6002_v9 = vld [vmem:[#allocation3 + $0x20] sm:$0x1] }
 0x290   : > { %v5701_v29 = vor.u32 %v5699_v47, %v5698_v12  ;;  %v5703_v17 = vrot.slane %v5698_v12, 4  ;;  %v15223_v26 = vrot.slane %v5722_v23, 7  ;;  %v6057_v4 = vor.u32 %v6056_v8, %v6052_v28 }
 0x291   : > { %v5912_v1 = vsel %vm12908_vm10, %v5676_v55, %v5911_v53  ;;  %v5684_v5 = vor.u32 %v5682_v36, %v5681_v22  ;;  %v5686_v14 = vrot.slane %v5681_v22, 4  ;;  %v6060_v18 = vshll.u32 %v6001_v34, 16  ;;  %v5977_v22 = vld [vmem:[#allocation3 + $0x3c] sm:$0xf] }
 0x292   : > { %5913 = vst [vmem:[#allocation3 + $0x6c] sm:$0xf] %v5912_v1  ;;  %v5702_v43 = vsel %vm12914_vm11, %v5694_v45, %v5701_v29  ;;  %v5923_v6 = vsel %vm12920_vm12, %v5703_v17, %v5922_v37  ;;  %v5727_v48 = vor.u32 %v5725_v51, %v15223_v26  ;;  %v5728_v52 = vrot.slane %v15223_v26, 4  ;;  %v12112_v51 = vpop.f32.mrf.mxu0 }
 0x293   : > { %5921 = vst.msk [vmem:[#allocation3 + $0x7c] sm:$0xf] %vm258_vm1, %v5702_v43  ;;  %5924 = vst [vmem:[#allocation3 + $0x80] sm:$0x1] %v5923_v6  ;;  %v5685_v53 = vsel %vm12914_vm11, %v5677_v50, %v5684_v5  ;;  %v5916_v47 = vsel %vm12920_vm12, %v5686_v14, %v5915_v19  ;;  %v6058_v54 = vrot.slane %v6057_v4, 4  ;;  %v6062_v63 = vrot.slane %v6060_v18, 5 }
 0x294   : > { %5914 = vst.msk [vmem:[#allocation3 + $0x70] sm:$0xf] %vm258_vm1, %v5685_v53  ;;  %5917 = vst [vmem:[#allocation3 + $0x74] sm:$0x1] %v5916_v47  ;;  %v5933_v45 = vsel %vm12908_vm10, %v5727_v48, %v5932_v41  ;;  %v6113_v16 = vshrl.u32 %v5975_v20, 16  ;;  %v6116_v37 = vshll.u32 %v5975_v20, 16  ;;  %v11162_v28 = vcombine.low %v5975_v20, %v15227_v59 }
 0x295   : > { %v6126_v46 = vshrl.u32 %v15227_v59, 16  ;;  %5934 = vst [vmem:[#allocation3 + $0x90] sm:$0xf] %v5933_v45  ;;  %v6063_v36 = vsel %vm12900_vm9, %v6058_v54, %v6062_v63  ;;  %v5301_v12 = vadd.f32 %v15211_v58, %v15049_v25  ;;  %v6071_v23 = vor.u32 %v15186_v49, %v15173_v31  ;;  %v15265_v31 = vld [vmem:[%s17613_s3 + $0x8] sm:$0x3] }
 0x296   : > { %v11127_v34 = vcombine.low %v6053_v3, %v6063_v36  ;;  %v15253_v8 = vrot.slane %v6113_v16, 4  ;;  %v15255_v55 = vrot.slane %v6116_v37, 5  ;;  %v6074_v50 = vshll.u32 %v15169_v57, 16  ;;  %12162 = vmatprep.mubr.msk.bf16.mxu0 %vm1241_vm5, %v11162_v28  ;;  %v5925_v28 = vld [vmem:[#allocation3 + $0x84] sm:$0xf] }
 0x297   : > { %v5340_v19 = vadd.f32 %v15001_v62, %v5301_v12  ;;  %v6072_v41 = vrot.slane %v6071_v23, 4  ;;  %v6080_v25 = vrot.slane %v6078_v11, 4  ;;  %v6084_v58 = vshll.u32 %v6002_v9, 16  ;;  %v15272_v11 = vld [vmem:[#allocation3 + $0x40] sm:$0xf]  ;;  %v5250_v9 = vpop.f32.mrf.mxu0 }
 0x298   : > { %12121 = vmatmul.mubr.msk.bf16.vlgmr.msra.gmra.mxu1 %vm1241_vm5, %v11127_v34  ;;  %v6076_v49 = vrot.slane %v6074_v50, 5  ;;  %v5304_v3 = vadd.f32 %v12109_v15, %v15054_v38  ;;  %v5302_v29 = vadd.f32 %v5237_v42, %v15057_v40  ;;  %v5307_v17 = vadd.f32 %v12112_v51, %v15061_v10 }
 0x299   : > { %12187 = vmatpush3.bf16.msra.mxu1 %v14984_v44  ;;  %v5372_v4 = vmax.f32 %v5340_v19, 0.0  ;;  %v6086_v57 = vrot.slane %v6084_v58, 5  ;;  %v6137_v20 = vshrl.u32 %v5977_v22, 16  ;;  %v6140_v1 = vshll.u32 %v5977_v22, 16 }
 0x29a   : > { %v6077_v5 = vsel %vm12900_vm9, %v6072_v41, %v6076_v49  ;;  %v6081_v14 = vor.u32 %v6080_v25, %v6076_v49  ;;  %v5343_v18 = vadd.f32 %v15001_v62, %v5304_v3  ;;  %v5341_v38 = vadd.f32 %v15001_v62, %v5302_v29  ;;  %12437 = vmatprep.subr.msk.bf16.mxu1 %vm1290_vm0, %v15265_v31  ;;  %v15293_v41 = vld [vmem:[#allocation3 + $0x2c] sm:$0x1]  ;;  %v5936_v49 = vld [vmem:[#allocation3 + $0x98] sm:$0x1]  ;;  %v12113_v29 = vpop.f32.mrf.mxu0 }
 0x29b   : > { %v11494_v40 = vpack.c.bf16 %v5372_v4, %v5372_v4  ;;  %v5346_v44 = vadd.f32 %v15001_v62, %v5307_v17  ;;  %v15281_v10 = vrot.slane %v6137_v20, 4  ;;  %v15283_v15 = vrot.slane %v6140_v1, 5 }
 0x29c   : > { %v6082_v42 = vrot.slane %v6081_v14, 4  ;;  %v5375_v43 = vmax.f32 %v5343_v18, 0.0  ;;  %v5373_v6 = vmax.f32 %v5341_v38, 0.0  ;;  %v6150_v48 = vshrl.u32 %v15272_v11, 16  ;;  %v5991_v2 = vld [vmem:[#allocation3 + $0x90] sm:$0xf] }
 0x29d   : > { %v5705_v53 = vshrl.u32 %v11494_v40, 16  ;;  %v5708_v47 = vshll.u32 %v11494_v40, 16  ;;  %v5378_v54 = vmax.f32 %v5346_v44, 0.0  ;;  %v11163_v63 = vcombine.low %v5977_v22, %v15272_v11  ;;  %v5979_v40 = vld [vmem:[#allocation3 + $0x48] sm:$0xf] }
 0x29e   : > { %v6087_v45 = vsel %vm12900_vm9, %v6082_v42, %v6086_v57  ;;  %v11497_v16 = vpack.c.bf16 %v5375_v43, %v5375_v43  ;;  %v11495_v62 = vpack.c.bf16 %v5373_v6, %v5373_v6  ;;  %v6095_v37 = vor.u32 %v15213_v60, %v15208_v56  ;;  %v5929_v56 = vld [vmem:[#allocation3 + $0x8c] sm:$0x1]  ;;  %v5946_v57 = vld [vmem:[#allocation3 + $0xa8] sm:$0xf] }
 0x29f   : > { %v5707_v36 = vrot.slane %v5705_v53, 7  ;;  %v11128_v12 = vcombine.low %v6077_v5, %v6087_v45  ;;  %v11500_v23 = vpack.c.bf16 %v5378_v54, %v5378_v54  ;;  %12163 = vmatmul.mubr.msk.bf16.gmra.mxu0 %vm1241_vm5, %v11163_v63  ;;  %v6098_v51 = vshll.u32 %v15189_v35, 16  ;;  %v15307_v45 = vld [vmem:[#allocation3 + $0x4c] sm:$0xf]  ;;  %v5253_v35 = vpop.f32.mrf.mxu0 }
 0x2a0   : > { %v5730_v34 = vshrl.u32 %v11497_v16, 16  ;;  %v5733_v50 = vshll.u32 %v11497_v16, 16  ;;  %v5713_v22 = vshrl.u32 %v11495_v62, 16  ;;  %v5716_v19 = vshll.u32 %v11495_v62, 16 }
 0x2a1   : > { %v5710_v25 = vor.u32 %v5708_v47, %v5707_v36  ;;  %v5711_v58 = vrot.slane %v5707_v36, 4  ;;  %12124 = vmatprep.mubr.msk.bf16.mxu1 %vm1241_vm5, %v11128_v12  ;;  %v5756_v60 = vshrl.u32 %v11500_v23, 16  ;;  %v5759_v3 = vshll.u32 %v11500_v23, 16 }
 0x2a2   : > { %v5732_v17 = vrot.slane %v5730_v34, 7  ;;  %v5715_v4 = vrot.slane %v5713_v22, 7  ;;  %v6096_v20 = vrot.slane %v6095_v37, 4  ;;  %v6100_v1 = vrot.slane %v6098_v51, 5 }
 0x2a3   : > { %v5926_v5 = vsel %vm12908_vm10, %v5710_v25, %v5925_v28  ;;  %v15298_v14 = vrot.slane %v5756_v60, 7  ;;  %v6104_v18 = vrot.slane %v6102_v30, 4  ;;  %v6108_v38 = vshll.u32 %v15293_v41, 16 }
 0x2a4   : > { %5927 = vst [vmem:[#allocation3 + $0x84] sm:$0xf] %v5926_v5  ;;  %v5735_v44 = vor.u32 %v5733_v50, %v5732_v17  ;;  %v5737_v42 = vrot.slane %v5732_v17, 4  ;;  %v5718_v43 = vor.u32 %v5716_v19, %v5715_v4  ;;  %v5720_v6 = vrot.slane %v5715_v4, 4  ;;  %v15326_v50 = vld [vmem:[#allocation3 + $0x38] sm:$0x1] }
 0x2a5   : > { %v5761_v53 = vor.u32 %v5759_v3, %v15298_v14  ;;  %v5762_v47 = vrot.slane %v15298_v14, 4  ;;  %v6101_v54 = vsel %vm12900_vm9, %v6096_v20, %v6100_v1  ;;  %v6105_v63 = vor.u32 %v6104_v18, %v6100_v1  ;;  %v15351_v18 = vld [vmem:[#allocation3 + $0x58] sm:$0xf] }
 0x2a6   : > { %v5736_v30 = vsel %vm12914_vm11, %v5728_v52, %v5735_v44  ;;  %v5937_v16 = vsel %vm12920_vm12, %v5737_v42, %v5936_v49  ;;  %v5719_v62 = vsel %vm12914_vm11, %v5711_v58, %v5718_v43  ;;  %v5930_v37 = vsel %vm12920_vm12, %v5720_v6, %v5929_v56  ;;  %v12116_v49 = vpop.f32.mrf.mxu0  ;;  %v5981_v56 = vld [vmem:[#allocation3 + $0x54] sm:$0xf] }
 0x2a7   : > { %5935 = vst.msk [vmem:[#allocation3 + $0x94] sm:$0xf] %vm258_vm1, %v5736_v30  ;;  %5938 = vst [vmem:[#allocation3 + $0x98] sm:$0x1] %v5937_v16  ;;  %v5947_v26 = vsel %vm12908_vm10, %v5761_v53, %v5946_v57  ;;  %v6106_v36 = vrot.slane %v6105_v63, 4  ;;  %v6110_v52 = vrot.slane %v6108_v38, 5  ;;  %v11164_v51 = vcombine.low %v5979_v40, %v15307_v45 }
 0x2a8   : > { %5928 = vst.msk [vmem:[#allocation3 + $0x88] sm:$0xf] %vm258_vm1, %v5719_v62  ;;  %5931 = vst [vmem:[#allocation3 + $0x8c] sm:$0x1] %v5930_v37  ;;  %v6161_v28 = vshrl.u32 %v5979_v40, 16  ;;  %v6164_v12 = vshll.u32 %v5979_v40, 16  ;;  %v5305_v34 = vadd.f32 %v5250_v9, %v15066_v39  ;;  %v6119_v25 = vor.u32 %v15255_v55, %v15253_v8 }
 0x2a9   : > { %5948 = vst [vmem:[#allocation3 + $0xa8] sm:$0xf] %v5947_v26  ;;  %v6174_v23 = vshrl.u32 %v15307_v45, 16  ;;  %v6111_v22 = vsel %vm12900_vm9, %v6106_v36, %v6110_v52  ;;  %v6122_v58 = vshll.u32 %v15227_v59, 16  ;;  %12166 = vmatprep.mubr.msk.bf16.mxu0 %vm1241_vm5, %v11164_v51  ;;  %v15341_v39 = vld [vmem:[%s17612_s2] ss:$0 sm:$0xff]  ;;  %v5308_v57 = vadd.f32 %v12113_v29, %v15070_v27 }
 0x2aa   : > { %v15330_v19 = vrot.slane %v6161_v28, 4  ;;  %v11129_v60 = vcombine.low %v6101_v54, %v6111_v22  ;;  %v15335_v3 = vrot.slane %v6164_v12, 5  ;;  %v5344_v9 = vadd.f32 %v15341_v39, %v5305_v34  ;;  %v5939_v51 = vld [vmem:[#allocation3 + $0x9c] sm:$0xf] }
 0x2ab   : > { %v6128_v17 = vrot.slane %v6126_v46, 4  ;;  %v6120_v8 = vrot.slane %v6119_v25, 4  ;;  %v6124_v55 = vrot.slane %v6122_v58, 5  ;;  %v6132_v4 = vshll.u32 %v15326_v50, 16 }
 0x2ac   : > { %12125 = vmatmul.mubr.msk.bf16.gmra.mxu1 %vm1241_vm5, %v11129_v60  ;;  %v5376_v20 = vmax.f32 %v5344_v9, 0.0  ;;  %v5306_v1 = vadd.f32 %v5253_v35, %v15072_v0  ;;  %v5311_v5 = vadd.f32 %v12116_v49, %v15075_v61  ;;  %v6185_v38 = vshrl.u32 %v5981_v56, 16 }
 0x2ad   : > { %v6125_v59 = vsel %vm12900_vm9, %v6120_v8, %v6124_v55  ;;  %v6129_v46 = vor.u32 %v6128_v17, %v6124_v55  ;;  %v6134_v40 = vrot.slane %v6132_v4, 5  ;;  %v5347_v44 = vadd.f32 %v15341_v39, %v5308_v57  ;;  %v15371_v17 = vld [vmem:[#allocation3 + $0x44] sm:$0x1]  ;;  %v5266_v8 = vpop.f32.mrf.mxu0  ;;  %v5950_v4 = vld [vmem:[#allocation3 + $0xb0] sm:$0x1] }
 0x2ae   : > { %v11498_v42 = vpack.c.bf16 %v5376_v20, %v5376_v20  ;;  %v5345_v27 = vadd.f32 %v15341_v39, %v5306_v1  ;;  %v5350_v29 = vadd.f32 %v15341_v39, %v5311_v5  ;;  %v15358_v43 = vrot.slane %v6185_v38, 4 }
 0x2af   : > { %v6130_v0 = vrot.slane %v6129_v46, 4  ;;  %v5379_v6 = vmax.f32 %v5347_v44, 0.0  ;;  %v6188_v61 = vshll.u32 %v5981_v56, 16  ;;  %v6198_v53 = vshrl.u32 %v15351_v18, 16 }
 0x2b0   : > { %v5739_v54 = vshrl.u32 %v11498_v42, 16  ;;  %v5742_v63 = vshll.u32 %v11498_v42, 16  ;;  %v5377_v35 = vmax.f32 %v5345_v27, 0.0  ;;  %v5382_v30 = vmax.f32 %v5350_v29, 0.0  ;;  %v5960_v42 = vld [vmem:[#allocation3 + $0xc0] sm:$0xf] }
 0x2b1   : > { %v6135_v16 = vsel %vm12900_vm9, %v6130_v0, %v6134_v40  ;;  %v11501_v62 = vpack.c.bf16 %v5379_v6, %v5379_v6  ;;  %v15363_v37 = vrot.slane %v6188_v61, 5  ;;  %v11165_v26 = vcombine.low %v5981_v56, %v15351_v18 }
 0x2b2   : > { %v5741_v36 = vrot.slane %v5739_v54, 7  ;;  %v11130_v52 = vcombine.low %v6125_v59, %v6135_v16  ;;  %v11499_v28 = vpack.c.bf16 %v5377_v35, %v5377_v35  ;;  %v11504_v12 = vpack.c.bf16 %v5382_v30, %v5382_v30  ;;  %v5983_v54 = vld [vmem:[#allocation3 + $0x60] sm:$0xf]  ;;  %v12117_v35 = vpop.f32.mrf.mxu0 }
 0x2b3   : > { %v5764_v34 = vshrl.u32 %v11501_v62, 16  ;;  %v5767_v22 = vshll.u32 %v11501_v62, 16  ;;  %12167 = vmatmul.mubr.msk.bf16.gmra.mxu0 %vm1241_vm5, %v11165_v26  ;;  %v6143_v25 = vor.u32 %v15283_v15, %v15281_v10  ;;  %v6146_v58 = vshll.u32 %v15272_v11, 16  ;;  %v5943_v15 = vld [vmem:[#allocation3 + $0xa4] sm:$0x1] }
 0x2b4   : > { %v5744_v49 = vor.u32 %v5742_v63, %v5741_v36  ;;  %v5745_v60 = vrot.slane %v5741_v36, 4  ;;  %12128 = vmatprep.mubr.msk.bf16.mxu1 %vm1241_vm5, %v11130_v52  ;;  %v5747_v9 = vshrl.u32 %v11499_v28, 16  ;;  %v5750_v56 = vshll.u32 %v11499_v28, 16  ;;  %v15382_v63 = vld [vmem:[#allocation3 + $0x64] sm:$0xf] }
 0x2b5   : > { %v5766_v55 = vrot.slane %v5764_v34, 7  ;;  %v5790_v57 = vshrl.u32 %v11504_v12, 16  ;;  %v5793_v20 = vshll.u32 %v11504_v12, 16  ;;  %v6144_v1 = vrot.slane %v6143_v25, 4 }
 0x2b6   : > { %v5940_v5 = vsel %vm12908_vm10, %v5744_v49, %v5939_v51  ;;  %v5749_v10 = vrot.slane %v5747_v9, 7  ;;  %v6148_v38 = vrot.slane %v6146_v58, 5  ;;  %v6152_v59 = vrot.slane %v6150_v48, 4  ;;  %v15401_v51 = vld [vmem:[#allocation3 + $0x50] sm:$0x1]  ;;  %v5269_v49 = vpop.f32.mrf.mxu0 }
 0x2b7   : > { %5941 = vst [vmem:[#allocation3 + $0x9c] sm:$0xf] %v5940_v5  ;;  %v5769_v46 = vor.u32 %v5767_v22, %v5766_v55  ;;  %v5771_v40 = vrot.slane %v5766_v55, 4  ;;  %v15377_v44 = vrot.slane %v5790_v57, 7  ;;  %v6156_v27 = vshll.u32 %v15371_v17, 16 }
 0x2b8   : > { %v5752_v29 = vor.u32 %v5750_v56, %v5749_v10  ;;  %v5754_v0 = vrot.slane %v5749_v10, 4  ;;  %v6149_v6 = vsel %vm12900_vm9, %v6144_v1, %v6148_v38  ;;  %v6153_v61 = vor.u32 %v6152_v59, %v6148_v38  ;;  %v15414_v57 = vld [vmem:[#allocation3 + $0x70] sm:$0xf] }
 0x2b9   : > { %v5770_v11 = vsel %vm12914_vm11, %v5762_v47, %v5769_v46  ;;  %v5951_v48 = vsel %vm12920_vm12, %v5771_v40, %v5950_v4  ;;  %v5795_v30 = vor.u32 %v5793_v20, %v15377_v44  ;;  %v5796_v16 = vrot.slane %v15377_v44, 4 }
 0x2ba   : > { %5949 = vst.msk [vmem:[#allocation3 + $0xac] sm:$0xf] %vm258_vm1, %v5770_v11  ;;  %5952 = vst [vmem:[#allocation3 + $0xb0] sm:$0x1] %v5951_v48  ;;  %v5753_v62 = vsel %vm12914_vm11, %v5745_v60, %v5752_v29  ;;  %v5944_v26 = vsel %vm12920_vm12, %v5754_v0, %v5943_v15  ;;  %v6154_v14 = vrot.slane %v6153_v61, 4  ;;  %v6158_v36 = vrot.slane %v6156_v27, 5 }
 0x2bb   : > { %5942 = vst.msk [vmem:[#allocation3 + $0xa0] sm:$0xf] %vm258_vm1, %v5753_v62  ;;  %5945 = vst [vmem:[#allocation3 + $0xa4] sm:$0x1] %v5944_v26  ;;  %v5961_v47 = vsel %vm12908_vm10, %v5795_v30, %v5960_v42  ;;  %v6209_v52 = vshrl.u32 %v5983_v54, 16  ;;  %v6212_v28 = vshll.u32 %v5983_v54, 16  ;;  %v11166_v22 = vcombine.low %v5983_v54, %v15382_v63 }
 0x2bc   : > { %v6222_v12 = vshrl.u32 %v15382_v63, 16  ;;  %5962 = vst [vmem:[#allocation3 + $0xc0] sm:$0xf] %v5961_v47  ;;  %v6159_v34 = vsel %vm12900_vm9, %v6154_v14, %v6158_v36  ;;  %v5309_v25 = vadd.f32 %v5266_v8, %v15078_v33  ;;  %v6167_v58 = vor.u32 %v15335_v3, %v15330_v19  ;;  %v5985_v60 = vld [vmem:[#allocation3 + $0x6c] sm:$0xf] }
 0x2bd   : > { %v11131_v9 = vcombine.low %v6149_v6, %v6159_v34  ;;  %v15409_v56 = vrot.slane %v6209_v52, 4  ;;  %v15411_v55 = vrot.slane %v6212_v28, 5  ;;  %v6170_v4 = vshll.u32 %v15307_v45, 16  ;;  %12170 = vmatprep.mubr.msk.bf16.mxu0 %vm1241_vm5, %v11166_v22  ;;  %v15434_v6 = vld [vmem:[#allocation3 + $0x5c] sm:$0x1] }
 0x2be   : > { %v5348_v20 = vadd.f32 %v15341_v39, %v5309_v25  ;;  %v6168_v1 = vrot.slane %v6167_v58, 4  ;;  %v6176_v33 = vrot.slane %v6174_v23, 4  ;;  %v6180_v19 = vshll.u32 %v15401_v51, 16  ;;  %v5953_v26 = vld [vmem:[#allocation3 + $0xb4] sm:$0xf] }
 0x2bf   : > { %12129 = vmatmul.mubr.msk.bf16.gmra.mxu1 %vm1241_vm5, %v11131_v9  ;;  %v6172_v3 = vrot.slane %v6170_v4, 5  ;;  %v5312_v8 = vadd.f32 %v12117_v35, %v15080_v13  ;;  %v5310_v5 = vadd.f32 %v5269_v49, %v15082_v7  ;;  %v6233_v10 = vshrl.u32 %v5985_v60, 16  ;;  %v15445_v9 = vld [vmem:[#allocation3 + $0x7c] sm:$0xf] }
 0x2c0   : > { %v5380_v15 = vmax.f32 %v5348_v20, 0.0  ;;  %v6182_v38 = vrot.slane %v6180_v19, 5  ;;  %v6236_v59 = vshll.u32 %v5985_v60, 16  ;;  %v6246_v46 = vshrl.u32 %v15414_v57, 16  ;;  %v5964_v19 = vld [vmem:[#allocation3 + $0xc8] sm:$0x1] }
 0x2c1   : > { %v6173_v40 = vsel %vm12900_vm9, %v6168_v1, %v6172_v3  ;;  %v6177_v42 = vor.u32 %v6176_v33, %v6172_v3  ;;  %v5351_v23 = vadd.f32 %v15341_v39, %v5312_v8  ;;  %v5349_v27 = vadd.f32 %v15341_v39, %v5310_v5 }
 0x2c2   : > { %v11502_v29 = vpack.c.bf16 %v5380_v15, %v5380_v15  ;;  %v15429_v0 = vrot.slane %v6233_v10, 4  ;;  %v15431_v13 = vrot.slane %v6236_v59, 5  ;;  %v11167_v7 = vcombine.low %v5985_v60, %v15414_v57  ;;  %v5957_v15 = vld [vmem:[#allocation3 + $0xbc] sm:$0x1] }
 0x2c3   : > { %v6178_v61 = vrot.slane %v6177_v42, 4  ;;  %v5383_v54 = vmax.f32 %v5351_v23, 0.0  ;;  %v5381_v35 = vmax.f32 %v5349_v27, 0.0  ;;  %v6191_v11 = vor.u32 %v15363_v37, %v15358_v43  ;;  %v5987_v37 = vld [vmem:[#allocation3 + $0x78] sm:$0xf] }
 0x2c4   : > { %v5773_v48 = vshrl.u32 %v11502_v29, 16  ;;  %v5776_v30 = vshll.u32 %v11502_v29, 16  ;;  %12171 = vmatmul.mubr.msk.bf16.gmra.mxu0 %vm1241_vm5, %v11167_v7  ;;  %v6194_v39 = vshll.u32 %v15351_v18, 16  ;;  %v6200_v62 = vrot.slane %v6198_v53, 4  ;;  %v15453_v7 = vld [vmem:[#allocation3 + $0x68] sm:$0x1] }
 0x2c5   : > { %v6183_v14 = vsel %vm12900_vm9, %v6178_v61, %v6182_v38  ;;  %v11505_v36 = vpack.c.bf16 %v5383_v54, %v5383_v54  ;;  %v11503_v47 = vpack.c.bf16 %v5381_v35, %v5381_v35  ;;  %v6192_v52 = vrot.slane %v6191_v11, 4  ;;  %v5989_v61 = vld [vmem:[#allocation3 + $0x84] sm:$0xf] }
 0x2c6   : > { %v5775_v28 = vrot.slane %v5773_v48, 7  ;;  %v11132_v34 = vcombine.low %v6173_v40, %v6183_v14  ;;  %v6196_v22 = vrot.slane %v6194_v39, 5  ;;  %v6204_v43 = vshll.u32 %v15434_v6, 16  ;;  %v15458_v48 = vld [vmem:[#allocation3 + $0x88] sm:$0xf] }
 0x2c7   : > { %v5798_v25 = vshrl.u32 %v11505_v36, 16  ;;  %v5801_v58 = vshll.u32 %v11505_v36, 16  ;;  %v5781_v49 = vshrl.u32 %v11503_v47, 16  ;;  %v5784_v60 = vshll.u32 %v11503_v47, 16  ;;  %v15478_v36 = vld [vmem:[#allocation3 + $0x74] sm:$0x1] }
 0x2c8   : > { %v5778_v53 = vor.u32 %v5776_v30, %v5775_v28  ;;  %v5779_v4 = vrot.slane %v5775_v28, 4  ;;  %12132 = vmatprep.mubr.msk.bf16.mxu1 %vm1241_vm5, %v11132_v34  ;;  %v6197_v20 = vsel %vm12900_vm9, %v6192_v52, %v6196_v22  ;;  %v6201_v1 = vor.u32 %v6200_v62, %v6196_v22 }
 0x2c9   : > { %v5800_v33 = vrot.slane %v5798_v25, 7  ;;  %v5783_v3 = vrot.slane %v5781_v49, 7  ;;  %v6206_v8 = vrot.slane %v6204_v43, 5  ;;  %v6257_v5 = vshrl.u32 %v5987_v37, 16  ;;  %v15487_v49 = vld [vmem:[#allocation3 + $0x94] sm:$0xf] }
 0x2ca   : > { %v5954_v10 = vsel %vm12908_vm10, %v5778_v53, %v5953_v26  ;;  %v6202_v38 = vrot.slane %v6201_v1, 4  ;;  %v6260_v59 = vshll.u32 %v5987_v37, 16  ;;  %v6270_v40 = vshrl.u32 %v15445_v9, 16 }
 0x2cb   : > { %5955 = vst [vmem:[#allocation3 + $0xb4] sm:$0xf] %v5954_v10  ;;  %v5803_v42 = vor.u32 %v5801_v58, %v5800_v33  ;;  %v5805_v23 = vrot.slane %v5800_v33, 4  ;;  %v5786_v27 = vor.u32 %v5784_v60, %v5783_v3  ;;  %v5788_v29 = vrot.slane %v5783_v3, 4 }
 0x2cc   : > { %v6207_v54 = vsel %vm12900_vm9, %v6202_v38, %v6206_v8  ;;  %v6259_v35 = vrot.slane %v6257_v5, 4  ;;  %v6262_v11 = vrot.slane %v6260_v59, 5  ;;  %v11168_v21 = vcombine.low %v5987_v37, %v15445_v9  ;;  %v15497_v5 = vld [vmem:[#allocation3 + $0x80] sm:$0x1] }
 0x2cd   : > { %v5804_v30 = vsel %vm12914_vm11, %v5796_v16, %v5803_v42  ;;  %v5965_v39 = vsel %vm12920_vm12, %v5805_v23, %v5964_v19  ;;  %v5787_v62 = vsel %vm12914_vm11, %v5779_v4, %v5786_v27  ;;  %v5958_v26 = vsel %vm12920_vm12, %v5788_v29, %v5957_v15  ;;  %v15501_v23 = vld [vmem:[#allocation3 + $0xa0] sm:$0xf] }
 0x2ce   : > { %5963 = vst.msk [vmem:[#allocation3 + $0xc4] sm:$0xf] %vm258_vm1, %v5804_v30  ;;  %5966 = vst [vmem:[#allocation3 + $0xc8] sm:$0x1] %v5965_v39  ;;  %v11133_v14 = vcombine.low %v6197_v20, %v6207_v54  ;;  %12174 = vmatprep.mubr.msk.bf16.mxu0 %vm1241_vm5, %v11168_v21  ;;  %v6215_v44 = vor.u32 %v15411_v55, %v15409_v56  ;;  %v6218_v16 = vshll.u32 %v15382_v63, 16  ;;  %v6224_v24 = vrot.slane %v6222_v12, 4 }
 0x2cf   : > { %5956 = vst.msk [vmem:[#allocation3 + $0xb8] sm:$0xf] %vm258_vm1, %v5787_v62  ;;  %5959 = vst [vmem:[#allocation3 + $0xbc] sm:$0x1] %v5958_v26  ;;  %v6228_v47 = vshll.u32 %v15453_v7, 16  ;;  %v6281_v52 = vshrl.u32 %v5989_v61, 16  ;;  %v11169_v56 = vcombine.low %v5989_v61, %v15458_v48  ;;  %v6239_v55 = vor.u32 %v15431_v13, %v15429_v0 }
 0x2d0   : > { %v6284_v28 = vshll.u32 %v5989_v61, 16  ;;  %v6294_v34 = vshrl.u32 %v15458_v48, 16  ;;  %12133 = vmatmul.mubr.msk.bf16.gmra.mxu1 %vm1241_vm5, %v11133_v14  ;;  %v6216_v22 = vrot.slane %v6215_v44, 4  ;;  %v6220_v43 = vrot.slane %v6218_v16, 5 }
 0x2d1   : > { %v6230_v37 = vrot.slane %v6228_v47, 5  ;;  %v6283_v12 = vrot.slane %v6281_v52, 4  ;;  %v6242_v58 = vshll.u32 %v15414_v57, 16  ;;  %12175 = vmatmul.mubr.msk.bf16.gmra.mxu0 %vm1241_vm5, %v11169_v56  ;;  %v6240_v4 = vrot.slane %v6239_v55, 4  ;;  %v5995_v52 = vld [vmem:[#allocation3 + $0xa8] sm:$0xf] }
 0x2d2   : > { %v6286_v25 = vrot.slane %v6284_v28, 5  ;;  %v6221_v60 = vsel %vm12900_vm9, %v6216_v22, %v6220_v43  ;;  %v6225_v53 = vor.u32 %v6224_v24, %v6220_v43  ;;  %v6248_v20 = vrot.slane %v6246_v46, 4  ;;  %v5993_v46 = vld [vmem:[#allocation3 + $0x9c] sm:$0xf]  ;;  %v15519_v56 = vld [vmem:[#allocation3 + $0xac] sm:$0xf] }
 0x2d3   : > { %v6244_v1 = vrot.slane %v6242_v58, 5  ;;  %v6252_v0 = vshll.u32 %v15478_v36, 16  ;;  %v6305_v13 = vshrl.u32 %v5991_v2, 16  ;;  %v6308_v33 = vshll.u32 %v5991_v2, 16 }
 0x2d4   : > { %v6226_v19 = vrot.slane %v6225_v53, 4  ;;  %v6318_v3 = vshrl.u32 %v15487_v49, 16  ;;  %v11170_v8 = vcombine.low %v5991_v2, %v15487_v49  ;;  %v6263_v10 = vor.u32 %v6262_v11, %v6259_v35  ;;  %v15515_v2 = vld [vmem:[#allocation3 + $0x8c] sm:$0x1]  ;;  %v15523_v53 = vld [vmem:[#allocation3 + $0x98] sm:$0x1] }
 0x2d5   : > { %v6245_v15 = vsel %vm12900_vm9, %v6240_v4, %v6244_v1  ;;  %v6249_v38 = vor.u32 %v6248_v20, %v6244_v1  ;;  %v6254_v59 = vrot.slane %v6252_v0, 5  ;;  %v6307_v42 = vrot.slane %v6305_v13, 4  ;;  %v5997_v1 = vld [vmem:[#allocation3 + $0xb4] sm:$0xf] }
 0x2d6   : > { %v6231_v27 = vsel %vm12900_vm9, %v6226_v19, %v6230_v37  ;;  %v6310_v29 = vrot.slane %v6308_v33, 5  ;;  %12178 = vmatprep.mubr.msk.bf16.mxu0 %vm1241_vm5, %v11170_v8  ;;  %v6264_v61 = vrot.slane %v6263_v10, 4  ;;  %v6266_v54 = vshll.u32 %v15445_v9, 16 }
 0x2d7   : > { %v11134_v21 = vcombine.low %v6221_v60, %v6231_v27  ;;  %v6250_v35 = vrot.slane %v6249_v38, 4  ;;  %v6272_v11 = vrot.slane %v6270_v40, 4  ;;  %v6276_v30 = vshll.u32 %v15497_v5, 16  ;;  %v15531_v38 = vld [vmem:[#allocation3 + $0xb8] sm:$0xf] }
 0x2d8   : > { %v6268_v39 = vrot.slane %v6266_v54, 5  ;;  %v6329_v62 = vshrl.u32 %v5993_v46, 16  ;;  %v6332_v26 = vshll.u32 %v5993_v46, 16  ;;  %v6342_v14 = vshrl.u32 %v15501_v23, 16 }
 0x2d9   : > { %12136 = vmatprep.mubr.msk.bf16.mxu1 %vm1241_vm5, %v11134_v21  ;;  %v6255_v44 = vsel %vm12900_vm9, %v6250_v35, %v6254_v59  ;;  %v6278_v16 = vrot.slane %v6276_v30, 5  ;;  %v11171_v24 = vcombine.low %v5993_v46, %v15501_v23  ;;  %v6287_v47 = vor.u32 %v6286_v25, %v6283_v12 }
 0x2da   : > { %v11135_v40 = vcombine.low %v6245_v15, %v6255_v44  ;;  %v6269_v28 = vsel %vm12900_vm9, %v6264_v61, %v6268_v39  ;;  %v6273_v22 = vor.u32 %v6272_v11, %v6268_v39  ;;  %v6331_v43 = vrot.slane %v6329_v62, 4 }
 0x2db   : > { %v6334_v55 = vrot.slane %v6332_v26, 5  ;;  %12179 = vmatmul.mubr.msk.bf16.gmra.mxu0 %vm1241_vm5, %v11171_v24  ;;  %v6288_v37 = vrot.slane %v6287_v47, 4  ;;  %v6290_v58 = vshll.u32 %v15458_v48, 16  ;;  %v6296_v60 = vrot.slane %v6294_v34, 4  ;;  %v12514_v47 = vld [vmem:[#allocation3 + $0xc] sm:$0xff]  }
 0x2dc   : > { %12137 = vmatmul.mubr.msk.bf16.gmra.mxu1 %vm1241_vm5, %v11135_v40  ;;  %v6274_v12 = vrot.slane %v6273_v22, 4  ;;  %v6300_v25 = vshll.u32 %v15515_v2, 16  ;;  %v6353_v4 = vshrl.u32 %v5995_v52, 16  ;;  %v6356_v20 = vshll.u32 %v5995_v52, 16  ;;  %v15547_v22 = vld [vmem:[#allocation3 + $0xb0] sm:$0x1] }
 0x2dd   : > { %v6292_v0 = vrot.slane %v6290_v58, 5  ;;  %v6366_v13 = vshrl.u32 %v15519_v56, 16  ;;  %v11172_v33 = vcombine.low %v5995_v52, %v15519_v56  ;;  %v6311_v19 = vor.u32 %v6310_v29, %v6307_v42 }
 0x2de   : > { %v6279_v8 = vsel %vm12900_vm9, %v6274_v12, %v6278_v16  ;;  %v6302_v34 = vrot.slane %v6300_v25, 5  ;;  %v6355_v10 = vrot.slane %v6353_v4, 4  ;;  %v6358_v15 = vrot.slane %v6356_v20, 5  ;;  %v15541_v16 = vld [vmem:[#allocation3 + $0xa4] sm:$0x1] }
 0x2df   : > { %v11136_v59 = vcombine.low %v6269_v28, %v6279_v8  ;;  %v6293_v46 = vsel %vm12900_vm9, %v6288_v37, %v6292_v0  ;;  %v6297_v27 = vor.u32 %v6296_v60, %v6292_v0  ;;  %12182 = vmatprep.mubr.msk.bf16.mxu0 %vm1241_vm5, %v11172_v33  ;;  %v6312_v61 = vrot.slane %v6311_v19, 4  ;;  %v12556_v33 = vld [vmem:[%s17613_s3 + $0x6] sm:$0x3] }
 0x2e0   : > { %v6314_v54 = vshll.u32 %v15487_v49, 16  ;;  %v6320_v21 = vrot.slane %v6318_v3, 4  ;;  %v6324_v42 = vshll.u32 %v15523_v53, 16  ;;  %v6377_v29 = vshrl.u32 %v5997_v1, 16 }
 0x2e1   : > { %12140 = vmatprep.mubr.msk.bf16.mxu1 %vm1241_vm5, %v11136_v59  ;;  %v6298_v35 = vrot.slane %v6297_v27, 4  ;;  %v6380_v11 = vshll.u32 %v5997_v1, 16  ;;  %v6390_v30 = vshrl.u32 %v15531_v38, 16  ;;  %v11173_v39 = vcombine.low %v5997_v1, %v15531_v38  ;;  %v15567_v59 = vld [vmem:[#allocation3 + $0xbc] sm:$0x1] }
 0x2e2   : > { %v6316_v62 = vrot.slane %v6314_v54, 5  ;;  %v6326_v26 = vrot.slane %v6324_v42, 5  ;;  %v6379_v44 = vrot.slane %v6377_v29, 4  ;;  %v6335_v24 = vor.u32 %v6334_v55, %v6331_v43  ;;  %v6954_v54 = vld [vmem:[#allocation3] sm:$0xe]  ;;  %v12515_v29 = vld [vmem:[#allocation3 + $0x18] sm:$0xff]  }
 0x2e3   : > { %v6303_v3 = vsel %vm12900_vm9, %v6298_v35, %v6302_v34  ;;  %v6382_v52 = vrot.slane %v6380_v11, 5  ;;  %12183 = vmatmul.mubr.msk.bf16.gmra.mxu0 %vm1241_vm5, %v11173_v39  ;;  %v6338_v40 = vshll.u32 %v15501_v23, 16  ;;  %v6344_v28 = vrot.slane %v6342_v14, 4  ;;  %v15557_v14 = vld [vmem:[%s17613_s3 + $0xa] sm:$0x3] }
 0x2e4   : > { %v11137_v37 = vcombine.low %v6293_v46, %v6303_v3  ;;  %v6317_v58 = vsel %vm12900_vm9, %v6312_v61, %v6316_v62  ;;  %v6321_v60 = vor.u32 %v6320_v21, %v6316_v62  ;;  %v6336_v12 = vrot.slane %v6335_v24, 4  ;;  %12222 = vmatprep.mubr.msk.bf16.mxu0 %vm1241_vm5, %v12514_v47  ;;  %v12516_v47 = vld [vmem:[#allocation3 + $0x24] sm:$0xff]  }
 0x2e5   : > { %v6340_v43 = vrot.slane %v6338_v40, 5  ;;  %v6348_v55 = vshll.u32 %v15541_v16, 16  ;;  %v6359_v25 = vor.u32 %v6358_v15, %v6355_v10  ;;  %v6362_v4 = vshll.u32 %v15519_v56, 16  ;;  %v12557_v40 = vld [vmem:[#allocation3 + $0x4] sm:$0xf] }
 0x2e6   : > { %12141 = vmatmul.mubr.msk.bf16.gmra.mxu1 %vm1241_vm5, %v11137_v37  ;;  %v6322_v20 = vrot.slane %v6321_v60, 4  ;;  %v6368_v1 = vrot.slane %v6366_v13, 4  ;;  %v6372_v0 = vshll.u32 %v15547_v22, 16  ;;  %v7571_v19 = vsel %vm1290_vm0, %v12556_v33, 0 }
 0x2e7   : > { %v6341_v8 = vsel %vm12900_vm9, %v6336_v12, %v6340_v43  ;;  %v6345_v34 = vor.u32 %v6344_v28, %v6340_v43  ;;  %v6350_v10 = vrot.slane %v6348_v55, 5  ;;  %v6360_v15 = vrot.slane %v6359_v25, 4  ;;  %12221 = vmatpush3.bf16.msra.mxu0 %v7571_v19  ;;  %v12558_v12 = vld [vmem:[#allocation3 + $0x8] sm:$0x1] }
 0x2e8   : > { %v6327_v13 = vsel %vm12900_vm9, %v6322_v20, %v6326_v26  ;;  %v6364_v46 = vrot.slane %v6362_v4, 5  ;;  %v6374_v27 = vrot.slane %v6372_v0, 5  ;;  %v6383_v61 = vor.u32 %v6382_v52, %v6379_v44  ;;  %12438 = vmatprep.subr.msk.bf16.mxu0 %vm1290_vm0, %v15557_v14  ;;  %v6956_v0 = vld [vmem:[#allocation3 + $0x18] sm:$0xe] }
 0x2e9   : > { %v11138_v21 = vcombine.low %v6317_v58, %v6327_v13  ;;  %v6346_v42 = vrot.slane %v6345_v34, 4  ;;  %v6386_v35 = vshll.u32 %v15531_v38, 16  ;;  %v6392_v11 = vrot.slane %v6390_v30, 4  ;;  %v6955_v30 = vld [vmem:[#allocation3 + $0xc] sm:$0xe] }
 0x2ea   : > { %v6365_v39 = vsel %vm12900_vm9, %v6360_v15, %v6364_v46  ;;  %v6369_v62 = vor.u32 %v6368_v1, %v6364_v46  ;;  %v6384_v24 = vrot.slane %v6383_v61, 4  ;;  %v6396_v26 = vshll.u32 %v15567_v59, 16  ;;  %v6957_v13 = vld [vmem:[#allocation3 + $0x24] sm:$0xe] }
 0x2eb   : > { %12144 = vmatprep.mubr.msk.bf16.mxu1 %vm1241_vm5, %v11138_v21  ;;  %v6351_v44 = vsel %vm12900_vm9, %v6346_v42, %v6350_v10  ;;  %12223 = vmatmul.mubr.msk.bf16.vlgmr.msra.gmra.mxu0 %vm1241_vm5, %v12515_v29  ;;  %v6388_v3 = vrot.slane %v6386_v35, 5  ;;  %v11190_v52 = vrot.slane %v6954_v54, 9  ;;  %v7004_v28 = vrot.slane %v12557_v40, 5  ;;  %v12560_v10 = vld [vmem:[#allocation3 + $0x14] sm:$0x1]  ;;  %v12518_v40 = vld [vmem:[#allocation3 + $0x3c] sm:$0xff]  }
 0x2ec   : > { %v11139_v37 = vcombine.low %v6341_v8, %v6351_v44  ;;  %v6370_v58 = vrot.slane %v6369_v62, 4  ;;  %v6398_v60 = vrot.slane %v6396_v26, 5  ;;  %12226 = vmatprep.mubr.msk.bf16.mxu0 %vm1241_vm5, %v12516_v47  ;;  %v7007_v43 = vrot.slane %v12558_v12, 5  ;;  %v12559_v8 = vld [vmem:[#allocation3 + $0x10] sm:$0xf] }
 0x2ed   : > { %v6389_v55 = vsel %vm12900_vm9, %v6384_v24, %v6388_v3  ;;  %v6393_v25 = vor.u32 %v6392_v11, %v6388_v3  ;;  %v7005_v20 = vsel %vm13251_vm15, %v11190_v52, %v7004_v28  ;;  %v7006_v1 = vrot.slane %v7004_v28, 4  ;;  %v6958_v11 = vld [vmem:[#allocation3 + $0x30] sm:$0xe]  ;;  %v12561_v24 = vld [vmem:[#allocation3 + $0x1c] sm:$0xf] }
 0x2ee   : > { %12145 = vmatmul.mubr.msk.bf16.gmra.mxu1 %vm1241_vm5, %v11139_v37  ;;  %v6375_v33 = vsel %vm12900_vm9, %v6370_v58, %v6374_v27  ;;  %v11191_v19 = vrot.slane %v6955_v30, 9  ;;  %v7011_v34 = vrot.slane %v12559_v8, 5  ;;  %v7014_v15 = vrot.slane %v12560_v10, 5  ;;  %v12517_v62 = vld [vmem:[#allocation3 + $0x30] sm:$0xff]   ;;  %v12562_v47 = vld [vmem:[#allocation3 + $0x20] sm:$0x1] }
 0x2ef   : > { %v11140_v46 = vcombine.low %v6365_v39, %v6375_v33  ;;  %v6394_v61 = vrot.slane %v6393_v25, 4  ;;  %v7008_v54 = vsel %vm13251_vm15, %v7006_v1, %v7007_v43  ;;  %v15593_v21 = vsel %vm1290_vm0, %v15265_v31, 0  ;;  %v12563_v28 = vld [vmem:[#allocation3 + $0x28] sm:$0xf]  ;;  %v6959_v58 = vld [vmem:[#allocation3 + $0x3c] sm:$0xe] }
 0x2f0   : > { %v11207_v42 = vcombine.low %v7005_v20, %v7008_v54  ;;  %v15597_v29 = vsel %vm13251_vm15, %v11191_v19, %v7011_v34  ;;  %v7013_v27 = vrot.slane %v7011_v34, 4  ;;  %v11192_v35 = vrot.slane %v6956_v0, 9  ;;  %v6960_v33 = vld [vmem:[#allocation3 + $0x48] sm:$0xe]  ;;  %v12565_v34 = vld [vmem:[#allocation3 + $0x40] sm:$0xf] }
 0x2f1   : > { %12148 = vmatprep.mubr.msk.bf16.mxu1 %vm1241_vm5, %v11140_v46  ;;  %v6399_v39 = vsel %vm12900_vm9, %v6394_v61, %v6398_v60  ;;  %v7018_v26 = vrot.slane %v12561_v24, 5  ;;  %v7021_v44 = vrot.slane %v12562_v47, 5  ;;  %v11193_v31 = vrot.slane %v6957_v13, 9  ;;  %v6961_v13 = vld [vmem:[#allocation3 + $0x54] sm:$0xe] }
 0x2f2   : > { %v11141_v3 = vcombine.low %v6389_v55, %v6399_v39  ;;  %v15604_v52 = vsel %vm13251_vm15, %v7013_v27, %v7014_v15  ;;  %v7025_v30 = vrot.slane %v12563_v28, 5  ;;  %v7028_v37 = vrot.slane %v15293_v41, 5  ;;  %v12564_v41 = vld [vmem:[#allocation3 + $0x34] sm:$0xf] }
 0x2f3   : > { %12227 = vmatmul.mubr.msk.bf16.gmra.mxu0 %vm1241_vm5, %v12517_v62  ;;  %v11208_v60 = vcombine.low %v15597_v29, %v15604_v52  ;;  %v15612_v12 = vsel %vm13251_vm15, %v11192_v35, %v7018_v26  ;;  %v7020_v43 = vrot.slane %v7018_v26, 4  ;;  %v11194_v55 = vrot.slane %v6958_v11, 9  ;;  %v6962_v11 = vld [vmem:[#allocation3 + $0x60] sm:$0xe]  ;;  %v6963_v52 = vld [vmem:[#allocation3 + $0x6c] sm:$0xe] }
 0x2f4   : > { %12230 = vmatprep.mubr.msk.bf16.mxu0 %vm1241_vm5, %v12518_v40  ;;  %v15617_v25 = vsel %vm13251_vm15, %v11193_v31, %v7025_v30  ;;  %v7027_v20 = vrot.slane %v7025_v30, 4  ;;  %v7032_v1 = vrot.slane %v12564_v41, 5  ;;  %v7035_v0 = vrot.slane %v15326_v50, 5  ;;  %v12520_v40 = vld [vmem:[#allocation3 + $0x54] sm:$0xff]  }
 0x2f5   : > { %v7022_v19 = vsel %vm13251_vm15, %v7020_v43, %v7021_v44  ;;  %v11195_v8 = vrot.slane %v6959_v58, 9  ;;  %v7039_v10 = vrot.slane %v12565_v34, 5  ;;  %v7042_v15 = vrot.slane %v15371_v17, 5 }
 0x2f6   : > { %12149 = vmatmul.mubr.msk.bf16.gmra.mxu1 %vm1241_vm5, %v11141_v3  ;;  %v11209_v46 = vcombine.low %v15612_v12, %v7022_v19  ;;  %v15627_v61 = vsel %vm13251_vm15, %v7027_v20, %v7028_v37  ;;  %v15631_v50 = vsel %vm13251_vm15, %v11194_v55, %v7032_v1  ;;  %v7034_v54 = vrot.slane %v7032_v1, 4  ;;  %v6964_v12 = vld [vmem:[#allocation3 + $0x78] sm:$0xe]  ;;  %v6965_v1 = vld [vmem:[#allocation3 + $0x84] sm:$0xe] }
 0x2f7   : > { %12188 = vmatprep.mubr.msk.bf16.mxu1 %vm1241_vm5, %v11207_v42  ;;  %v11210_v29 = vcombine.low %v15617_v25, %v15627_v61  ;;  %v15638_v17 = vsel %vm13251_vm15, %v11195_v8, %v7039_v10  ;;  %v7041_v27 = vrot.slane %v7039_v10, 4  ;;  %v11196_v35 = vrot.slane %v6960_v33, 9  ;;  %v12519_v42 = vld [vmem:[#allocation3 + $0x48] sm:$0xff]   ;;  %v15687_v19 = vld [vmem:[%s17613_s3 + $0xc] sm:$0x3] }
 0x2f8   : > { %v15642_v39 = vsel %vm13251_vm15, %v7034_v54, %v7035_v0  ;;  %v7046_v62 = vrot.slane %v15307_v45, 5  ;;  %v7049_v24 = vrot.slane %v15401_v51, 5  ;;  %v11197_v26 = vrot.slane %v6961_v13, 9  ;;  %v6966_v10 = vld [vmem:[#allocation3 + $0x90] sm:$0xe] }
 0x2f9   : > { %v11211_v47 = vcombine.low %v15631_v50, %v15642_v39  ;;  %v15650_v44 = vsel %vm13251_vm15, %v7041_v27, %v7042_v15  ;;  %v7053_v31 = vrot.slane %v15351_v18, 5  ;;  %v7056_v3 = vrot.slane %v15434_v6, 5 }
 0x2fa   : > { %v11212_v45 = vcombine.low %v15638_v17, %v15650_v44  ;;  %v15658_v51 = vsel %vm13251_vm15, %v11196_v35, %v7046_v62  ;;  %v7048_v28 = vrot.slane %v7046_v62, 4  ;;  %v11198_v30 = vrot.slane %v6962_v11, 9  ;;  %v6967_v11 = vld [vmem:[#allocation3 + $0x9c] sm:$0xe]  ;;  %v8492_v62 = vld [vmem:[#allocation3 + $0xc] sm:$0xe] }
 0x2fb   : > { %12231 = vmatmul.mubr.msk.bf16.gmra.mxu0 %vm1241_vm5, %v12519_v42  ;;  %v15663_v37 = vsel %vm13251_vm15, %v11197_v26, %v7053_v31  ;;  %v7055_v18 = vrot.slane %v7053_v31, 4  ;;  %v7060_v6 = vrot.slane %v15382_v63, 5  ;;  %v7063_v58 = vrot.slane %v15453_v7, 5  ;;  %v15720_v31 = vld [vmem:[#allocation3 + $0x10] sm:$0xf] }
 0x2fc   : > { %12234 = vmatprep.mubr.msk.bf16.mxu0 %vm1241_vm5, %v12520_v40  ;;  %v15670_v43 = vsel %vm13251_vm15, %v7048_v28, %v7049_v24  ;;  %v11199_v55 = vrot.slane %v6963_v52, 9  ;;  %v7067_v20 = vrot.slane %v15414_v57, 5  ;;  %v7070_v41 = vrot.slane %v15478_v36, 5  ;;  %v15728_v28 = vld [vmem:[#allocation3 + $0x14] sm:$0x1] }
 0x2fd   : > { %v11213_v0 = vcombine.low %v15658_v51, %v15670_v43  ;;  %v15678_v63 = vsel %vm13251_vm15, %v7055_v18, %v7056_v3  ;;  %v15682_v7 = vsel %vm13251_vm15, %v11198_v30, %v7060_v6  ;;  %v7062_v33 = vrot.slane %v7060_v6, 4  ;;  %v15857_v51 = vld [vmem:[#allocation3 + $0x38] sm:$0x1]  ;;  %v12525_v43 = vld [vmem:[#allocation3 + $0x90] sm:$0xff]  }
 0x2fe   : > { %12189 = vmatmul.mubr.msk.bf16.vlgmr.msra.gmra.mxu1 %vm1241_vm5, %v11208_v60  ;;  %v11214_v57 = vcombine.low %v15663_v37, %v15678_v63  ;;  %v15694_v36 = vsel %vm13251_vm15, %v11199_v55, %v7067_v20  ;;  %v7069_v8 = vrot.slane %v7067_v20, 4  ;;  %v11200_v34 = vrot.slane %v6964_v12, 9  ;;  %v6968_v12 = vld [vmem:[#allocation3 + $0xa8] sm:$0xe] }
 0x2ff   : > { %12255 = vmatpush3.bf16.msra.mxu1 %v15593_v21  ;;  %12192 = vmatprep.mubr.msk.bf16.mxu1 %vm1241_vm5, %v11209_v46  ;;  %v15700_v15 = vsel %vm13251_vm15, %v7062_v33, %v7063_v58  ;;  %v7074_v60 = vrot.slane %v15445_v9, 5  ;;  %v7077_v13 = vrot.slane %v15497_v5, 5  ;;  %v11201_v54 = vrot.slane %v6965_v1, 9  ;;  %v12521_v9 = vld [vmem:[#allocation3 + $0x60] sm:$0xff]   ;;  %v15754_v33 = vld [vmem:[#allocation3 + $0x1c] sm:$0xf] }
 0x300   : > { %v11215_v27 = vcombine.low %v15682_v7, %v15700_v15  ;;  %v15708_v35 = vsel %vm13251_vm15, %v7069_v8, %v7070_v41  ;;  %v7081_v21 = vrot.slane %v15458_v48, 5  ;;  %v7084_v46 = vrot.slane %v15515_v2, 5  ;;  %12439 = vmatprep.subr.msk.bf16.mxu1 %vm1290_vm0, %v15687_v19  ;;  %v12522_v48 = vld [vmem:[#allocation3 + $0x6c] sm:$0xff]   ;;  %v8493_v8 = vld [vmem:[#allocation3 + $0x18] sm:$0xe] }
 0x301   : > { %v11216_v5 = vcombine.low %v15694_v36, %v15708_v35  ;;  %v15718_v24 = vsel %vm13251_vm15, %v11200_v34, %v7074_v60  ;;  %v7076_v26 = vrot.slane %v7074_v60, 4  ;;  %v11202_v42 = vrot.slane %v6966_v10, 9 }
 0x302   : > { %v15724_v2 = vsel %vm13251_vm15, %v11201_v54, %v7081_v21  ;;  %v7083_v3 = vrot.slane %v7081_v21, 4  ;;  %v7088_v52 = vrot.slane %v15487_v49, 5  ;;  %v7091_v40 = vrot.slane %v15523_v53, 5  ;;  %v15766_v54 = vld [vmem:[#allocation3 + $0x20] sm:$0x1] }
 0x303   : > { %12235 = vmatmul.mubr.msk.bf16.gmra.mxu0 %vm1241_vm5, %v12521_v9  ;;  %v15733_v30 = vsel %vm13251_vm15, %v7076_v26, %v7077_v13  ;;  %v11203_v18 = vrot.slane %v6967_v11, 9  ;;  %v7095_v6 = vrot.slane %v15501_v23, 5  ;;  %v7098_v58 = vrot.slane %v15541_v16, 5  ;;  %v11387_v11 = vld [vmem:[%s17613_s3 + $0xe] sm:$0x3] }
 0x304   : > { %12238 = vmatprep.mubr.msk.bf16.mxu0 %vm1241_vm5, %v12522_v48  ;;  %v11217_v49 = vcombine.low %v15718_v24, %v15733_v30  ;;  %v15742_v53 = vsel %vm13251_vm15, %v7083_v3, %v7084_v46  ;;  %v15746_v55 = vsel %vm13251_vm15, %v11202_v42, %v7088_v52  ;;  %v7090_v20 = vrot.slane %v7088_v52, 4  ;;  %v6969_v46 = vld [vmem:[#allocation3 + $0xb4] sm:$0xe]  ;;  %v8494_v9 = vld [vmem:[#allocation3 + $0x24] sm:$0xe] }
 0x305   : > { %v11218_v23 = vcombine.low %v15724_v2, %v15742_v53  ;;  %v15752_v16 = vsel %vm13251_vm15, %v11203_v18, %v7095_v6  ;;  %v7097_v41 = vrot.slane %v7095_v6, 4  ;;  %v11305_v1 = vrot.slane %v8492_v62, 9  ;;  %v15796_v3 = vld [vmem:[#allocation3 + $0x28] sm:$0xf] }
 0x306   : > { %12193 = vmatmul.mubr.msk.bf16.gmra.mxu1 %vm1241_vm5, %v11210_v29  ;;  %v15762_v34 = vsel %vm13251_vm15, %v7090_v20, %v7091_v40  ;;  %v8558_v10 = vrot.slane %v15720_v31, 5  ;;  %v8561_v60 = vrot.slane %v15728_v28, 5  ;;  %v11204_v13 = vrot.slane %v6968_v12, 9  ;;  %v12524_v52 = vld [vmem:[#allocation3 + $0x84] sm:$0xff]  }
 0x307   : > { %12196 = vmatprep.mubr.msk.bf16.mxu1 %vm1241_vm5, %v11211_v47  ;;  %v11219_v25 = vcombine.low %v15746_v55, %v15762_v34  ;;  %v15776_v61 = vsel %vm13251_vm15, %v7097_v41, %v7098_v58  ;;  %v7102_v29 = vrot.slane %v15519_v56, 5  ;;  %v7105_v21 = vrot.slane %v15547_v22, 5  ;;  %v12523_v56 = vld [vmem:[#allocation3 + $0x78] sm:$0xff]   ;;  %v15804_v58 = vld [vmem:[#allocation3 + $0x2c] sm:$0x1] }
 0x308   : > { %v11220_v50 = vcombine.low %v15752_v16, %v15776_v61  ;;  %v15787_v39 = vsel %vm13251_vm15, %v11305_v1, %v8558_v10  ;;  %v8560_v47 = vrot.slane %v8558_v10, 4  ;;  %v8767_v62 = vsel %vm1290_vm0, %v15557_v14, 0  ;;  %v15991_v55 = vld [vmem:[#allocation3 + $0x68] sm:$0x1] }
 0x309   : > { %v15793_v22 = vsel %vm13251_vm15, %v11204_v13, %v7102_v29  ;;  %v7104_v26 = vrot.slane %v7102_v29, 4  ;;  %12289 = vmatpush3.bf16.msra.mxu0 %v8767_v62  ;;  %v11306_v42 = vrot.slane %v8493_v8, 9  ;;  %v8565_v48 = vrot.slane %v15754_v33, 5  ;;  %v7766_v8 = vld [vmem:[#allocation3 + $0xc] sm:$0xf] }
 0x30a   : > { %v15800_v40 = vsel %vm13251_vm15, %v8560_v47, %v8561_v60  ;;  %v8568_v14 = vrot.slane %v15766_v54, 5  ;;  %v11205_v18 = vrot.slane %v6969_v46, 9  ;;  %v7109_v6 = vrot.slane %v15531_v38, 5  ;;  %12440 = vmatprep.subr.msk.bf16.mxu0 %vm1290_vm0, %v11387_v11  ;;  %v7781_v34 = vld [vmem:[#allocation3 + $0x48] sm:$0xf] }
 0x30b   : > { %12239 = vmatmul.mubr.msk.bf16.gmra.mxu0 %vm1241_vm5, %v12523_v56  ;;  %v11322_v12 = vcombine.low %v15787_v39, %v15800_v40  ;;  %v15812_v20 = vsel %vm13251_vm15, %v7104_v26, %v7105_v21  ;;  %v15816_v41 = vsel %vm13251_vm15, %v11306_v42, %v8565_v48  ;;  %v8567_v1 = vrot.slane %v8565_v48, 4  ;;  %v15842_v26 = vld [vmem:[#allocation3 + $0x34] sm:$0xf]  ;;  %v7769_v48 = vld [vmem:[#allocation3 + $0x18] sm:$0xf] }
 0x30c   : > { %12242 = vmatprep.mubr.msk.bf16.mxu0 %vm1241_vm5, %v12524_v52  ;;  %v15823_v10 = vsel %vm13251_vm15, %v11205_v18, %v7109_v6  ;;  %v7111_v60 = vrot.slane %v7109_v6, 4  ;;  %v7112_v13 = vrot.slane %v15567_v59, 5  ;;  %v11307_v21 = vrot.slane %v8494_v9, 9  ;;  %v8495_v9 = vld [vmem:[#allocation3 + $0x30] sm:$0xe] }
 0x30d   : > { %v15828_v29 = vsel %vm13251_vm15, %v8567_v1, %v8568_v14  ;;  %v8572_v46 = vrot.slane %v15796_v3, 5  ;;  %v8575_v11 = vrot.slane %v15804_v58, 5  ;;  %v7815_v62 = vshrl.u32 %v7766_v8, 16 }
 0x30e   : > { %12197 = vmatmul.mubr.msk.bf16.gmra.mxu1 %vm1241_vm5, %v11212_v45  ;;  %v11323_v47 = vcombine.low %v15816_v41, %v15828_v29  ;;  %v15840_v59 = vsel %vm13251_vm15, %v7111_v60, %v7112_v13  ;;  %v7818_v56 = vshll.u32 %v7766_v8, 16  ;;  %v7824_v42 = vshll.u32 %v15720_v31, 16  ;;  %v12526_v13 = vld [vmem:[#allocation3 + $0x9c] sm:$0xff]   ;;  %v7784_v41 = vld [vmem:[#allocation3 + $0x54] sm:$0xf] }
 0x30f   : > { %12200 = vmatprep.mubr.msk.bf16.mxu1 %vm1241_vm5, %v11213_v0  ;;  %v15852_v44 = vsel %vm13251_vm15, %v11307_v21, %v8572_v46  ;;  %v8574_v45 = vrot.slane %v8572_v46, 4  ;;  %v7817_v52 = vrot.slane %v7815_v62, 4  ;;  %v7828_v18 = vshrl.u32 %v15720_v31, 16 }
 0x310   : > { %v7820_v14 = vrot.slane %v7818_v56, 5  ;;  %v7834_v6 = vshll.u32 %v15728_v28, 16  ;;  %v7826_v1 = vrot.slane %v7824_v42, 5  ;;  %v11308_v8 = vrot.slane %v8495_v9, 9  ;;  %v8496_v9 = vld [vmem:[#allocation3 + $0x3c] sm:$0xe] }
 0x311   : > { %v15861_v0 = vsel %vm13251_vm15, %v8574_v45, %v8575_v11  ;;  %v8579_v60 = vrot.slane %v15842_v26, 5  ;;  %v7830_v62 = vrot.slane %v7828_v18, 4  ;;  %v8582_v11 = vrot.slane %v15857_v51, 5 }
 0x312   : > { %v11324_v21 = vcombine.low %v15852_v44, %v15861_v0  ;;  %v7821_v46 = vor.u32 %v7820_v14, %v7817_v52  ;;  %v7836_v31 = vrot.slane %v7834_v6, 5  ;;  %v7839_v45 = vshrl.u32 %v7769_v48, 16  ;;  %v15874_v14 = vld [vmem:[#allocation3 + $0x40] sm:$0xf] }
 0x313   : > { %12243 = vmatmul.mubr.msk.bf16.gmra.mxu0 %vm1241_vm5, %v12525_v43  ;;  %v15869_v28 = vsel %vm13251_vm15, %v11308_v8, %v8579_v60  ;;  %v8581_v56 = vrot.slane %v8579_v60, 4  ;;  %v7831_v17 = vor.u32 %v7830_v62, %v7826_v1  ;;  %v7842_v38 = vshll.u32 %v7769_v48, 16  ;;  %v15882_v60 = vld [vmem:[#allocation3 + $0x44] sm:$0x1] }
 0x314   : > { %12246 = vmatprep.mubr.msk.bf16.mxu0 %vm1241_vm5, %v12526_v13  ;;  %v7822_v42 = vrot.slane %v7821_v46, 4  ;;  %v7848_v52 = vshll.u32 %v15754_v33, 16  ;;  %v7841_v6 = vrot.slane %v7839_v45, 4  ;;  %v7852_v43 = vshrl.u32 %v15754_v33, 16  ;;  %v12527_v45 = vld [vmem:[#allocation3 + $0xa8] sm:$0xff]  }
 0x315   : > { %v15878_v18 = vsel %vm13251_vm15, %v8581_v56, %v8582_v11  ;;  %v7858_v8 = vshll.u32 %v15766_v54, 16  ;;  %v7832_v13 = vrot.slane %v7831_v17, 4  ;;  %v7844_v62 = vrot.slane %v7842_v38, 5  ;;  %v7772_v56 = vld [vmem:[#allocation3 + $0x24] sm:$0xf] }
 0x316   : > { %12201 = vmatmul.mubr.msk.bf16.gmra.mxu1 %vm1241_vm5, %v11214_v57  ;;  %v7827_v48 = vsel %vm12900_vm9, %v7822_v42, %v7826_v1  ;;  %v11325_v46 = vcombine.low %v15869_v28, %v15878_v18  ;;  %v7850_v33 = vrot.slane %v7848_v52, 5  ;;  %v7854_v54 = vrot.slane %v7852_v43, 4  ;;  %v7775_v43 = vld [vmem:[#allocation3 + $0x30] sm:$0xf] }
 0x317   : > { %12204 = vmatprep.mubr.msk.bf16.mxu1 %vm1241_vm5, %v11215_v27  ;;  %v7860_v11 = vrot.slane %v7858_v8, 5  ;;  %v11309_v37 = vrot.slane %v8496_v9, 9  ;;  %v7837_v63 = vsel %vm12900_vm9, %v7832_v13, %v7836_v31  ;;  %v7845_v57 = vor.u32 %v7844_v62, %v7841_v6  ;;  %v12528_v27 = vld [vmem:[#allocation3 + $0xb4] sm:$0xff]  }
 0x318   : > { %v8586_v17 = vrot.slane %v15874_v14, 5  ;;  %v8589_v1 = vrot.slane %v15882_v60, 5  ;;  %v15900_v38 = vcombine.low %v7827_v48, %v7837_v63  ;;  %v7855_v42 = vor.u32 %v7854_v54, %v7850_v33 }
 0x319   : > { %v15904_v7 = vsel %vm1290_vm0, %v15687_v19, 0  ;;  %v7863_v15 = vshrl.u32 %v7772_v56, 16  ;;  %v7846_v52 = vrot.slane %v7845_v57, 4  ;;  %v7866_v6 = vshll.u32 %v7772_v56, 16  ;;  %v8497_v19 = vld [vmem:[#allocation3 + $0x48] sm:$0xe] }
 0x31a   : > { %v15908_v9 = vsel %vm13251_vm15, %v11309_v37, %v8586_v17  ;;  %v8588_v31 = vrot.slane %v8586_v17, 4  ;;  %v7856_v8 = vrot.slane %v7855_v42, 4  ;;  %v7872_v13 = vshll.u32 %v15796_v3, 16  ;;  %v15921_v57 = vld [vmem:[#allocation3 + $0x4c] sm:$0xf] }
 0x31b   : > { %12247 = vmatmul.mubr.msk.bf16.gmra.mxu0 %vm1241_vm5, %v12527_v45  ;;  %v7865_v48 = vrot.slane %v7863_v15, 4  ;;  %v7876_v62 = vshrl.u32 %v15796_v3, 16  ;;  %v7851_v54 = vsel %vm12900_vm9, %v7846_v52, %v7850_v33  ;;  %v7868_v56 = vrot.slane %v7866_v6, 5  ;;  %v15923_v17 = vld [vmem:[#allocation3 + $0x50] sm:$0x1] }
 0x31c   : > { %12250 = vmatprep.mubr.msk.bf16.mxu0 %vm1241_vm5, %v12528_v27  ;;  %v15918_v37 = vsel %vm13251_vm15, %v8588_v31, %v8589_v1  ;;  %v7882_v63 = vshll.u32 %v15804_v58, 16  ;;  %v7861_v3 = vsel %vm12900_vm9, %v7856_v8, %v7860_v11  ;;  %v7874_v42 = vrot.slane %v7872_v13, 5  ;;  %v7778_v13 = vld [vmem:[#allocation3 + $0x3c] sm:$0xf] }
 0x31d   : > { %v11326_v45 = vcombine.low %v15908_v9, %v15918_v37  ;;  %v7878_v15 = vrot.slane %v7876_v62, 4  ;;  %v15933_v33 = vcombine.low %v7851_v54, %v7861_v3  ;;  %v7869_v58 = vor.u32 %v7868_v56, %v7865_v48  ;;  %v8498_v48 = vld [vmem:[#allocation3 + $0x54] sm:$0xe]  ;;  %v12529_v62 = vld [vmem:[#allocation3 + $0xc0] sm:$0xff]   ;;  %v15947_v54 = vld [vmem:[#allocation3 + $0x58] sm:$0xf] }
 0x31e   : > { %12205 = vmatmul.mubr.msk.bf16.gmra.mxu1 %vm1241_vm5, %v11216_v5  ;;  %v7884_v1 = vrot.slane %v7882_v63, 5  ;;  %v11310_v27 = vrot.slane %v8497_v19, 9  ;;  %v8593_v52 = vrot.slane %v15921_v57, 5  ;;  %v8596_v31 = vrot.slane %v15923_v17, 5 }
 0x31f   : > { %12208 = vmatprep.mubr.msk.bf16.mxu1 %vm1241_vm5, %v11217_v49  ;;  %v7879_v11 = vor.u32 %v7878_v15, %v7874_v42  ;;  %v7887_v6 = vshrl.u32 %v7775_v43, 16  ;;  %v7870_v8 = vrot.slane %v7869_v58, 4  ;;  %v7890_v36 = vshll.u32 %v7775_v43, 16  ;;  %v15951_v15 = vld [vmem:[#allocation3 + $0x5c] sm:$0x1] }
 0x320   : > { %v7896_v35 = vshll.u32 %v15842_v26, 16  ;;  %v7900_v5 = vshrl.u32 %v15842_v26, 16  ;;  %v15945_v24 = vsel %vm13251_vm15, %v11310_v27, %v8593_v52  ;;  %v8595_v30 = vrot.slane %v8593_v52, 4 }
 0x321   : > { %v7880_v19 = vrot.slane %v7879_v11, 4  ;;  %v7889_v49 = vrot.slane %v7887_v6, 4  ;;  %v7875_v56 = vsel %vm12900_vm9, %v7870_v8, %v7874_v42  ;;  %v7892_v43 = vrot.slane %v7890_v36, 5 }
 0x322   : > { %v7898_v63 = vrot.slane %v7896_v35, 5  ;;  %v7902_v3 = vrot.slane %v7900_v5, 4  ;;  %v15958_v58 = vsel %vm13251_vm15, %v8595_v30, %v8596_v31  ;;  %v7906_v27 = vshll.u32 %v15857_v51, 16  ;;  %v15976_v5 = vld [vmem:[#allocation3 + $0x64] sm:$0xf] }
 0x323   : > { %12251 = vmatmul.mubr.msk.bf16.gmra.mxu0 %vm1241_vm5, %v12529_v62  ;;  %v7885_v26 = vsel %vm12900_vm9, %v7880_v19, %v7884_v1  ;;  %v11311_v11 = vrot.slane %v8498_v48, 9  ;;  %v11327_v52 = vcombine.low %v15945_v24, %v15958_v58  ;;  %v7893_v6 = vor.u32 %v7892_v43, %v7889_v49 }
 0x324   : > { %12290 = vmatprep.mubr.msk.bf16.mxu0 %vm1241_vm5, %v11322_v12  ;;  %v15965_v42 = vcombine.low %v7875_v56, %v7885_v26  ;;  %v7903_v8 = vor.u32 %v7902_v3, %v7898_v63  ;;  %v7908_v1 = vrot.slane %v7906_v27, 5  ;;  %v8600_v36 = vrot.slane %v15947_v54, 5 }
 0x325   : > { %v8603_v31 = vrot.slane %v15951_v15, 5  ;;  %v7911_v35 = vshrl.u32 %v7778_v13, 16  ;;  %v7894_v39 = vrot.slane %v7893_v6, 4  ;;  %v7914_v12 = vshll.u32 %v7778_v13, 16 }
 0x326   : > { %12209 = vmatmul.mubr.msk.bf16.gmra.mxu1 %vm1241_vm5, %v11218_v23  ;;  %v7904_v40 = vrot.slane %v7903_v8, 4  ;;  %v7920_v51 = vshll.u32 %v15874_v14, 16  ;;  %v15984_v48 = vsel %vm13251_vm15, %v11311_v11, %v8600_v36  ;;  %v8602_v62 = vrot.slane %v8600_v36, 4  ;;  %v8499_v23 = vld [vmem:[#allocation3 + $0x60] sm:$0xe] }
 0x327   : > { %12212 = vmatprep.mubr.msk.bf16.mxu1 %vm1241_vm5, %v11219_v25  ;;  %v7913_v2 = vrot.slane %v7911_v35, 4  ;;  %v7924_v53 = vshrl.u32 %v15874_v14, 16  ;;  %v7899_v13 = vsel %vm12900_vm9, %v7894_v39, %v7898_v63  ;;  %v7916_v30 = vrot.slane %v7914_v12, 5  ;;  %v8500_v12 = vld [vmem:[#allocation3 + $0x6c] sm:$0xe] }
 0x328   : > { %v7909_v19 = vsel %vm12900_vm9, %v7904_v40, %v7908_v1  ;;  %v7922_v49 = vrot.slane %v7920_v51, 5  ;;  %v15997_v56 = vsel %vm13251_vm15, %v8602_v62, %v8603_v31  ;;  %v7930_v14 = vshll.u32 %v15882_v60, 16  ;;  %v16029_v62 = vld [vmem:[#allocation3 + $0x70] sm:$0xf] }
 0x329   : > { %v15993_v25 = vcombine.low %v7899_v13, %v7909_v19  ;;  %v7926_v43 = vrot.slane %v7924_v53, 4  ;;  %v11328_v63 = vcombine.low %v15984_v48, %v15997_v56  ;;  %v7917_v3 = vor.u32 %v7916_v30, %v7913_v2  ;;  %v16031_v2 = vld [vmem:[#allocation3 + $0x74] sm:$0x1] }
 0x32a   : > { %v11312_v26 = vrot.slane %v8499_v23, 9  ;;  %v8607_v27 = vrot.slane %v15976_v5, 5  ;;  %v7932_v6 = vrot.slane %v7930_v14, 5  ;;  %v8610_v8 = vrot.slane %v15991_v55, 5 }
 0x32b   : > { %12291 = vmatmul.mubr.msk.bf16.vlgmr.msra.gmra.mxu0 %vm1241_vm5, %v11323_v47  ;;  %v7927_v11 = vor.u32 %v7926_v43, %v7922_v49  ;;  %v7935_v1 = vshrl.u32 %v7781_v34, 16  ;;  %v7918_v60 = vrot.slane %v7917_v3, 4  ;;  %v7938_v35 = vshll.u32 %v7781_v34, 16 }
 0x32c   : > { %12294 = vmatprep.mubr.msk.bf16.mxu0 %vm1241_vm5, %v11324_v21  ;;  %v16014_v36 = vsel %vm13251_vm15, %v11312_v26, %v8607_v27  ;;  %v8609_v31 = vrot.slane %v8607_v27, 4  ;;  %v7944_v39 = vshll.u32 %v15921_v57, 16  ;;  %v7948_v40 = vshrl.u32 %v15921_v57, 16  ;;  %v8501_v26 = vld [vmem:[#allocation3 + $0x78] sm:$0xe] }
 0x32d   : > { %v7928_v29 = vrot.slane %v7927_v11, 4  ;;  %v7937_v47 = vrot.slane %v7935_v1, 4  ;;  %v7923_v44 = vsel %vm12900_vm9, %v7918_v60, %v7922_v49  ;;  %v7940_v21 = vrot.slane %v7938_v35, 5  ;;  %v7787_v27 = vld [vmem:[#allocation3 + $0x60] sm:$0xf] }
 0x32e   : > { %12213 = vmatmul.mubr.msk.bf16.gmra.mxu1 %vm1241_vm5, %v11220_v50  ;;  %v16026_v0 = vsel %vm13251_vm15, %v8609_v31, %v8610_v8  ;;  %v7954_v51 = vshll.u32 %v15923_v17, 16  ;;  %v17831_v57 = vcombine.low %v15793_v22, %v15812_v20  ;;  %v7946_v50 = vrot.slane %v7944_v39, 5  ;;  %v16055_v60 = vld [vmem:[#allocation3 + $0x7c] sm:$0xf]  ;;  %v16063_v31 = vld [vmem:[#allocation3 + $0x80] sm:$0x1] }
 0x32f   : > { %v7933_v16 = vsel %vm12900_vm9, %v7928_v29, %v7932_v6  ;;  %v11329_v61 = vcombine.low %v16014_v36, %v16026_v0  ;;  %v7950_v53 = vrot.slane %v7948_v40, 4  ;;  %v7941_v17 = vor.u32 %v7940_v21, %v7937_v47  ;;  %v8504_v36 = vld [vmem:[#allocation3 + $0x9c] sm:$0xe]  ;;  %v7796_v0 = vld [vmem:[#allocation3 + $0x84] sm:$0xf] }
 0x330   : > { %12216 = vmatprep.mubr.msk.bf16.mxu1 %vm1241_vm5, %v17831_v57  ;;  %v16041_v23 = vcombine.low %v7923_v44, %v7933_v16  ;;  %v7956_v13 = vrot.slane %v7954_v51, 5  ;;  %v11313_v19 = vrot.slane %v8500_v12, 9  ;;  %v8614_v49 = vrot.slane %v16029_v62, 5  ;;  %v8502_v16 = vld [vmem:[#allocation3 + $0x84] sm:$0xe] }
 0x331   : > { %v7951_v30 = vor.u32 %v7950_v53, %v7946_v50  ;;  %v8617_v22 = vrot.slane %v16031_v2, 5  ;;  %v7959_v20 = vshrl.u32 %v7784_v41, 16  ;;  %v7942_v34 = vrot.slane %v7941_v17, 4 }
 0x332   : > { %v7962_v43 = vshll.u32 %v7784_v41, 16  ;;  %v7968_v14 = vshll.u32 %v15947_v54, 16  ;;  %v7972_v3 = vshrl.u32 %v15947_v54, 16  ;;  %v16053_v6 = vsel %vm13251_vm15, %v11313_v19, %v8614_v49 }
 0x333   : > { %12295 = vmatmul.mubr.msk.bf16.gmra.mxu0 %vm1241_vm5, %v11325_v46  ;;  %v7952_v11 = vrot.slane %v7951_v30, 4  ;;  %v8616_v8 = vrot.slane %v8614_v49, 4  ;;  %v7961_v1 = vrot.slane %v7959_v20, 4  ;;  %v7947_v54 = vsel %vm12900_vm9, %v7942_v34, %v7946_v50  ;;  %v16096_v20 = vld [vmem:[#allocation3 + $0x8c] sm:$0x1] }
 0x334   : > { %12298 = vmatprep.mubr.msk.bf16.mxu0 %vm1241_vm5, %v11326_v45  ;;  %v7964_v28 = vrot.slane %v7962_v43, 5  ;;  %v7970_v18 = vrot.slane %v7968_v14, 5  ;;  %v7974_v46 = vrot.slane %v7972_v3, 4  ;;  %v7978_v29 = vshll.u32 %v15951_v15, 16  ;;  %v7790_v34 = vld [vmem:[#allocation3 + $0x6c] sm:$0xf] }
 0x335   : > { %v7957_v35 = vsel %vm12900_vm9, %v7952_v11, %v7956_v13  ;;  %v16069_v41 = vsel %vm13251_vm15, %v8616_v8, %v8617_v22  ;;  %v11314_v9 = vrot.slane %v8501_v26, 9  ;;  %v17832_v37 = vcombine.low %v15823_v10, %v15840_v59  ;;  %v16090_v13 = vld [vmem:[#allocation3 + $0x88] sm:$0xf] }
 0x336   : > { %v16076_v45 = vcombine.low %v7947_v54, %v7957_v35  ;;  %v11330_v47 = vcombine.low %v16053_v6, %v16069_v41  ;;  %v7965_v39 = vor.u32 %v7964_v28, %v7961_v1  ;;  %v7975_v40 = vor.u32 %v7974_v46, %v7970_v18  ;;  %v8503_v28 = vld [vmem:[#allocation3 + $0x90] sm:$0xe]  ;;  %v16170_v6 = vld [vmem:[#allocation3 + $0xa0] sm:$0xf] }
 0x337   : > { %12217 = vmatmul.mubr.msk.bf16.gmra.mxu1 %vm1241_vm5, %v17832_v37  ;;  %v7980_v12 = vrot.slane %v7978_v29, 5  ;;  %v8621_v44 = vrot.slane %v16055_v60, 5  ;;  %v8624_v15 = vrot.slane %v16063_v31, 5  ;;  %v7983_v21 = vshrl.u32 %v7787_v27, 16 }
 0x338   : > { %12256 = vmatprep.mubr.msk.bf16.mxu1 %vm1241_vm5, %v15900_v38  ;;  %v7966_v51 = vrot.slane %v7965_v39, 4  ;;  %v7976_v10 = vrot.slane %v7975_v40, 4  ;;  %v7986_v59 = vshll.u32 %v7787_v27, 16  ;;  %v7992_v57 = vshll.u32 %v15976_v5, 16  ;;  %v16140_v40 = vld [vmem:[#allocation3 + $0x94] sm:$0xf] }
 0x339   : > { %v16087_v50 = vsel %vm13251_vm15, %v11314_v9, %v8621_v44  ;;  %v8623_v53 = vrot.slane %v8621_v44, 4  ;;  %v7985_v17 = vrot.slane %v7983_v21, 4  ;;  %v7996_v38 = vshrl.u32 %v15976_v5, 16 }
 0x33a   : > { %v7971_v19 = vsel %vm12900_vm9, %v7966_v51, %v7970_v18  ;;  %v7981_v30 = vsel %vm12900_vm9, %v7976_v10, %v7980_v12  ;;  %v7988_v49 = vrot.slane %v7986_v59, 5  ;;  %v7994_v22 = vrot.slane %v7992_v57, 5 }
 0x33b   : > { %12299 = vmatmul.mubr.msk.bf16.gmra.mxu0 %vm1241_vm5, %v11327_v52  ;;  %v16102_v43 = vcombine.low %v7971_v19, %v7981_v30  ;;  %v16106_v5 = vsel %vm13251_vm15, %v8623_v53, %v8624_v15  ;;  %v7998_v14 = vrot.slane %v7996_v38, 4  ;;  %v8002_v3 = vshll.u32 %v15991_v55, 16  ;;  %v16120_v55 = vld [vmem:[%s17613_s3 + $0x10] sm:$0x3] }
 0x33c   : > { %12302 = vmatprep.mubr.msk.bf16.mxu0 %vm1241_vm5, %v11328_v63  ;;  %v11331_v26 = vcombine.low %v16087_v50, %v16106_v5  ;;  %v7989_v24 = vor.u32 %v7988_v49, %v7985_v17  ;;  %v11315_v58 = vrot.slane %v8502_v16, 9  ;;  %v8628_v52 = vrot.slane %v16090_v13, 5 }
 0x33d   : > { %v7999_v27 = vor.u32 %v7998_v14, %v7994_v22  ;;  %v8004_v11 = vrot.slane %v8002_v3, 5  ;;  %v8631_v8 = vrot.slane %v16096_v20, 5  ;;  %v8007_v1 = vshrl.u32 %v7790_v34, 16 }
 0x33e   : > { %v7990_v48 = vrot.slane %v7989_v24, 4  ;;  %v16126_v56 = vsel %vm13251_vm15, %v11315_v58, %v8628_v52  ;;  %v8630_v63 = vrot.slane %v8628_v52, 4  ;;  %v8010_v54 = vshll.u32 %v7790_v34, 16  ;;  %v16176_v24 = vld [vmem:[#allocation3 + $0xa4] sm:$0x1] }
 0x33f   : > { %12257 = vmatmul.mubr.msk.bf16.vlgmr.msra.gmra.mxu1 %vm1241_vm5, %v15933_v33  ;;  %v8000_v18 = vrot.slane %v7999_v27, 4  ;;  %v8009_v46 = vrot.slane %v8007_v1, 4  ;;  %v8016_v35 = vshll.u32 %v16029_v62, 16  ;;  %v8020_v29 = vshrl.u32 %v16029_v62, 16  ;;  %v7793_v33 = vld [vmem:[#allocation3 + $0x78] sm:$0xf] }
 0x340   : > { %12323 = vmatpush3.bf16.msra.mxu1 %v15904_v7  ;;  %12260 = vmatprep.mubr.msk.bf16.mxu1 %vm1241_vm5, %v15965_v42  ;;  %v7995_v9 = vsel %vm12900_vm9, %v7990_v48, %v7994_v22  ;;  %v16137_v37 = vsel %vm13251_vm15, %v8630_v63, %v8631_v8  ;;  %v8012_v39 = vrot.slane %v8010_v54, 5  ;;  %v8026_v7 = vshll.u32 %v16031_v2, 16  ;;  %v16142_v42 = vld [vmem:[#allocation3 + $0x98] sm:$0x1] }
 0x341   : > { %12441 = vmatprep.subr.msk.bf16.mxu1 %vm1290_vm0, %v16120_v55  ;;  %v8005_v62 = vsel %vm12900_vm9, %v8000_v18, %v8004_v11  ;;  %v11332_v12 = vcombine.low %v16126_v56, %v16137_v37  ;;  %v8018_v44 = vrot.slane %v8016_v35, 5  ;;  %v8022_v15 = vrot.slane %v8020_v29, 4  ;;  %v8505_v29 = vld [vmem:[#allocation3 + $0xa8] sm:$0xe] }
 0x342   : > { %v16150_v21 = vcombine.low %v7995_v9, %v8005_v62  ;;  %v8013_v51 = vor.u32 %v8012_v39, %v8009_v46  ;;  %v8028_v10 = vrot.slane %v8026_v7, 5  ;;  %v11316_v2 = vrot.slane %v8503_v28, 9  ;;  %v16203_v7 = vld [vmem:[#allocation3 + $0xac] sm:$0xf] }
 0x343   : > { %12303 = vmatmul.mubr.msk.bf16.gmra.mxu0 %vm1241_vm5, %v11329_v61  ;;  %v8023_v59 = vor.u32 %v8022_v15, %v8018_v44  ;;  %v8635_v57 = vrot.slane %v16140_v40, 5  ;;  %v8638_v16 = vrot.slane %v16142_v42, 5  ;;  %v8031_v53 = vshrl.u32 %v7793_v33, 16  ;;  %v16164_v61 = vpop.f32.mrf.mxu0  ;;  %v7799_v15 = vld [vmem:[#allocation3 + $0x90] sm:$0xf] }
 0x344   : > { %12306 = vmatprep.mubr.msk.bf16.mxu0 %vm1241_vm5, %v11330_v47  ;;  %v8014_v17 = vrot.slane %v8013_v51, 4  ;;  %v8034_v38 = vshll.u32 %v7793_v33, 16  ;;  %v8040_v19 = vshll.u32 %v16055_v60, 16  ;;  %v8044_v30 = vshrl.u32 %v16055_v60, 16 }
 0x345   : > { %v8024_v49 = vrot.slane %v8023_v59, 4  ;;  %v16168_v22 = vsel %vm13251_vm15, %v11316_v2, %v8635_v57  ;;  %v8637_v34 = vrot.slane %v8635_v57, 4  ;;  %v8033_v14 = vrot.slane %v8031_v53, 4  ;;  %v16191_v56 = vpop.f32.mrf.mxu0 }
 0x346   : > { %v8019_v41 = vsel %vm12900_vm9, %v8014_v17, %v8018_v44  ;;  %v8036_v60 = vrot.slane %v8034_v38, 5  ;;  %v8042_v47 = vrot.slane %v8040_v19, 5  ;;  %v8046_v3 = vrot.slane %v8044_v30, 4 }
 0x347   : > { %12261 = vmatmul.mubr.msk.bf16.gmra.mxu1 %vm1241_vm5, %v15993_v25  ;;  %v8029_v58 = vsel %vm12900_vm9, %v8024_v49, %v8028_v10  ;;  %v16184_v52 = vsel %vm13251_vm15, %v8637_v34, %v8638_v16  ;;  %v8050_v25 = vshll.u32 %v16063_v31, 16  ;;  %v11317_v27 = vrot.slane %v8504_v36, 9  ;;  %v16212_v51 = vpop.f32.mrf.mxu0 }
 0x348   : > { %12264 = vmatprep.mubr.msk.bf16.mxu1 %vm1241_vm5, %v16041_v23  ;;  %v16187_v11 = vcombine.low %v8019_v41, %v8029_v58  ;;  %v11333_v8 = vcombine.low %v16168_v22, %v16184_v52  ;;  %v8037_v1 = vor.u32 %v8036_v60, %v8033_v14  ;;  %v8047_v48 = vor.u32 %v8046_v3, %v8042_v47  ;;  %v8506_v60 = vld [vmem:[#allocation3 + $0xb4] sm:$0xe] }
 0x349   : > { %v8052_v23 = vrot.slane %v8050_v25, 5  ;;  %v8642_v63 = vrot.slane %v16170_v6, 5  ;;  %v8645_v54 = vrot.slane %v16176_v24, 5  ;;  %v8055_v28 = vshrl.u32 %v7796_v0, 16  ;;  %v16227_v22 = vpop.f32.mrf.mxu0  ;;  %v16236_v25 = vld [vmem:[#allocation3 + $0xb8] sm:$0xf] }
 0x34a   : > { %v8038_v18 = vrot.slane %v8037_v1, 4  ;;  %v8048_v46 = vrot.slane %v8047_v48, 4  ;;  %v8058_v35 = vshll.u32 %v7796_v0, 16  ;;  %v8064_v31 = vshll.u32 %v16090_v13, 16 }
 0x34b   : > { %12307 = vmatmul.mubr.msk.bf16.gmra.mxu0 %vm1241_vm5, %v11331_v26  ;;  %v8643_v33 = vsel %vm13251_vm15, %v11317_v27, %v8642_v63  ;;  %v8644_v9 = vrot.slane %v8642_v63, 4  ;;  %v8057_v37 = vrot.slane %v8055_v28, 4  ;;  %v8068_v39 = vshrl.u32 %v16090_v13, 16  ;;  %v16210_v26 = vld [vmem:[#allocation3 + $0xb0] sm:$0x1] }
 0x34c   : > { %12310 = vmatprep.mubr.msk.bf16.mxu0 %vm1241_vm5, %v11332_v12  ;;  %v8043_v62 = vsel %vm12900_vm9, %v8038_v18, %v8042_v47  ;;  %v8053_v44 = vsel %vm12900_vm9, %v8048_v46, %v8052_v23  ;;  %v8060_v50 = vrot.slane %v8058_v35, 5  ;;  %v8066_v5 = vrot.slane %v8064_v31, 5  ;;  %v16238_v27 = vld [vmem:[#allocation3 + $0xbc] sm:$0x1]  ;;  %v16244_v46 = vpop.f32.mrf.mxu0 }
 0x34d   : > { %v16214_v10 = vcombine.low %v8043_v62, %v8053_v44  ;;  %v8646_v13 = vsel %vm13251_vm15, %v8644_v9, %v8645_v54  ;;  %v8070_v2 = vrot.slane %v8068_v39, 4  ;;  %v8074_v12 = vshll.u32 %v16096_v20, 16  ;;  %v8507_v39 = vld [vmem:[#allocation3 + $0xc0] sm:$0xe]  ;;  %v7805_v62 = vld [vmem:[#allocation3 + $0xa8] sm:$0xf] }
 0x34e   : > { %v11334_v59 = vcombine.low %v8643_v33, %v8646_v13  ;;  %v8061_v57 = vor.u32 %v8060_v50, %v8057_v37  ;;  %v11318_v16 = vrot.slane %v8505_v29, 9  ;;  %v8649_v53 = vrot.slane %v16203_v7, 5  ;;  %v16256_v13 = vld [vmem:[#allocation3 + $0xc4] sm:$0xf] }
 0x34f   : > { %12265 = vmatmul.mubr.msk.bf16.gmra.mxu1 %vm1241_vm5, %v16076_v45  ;;  %v8071_v17 = vor.u32 %v8070_v2, %v8066_v5  ;;  %v8076_v38 = vrot.slane %v8074_v12, 5  ;;  %v8652_v19 = vrot.slane %v16210_v26, 5  ;;  %v8079_v30 = vshrl.u32 %v7799_v15, 16  ;;  %v7802_v45 = vld [vmem:[#allocation3 + $0x9c] sm:$0xf] }
 0x350   : > { %12268 = vmatprep.mubr.msk.bf16.mxu1 %vm1241_vm5, %v16102_v43  ;;  %v8062_v36 = vrot.slane %v8061_v57, 4  ;;  %v8650_v20 = vsel %vm13251_vm15, %v11318_v16, %v8649_v53  ;;  %v8651_v0 = vrot.slane %v8649_v53, 4  ;;  %v8082_v49 = vshll.u32 %v7799_v15, 16  ;;  %v16262_v57 = vpop.f32.mrf.mxu0 }
 0x351   : > { %v8072_v34 = vrot.slane %v8071_v17, 4  ;;  %v8081_v14 = vrot.slane %v8079_v30, 4  ;;  %v8088_v41 = vshll.u32 %v16140_v40, 16  ;;  %v8092_v43 = vshrl.u32 %v16140_v40, 16 }
 0x352   : > { %v8067_v47 = vsel %vm12900_vm9, %v8062_v36, %v8066_v5  ;;  %v8653_v3 = vsel %vm13251_vm15, %v8651_v0, %v8652_v19  ;;  %v8084_v58 = vrot.slane %v8082_v49, 5  ;;  %v8098_v52 = vshll.u32 %v16142_v42, 16 }
 0x353   : > { %12311 = vmatmul.mubr.msk.bf16.gmra.mxu0 %vm1241_vm5, %v11333_v8  ;;  %v8077_v1 = vsel %vm12900_vm9, %v8072_v34, %v8076_v38  ;;  %v11335_v40 = vcombine.low %v8650_v20, %v8653_v3  ;;  %v8090_v48 = vrot.slane %v8088_v41, 5  ;;  %v8094_v23 = vrot.slane %v8092_v43, 4  ;;  %v16276_v43 = vpop.f32.mrf.mxu0 }
 0x354   : > { %12314 = vmatprep.mubr.msk.bf16.mxu0 %vm1241_vm5, %v11334_v59  ;;  %v11283_v63 = vcombine.low %v8067_v47, %v8077_v1  ;;  %v8085_v54 = vor.u32 %v8084_v58, %v8081_v14  ;;  %v8100_v28 = vrot.slane %v8098_v52, 5  ;;  %v11319_v18 = vrot.slane %v8506_v60, 9  ;;  %v9321_v52 = vld [vmem:[#allocation3 + $0x18] sm:$0xf] }
 0x355   : > { %v8095_v42 = vor.u32 %v8094_v23, %v8090_v48  ;;  %v8656_v35 = vrot.slane %v16236_v25, 5  ;;  %v8659_v31 = vrot.slane %v16238_v27, 5  ;;  %v8103_v8 = vshrl.u32 %v7802_v45, 16 }
 0x356   : > { %v8086_v29 = vrot.slane %v8085_v54, 4  ;;  %v8106_v33 = vshll.u32 %v7802_v45, 16  ;;  %v8112_v9 = vshll.u32 %v16170_v6, 16  ;;  %v8116_v37 = vshrl.u32 %v16170_v6, 16  ;;  %v16260_v6 = vld [vmem:[#allocation3 + $0xc8] sm:$0x1] }
 0x357   : > { %12269 = vmatmul.mubr.msk.bf16.gmra.mxu1 %vm1241_vm5, %v16150_v21  ;;  %v8096_v44 = vrot.slane %v8095_v42, 4  ;;  %v8657_v50 = vsel %vm13251_vm15, %v11319_v18, %v8656_v35  ;;  %v8658_v5 = vrot.slane %v8656_v35, 4  ;;  %v8105_v15 = vrot.slane %v8103_v8, 4  ;;  %v16287_v54 = vld [vmem:[#allocation3 + $0x1c] sm:$0xf] }
 0x358   : > { %12272 = vmatprep.mubr.msk.bf16.mxu1 %vm1241_vm5, %v16187_v11  ;;  %v8091_v21 = vsel %vm12900_vm9, %v8086_v29, %v8090_v48  ;;  %v8108_v2 = vrot.slane %v8106_v33, 5  ;;  %v8114_v12 = vrot.slane %v8112_v9, 5  ;;  %v8118_v59 = vrot.slane %v8116_v37, 4  ;;  %v7808_v33 = vld [vmem:[#allocation3 + $0xb4] sm:$0xf]  ;;  %v16295_v9 = vpop.f32.mrf.mxu1  ;;  %v16297_v37 = vpop.f32.mrf.mxu0 }
 0x359   : > { %v8101_v11 = vsel %vm12900_vm9, %v8096_v44, %v8100_v28  ;;  %v8660_v16 = vsel %vm13251_vm15, %v8658_v5, %v8659_v31  ;;  %v8122_v53 = vshll.u32 %v16176_v24, 16  ;;  %v11320_v17 = vrot.slane %v8507_v39, 9  ;;  %17833 = vst [vmem:[#allocation19_spill] sm:$0xff] %v16297_v37  ;;  %v12535_v37 = vld [vmem:[#allocation3 + $0x54] sm:$0xff]  }
 0x35a   : > { %v16269_v38 = vcombine.low %v8091_v21, %v8101_v11  ;;  %v11336_v19 = vcombine.low %v8657_v50, %v8660_v16  ;;  %v8109_v30 = vor.u32 %v8108_v2, %v8105_v15  ;;  %v8119_v36 = vor.u32 %v8118_v59, %v8114_v12 }
 0x35b   : > { %12315 = vmatmul.mubr.msk.bf16.gmra.mxu0 %vm1241_vm5, %v11335_v40  ;;  %v8124_v20 = vrot.slane %v8122_v53, 5  ;;  %v8663_v0 = vrot.slane %v16256_v13, 5  ;;  %v8666_v49 = vrot.slane %v16260_v6, 5  ;;  %v8127_v45 = vshrl.u32 %v7805_v62, 16 }
 0x35c   : > { %12318 = vmatprep.mubr.msk.bf16.mxu0 %vm1241_vm5, %v11336_v19  ;;  %v8110_v34 = vrot.slane %v8109_v30, 4  ;;  %v8120_v14 = vrot.slane %v8119_v36, 4  ;;  %v8130_v41 = vshll.u32 %v7805_v62, 16  ;;  %v8136_v24 = vshll.u32 %v16203_v7, 16  ;;  %v16305_v19 = vpop.f32.mrf.mxu1 }
 0x35d   : > { %v8664_v60 = vsel %vm13251_vm15, %v11320_v17, %v8663_v0  ;;  %v8665_v47 = vrot.slane %v8663_v0, 4  ;;  %v8129_v3 = vrot.slane %v8127_v45, 4  ;;  %v8140_v58 = vshrl.u32 %v16203_v7, 16  ;;  %v9324_v45 = vld [vmem:[#allocation3 + $0x24] sm:$0xf] }
 0x35e   : > { %v8115_v1 = vsel %vm12900_vm9, %v8110_v34, %v8114_v12  ;;  %v8125_v40 = vsel %vm12900_vm9, %v8120_v14, %v8124_v20  ;;  %v8132_v48 = vrot.slane %v8130_v41, 5  ;;  %v8138_v23 = vrot.slane %v8136_v24, 5 }
 0x35f   : > { %12273 = vmatmul.mubr.msk.bf16.gmra.mxu1 %vm1241_vm5, %v16214_v10  ;;  %v11285_v28 = vcombine.low %v8115_v1, %v8125_v40  ;;  %v8667_v7 = vsel %vm13251_vm15, %v8665_v47, %v8666_v49  ;;  %v8142_v18 = vrot.slane %v8140_v58, 4  ;;  %v8146_v42 = vshll.u32 %v16210_v26, 16  ;;  %v16293_v10 = vld [vmem:[#allocation3 + $0x20] sm:$0x1]  ;;  %v16307_v30 = vpop.f32.mrf.mxu0 }
 0x360   : > { %12276 = vmatprep.mubr.msk.bf16.mxu1 %vm1241_vm5, %v11283_v63  ;;  %v11337_v35 = vcombine.low %v8664_v60, %v8667_v7  ;;  %v8133_v31 = vor.u32 %v8132_v48, %v8129_v3  ;;  %v9370_v8 = vshrl.u32 %v9321_v52, 16  ;;  %v9373_v29 = vshll.u32 %v9321_v52, 16  ;;  %v16315_v60 = vld [vmem:[#allocation3 + $0x28] sm:$0xf]  ;;  %v12566_v52 = vld [vmem:[%s17613_s3 + $0xe] sm:$0x3] }
 0x361   : > { %v8143_v39 = vor.u32 %v8142_v18, %v8138_v23  ;;  %v8148_v63 = vrot.slane %v8146_v42, 5  ;;  %v9379_v62 = vshll.u32 %v16287_v54, 16  ;;  %v9383_v44 = vshrl.u32 %v16287_v54, 16  ;;  %v16329_v7 = vpop.f32.mrf.mxu0 }
 0x362   : > { %v8134_v50 = vrot.slane %v8133_v31, 4  ;;  %v9372_v5 = vrot.slane %v9370_v8, 4  ;;  %v9375_v26 = vrot.slane %v9373_v29, 5  ;;  %v9389_v15 = vshll.u32 %v16293_v10, 16  ;;  %v7811_v31 = vld [vmem:[#allocation3 + $0xc0] sm:$0xf] }
 0x363   : > { %12319 = vmatmul.mubr.msk.bf16.gmra.mxu0 %vm1241_vm5, %v11337_v35  ;;  %v8144_v21 = vrot.slane %v8143_v39, 4  ;;  %v9381_v2 = vrot.slane %v9379_v62, 5  ;;  %v9385_v12 = vrot.slane %v9383_v44, 4  ;;  %v8151_v59 = vshrl.u32 %v7808_v33, 16 }
 0x364   : > { %v8139_v11 = vsel %vm12900_vm9, %v8134_v50, %v8138_v23  ;;  %v9376_v16 = vor.u32 %v9375_v26, %v9372_v5  ;;  %v9391_v53 = vrot.slane %v9389_v15, 5  ;;  %v8154_v17 = vshll.u32 %v7808_v33, 16 }
 0x365   : > { %v8149_v36 = vsel %vm12900_vm9, %v8144_v21, %v8148_v63  ;;  %v9386_v20 = vor.u32 %v9385_v12, %v9381_v2  ;;  %v8153_v0 = vrot.slane %v8151_v59, 4  ;;  %v8160_v49 = vshll.u32 %v16236_v25, 16  ;;  %v16341_v12 = vpop.f32.mrf.mxu0 }
 0x366   : > { %v11286_v34 = vcombine.low %v8139_v11, %v8149_v36  ;;  %v9377_v14 = vrot.slane %v9376_v16, 4  ;;  %v8156_v41 = vrot.slane %v8154_v17, 5  ;;  %v8164_v24 = vshrl.u32 %v16236_v25, 16  ;;  %v16325_v25 = vld [vmem:[#allocation3 + $0x2c] sm:$0x1] }
 0x367   : > { %12277 = vmatmul.mubr.msk.bf16.gmra.mxu1 %vm1241_vm5, %v16269_v38  ;;  %v9387_v47 = vrot.slane %v9386_v20, 4  ;;  %v8162_v3 = vrot.slane %v8160_v49, 5  ;;  %v8170_v58 = vshll.u32 %v16238_v27, 16  ;;  %v9852_v1 = vsel %vm1290_vm0, %v12566_v52, 0  ;;  %v9327_v17 = vld [vmem:[#allocation3 + $0x30] sm:$0xf] }
 0x368   : > { %12280 = vmatprep.mubr.msk.bf16.mxu1 %vm1241_vm5, %v11285_v28  ;;  %v9382_v38 = vsel %vm12900_vm9, %v9377_v14, %v9381_v2  ;;  %v8157_v40 = vor.u32 %v8156_v41, %v8153_v0  ;;  %v8166_v48 = vrot.slane %v8164_v24, 4  ;;  %12357 = vmatpush3.bf16.msra.mxu0 %v9852_v1  ;;  %v9394_v23 = vshrl.u32 %v9324_v45, 16  ;;  %v16327_v28 = vpop.f32.mrf.mxu1 }
 0x369   : > { %v9392_v27 = vsel %vm12900_vm9, %v9387_v47, %v9391_v53  ;;  %v8172_v18 = vrot.slane %v8170_v58, 5  ;;  %v9397_v42 = vshll.u32 %v9324_v45, 16  ;;  %v9403_v35 = vshll.u32 %v16315_v60, 16  ;;  %v16348_v45 = vld [vmem:[#allocation3 + $0x34] sm:$0xf] }
 0x36a   : > { %v11388_v8 = vcombine.low %v9382_v38, %v9392_v27  ;;  %v8158_v29 = vrot.slane %v8157_v40, 4  ;;  %v8167_v33 = vor.u32 %v8166_v48, %v8162_v3  ;;  %v9396_v39 = vrot.slane %v9394_v23, 4  ;;  %v16339_v2 = vpop.f32.mrf.mxu1  ;;  %v16358_v48 = vld [vmem:[#allocation3 + $0x38] sm:$0x1] }
 0x36b   : > { %v9399_v63 = vrot.slane %v9397_v42, 5  ;;  %v9405_v62 = vrot.slane %v9403_v35, 5  ;;  %v9407_v44 = vshrl.u32 %v16315_v60, 16  ;;  %v9413_v50 = vshll.u32 %v16325_v25, 16 }
 0x36c   : > { %12358 = vmatprep.mubr.msk.bf16.mxu0 %vm1241_vm5, %v11388_v8  ;;  %v8163_v5 = vsel %vm12900_vm9, %v8158_v29, %v8162_v3  ;;  %v8168_v26 = vrot.slane %v8167_v33, 4  ;;  %v8175_v15 = vshrl.u32 %v7811_v31, 16  ;;  %v8178_v21 = vshll.u32 %v7811_v31, 16  ;;  %v16351_v38 = vpop.f32.mrf.mxu1  ;;  %v9330_v31 = vld [vmem:[#allocation3 + $0x3c] sm:$0xf] }
 0x36d   : > { %v9400_v59 = vor.u32 %v9399_v63, %v9396_v39  ;;  %v9409_v11 = vrot.slane %v9407_v44, 4  ;;  %v9415_v16 = vrot.slane %v9413_v50, 5  ;;  %v8184_v53 = vshll.u32 %v16256_v13, 16  ;;  %v16364_v63 = vld [vmem:[#allocation3 + $0x40] sm:$0xf] }
 0x36e   : > { %v8173_v36 = vsel %vm12900_vm9, %v8168_v26, %v8172_v18  ;;  %v8177_v20 = vrot.slane %v8175_v15, 4  ;;  %v8180_v0 = vrot.slane %v8178_v21, 5  ;;  %v8188_v49 = vshrl.u32 %v16256_v13, 16  ;;  %v16369_v26 = vpop.f32.mrf.mxu1 }
 0x36f   : > { %12281 = vmatmul.mubr.msk.bf16.gmra.mxu1 %vm1241_vm5, %v11286_v34  ;;  %v11287_v14 = vcombine.low %v8163_v5, %v8173_v36  ;;  %v9401_v41 = vrot.slane %v9400_v59, 4  ;;  %v9410_v24 = vor.u32 %v9409_v11, %v9405_v62  ;;  %v8186_v47 = vrot.slane %v8184_v53, 5  ;;  %v16353_v34 = vpop.f32.mrf.mxu0  ;;  %v16373_v11 = vld [vmem:[#allocation3 + $0x44] sm:$0x1] }
 0x370   : > { %v8181_v3 = vor.u32 %v8180_v0, %v8177_v20  ;;  %v8190_v58 = vrot.slane %v8188_v49, 4  ;;  %v8194_v52 = vshll.u32 %v16260_v6, 16  ;;  %v9418_v1 = vshrl.u32 %v9327_v17, 16  ;;  %v9333_v49 = vld [vmem:[#allocation3 + $0x48] sm:$0xf] }
 0x371   : > { %12284 = vmatprep.mubr.msk.bf16.mxu1 %vm1241_vm5, %v11287_v14  ;;  %v9406_v13 = vsel %vm12900_vm9, %v9401_v41, %v9405_v62  ;;  %v9411_v40 = vrot.slane %v9410_v24, 4  ;;  %v9421_v23 = vshll.u32 %v9327_v17, 16  ;;  %v9427_v27 = vshll.u32 %v16348_v45, 16 }
 0x372   : > { %v8182_v18 = vrot.slane %v8181_v3, 4  ;;  %v8191_v42 = vor.u32 %v8190_v58, %v8186_v47  ;;  %v8196_v35 = vrot.slane %v8194_v52, 5  ;;  %v9420_v6 = vrot.slane %v9418_v1, 4 }
 0x373   : > { %v9416_v8 = vsel %vm12900_vm9, %v9411_v40, %v9415_v16  ;;  %v9423_v29 = vrot.slane %v9421_v23, 5  ;;  %v9429_v33 = vrot.slane %v9427_v27, 5  ;;  %v9431_v39 = vshrl.u32 %v16348_v45, 16  ;;  %v16371_v15 = vpop.f32.mrf.mxu0  ;;  %v16381_v40 = vld [vmem:[#allocation3 + $0x4c] sm:$0xf]  ;;  %v16383_v23 = vpop.f32.mrf.mxu1 }
 0x374   : > { %v11389_v62 = vcombine.low %v9406_v13, %v9416_v8  ;;  %v8187_v44 = vsel %vm12900_vm9, %v8182_v18, %v8186_v47  ;;  %v8192_v50 = vrot.slane %v8191_v42, 4  ;;  %v9437_v5 = vshll.u32 %v16358_v48, 16  ;;  %v12530_v47 = vld [vmem:[#allocation3 + $0x18] sm:$0xff]  }
 0x375   : > { %v9424_v21 = vor.u32 %v9423_v29, %v9420_v6  ;;  %v9433_v59 = vrot.slane %v9431_v39, 4  ;;  %v9442_v16 = vshrl.u32 %v9330_v31, 16  ;;  %v9445_v53 = vshll.u32 %v9330_v31, 16  ;;  %v16385_v27 = vpop.f32.mrf.mxu0  ;;  %v16395_v39 = vld [vmem:[#allocation3 + $0x50] sm:$0x1] }
 0x376   : > { %12359 = vmatmul.mubr.msk.bf16.vlgmr.msra.gmra.mxu0 %vm1241_vm5, %v11389_v62  ;;  %v8197_v17 = vsel %vm12900_vm9, %v8192_v50, %v8196_v35  ;;  %v9439_v36 = vrot.slane %v9437_v5, 5  ;;  %v9451_v20 = vshll.u32 %v16364_v63, 16  ;;  %v9455_v0 = vshrl.u32 %v16364_v63, 16 }
 0x377   : > { %v11288_v14 = vcombine.low %v8187_v44, %v8197_v17  ;;  %v9425_v41 = vrot.slane %v9424_v21, 4  ;;  %v9434_v24 = vor.u32 %v9433_v59, %v9429_v33  ;;  %v9444_v3 = vrot.slane %v9442_v16, 4  ;;  %v16401_v16 = vpop.f32.mrf.mxu1 }
 0x378   : > { %v9447_v58 = vrot.slane %v9445_v53, 5  ;;  %v9453_v52 = vrot.slane %v9451_v20, 5  ;;  %v9457_v1 = vrot.slane %v9455_v0, 4  ;;  %v9461_v13 = vshll.u32 %v16373_v11, 16  ;;  %17834 = vst [vmem:[#allocation18_spill] sm:$0xff] %v16401_v16  ;;  %v16403_v53 = vpop.f32.mrf.mxu0 }
 0x379   : > { %12285 = vmatmul.mubr.msk.bf16.gmra.mxu1 %vm1241_vm5, %v11288_v14  ;;  %v9430_v18 = vsel %vm12900_vm9, %v9425_v41, %v9429_v33  ;;  %v9435_v42 = vrot.slane %v9434_v24, 4  ;;  %v16392_v35 = vadd.f32 %v16164_v61, %v16295_v9  ;;  %v9466_v6 = vshrl.u32 %v9333_v49, 16 }
 0x37a   : > { %12324 = vmatprep.mubr.msk.bf16.mxu1 %vm1241_vm5, %v12530_v47  ;;  %v9448_v31 = vor.u32 %v9447_v58, %v9444_v3  ;;  %v9458_v8 = vor.u32 %v9457_v1, %v9453_v52  ;;  %v9463_v29 = vrot.slane %v9461_v13, 5  ;;  %v9469_v62 = vshll.u32 %v9333_v49, 16  ;;  %v9336_v49 = vld [vmem:[#allocation3 + $0x54] sm:$0xf]  ;;  %v16415_v47 = vld [vmem:[#allocation3 + $0x58] sm:$0xf] }
 0x37b   : > { %v9440_v44 = vsel %vm12900_vm9, %v9435_v42, %v9439_v36  ;;  %v9468_v50 = vrot.slane %v9466_v6, 4  ;;  %v9475_v33 = vshll.u32 %v16381_v40, 16  ;;  %v9479_v5 = vshrl.u32 %v16381_v40, 16  ;;  %v12531_v58 = vld [vmem:[#allocation3 + $0x24] sm:$0xff]   ;;  %v12532_v6 = vld [vmem:[#allocation3 + $0x30] sm:$0xff]  }
 0x37c   : > { %v11390_v21 = vcombine.low %v9430_v18, %v9440_v44  ;;  %v9449_v61 = vrot.slane %v9448_v31, 4  ;;  %v9459_v9 = vrot.slane %v9458_v8, 4  ;;  %v9471_v59 = vrot.slane %v9469_v62, 5  ;;  %v16433_v44 = vld [vmem:[#allocation3 + $0x64] sm:$0xf] }
 0x37d   : > { %v9477_v17 = vrot.slane %v9475_v33, 5  ;;  %v9481_v20 = vrot.slane %v9479_v5, 4  ;;  %v9485_v0 = vshll.u32 %v16395_v39, 16  ;;  %v16413_v24 = vadd.f32 %v16191_v56, %v16305_v19  ;;  %v9339_v56 = vld [vmem:[#allocation3 + $0x60] sm:$0xf] }
 0x37e   : > { %12362 = vmatprep.mubr.msk.bf16.mxu0 %vm1241_vm5, %v11390_v21  ;;  %v9454_v36 = vsel %vm12900_vm9, %v9449_v61, %v9453_v52  ;;  %v9464_v14 = vsel %vm12900_vm9, %v9459_v9, %v9463_v29  ;;  %v9472_v41 = vor.u32 %v9471_v59, %v9468_v50  ;;  %v10322_v13 = vsel %vm1290_vm0, %v16120_v55, 0  ;;  %v16423_v52 = vld [vmem:[#allocation3 + $0x5c] sm:$0x1]  ;;  %v16427_v29 = vpop.f32.mrf.mxu0  ;;  %v16441_v61 = vld [vmem:[#allocation3 + $0x68] sm:$0x1] }
 0x37f   : > { %v11391_v3 = vcombine.low %v9454_v36, %v9464_v14  ;;  %v9482_v1 = vor.u32 %v9481_v20, %v9477_v17  ;;  %v16421_v18 = vadd.f32 %v16212_v51, %v16327_v28  ;;  %v9490_v31 = vshrl.u32 %v9336_v49, 16  ;;  %v16425_v19 = vpop.f32.mrf.mxu1 }
 0x380   : > { %v9473_v42 = vrot.slane %v9472_v41, 4  ;;  %v9493_v8 = vshll.u32 %v9336_v49, 16  ;;  %v9487_v62 = vrot.slane %v9485_v0, 5  ;;  %v9499_v51 = vshll.u32 %v16415_v47, 16 }
 0x381   : > { %12363 = vmatmul.mubr.msk.bf16.gmra.mxu0 %vm1241_vm5, %v11391_v3  ;;  %12325 = vmatmul.mubr.msk.bf16.vlgmr.msra.gmra.mxu1 %vm1241_vm5, %v12531_v58  ;;  %v9483_v55 = vrot.slane %v9482_v1, 4  ;;  %v9503_v28 = vshrl.u32 %v16415_v47, 16  ;;  %v9492_v50 = vrot.slane %v9490_v31, 4  ;;  %v9509_v5 = vshll.u32 %v16423_v52, 16  ;;  %v16447_v3 = vpop.f32.mrf.mxu1 }
 0x382   : > { %12391 = vmatpush3.bf16.msra.mxu1 %v10322_v13  ;;  %12328 = vmatprep.mubr.msk.bf16.mxu1 %vm1241_vm5, %v12532_v6  ;;  %v9495_v33 = vrot.slane %v9493_v8, 5  ;;  %v16439_v21 = vadd.f32 %v16244_v46, %v16351_v38  ;;  %v9478_v9 = vsel %vm12900_vm9, %v9473_v42, %v9477_v17  ;;  %v9501_v20 = vrot.slane %v9499_v51, 5  ;;  %v12533_v42 = vld [vmem:[#allocation3 + $0x3c] sm:$0xff]  }
 0x383   : > { %v9488_v59 = vsel %vm12900_vm9, %v9483_v55, %v9487_v62  ;;  %v9505_v0 = vrot.slane %v9503_v28, 4  ;;  %v9514_v14 = vshrl.u32 %v9339_v56, 16  ;;  %v9517_v41 = vshll.u32 %v9339_v56, 16  ;;  %v9342_v56 = vld [vmem:[#allocation3 + $0x6c] sm:$0xf] }
 0x384   : > { %17835 = vst [vmem:[#allocation34_spill] sm:$0xff] %v16439_v21  ;;  %v11392_v49 = vcombine.low %v9478_v9, %v9488_v59  ;;  %v9496_v36 = vor.u32 %v9495_v33, %v9492_v50  ;;  %v16449_v58 = vpop.f32.mrf.mxu0  ;;  %v9523_v38 = vshll.u32 %v16433_v44, 16  ;;  %v9527_v1 = vshrl.u32 %v16433_v44, 16  ;;  %v16461_v33 = vld [vmem:[#allocation3 + $0x70] sm:$0xf] }
 0x385   : > { %v9506_v46 = vor.u32 %v9505_v0, %v9501_v20  ;;  %v9533_v17 = vshll.u32 %v16441_v61, 16  ;;  %v9516_v6 = vrot.slane %v9514_v14, 4  ;;  %v9519_v31 = vrot.slane %v9517_v41, 5 }
 0x386   : > { %12366 = vmatprep.mubr.msk.bf16.mxu0 %vm1241_vm5, %v11392_v49  ;;  %v9497_v13 = vrot.slane %v9496_v36, 4  ;;  %v16457_v8 = vadd.f32 %v16262_v57, %v16369_v26  ;;  %v16459_v55 = vpop.f32.mrf.mxu0  ;;  %v9511_v51 = vrot.slane %v9509_v5, 5  ;;  %v9525_v28 = vrot.slane %v9523_v38, 5  ;;  %v12534_v49 = vld [vmem:[#allocation3 + $0x48] sm:$0xff]   ;;  %v16469_v57 = vld [vmem:[#allocation3 + $0x74] sm:$0x1]  ;;  %v12131_v26 = vpop.f32.mrf.mxu1 }
 0x387   : > { %v9507_v62 = vrot.slane %v9506_v46, 4  ;;  %v9529_v50 = vrot.slane %v9527_v1, 4  ;;  %v9520_v59 = vor.u32 %v9519_v31, %v9516_v6  ;;  %v9535_v0 = vrot.slane %v9533_v17, 5 }
 0x388   : > { %17836 = vst [vmem:[#allocation28_spill] sm:$0xff] %v16457_v8  ;;  %v9502_v9 = vsel %vm12900_vm9, %v9497_v13, %v9501_v20  ;;  %v16467_v36 = vadd.f32 %v16276_v43, %v16383_v23  ;;  %v9538_v41 = vshrl.u32 %v9342_v56, 16  ;;  %v9541_v46 = vshll.u32 %v9342_v56, 16  ;;  %v9345_v23 = vld [vmem:[#allocation3 + $0x78] sm:$0xf]  ;;  %v16477_v17 = vpop.f32.mrf.mxu0 }
 0x389   : > { %v9512_v5 = vsel %vm12900_vm9, %v9507_v62, %v9511_v51  ;;  %12329 = vmatmul.mubr.msk.bf16.gmra.mxu1 %vm1241_vm5, %v12533_v42  ;;  %v9530_v14 = vor.u32 %v9529_v50, %v9525_v28  ;;  %v9521_v20 = vrot.slane %v9520_v59, 4  ;;  %v9547_v1 = vshll.u32 %v16461_v33, 16  ;;  %v16480_v42 = vld [vmem:[#allocation3 + $0x7c] sm:$0xf]  ;;  %v16489_v59 = vld [vmem:[#allocation3 + $0x80] sm:$0x1] }
 0x38a   : > { %17837 = vst [vmem:[#allocation39_spill] sm:$0xff] %v16467_v36  ;;  %v11393_v38 = vcombine.low %v9502_v9, %v9512_v5  ;;  %12332 = vmatprep.mubr.msk.bf16.mxu1 %vm1241_vm5, %v12534_v49  ;;  %v9551_v43 = vshrl.u32 %v16461_v33, 16  ;;  %v9540_v6 = vrot.slane %v9538_v41, 4  ;;  %v9543_v31 = vrot.slane %v9541_v46, 5  ;;  %v6570_v49 = vpop.f32.mrf.mxu1 }
 0x38b   : > { %v9531_v13 = vrot.slane %v9530_v14, 4  ;;  %v9557_v62 = vshll.u32 %v16469_v57, 16  ;;  %v9526_v56 = vsel %vm12900_vm9, %v9521_v20, %v9525_v28  ;;  %v9549_v51 = vrot.slane %v9547_v1, 5  ;;  %v16494_v20 = vpop.f32.mrf.mxu0 }
 0x38c   : > { %12367 = vmatmul.mubr.msk.bf16.gmra.mxu0 %vm1241_vm5, %v11393_v38  ;;  %v9553_v50 = vrot.slane %v9551_v43, 4  ;;  %v16487_v9 = vadd.f32 %v16307_v30, %v16425_v19  ;;  %v9544_v14 = vor.u32 %v9543_v31, %v9540_v6  ;;  %v9562_v46 = vshrl.u32 %v9345_v23, 16  ;;  %v12536_v31 = vld [vmem:[#allocation3 + $0x60] sm:$0xff]  }
 0x38d   : > { %v9536_v5 = vsel %vm12900_vm9, %v9531_v13, %v9535_v0  ;;  %v9559_v41 = vrot.slane %v9557_v62, 5  ;;  %v9565_v16 = vshll.u32 %v9345_v23, 16  ;;  %v9571_v28 = vshll.u32 %v16480_v42, 16  ;;  %v16503_v62 = vld [vmem:[#allocation3 + $0x88] sm:$0xf] }
 0x38e   : > { %17838 = vst [vmem:[#allocation35_spill] sm:$0xff] %v16487_v9  ;;  %v11394_v36 = vcombine.low %v9526_v56, %v9536_v5  ;;  %v9554_v38 = vor.u32 %v9553_v50, %v9549_v51  ;;  %v9545_v1 = vrot.slane %v9544_v14, 4  ;;  %v9564_v30 = vrot.slane %v9562_v46, 4  ;;  %v9348_v9 = vld [vmem:[#allocation3 + $0x84] sm:$0xf]  ;;  %17840 = vst [vmem:[#allocation13_spill] sm:$0xff] %v16503_v62 }
 0x38f   : > { %v9575_v19 = vshrl.u32 %v16480_v42, 16  ;;  %v9581_v43 = vshll.u32 %v16489_v59, 16  ;;  %v9567_v13 = vrot.slane %v9565_v16, 5  ;;  %v9573_v6 = vrot.slane %v9571_v28, 5  ;;  %v16511_v16 = vld [vmem:[#allocation3 + $0x8c] sm:$0x1] }
 0x390   : > { %12370 = vmatprep.mubr.msk.bf16.mxu0 %vm1241_vm5, %v11394_v36  ;;  %v9555_v0 = vrot.slane %v9554_v38, 4  ;;  %v16501_v23 = vadd.f32 %v16329_v7, %v16447_v3  ;;  %v12134_v56 = vpop.f32.mrf.mxu1  ;;  %v9550_v50 = vsel %vm12900_vm9, %v9545_v1, %v9549_v51  ;;  %v16509_v36 = vadd.f32 %v16341_v12, %v12131_v26  ;;  %17842 = vst [vmem:[#allocation16_spill] sm:$0xff] %v16511_v16  ;;  %v9351_v26 = vld [vmem:[#allocation3 + $0x90] sm:$0xf] }
 0x391   : > { %12333 = vmatmul.mubr.msk.bf16.gmra.mxu1 %vm1241_vm5, %v12535_v37  ;;  %v9577_v5 = vrot.slane %v9575_v19, 4  ;;  %v9583_v14 = vrot.slane %v9581_v43, 5  ;;  %v9568_v7 = vor.u32 %v9567_v13, %v9564_v30  ;;  %v16517_v3 = vadd.f32 %v16353_v34, %v6570_v49  ;;  %v16519_v28 = vpop.f32.mrf.mxu0 }
 0x392   : > { %17839 = vst [vmem:[#allocation40_spill] sm:$0xff] %v16501_v23  ;;  %17841 = vst [vmem:[#allocation11_spill] sm:$0xff] %v16509_v36  ;;  %v9560_v46 = vsel %vm12900_vm9, %v9555_v0, %v9559_v41  ;;  %12336 = vmatprep.mubr.msk.bf16.mxu1 %vm1241_vm5, %v12536_v31  ;;  %v9586_v38 = vshrl.u32 %v9348_v9, 16  ;;  %v6583_v51 = vpop.f32.mrf.mxu1  ;;  %v9589_v19 = vshll.u32 %v9348_v9, 16  ;;  %v9595_v12 = vshll.u32 %v16503_v62, 16 }
 0x393   : > { %17843 = vst [vmem:[#allocation30_spill] sm:$0xff] %v16517_v3  ;;  %v11395_v37 = vcombine.low %v9550_v50, %v9560_v46  ;;  %v9578_v1 = vor.u32 %v9577_v5, %v9573_v6  ;;  %v9569_v43 = vrot.slane %v9568_v7, 4  ;;  %v9599_v41 = vshrl.u32 %v16503_v62, 16  ;;  %v16524_v0 = vld [vmem:[#allocation3 + $0x94] sm:$0xf]  ;;  %v16526_v49 = vpop.f32.mrf.mxu0 }
 0x394   : > { %v9588_v36 = vrot.slane %v9586_v38, 4  ;;  %v9605_v30 = vshll.u32 %v16511_v16, 16  ;;  %17844 = vst [vmem:[#allocation12_spill] sm:$0xff] %v16524_v0  ;;  %v12135_v34 = vpop.f32.mrf.mxu1  ;;  %v9591_v31 = vrot.slane %v9589_v19, 5  ;;  %v9597_v50 = vrot.slane %v9595_v12, 5 }
 0x395   : > { %12371 = vmatmul.mubr.msk.bf16.gmra.mxu0 %vm1241_vm5, %v11395_v37  ;;  %v9579_v13 = vrot.slane %v9578_v1, 4  ;;  %v16530_v9 = vadd.f32 %v16371_v15, %v12134_v56  ;;  %v9574_v5 = vsel %vm12900_vm9, %v9569_v43, %v9573_v6  ;;  %v9601_v46 = vrot.slane %v9599_v41, 4  ;;  %v16534_v38 = vld [vmem:[#allocation3 + $0x98] sm:$0x1]  ;;  %v16536_v23 = vpop.f32.mrf.mxu0  ;;  %v12537_v1 = vld [vmem:[#allocation3 + $0x6c] sm:$0xff]  }
 0x396   : > { %v9607_v7 = vrot.slane %v9605_v30, 5  ;;  %17846 = vst [vmem:[#allocation27_spill] sm:$0xff] %v16534_v38  ;;  %v9610_v3 = vshrl.u32 %v9351_v26, 16  ;;  %v9592_v37 = vor.u32 %v9591_v31, %v9588_v36  ;;  %v9613_v19 = vshll.u32 %v9351_v26, 16  ;;  %v12538_v43 = vld [vmem:[#allocation3 + $0x78] sm:$0xff]   ;;  %v6586_v41 = vpop.f32.mrf.mxu1 }
 0x397   : > { %17845 = vst [vmem:[#allocation21_spill] sm:$0xff] %v16530_v9  ;;  %v9584_v16 = vsel %vm12900_vm9, %v9579_v13, %v9583_v14  ;;  %v9619_v12 = vshll.u32 %v16524_v0, 16  ;;  %v9602_v56 = vor.u32 %v9601_v46, %v9597_v50  ;;  %v9623_v6 = vshrl.u32 %v16524_v0, 16  ;;  %v16542_v30 = vpop.f32.mrf.mxu0  ;;  %v9354_v36 = vld [vmem:[#allocation3 + $0x9c] sm:$0xf] }
 0x398   : > { %v11396_v15 = vcombine.low %v9574_v5, %v9584_v16  ;;  %v9612_v9 = vrot.slane %v9610_v3, 4  ;;  %v9593_v8 = vrot.slane %v9592_v37, 4  ;;  %v9615_v62 = vrot.slane %v9613_v19, 5  ;;  %v16554_v31 = vld [vmem:[#allocation3 + $0xa0] sm:$0xf] }
 0x399   : > { %12337 = vmatmul.mubr.msk.bf16.gmra.mxu1 %vm1241_vm5, %v12537_v1  ;;  %v9621_v21 = vrot.slane %v9619_v12, 5  ;;  %v9629_v14 = vshll.u32 %v16534_v38, 16  ;;  %v9603_v26 = vrot.slane %v9602_v56, 4  ;;  %v9625_v16 = vrot.slane %v9623_v6, 4  ;;  %17849 = vst [vmem:[#allocation15_spill] sm:$0xff] %v16554_v31 }
 0x39a   : > { %12374 = vmatprep.mubr.msk.bf16.mxu0 %vm1241_vm5, %v11396_v15  ;;  %12340 = vmatprep.mubr.msk.bf16.mxu1 %vm1241_vm5, %v12538_v43  ;;  %v16549_v3 = vadd.f32 %v16385_v27, %v6583_v51  ;;  %v16552_v13 = vadd.f32 %v16403_v53, %v12135_v34  ;;  %v9598_v5 = vsel %vm12900_vm9, %v9593_v8, %v9597_v50  ;;  %v16561_v19 = vld [vmem:[#allocation3 + $0xa4] sm:$0x1]  ;;  %v9634_v53 = vshrl.u32 %v9354_v36, 16  ;;  %v9357_v50 = vld [vmem:[#allocation3 + $0xa8] sm:$0xf] }
 0x39b   : > { %v9616_v46 = vor.u32 %v9615_v62, %v9612_v9  ;;  %v9631_v37 = vrot.slane %v9629_v14, 5  ;;  %v16559_v1 = vadd.f32 %v16427_v29, %v6586_v41  ;;  %17851 = vst [vmem:[#allocation33_spill] sm:$0xff] %v16561_v19  ;;  %v16563_v12 = vpop.f32.mrf.mxu0  ;;  %v9608_v27 = vsel %vm12900_vm9, %v9603_v26, %v9607_v7 }
 0x39c   : > { %17847 = vst [vmem:[#allocation24_spill] sm:$0xff] %v16549_v3  ;;  %17848 = vst [vmem:[#allocation32_spill] sm:$0xff] %v16552_v13  ;;  %v9626_v51 = vor.u32 %v9625_v16, %v9621_v21  ;;  %v9637_v34 = vshll.u32 %v9354_v36, 16  ;;  %v12138_v15 = vpop.f32.mrf.mxu1  ;;  %v11397_v56 = vcombine.low %v9598_v5, %v9608_v27  ;;  %v9643_v8 = vshll.u32 %v16554_v31, 16  ;;  %v16580_v27 = vld [vmem:[#allocation3 + $0xb0] sm:$0x1] }
 0x39d   : > { %17850 = vst [vmem:[#allocation25_spill] sm:$0xff] %v16559_v1  ;;  %v9617_v6 = vrot.slane %v9616_v46, 4  ;;  %v9647_v62 = vshrl.u32 %v16554_v31, 16  ;;  %v16569_v29 = vpop.f32.mrf.mxu0  ;;  %v9636_v43 = vrot.slane %v9634_v53, 4  ;;  %v9653_v14 = vshll.u32 %v16561_v19, 16  ;;  %v12539_v46 = vld [vmem:[#allocation3 + $0x84] sm:$0xff]  }
 0x39e   : > { %v9627_v9 = vrot.slane %v9626_v51, 4  ;;  %v9639_v41 = vrot.slane %v9637_v34, 5  ;;  %v16572_v1 = vld [vmem:[#allocation3 + $0xac] sm:$0xf]  ;;  %v6599_v7 = vpop.f32.mrf.mxu1  ;;  %12375 = vmatmul.mubr.msk.bf16.gmra.mxu0 %vm1241_vm5, %v11397_v56  ;;  %v9645_v26 = vrot.slane %v9643_v8, 5  ;;  %v16578_v5 = vadd.f32 %v16449_v58, %v12138_v15  ;;  %17854 = vst [vmem:[#allocation14_spill] sm:$0xff] %v16580_v27 }
 0x39f   : > { %17852 = vst [vmem:[#allocation36_spill] sm:$0xff] %v16572_v1  ;;  %v9622_v36 = vsel %vm12900_vm9, %v9617_v6, %v9621_v21  ;;  %v9649_v16 = vrot.slane %v9647_v62, 4  ;;  %v16582_v51 = vpop.f32.mrf.mxu0  ;;  %v9655_v13 = vrot.slane %v9653_v14, 5  ;;  %v9658_v3 = vshrl.u32 %v9357_v50, 16  ;;  %v12540_v56 = vld [vmem:[#allocation3 + $0x90] sm:$0xff]  }
 0x3a0   : > { %17853 = vst [vmem:[#allocation26_spill] sm:$0xff] %v16578_v5  ;;  %v9632_v53 = vsel %vm12900_vm9, %v9627_v9, %v9631_v37  ;;  %v9640_v34 = vor.u32 %v9639_v41, %v9636_v43  ;;  %v12139_v19 = vpop.f32.mrf.mxu1  ;;  %v9661_v6 = vshll.u32 %v9357_v50, 16  ;;  %v9667_v58 = vshll.u32 %v16572_v1, 16  ;;  %v9360_v43 = vld [vmem:[#allocation3 + $0xb4] sm:$0xf] }
 0x3a1   : > { %v11398_v31 = vcombine.low %v9622_v36, %v9632_v53  ;;  %v9650_v21 = vor.u32 %v9649_v16, %v9645_v26  ;;  %12341 = vmatmul.mubr.msk.bf16.gmra.mxu1 %vm1241_vm5, %v12539_v46  ;;  %v16588_v15 = vpop.f32.mrf.mxu0  ;;  %v9660_v62 = vrot.slane %v9658_v3, 4  ;;  %v9671_v5 = vshrl.u32 %v16572_v1, 16  ;;  %v16597_v16 = vld [vmem:[#allocation3 + $0xb8] sm:$0xf] }
 0x3a2   : > { %v9641_v8 = vrot.slane %v9640_v34, 4  ;;  %v9677_v37 = vshll.u32 %v16580_v27, 16  ;;  %12344 = vmatprep.mubr.msk.bf16.mxu1 %vm1241_vm5, %v12540_v56  ;;  %v6602_v9 = vpop.f32.mrf.mxu1  ;;  %v9663_v14 = vrot.slane %v9661_v6, 5  ;;  %v9669_v36 = vrot.slane %v9667_v58, 5  ;;  %17856 = vst [vmem:[#allocation17_spill] sm:$0xff] %v16597_v16 }
 0x3a3   : > { %12378 = vmatprep.mubr.msk.bf16.mxu0 %vm1241_vm5, %v11398_v31  ;;  %v9651_v41 = vrot.slane %v9650_v21, 4  ;;  %v16595_v50 = vadd.f32 %v16459_v55, %v6599_v7  ;;  %v16599_v46 = vpop.f32.mrf.mxu0  ;;  %v9673_v53 = vrot.slane %v9671_v5, 4  ;;  %v16604_v56 = vadd.f32 %v16477_v17, %v12139_v19  ;;  %v16606_v27 = vld [vmem:[#allocation3 + $0xbc] sm:$0x1]  ;;  %v9363_v19 = vld [vmem:[#allocation3 + $0xc0] sm:$0xf] }
 0x3a4   : > { %v9646_v3 = vsel %vm12900_vm9, %v9641_v8, %v9645_v26  ;;  %v9679_v34 = vrot.slane %v9677_v37, 5  ;;  %17858 = vst [vmem:[#allocation22_spill] sm:$0xff] %v16606_v27  ;;  %v9664_v21 = vor.u32 %v9663_v14, %v9660_v62  ;;  %v16611_v55 = vadd.f32 %v16494_v20, %v6602_v9  ;;  %v12541_v17 = vld [vmem:[#allocation3 + $0x9c] sm:$0xff]   ;;  %v16618_v62 = vld [vmem:[#allocation3 + $0xc4] sm:$0xf] }
 0x3a5   : > { %17855 = vst [vmem:[#allocation31_spill] sm:$0xff] %v16595_v50  ;;  %17857 = vst [vmem:[#allocation20_spill] sm:$0xff] %v16604_v56  ;;  %v9656_v31 = vsel %vm12900_vm9, %v9651_v41, %v9655_v13  ;;  %v9682_v7 = vshrl.u32 %v9360_v43, 16  ;;  %v16613_v6 = vpop.f32.mrf.mxu0  ;;  %v9674_v50 = vor.u32 %v9673_v53, %v9669_v36  ;;  %v9685_v26 = vshll.u32 %v9360_v43, 16 }
 0x3a6   : > { %17859 = vst [vmem:[#allocation23_spill] sm:$0xff] %v16611_v55  ;;  %v11399_v58 = vcombine.low %v9646_v3, %v9656_v31  ;;  %v9691_v5 = vshll.u32 %v16597_v16, 16  ;;  %v12142_v8 = vpop.f32.mrf.mxu1  ;;  %v9665_v37 = vrot.slane %v9664_v21, 4  ;;  %v9695_v1 = vshrl.u32 %v16597_v16, 16  ;;  %v12542_v3 = vld [vmem:[#allocation3 + $0xa8] sm:$0xff]  }
 0x3a7   : > { %v9684_v56 = vrot.slane %v9682_v7, 4  ;;  %v9701_v13 = vshll.u32 %v16606_v27, 16  ;;  %v16620_v20 = vpop.f32.mrf.mxu0  ;;  %v9675_v9 = vrot.slane %v9674_v50, 4  ;;  %v9687_v41 = vrot.slane %v9685_v26, 5  ;;  %v16629_v55 = vld [vmem:[#allocation3 + $0xc8] sm:$0x1] }
 0x3a8   : > { %12379 = vmatmul.mubr.msk.bf16.gmra.mxu0 %vm1241_vm5, %v11399_v58  ;;  %v9693_v43 = vrot.slane %v9691_v5, 5  ;;  %v16624_v14 = vadd.f32 %v16519_v28, %v12142_v8  ;;  %v6615_v53 = vpop.f32.mrf.mxu1  ;;  %v9670_v31 = vsel %vm12900_vm9, %v9665_v37, %v9669_v36  ;;  %v9697_v21 = vrot.slane %v9695_v1, 4 }
 0x3a9   : > { %v9703_v7 = vrot.slane %v9701_v13, 5  ;;  %12345 = vmatmul.mubr.msk.bf16.gmra.mxu1 %vm1241_vm5, %v12541_v17  ;;  %v9706_v27 = vshrl.u32 %v9363_v19, 16  ;;  %v16631_v16 = vpop.f32.mrf.mxu0  ;;  %v9680_v50 = vsel %vm12900_vm9, %v9675_v9, %v9679_v34  ;;  %v9688_v58 = vor.u32 %v9687_v41, %v9684_v56 }
 0x3aa   : > { %17860 = vst [vmem:[#allocation29_spill] sm:$0xff] %v16624_v14  ;;  %v9709_v28 = vshll.u32 %v9363_v19, 16  ;;  %v9715_v26 = vshll.u32 %v16618_v62, 16  ;;  %12348 = vmatprep.mubr.msk.bf16.mxu1 %vm1241_vm5, %v12542_v3  ;;  %v12143_v5 = vpop.f32.mrf.mxu1  ;;  %v11400_v36 = vcombine.low %v9670_v31, %v9680_v50  ;;  %v9698_v1 = vor.u32 %v9697_v21, %v9693_v43  ;;  %v10047_v3 = vld [vmem:[#allocation3 + $0x18] sm:$0xe] }
 0x3ab   : > { %v9708_v8 = vrot.slane %v9706_v27, 4  ;;  %v9719_v17 = vshrl.u32 %v16618_v62, 16  ;;  %v16638_v37 = vpop.f32.mrf.mxu0  ;;  %v9689_v13 = vrot.slane %v9688_v58, 4  ;;  %v9725_v0 = vshll.u32 %v16629_v55, 16 }
 0x3ac   : > { %v9711_v14 = vrot.slane %v9709_v28, 5  ;;  %v9717_v38 = vrot.slane %v9715_v26, 5  ;;  %v6618_v34 = vpop.f32.mrf.mxu1  ;;  %12382 = vmatprep.mubr.msk.bf16.mxu0 %vm1241_vm5, %v11400_v36  ;;  %v9699_v56 = vrot.slane %v9698_v1, 4  ;;  %v16643_v9 = vadd.f32 %v16526_v49, %v6615_v53  ;;  %v9366_v28 = vld [vmem:[#allocation3 + $0xcc] sm:$0xf] }
 0x3ad   : > { %v9721_v19 = vrot.slane %v9719_v17, 4  ;;  %v16646_v41 = vadd.f32 %v16536_v23, %v12143_v5  ;;  %v16648_v27 = vpop.f32.mrf.mxu0  ;;  %v9694_v31 = vsel %vm12900_vm9, %v9689_v13, %v9693_v43  ;;  %v16653_v50 = vadd.f32 %v16542_v30, %v6618_v34  ;;  %v12543_v5 = vld [vmem:[#allocation3 + $0xb4] sm:$0xff]   ;;  %v16660_v36 = vld [vmem:[#allocation3 + $0xd0] sm:$0xf] }
 0x3ae   : > { %v9712_v21 = vor.u32 %v9711_v14, %v9708_v8  ;;  %v12146_v58 = vpop.f32.mrf.mxu1  ;;  %v9704_v26 = vsel %vm12900_vm9, %v9699_v56, %v9703_v7  ;;  %v9727_v53 = vrot.slane %v9725_v0, 5  ;;  %v12544_v8 = vld [vmem:[#allocation3 + $0xc0] sm:$0xff]   ;;  %v11420_v17 = vrot.slane %v10047_v3, 9 }
 0x3af   : > { %v9722_v49 = vor.u32 %v9721_v19, %v9717_v38  ;;  %v16658_v23 = vadd.f32 %v16563_v12, %v12146_v58  ;;  %v16662_v1 = vpop.f32.mrf.mxu0  ;;  %v11401_v43 = vcombine.low %v9694_v31, %v9704_v26  ;;  %v10113_v13 = vrot.slane %v16287_v54, 5 }
 0x3b0   : > { %v9713_v14 = vrot.slane %v9712_v21, 4  ;;  %v6631_v30 = vpop.f32.mrf.mxu1  ;;  %v9730_v12 = vshrl.u32 %v9366_v28, 16  ;;  %v9733_v7 = vshll.u32 %v9366_v28, 16  ;;  %v10116_v54 = vrot.slane %v16293_v10, 5  ;;  %v16676_v21 = vld [vmem:[#allocation3 + $0xd4] sm:$0x1] }
 0x3b1   : > { %17861 = vst [vmem:[#allocation41_spill] sm:$0xff] %v16658_v23  ;;  %v9723_v34 = vrot.slane %v9722_v49, 4  ;;  %12349 = vmatmul.mubr.msk.bf16.gmra.mxu1 %vm1241_vm5, %v12543_v5  ;;  %v16667_v0 = vadd.f32 %v16569_v29, %v6631_v30  ;;  %v16669_v56 = vpop.f32.mrf.mxu0  ;;  %12383 = vmatmul.mubr.msk.bf16.gmra.mxu0 %vm1241_vm5, %v11401_v43  ;;  %v10115_v31 = vrot.slane %v10113_v13, 4  ;;  %v9739_v29 = vshll.u32 %v16660_v36, 16  ;;  %v10048_v30 = vld [vmem:[#allocation3 + $0x24] sm:$0xe] }
 0x3b2   : > { %v9718_v19 = vsel %vm12900_vm9, %v9713_v14, %v9717_v38  ;;  %12352 = vmatprep.mubr.msk.bf16.mxu1 %vm1241_vm5, %v12544_v8  ;;  %v12147_v3 = vpop.f32.mrf.mxu1  ;;  %v9732_v26 = vrot.slane %v9730_v12, 4  ;;  %v9735_v49 = vrot.slane %v9733_v7, 5  ;;  %v9743_v8 = vshrl.u32 %v16660_v36, 16 }
 0x3b3   : > { %17862 = vst [vmem:[#allocation38_spill] sm:$0xff] %v16667_v0  ;;  %v9728_v58 = vsel %vm12900_vm9, %v9723_v34, %v9727_v53  ;;  %v16682_v28 = vadd.f32 %v16582_v51, %v12147_v3  ;;  %v16684_v5 = vpop.f32.mrf.mxu0  ;;  %v10117_v14 = vsel %vm13251_vm15, %v10115_v31, %v10116_v54  ;;  %v9741_v10 = vrot.slane %v9739_v29, 5  ;;  %v12545_v53 = vld [vmem:[#allocation3 + $0xcc] sm:$0xff]  }
 0x3b4   : > { %v11402_v38 = vcombine.low %v9718_v19, %v9728_v58  ;;  %v6634_v43 = vpop.f32.mrf.mxu1  ;;  %v10114_v51 = vsel %vm13251_vm15, %v11420_v17, %v10113_v13  ;;  %v9736_v34 = vor.u32 %v9735_v49, %v9732_v26  ;;  %v9749_v12 = vshll.u32 %v16676_v21, 16  ;;  %v10049_v29 = vld [vmem:[#allocation3 + $0x30] sm:$0xe] }
 0x3b5   : > { %17863 = vst [vmem:[#allocation37_spill] sm:$0xff] %v16682_v28  ;;  %v16690_v0 = vadd.f32 %v16588_v15, %v6634_v43  ;;  %v16695_v7 = vpop.f32.mrf.mxu0  ;;  %v16699_v19 = vadd.f32 %v16227_v22, %v16339_v2  ;;  %v11437_v31 = vcombine.low %v10114_v51, %v10117_v14  ;;  %v9745_v54 = vrot.slane %v9743_v8, 4  ;;  %v10050_v14 = vld [vmem:[#allocation3 + $0x3c] sm:$0xe]  ;;  %v17884_v28 = vld [vmem:[#allocation11_spill] sm:$0xff] }
 0x3b6   : > { %12386 = vmatprep.mubr.msk.bf16.mxu0 %vm1241_vm5, %v11402_v38  ;;  %v12150_v3 = vpop.f32.mrf.mxu1  ;;  %v10120_v15 = vrot.slane %v16315_v60, 5  ;;  %v9737_v17 = vrot.slane %v9736_v34, 4  ;;  %v11421_v13 = vrot.slane %v10048_v30, 9  ;;  %v10123_v26 = vrot.slane %v16325_v25, 5 }
 0x3b7   : > { %17864 = vst [vmem:[#allocation42_spill] sm:$0xff] %v16690_v0  ;;  %v16704_v58 = vadd.f32 %v16599_v46, %v12150_v3  ;;  %v16707_v49 = vpop.f32.mrf.mxu0  ;;  %v9746_v22 = vor.u32 %v9745_v54, %v9741_v10  ;;  %v9751_v2 = vrot.slane %v9749_v12, 5  ;;  %v10127_v38 = vrot.slane %v16348_v45, 5  ;;  %v10051_v12 = vld [vmem:[#allocation3 + $0x48] sm:$0xe] }
 0x3b8   : > { %v6647_v43 = vpop.f32.mrf.mxu1  ;;  %v10122_v0 = vrot.slane %v10120_v15, 4  ;;  %v9742_v46 = vsel %vm12900_vm9, %v9737_v17, %v9741_v10  ;;  %v10121_v25 = vsel %vm13251_vm15, %v11421_v13, %v10120_v15  ;;  %v11422_v8 = vrot.slane %v10049_v29, 9 }
 0x3b9   : > { %17865 = vst [vmem:[#allocation43_spill] sm:$0xff] %v16704_v58  ;;  %12353 = vmatmul.mubr.msk.bf16.gmra.mxu1 %vm1241_vm5, %v12545_v53  ;;  %v16712_v60 = vadd.f32 %v16613_v6, %v6647_v43  ;;  %v16718_v30 = vpop.f32.mrf.mxu0  ;;  %v9747_v51 = vrot.slane %v9746_v22, 4  ;;  %v10129_v53 = vrot.slane %v10127_v38, 4  ;;  %v10130_v6 = vrot.slane %v16358_v48, 5 }
 0x3ba   : > { %12392 = vmatprep.mubr.msk.bf16.mxu1 %vm1241_vm5, %v11437_v31  ;;  %v12151_v34 = vpop.f32.mrf.mxu1  ;;  %v10124_v45 = vsel %vm13251_vm15, %v10122_v0, %v10123_v26  ;;  %v10128_v10 = vsel %vm13251_vm15, %v11422_v8, %v10127_v38  ;;  %v11423_v15 = vrot.slane %v10050_v14, 9  ;;  %v10134_v31 = vrot.slane %v16364_v63, 5  ;;  %v10052_v63 = vld [vmem:[#allocation3 + $0x54] sm:$0xe] }
 0x3bb   : > { %17866 = vst [vmem:[#allocation44_spill] sm:$0xff] %v16712_v60  ;;  %v16725_v3 = vadd.f32 %v16620_v20, %v12151_v34  ;;  %v16729_v54 = vpop.f32.mrf.mxu0  ;;  %v9752_v29 = vsel %vm12900_vm9, %v9747_v51, %v9751_v2  ;;  %v11438_v0 = vcombine.low %v10121_v25, %v10124_v45  ;;  %v10131_v48 = vsel %vm13251_vm15, %v10129_v53, %v10130_v6  ;;  %v10053_v51 = vld [vmem:[#allocation3 + $0x60] sm:$0xe] }
 0x3bc   : > { %v6650_v17 = vpop.f32.mrf.mxu1  ;;  %v10141_v13 = vrot.slane %v16381_v40, 5  ;;  %v11403_v20 = vcombine.low %v9742_v46, %v9752_v29  ;;  %v10137_v43 = vrot.slane %v16373_v11, 5  ;;  %v11424_v38 = vrot.slane %v10051_v12, 9  ;;  %v10054_v29 = vld [vmem:[#allocation3 + $0x6c] sm:$0xe] }
 0x3bd   : > { %17867 = vst [vmem:[#allocation45_spill] sm:$0xff] %v16725_v3  ;;  %v16738_v26 = vadd.f32 %v16631_v16, %v6650_v17  ;;  %v16741_v22 = vpop.f32.mrf.mxu0  ;;  %v11439_v32 = vcombine.low %v10128_v10, %v10131_v48  ;;  %v10136_v2 = vrot.slane %v10134_v31, 4  ;;  %v10144_v25 = vrot.slane %v16395_v39, 5 }
 0x3be   : > { %v12190_v14 = vpop.f32.mrf.mxu1  ;;  %v10143_v8 = vrot.slane %v10141_v13, 4  ;;  %12387 = vmatmul.mubr.msk.bf16.gmra.mxu0 %vm1241_vm5, %v11403_v20  ;;  %v10135_v16 = vsel %vm13251_vm15, %v11423_v15, %v10134_v31  ;;  %v10142_v11 = vsel %vm13251_vm15, %v11424_v38, %v10141_v13  ;;  %v10148_v34 = vrot.slane %v16415_v47, 5 }
 0x3bf   : > { %17868 = vst [vmem:[#allocation46_spill] sm:$0xff] %v16738_v26  ;;  %v16746_v40 = vadd.f32 %v12190_v14, %v16392_v35  ;;  %v16752_v46 = vpop.f32.mrf.mxu0  ;;  %v10138_v39 = vsel %vm13251_vm15, %v10136_v2, %v10137_v43  ;;  %v11425_v6 = vrot.slane %v10052_v63, 9  ;;  %v10155_v35 = vrot.slane %v16433_v44, 5  ;;  %v10055_v43 = vld [vmem:[#allocation3 + $0x78] sm:$0xe] }
 0x3c0   : > { %v7249_v45 = vpop.f32.mrf.mxu1  ;;  %v10145_v53 = vsel %vm13251_vm15, %v10143_v8, %v10144_v25  ;;  %v11440_v10 = vcombine.low %v10135_v16, %v10138_v39  ;;  %v10151_v47 = vrot.slane %v16423_v52, 5  ;;  %v11426_v31 = vrot.slane %v10053_v51, 9 }
 0x3c1   : > { %12393 = vmatmul.mubr.msk.bf16.vlgmr.msra.gmra.mxu1 %vm1241_vm5, %v11438_v0  ;;  %v16762_v12 = vadd.f32 %v7249_v45, %v16413_v24  ;;  %v16764_v15 = vpop.f32.mrf.mxu0  ;;  %v11441_v48 = vcombine.low %v10142_v11, %v10145_v53  ;;  %v10150_v13 = vrot.slane %v10148_v34, 4  ;;  %v10157_v20 = vrot.slane %v10155_v35, 4  ;;  %v10056_v11 = vld [vmem:[#allocation3 + $0x84] sm:$0xe] }
 0x3c2   : > { %12396 = vmatprep.mubr.msk.bf16.mxu1 %vm1241_vm5, %v11439_v32  ;;  %v12191_v17 = vpop.f32.mrf.mxu1  ;;  %v10158_v44 = vrot.slane %v16441_v61, 5  ;;  %v16776_v38 = vsel %vm13251_vm15, %v11425_v6, %v10148_v34  ;;  %v16780_v52 = vsel %vm13251_vm15, %v11426_v31, %v10155_v35  ;;  %v10162_v63 = vrot.slane %v16461_v33, 5  ;;  %v17869_v6 = vld [vmem:[#allocation34_spill] sm:$0xff] }
 0x3c3   : > { %v16770_v0 = vadd.f32 %v12191_v17, %v16421_v18  ;;  %v16772_v24 = vpop.f32.mrf.mxu0  ;;  %v16785_v61 = vsel %vm13251_vm15, %v10150_v13, %v10151_v47  ;;  %v11427_v32 = vrot.slane %v10054_v29, 9  ;;  %v10169_v2 = vrot.slane %v16480_v42, 5  ;;  %v17870_v29 = vld [vmem:[#allocation13_spill] sm:$0xff]  ;;  %v10057_v13 = vld [vmem:[#allocation3 + $0x90] sm:$0xe] }
 0x3c4   : > { %v7252_v14 = vpop.f32.mrf.mxu1  ;;  %v16789_v18 = vsel %vm13251_vm15, %v10157_v20, %v10158_v44  ;;  %v11442_v25 = vcombine.low %v16776_v38, %v16785_v61  ;;  %v11428_v16 = vrot.slane %v10055_v43, 9  ;;  %v10164_v45 = vrot.slane %v10162_v63, 4  ;;  %v17871_v43 = vld [vmem:[#allocation12_spill] sm:$0xff]  ;;  %v17878_v61 = vld [vmem:[#allocation15_spill] sm:$0xff] }
 0x3c5   : > { %v16793_v8 = vadd.f32 %v7252_v14, %v16699_v19  ;;  %v16797_v51 = vpop.f32.mrf.mxu0  ;;  %v11443_v33 = vcombine.low %v16780_v52, %v16789_v18  ;;  %v10165_v39 = vrot.slane %v16469_v57, 5  ;;  %v10171_v53 = vrot.slane %v10169_v2, 4  ;;  %v17872_v52 = vld [vmem:[#allocation28_spill] sm:$0xff] }
 0x3c6   : > { %v12194_v34 = vpop.f32.mrf.mxu1  ;;  %v10172_v42 = vrot.slane %v16489_v59, 5  ;;  %v16810_v47 = vsel %vm13251_vm15, %v11427_v32, %v10162_v63  ;;  %v16814_v31 = vsel %vm13251_vm15, %v11428_v16, %v10169_v2  ;;  %v10176_v17 = vrot.slane %v17870_v29, 5  ;;  %v17873_v32 = vld [vmem:[#allocation16_spill] sm:$0xff]  ;;  %v17877_v29 = vld [vmem:[#allocation39_spill] sm:$0xff] }
 0x3c7   : > { %v16804_v19 = vadd.f32 %v12194_v34, %v17869_v6  ;;  %v16806_v35 = vpop.f32.mrf.mxu0  ;;  %v16819_v59 = vsel %vm13251_vm15, %v10164_v45, %v10165_v39  ;;  %v11429_v44 = vrot.slane %v10056_v11, 9  ;;  %v10183_v38 = vrot.slane %v17871_v43, 5  ;;  %v17874_v39 = vld [vmem:[#allocation27_spill] sm:$0xff] }
 0x3c8   : > { %v7265_v57 = vpop.f32.mrf.mxu1  ;;  %v16823_v20 = vsel %vm13251_vm15, %v10171_v53, %v10172_v42  ;;  %v10179_v2 = vrot.slane %v17873_v32, 5  ;;  %v10178_v11 = vrot.slane %v10176_v17, 4  ;;  %v11430_v34 = vrot.slane %v10057_v13, 9  ;;  %v17875_v53 = vld [vmem:[#allocation18_spill] sm:$0xff]  ;;  %v17876_v42 = vld [vmem:[#allocation19_spill] sm:$0xff] }
 0x3c9   : > { %12397 = vmatmul.mubr.msk.bf16.gmra.mxu1 %vm1241_vm5, %v11440_v10  ;;  %v7380_v63 = vadd.f32 %v7265_v57, %v17872_v52  ;;  %v16828_v14 = vpop.f32.mrf.mxu0  ;;  %v10185_v45 = vrot.slane %v10183_v38, 4  ;;  %v10186_v10 = vrot.slane %v17874_v39, 5  ;;  %v6847_v6 = vadd.f32 %v17876_v42, %v17875_v53  ;;  %v10058_v52 = vld [vmem:[#allocation3 + $0x9c] sm:$0xe]  ;;  %v17879_v42 = vld [vmem:[#allocation33_spill] sm:$0xff] }
 0x3ca   : > { %12400 = vmatprep.mubr.msk.bf16.mxu1 %vm1241_vm5, %v11441_v48  ;;  %v12195_v16 = vpop.f32.mrf.mxu1  ;;  %v10190_v18 = vrot.slane %v17878_v61, 5  ;;  %v16845_v48 = vsel %vm13251_vm15, %v11429_v44, %v10176_v17  ;;  %v16849_v13 = vsel %vm13251_vm15, %v10178_v11, %v10179_v2  ;;  %v16853_v32 = vsel %vm13251_vm15, %v11430_v34, %v10183_v38  ;;  %v17880_v38 = vld [vmem:[#allocation35_spill] sm:$0xff] }
 0x3cb   : > { %v7383_v57 = vadd.f32 %v12195_v16, %v17877_v29  ;;  %v16840_v43 = vpop.f32.mrf.mxu0  ;;  %v16857_v16 = vsel %vm13251_vm15, %v10185_v45, %v10186_v10  ;;  %v11431_v2 = vrot.slane %v10058_v52, 9  ;;  %v10193_v29 = vrot.slane %v17879_v42, 5  ;;  %v10060_v45 = vld [vmem:[#allocation3 + $0xb4] sm:$0xe]  ;;  %v17881_v10 = vld [vmem:[#allocation17_spill] sm:$0xff]  ;;  %v17882_v52 = vld [vmem:[#allocation40_spill] sm:$0xff] }
 0x3cc   : > { %v7268_v26 = vpop.f32.mrf.mxu1  ;;  %v10192_v11 = vrot.slane %v10190_v18, 4 }
 0x3cd   : > { %v7381_v39 = vadd.f32 %v7268_v26, %v6847_v6  ;;  %v16859_v53 = vpop.f32.mrf.mxu0  ;;  %v10204_v26 = vrot.slane %v17881_v10, 5  ;;  %v16872_v60 = vsel %vm13251_vm15, %v11431_v2, %v10190_v18  ;;  %v11433_v10 = vrot.slane %v10060_v45, 9  ;;  %v17883_v18 = vld [vmem:[#allocation22_spill] sm:$0xff] }
 0x3ce   : > { %v12198_v44 = vpop.f32.mrf.mxu1  ;;  %v16876_v17 = vsel %vm13251_vm15, %v10192_v11, %v10193_v29  ;;  %v10207_v2 = vrot.slane %v17883_v18, 5  ;;  %v16903_v45 = vadd.f32 %v16648_v27, %v16762_v12  ;;  %v16920_v27 = vadd.f32 %v16684_v5, %v16804_v19 }
 0x3cf   : > { %v7386_v34 = vadd.f32 %v12198_v44, %v17880_v38  ;;  %v16867_v3 = vpop.f32.mrf.mxu0  ;;  %v11448_v44 = vcombine.low %v16872_v60, %v16876_v17  ;;  %v10206_v58 = vrot.slane %v10204_v26, 4  ;;  %v10214_v60 = vrot.slane %v16629_v55, 5 }
 0x3d0   : > { %v7281_v6 = vpop.f32.mrf.mxu1 }
 0x3d1   : > { %12401 = vmatmul.mubr.msk.bf16.gmra.mxu1 %vm1241_vm5, %v11442_v25  ;;  %v7384_v42 = vadd.f32 %v7281_v6, %v17882_v52  ;;  %v16880_v61 = vpop.f32.mrf.mxu0  ;;  %v16891_v25 = vsel %vm13251_vm15, %v11433_v10, %v10204_v26  ;;  %v16895_v6 = vsel %vm13251_vm15, %v10206_v58, %v10207_v2  ;;  %v16912_v58 = vadd.f32 %v16662_v1, %v16770_v0 }
 0x3d2   : > { %12404 = vmatprep.mubr.msk.bf16.mxu1 %vm1241_vm5, %v11443_v33  ;;  %v12199_v38 = vpop.f32.mrf.mxu1  ;;  %v16899_v33 = vadd.f32 %v16638_v37, %v16746_v40  ;;  %v11450_v26 = vcombine.low %v16891_v25, %v16895_v6  ;;  %v16916_v37 = vadd.f32 %v16669_v56, %v16793_v8  ;;  %v17886_v40 = vld [vmem:[#allocation21_spill] sm:$0xff]  ;;  %v16926_v2 = vadd.f32 %v16695_v7, %v7380_v63 }
 0x3d3   : > { %v7387_v23 = vadd.f32 %v12199_v38, %v17884_v28  ;;  %v16887_v11 = vpop.f32.mrf.mxu0  ;;  %v17885_v28 = vld [vmem:[#allocation30_spill] sm:$0xff]  ;;  %v16932_v1 = vadd.f32 %v16718_v30, %v7381_v39  ;;  %v16935_v56 = vadd.f32 %v16729_v54, %v7386_v34  ;;  %v16938_v5 = vadd.f32 %v16741_v22, %v7384_v42  ;;  %v17891_v34 = vld [vmem:[#allocation25_spill] sm:$0xff] }
 0x3d4   : > { %v7284_v29 = vpop.f32.mrf.mxu1  ;;  %v17887_v7 = vcombine.low %v16810_v47, %v16819_v59  ;;  %v17889_v22 = vcombine.low %v16814_v31, %v16823_v20  ;;  %v17893_v20 = vld [vmem:[#allocation26_spill] sm:$0xff] }
 0x3d5   : > { %v7385_v52 = vadd.f32 %v7284_v29, %v17885_v28  ;;  %v16906_v38 = vpop.f32.mrf.mxu0  ;;  %v16929_v29 = vadd.f32 %v16707_v49, %v7383_v57  ;;  %v16941_v8 = vadd.f32 %v16752_v46, %v7387_v23  ;;  %v17888_v49 = vld [vmem:[#allocation24_spill] sm:$0xff] }
 0x3d6   : > { %v12202_v10 = vpop.f32.mrf.mxu1  ;;  %v17890_v46 = vld [vmem:[#allocation32_spill] sm:$0xff] }
 0x3d7   : > { %v7390_v12 = vadd.f32 %v12202_v10, %v17886_v40  ;;  %v16923_v18 = vpop.f32.mrf.mxu0  ;;  %v16951_v30 = vadd.f32 %v16764_v15, %v7385_v52 }
 0x3d8   : > { %v7297_v0 = vpop.f32.mrf.mxu1 }
 0x3d9   : > { %12405 = vmatmul.mubr.msk.bf16.gmra.mxu1 %vm1241_vm5, %v17887_v7  ;;  %v7388_v19 = vadd.f32 %v7297_v0, %v17888_v49  ;;  %v16948_v63 = vpop.f32.mrf.mxu0  ;;  %v16954_v54 = vadd.f32 %v16772_v24, %v7390_v12  ;;  %v17892_v24 = vld [vmem:[#allocation36_spill] sm:$0xff]  ;;  %v17894_v0 = vcombine.low %v16845_v48, %v16849_v13  ;;  %v17895_v7 = vld [vmem:[#allocation31_spill] sm:$0xff]  ;;  %v17898_v48 = vld [vmem:[#allocation14_spill] sm:$0xff] }
 0x3da   : > { %12408 = vmatprep.mubr.msk.bf16.mxu1 %vm1241_vm5, %v17889_v22  ;;  %v12203_v23 = vpop.f32.mrf.mxu1  ;;  %v10197_v28 = vrot.slane %v17892_v24, 5  ;;  %v10200_v13 = vrot.slane %v17898_v48, 5  ;;  %v10218_v48 = vrot.slane %v16660_v36, 5 }
 0x3db   : > { %v7391_v47 = vadd.f32 %v12203_v23, %v17890_v46  ;;  %v16961_v59 = vpop.f32.mrf.mxu0  ;;  %v16964_v57 = vadd.f32 %v16797_v51, %v7388_v19  ;;  %v10059_v19 = vld [vmem:[#allocation3 + $0xa8] sm:$0xe]  ;;  %v17896_v46 = vcombine.low %v16853_v32, %v16857_v16  ;;  %v10211_v16 = vrot.slane %v16618_v62, 5 }
 0x3dc   : > { %v7300_v39 = vpop.f32.mrf.mxu1  ;;  %v10199_v22 = vrot.slane %v10197_v28, 4 }
 0x3dd   : > { %v7389_v15 = vadd.f32 %v7300_v39, %v17891_v34  ;;  %v16967_v42 = vpop.f32.mrf.mxu0  ;;  %v16971_v52 = vadd.f32 %v16806_v35, %v7391_v47  ;;  %v17897_v47 = vld [vmem:[#allocation20_spill] sm:$0xff] }
 0x3de   : > { %v12206_v31 = vpop.f32.mrf.mxu1 }
 0x3df   : > { %v7394_v10 = vadd.f32 %v12206_v31, %v17893_v20  ;;  %v16974_v40 = vpop.f32.mrf.mxu0  ;;  %v16977_v12 = vadd.f32 %v16828_v14, %v7389_v15  ;;  %v11432_v31 = vrot.slane %v10059_v19, 9  ;;  %v17899_v20 = vld [vmem:[#allocation23_spill] sm:$0xff] }
 0x3e0   : > { %v7313_v51 = vpop.f32.mrf.mxu1 }
 0x3e1   : > { %12409 = vmatmul.mubr.msk.bf16.gmra.mxu1 %vm1241_vm5, %v17894_v0  ;;  %v7392_v49 = vadd.f32 %v7313_v51, %v17895_v7  ;;  %v16984_v35 = vpop.f32.mrf.mxu0  ;;  %v16987_v23 = vadd.f32 %v16840_v43, %v7394_v10  ;;  %v10201_v10 = vsel %vm13251_vm15, %v10199_v22, %v10200_v13  ;;  %v17900_v7 = vld [vmem:[#allocation29_spill] sm:$0xff] }
 0x3e2   : > { %12412 = vmatprep.mubr.msk.bf16.mxu1 %vm1241_vm5, %v17896_v46  ;;  %v12207_v14 = vpop.f32.mrf.mxu1 }
 0x3e3   : > { %v7395_v39 = vadd.f32 %v12207_v14, %v17897_v47  ;;  %v16995_v34 = vpop.f32.mrf.mxu0  ;;  %v16998_v15 = vadd.f32 %v16859_v53, %v7392_v49  ;;  %v10198_v53 = vsel %vm13251_vm15, %v11432_v31, %v10197_v28 }
 0x3e4   : > { %v7316_v24 = vpop.f32.mrf.mxu1  ;;  %v11449_v14 = vcombine.low %v10198_v53, %v10201_v10  ;;  %v10220_v10 = vrot.slane %v10218_v48, 4 }
 0x3e5   : > { %v7393_v43 = vadd.f32 %v7316_v24, %v17899_v20  ;;  %v17003_v32 = vpop.f32.mrf.mxu0  ;;  %v17007_v51 = vadd.f32 %v16867_v3, %v7395_v39  ;;  %v10213_v3 = vrot.slane %v10211_v16, 4 }
 0x3e6   : > { %v12210_v0 = vpop.f32.mrf.mxu1 }
 0x3e7   : > { %v7398_v46 = vadd.f32 %v12210_v0, %v17900_v7  ;;  %v17012_v49 = vpop.f32.mrf.mxu0  ;;  %v17015_v19 = vadd.f32 %v16880_v61, %v7393_v43  ;;  %v10061_v61 = vld [vmem:[#allocation3 + $0xc0] sm:$0xe]  ;;  %v10215_v20 = vsel %vm13251_vm15, %v10213_v3, %v10214_v60  ;;  %v10221_v0 = vrot.slane %v16676_v21, 5  ;;  %v17904_v60 = vld [vmem:[#allocation42_spill] sm:$0xff] }
 0x3e8   : > { %v7329_v22 = vpop.f32.mrf.mxu1  ;;  %v11434_v31 = vrot.slane %v10061_v61, 9  ;;  %v17901_v7 = vld [vmem:[#allocation41_spill] sm:$0xff] }
 0x3e9   : > { %12413 = vmatmul.mubr.msk.bf16.gmra.mxu1 %vm1241_vm5, %v11448_v44  ;;  %v7396_v62 = vadd.f32 %v7329_v22, %v16643_v9  ;;  %v17022_v47 = vpop.f32.mrf.mxu0  ;;  %v17025_v39 = vadd.f32 %v16887_v11, %v7398_v46  ;;  %v10062_v44 = vld [vmem:[#allocation3 + $0xcc] sm:$0xe]  ;;  %v17903_v61 = vld [vmem:[#allocation37_spill] sm:$0xff] }
 0x3ea   : > { %12416 = vmatprep.mubr.msk.bf16.mxu1 %vm1241_vm5, %v11449_v14  ;;  %v12211_v28 = vpop.f32.mrf.mxu1  ;;  %v11435_v55 = vrot.slane %v10062_v44, 9  ;;  %v10212_v46 = vsel %vm13251_vm15, %v11434_v31, %v10211_v16  ;;  %v17905_v31 = vld [vmem:[#allocation43_spill] sm:$0xff] }
 0x3eb   : > { %v7399_v13 = vadd.f32 %v12211_v28, %v16646_v41  ;;  %v17031_v17 = vpop.f32.mrf.mxu0  ;;  %v17034_v9 = vadd.f32 %v16906_v38, %v7396_v62  ;;  %v11451_v14 = vcombine.low %v10212_v46, %v10215_v20  ;;  %v10222_v28 = vsel %vm13251_vm15, %v10220_v10, %v10221_v0 }
 0x3ec   : > { %v7332_v24 = vpop.f32.mrf.mxu1 }
 0x3ed   : > { %v7397_v11 = vadd.f32 %v7332_v24, %v16653_v50  ;;  %v17039_v43 = vpop.f32.mrf.mxu0  ;;  %v17042_v36 = vadd.f32 %v16923_v18, %v7399_v13  ;;  %v17902_v18 = vld [vmem:[#allocation38_spill] sm:$0xff] }
 0x3ee   : > { %v12214_v41 = vpop.f32.mrf.mxu1 }
 0x3ef   : > { %v7402_v38 = vadd.f32 %v12214_v41, %v17901_v7  ;;  %v17048_v50 = vpop.f32.mrf.mxu0  ;;  %v17051_v53 = vadd.f32 %v16948_v63, %v7397_v11  ;;  %v10219_v63 = vsel %vm13251_vm15, %v11435_v55, %v10218_v48 }
 0x3f0   : > { %v7345_v22 = vpop.f32.mrf.mxu1  ;;  %v11452_v44 = vcombine.low %v10219_v63, %v10222_v28 }
 0x3f1   : > { %12417 = vmatmul.mubr.msk.bf16.gmra.mxu1 %vm1241_vm5, %v11450_v26  ;;  %v7400_v62 = vadd.f32 %v7345_v22, %v17902_v18  ;;  %v17058_v21 = vpop.f32.mrf.mxu0  ;;  %v17061_v3 = vadd.f32 %v16961_v59, %v7402_v38  ;;  %v17907_v38 = vld [vmem:[#allocation45_spill] sm:$0xff]  ;;  %v17908_v18 = vld [vmem:[#allocation46_spill] sm:$0xff] }
 0x3f2   : > { %12420 = vmatprep.mubr.msk.bf16.mxu1 %vm1241_vm5, %v11451_v14  ;;  %v12215_v16 = vpop.f32.mrf.mxu1 }
 0x3f3   : > { %v7403_v25 = vadd.f32 %v12215_v16, %v17903_v61  ;;  %v17069_v6 = vpop.f32.mrf.mxu0  ;;  %v17072_v26 = vadd.f32 %v16967_v42, %v7400_v62  ;;  %v17906_v42 = vld [vmem:[#allocation44_spill] sm:$0xff] }
 0x3f4   : > { %v7348_v13 = vpop.f32.mrf.mxu1 }
 0x3f5   : > { %v7401_v59 = vadd.f32 %v7348_v13, %v17904_v60  ;;  %v17075_v24 = vpop.f32.mrf.mxu0  ;;  %v17078_v11 = vadd.f32 %v16974_v40, %v7403_v25 }
 0x3f7   : > { %v12218_v48 = vpop.f32.mrf.mxu1  ;;  %v17081_v20 = vpop.f32.mrf.mxu0  ;;  %v17084_v41 = vadd.f32 %v16984_v35, %v7401_v59 }
 0x3f8   : > { %v7406_v4 = vadd.f32 %v12218_v48, %v17905_v31 }
 0x3f9   : > { %v7361_v55 = vpop.f32.mrf.mxu1  ;;  %12421 = vmatmul.mubr.msk.bf16.gmra.mxu1 %vm1241_vm5, %v11452_v44  ;;  %v17088_v0 = vpop.f32.mrf.mxu0 }
 0x3fa   : > { %v7404_v10 = vadd.f32 %v7361_v55, %v17906_v42  ;;  %v17091_v7 = vadd.f32 %v16995_v34, %v7406_v4 }
 0x3fb   : > { %v12219_v40 = vpop.f32.mrf.mxu1  ;;  %v17094_v14 = vpop.f32.mrf.mxu0 }
 0x3fc   : > { %v7407_v46 = vadd.f32 %v12219_v40, %v17907_v38  ;;  %v17097_v22 = vadd.f32 %v17003_v32, %v7404_v10 }
 0x3fd   : > { %v7364_v35 = vpop.f32.mrf.mxu1  ;;  %v17100_v16 = vpop.f32.mrf.mxu0 }
 0x3fe   : > { %v7405_v62 = vadd.f32 %v7364_v35, %v17908_v18  ;;  %v17103_v63 = vadd.f32 %v17012_v49, %v7407_v46 }
 0x3ff   : > { %v12258_v28 = vpop.f32.mrf.mxu1  ;;  %v17108_v61 = vpop.f32.mrf.mxu0 }
 0x400   : > { %v17106_v34 = vadd.f32 %v12258_v28, %v16899_v33  ;;  %v17111_v25 = vadd.f32 %v17022_v47, %v7405_v62 }
 0x401   : > { %v8333_v13 = vpop.f32.mrf.mxu1  ;;  %v17116_v60 = vpop.f32.mrf.mxu0 }
 0x402   : > { %v17114_v32 = vadd.f32 %v8333_v13, %v16903_v45 }
 0x403   : > { %v12259_v59 = vpop.f32.mrf.mxu1  ;;  %v17121_v49 = vpop.f32.mrf.mxu0 }
 0x404   : > { %v17119_v44 = vadd.f32 %v12259_v59, %v16912_v58 }
 0x405   : > { %v8336_v48 = vpop.f32.mrf.mxu1  ;;  %v17126_v31 = vpop.f32.mrf.mxu0 }
 0x406   : > { %v17124_v33 = vadd.f32 %v8336_v48, %v16916_v37 }
 0x407   : > { %v12262_v47 = vpop.f32.mrf.mxu1  ;;  %v17131_v45 = vpop.f32.mrf.mxu0 }
 0x408   : > { %v17129_v4 = vadd.f32 %v12262_v47, %v16920_v27  ;;  %17909 = vst [vmem:[#allocation47_spill] sm:$0xff] %v17131_v45 }
 0x409   : > { %v8349_v55 = vpop.f32.mrf.mxu1  ;;  %v17136_v58 = vpop.f32.mrf.mxu0 }
 0x40a   : > { %v17134_v42 = vadd.f32 %v8349_v55, %v16926_v2  ;;  %17910 = vst [vmem:[#allocation48_spill] sm:$0xff] %v17136_v58 }
 0x40b   : > { %v12263_v10 = vpop.f32.mrf.mxu1  ;;  %v17141_v37 = vpop.f32.mrf.mxu0 }
 0x40c   : > { %v17139_v40 = vadd.f32 %v12263_v10, %v16929_v29  ;;  %17911 = vst [vmem:[#allocation49_spill] sm:$0xff] %v17141_v37 }
 0x40d   : > { %v8352_v38 = vpop.f32.mrf.mxu1  ;;  %v17146_v27 = vpop.f32.mrf.mxu0 }
 0x40e   : > { %v17144_v46 = vadd.f32 %v8352_v38, %v16932_v1  ;;  %17912 = vst [vmem:[#allocation50_spill] sm:$0xff] %v17146_v27 }
 0x40f   : > { %v12266_v35 = vpop.f32.mrf.mxu1  ;;  %v17151_v2 = vpop.f32.mrf.mxu0 }
 0x410   : > { %v17149_v18 = vadd.f32 %v12266_v35, %v16935_v56  ;;  %17913 = vst [vmem:[#allocation51_spill] sm:$0xff] %v17151_v2 }
 0x411   : > { %v8365_v62 = vpop.f32.mrf.mxu1  ;;  %v17156_v29 = vpop.f32.mrf.mxu0 }
 0x412   : > { %v17154_v28 = vadd.f32 %v8365_v62, %v16938_v5  ;;  %17914 = vst [vmem:[#allocation52_spill] sm:$0xff] %v17156_v29 }
 0x413   : > { %v12267_v13 = vpop.f32.mrf.mxu1  ;;  %v17161_v1 = vpop.f32.mrf.mxu0 }
 0x414   : > { %v17159_v59 = vadd.f32 %v12267_v13, %v16941_v8  ;;  %17915 = vst [vmem:[#allocation53_spill] sm:$0xff] %v17161_v1 }
 0x415   : > { %v8368_v48 = vpop.f32.mrf.mxu1  ;;  %v17166_v56 = vpop.f32.mrf.mxu0 }
 0x416   : > { %v17164_v47 = vadd.f32 %v8368_v48, %v16951_v30  ;;  %17916 = vst [vmem:[#allocation54_spill] sm:$0xff] %v17166_v56 }
 0x417   : > { %v12270_v55 = vpop.f32.mrf.mxu1  ;;  %v17171_v38 = vpop.f32.mrf.mxu0 }
 0x418   : > { %v17169_v10 = vadd.f32 %v12270_v55, %v16954_v54  ;;  %17917 = vst [vmem:[#allocation55_spill] sm:$0xff] %v17171_v38 }
 0x419   : > { %v8381_v5 = vpop.f32.mrf.mxu1  ;;  %v17179_v1 = vpop.f32.mrf.mxu0 }
 0x41a   : > { %v17174_v35 = vadd.f32 %v8381_v5, %v16964_v57  ;;  %17919 = vst [vmem:[#allocation56_spill] sm:$0xff] %v17179_v1 }
 0x41b   : > { %v12271_v8 = vpop.f32.mrf.mxu1  ;;  %v17187_v56 = vpop.f32.mrf.mxu0 }
 0x41c   : > { %v17177_v62 = vadd.f32 %v12271_v8, %v16971_v52  ;;  %17922 = vst [vmem:[#allocation60_spill] sm:$0xff] %v17187_v56 }
 0x41d   : > { %v8384_v13 = vpop.f32.mrf.mxu1  ;;  %v17195_v38 = vpop.f32.mrf.mxu0 }
 0x41e   : > { %17918 = vst [vmem:[#allocation57_spill] sm:$0xff] %v17177_v62  ;;  %v17182_v30 = vadd.f32 %v8384_v13, %v16977_v12  ;;  %17925 = vst [vmem:[#allocation10_spill] sm:$0xff] %v17195_v38 }
 0x41f   : > { %v12274_v48 = vpop.f32.mrf.mxu1  ;;  %v17203_v1 = vpop.f32.mrf.mxu0 }
 0x420   : > { %17920 = vst [vmem:[#allocation59_spill] sm:$0xff] %v17182_v30  ;;  %v17185_v54 = vadd.f32 %v12274_v48, %v16987_v23  ;;  %17928 = vst [vmem:[#allocation6_spill] sm:$0xff] %v17203_v1 }
 0x421   : > { %v8397_v55 = vpop.f32.mrf.mxu1 }
 0x422   : > { %17921 = vst [vmem:[#allocation58_spill] sm:$0xff] %v17185_v54  ;;  %v17190_v57 = vadd.f32 %v8397_v55, %v16998_v15 }
 0x423   : > { %v12275_v5 = vpop.f32.mrf.mxu1 }
 0x424   : > { %17923 = vst [vmem:[#allocation62_spill] sm:$0xff] %v17190_v57  ;;  %v17193_v52 = vadd.f32 %v12275_v5, %v17007_v51  ;;  %v17211_v5 = vpop.f32.mrf.mxu0 }
 0x425   : > { %v8400_v8 = vpop.f32.mrf.mxu1  ;;  %17931 = vst [vmem:[#allocation8_spill] sm:$0xff] %v17211_v5 }
 0x426   : > { %17924 = vst [vmem:[#allocation61_spill] sm:$0xff] %v17193_v52  ;;  %v17198_v12 = vadd.f32 %v8400_v8, %v17015_v19 }
 0x427   : > { %v12278_v13 = vpop.f32.mrf.mxu1 }
 0x428   : > { %17926 = vst [vmem:[#allocation9_spill] sm:$0xff] %v17198_v12  ;;  %v17201_v23 = vadd.f32 %v12278_v13, %v17025_v39  ;;  %v17219_v13 = vpop.f32.mrf.mxu0 }
 0x429   : > { %v8413_v48 = vpop.f32.mrf.mxu1  ;;  %17934 = vst [vmem:[#allocation12_spill] sm:$0xff] %v17219_v13 }
 0x42a   : > { %17927 = vst [vmem:[#allocation5_spill] sm:$0xff] %v17201_v23  ;;  %v17206_v15 = vadd.f32 %v8413_v48, %v17034_v9 }
 0x42b   : > { %v12279_v55 = vpop.f32.mrf.mxu1 }
 0x42c   : > { %17929 = vst [vmem:[#allocation7_spill] sm:$0xff] %v17206_v15  ;;  %v17209_v51 = vadd.f32 %v12279_v55, %v17042_v36  ;;  %v17227_v55 = vpop.f32.mrf.mxu0 }
 0x42d   : > { %v8416_v38 = vpop.f32.mrf.mxu1  ;;  %17937 = vst [vmem:[#allocation27_spill] sm:$0xff] %v17227_v55 }
 0x42e   : > { %17930 = vst [vmem:[#allocation4_spill] sm:$0xff] %v17209_v51  ;;  %v17214_v19 = vadd.f32 %v8416_v38, %v17051_v53  ;;  %v17232_v38 = vpop.f32.mrf.mxu0 }
 0x42f   : > { %v12282_v8 = vpop.f32.mrf.mxu1  ;;  %17939 = vst [vmem:[#allocation19_spill] sm:$0xff] %v17232_v38 }
 0x430   : > { %17932 = vst [vmem:[#allocation34_spill] sm:$0xff] %v17214_v19  ;;  %v17217_v39 = vadd.f32 %v12282_v8, %v17061_v3  ;;  %v17237_v56 = vpop.f32.mrf.mxu0 }
 0x431   : > { %v8429_v1 = vpop.f32.mrf.mxu1  ;;  %17941 = vst [vmem:[#allocation15_spill] sm:$0xff] %v17237_v56 }
 0x432   : > { %17933 = vst [vmem:[#allocation13_spill] sm:$0xff] %v17217_v39  ;;  %v17222_v9 = vadd.f32 %v8429_v1, %v17072_v26 }
 0x433   : > { %v12283_v48 = vpop.f32.mrf.mxu1 }
 0x434   : > { %17935 = vst [vmem:[#allocation28_spill] sm:$0xff] %v17222_v9  ;;  %v17225_v36 = vadd.f32 %v12283_v48, %v17078_v11 }
 0x435   : > { %v8432_v5 = vpop.f32.mrf.mxu1 }
 0x436   : > { %17936 = vst [vmem:[#allocation16_spill] sm:$0xff] %v17225_v36  ;;  %v17230_v53 = vadd.f32 %v8432_v5, %v17084_v41  ;;  %v12360_v55 = vpop.f32.mrf.mxu0 }
 0x438   : > { %17938 = vst [vmem:[#allocation18_spill] sm:$0xff] %v17230_v53  ;;  %v9888_v53 = vpop.f32.mrf.mxu0 }
 0x439   : > { %v12286_v3 = vpop.f32.mrf.mxu1 }
 0x43a   : > { %v17235_v8 = vadd.f32 %v12286_v3, %v17091_v7 }
 0x43b   : > { %v8445_v13 = vpop.f32.mrf.mxu1 }
 0x43c   : > { %17940 = vst [vmem:[#allocation39_spill] sm:$0xff] %v17235_v8  ;;  %v17240_v26 = vadd.f32 %v8445_v13, %v17097_v22  ;;  %v17248_v8 = vpop.f32.mrf.mxu0 }
 0x43d   : > { %v12287_v11 = vpop.f32.mrf.mxu1 }
 0x43e   : > { %17942 = vst [vmem:[#allocation33_spill] sm:$0xff] %v17240_v26  ;;  %v17243_v1 = vadd.f32 %v12287_v11, %v17103_v63  ;;  %v17252_v22 = vpop.f32.mrf.mxu0 }
 0x43f   : > { %v8448_v48 = vpop.f32.mrf.mxu1 }
 0x440   : > { %17943 = vst [vmem:[#allocation35_spill] sm:$0xff] %v17243_v1  ;;  %v17246_v41 = vadd.f32 %v8448_v48, %v17111_v25 }
 0x441   : > { %v12326_v5 = vpop.f32.mrf.mxu1  ;;  %v17258_v11 = vpop.f32.mrf.mxu0 }
 0x442   : > { %17944 = vst [vmem:[#allocation17_spill] sm:$0xff] %v17246_v41 }
 0x443   : > { %v9162_v38 = vpop.f32.mrf.mxu1  ;;  %v17264_v41 = vpop.f32.mrf.mxu0 }
 0x445   : > { %v12327_v7 = vpop.f32.mrf.mxu1  ;;  %v17270_v9 = vpop.f32.mrf.mxu0 }
 0x447   : > { %v9165_v3 = vpop.f32.mrf.mxu1  ;;  %v17276_v51 = vpop.f32.mrf.mxu0 }
 0x449   : > { %v12330_v56 = vpop.f32.mrf.mxu1 }
 0x44b   : > { %v17250_v36 = vpop.f32.mrf.mxu1 }
 0x44c   : > { %v17282_v29 = vpop.f32.mrf.mxu0 }
 0x44d   : > { %v17254_v13 = vpop.f32.mrf.mxu1 }
 0x44e   : > { %v17288_v52 = vpop.f32.mrf.mxu0 }
 0x44f   : > { %v17256_v63 = vpop.f32.mrf.mxu1 }
 0x450   : > { %v17294_v37 = vpop.f32.mrf.mxu0 }
 0x451   : > { %v17260_v25 = vpop.f32.mrf.mxu1 }
 0x452   : > { %v17300_v30 = vpop.f32.mrf.mxu0 }
 0x453   : > { %v17262_v48 = vpop.f32.mrf.mxu1 }
 0x455   : > { %v17266_v1 = vpop.f32.mrf.mxu1 }
 0x457   : > { %v17268_v26 = vpop.f32.mrf.mxu1 }
 0x459   : > { %v17272_v39 = vpop.f32.mrf.mxu1 }
 0x45b   : > { %v17274_v19 = vpop.f32.mrf.mxu1 }
 0x45d   : > { %v17278_v15 = vpop.f32.mrf.mxu1 }
 0x45e   : > { %17945 = vst [vmem:[#allocation40_spill] sm:$0xff] %v17278_v15 }
 0x45f   : > { %v17280_v23 = vpop.f32.mrf.mxu1 }
 0x460   : > { %17946 = vst [vmem:[#allocation22_spill] sm:$0xff] %v17280_v23 }
 0x461   : > { %v17284_v12 = vpop.f32.mrf.mxu1 }
 0x462   : > { %17947 = vst [vmem:[#allocation11_spill] sm:$0xff] %v17284_v12  ;;  %v17306_v12 = vpop.f32.mrf.mxu0 }
 0x463   : > { %v17286_v2 = vpop.f32.mrf.mxu1  ;;  %17955 = vst [vmem:[#allocation31_spill] sm:$0xff] %v17306_v12 }
 0x464   : > { %17948 = vst [vmem:[#allocation30_spill] sm:$0xff] %v17286_v2 }
 0x465   : > { %v17290_v27 = vpop.f32.mrf.mxu1 }
 0x466   : > { %17949 = vst [vmem:[#allocation21_spill] sm:$0xff] %v17290_v27  ;;  %v17312_v27 = vpop.f32.mrf.mxu0 }
 0x467   : > { %v17292_v57 = vpop.f32.mrf.mxu1  ;;  %17958 = vst [vmem:[#allocation23_spill] sm:$0xff] %v17312_v27 }
 0x468   : > { %17950 = vst [vmem:[#allocation24_spill] sm:$0xff] %v17292_v57 }
 0x469   : > { %v17296_v54 = vpop.f32.mrf.mxu1 }
 0x46a   : > { %17951 = vst [vmem:[#allocation32_spill] sm:$0xff] %v17296_v54  ;;  %v17318_v54 = vpop.f32.mrf.mxu0 }
 0x46b   : > { %v17298_v58 = vpop.f32.mrf.mxu1  ;;  %17961 = vst [vmem:[#allocation38_spill] sm:$0xff] %v17318_v54 }
 0x46c   : > { %17952 = vst [vmem:[#allocation25_spill] sm:$0xff] %v17298_v58 }
 0x46d   : > { %v17302_v23 = vpop.f32.mrf.mxu1 }
 0x46e   : > { %17953 = vst [vmem:[#allocation36_spill] sm:$0xff] %v17302_v23  ;;  %v8932_v23 = vadd.f32 %v17031_v17, %v17106_v34  ;;  %v8931_v17 = vadd.f32 %v17058_v21, %v17124_v33  ;;  %v8934_v33 = vadd.f32 %v17075_v24, %v17134_v42 }
 0x46f   : > { %v17304_v15 = vpop.f32.mrf.mxu1 }
 0x470   : > { %17954 = vst [vmem:[#allocation26_spill] sm:$0xff] %v17304_v15  ;;  %v9291_v12 = vadd.f32 %v12326_v5, %v8932_v23 }
 0x471   : > { %v17308_v2 = vpop.f32.mrf.mxu1 }
 0x472   : > { %17956 = vst [vmem:[#allocation20_spill] sm:$0xff] %v17308_v2  ;;  %v17328_v2 = vpop.f32.mrf.mxu0  ;;  %v10017_v23 = vadd.f32 %v12360_v55, %v9291_v12 }
 0x473   : > { %v17310_v45 = vpop.f32.mrf.mxu1 }
 0x474   : > { %17957 = vst [vmem:[#allocation14_spill] sm:$0xff] %v17310_v45  ;;  %v8930_v45 = vadd.f32 %v17039_v43, %v17114_v32  ;;  %v17338_v34 = vpop.f32.mrf.mxu0  ;;  %v8936_v43 = vadd.f32 %v17069_v6, %v17129_v4 }
 0x475   : > { %v17314_v57 = vpop.f32.mrf.mxu1 }
 0x476   : > { %17959 = vst [vmem:[#allocation29_spill] sm:$0xff] %v17314_v57  ;;  %v9289_v57 = vadd.f32 %v9162_v38, %v8930_v45  ;;  %v17345_v45 = vld [vmem:[%s17614_s4] ss:$0 sm:$0xff]  ;;  %v9295_v21 = vadd.f32 %v12330_v56, %v8936_v43  ;;  %v17350_v55 = vpop.f32.mrf.mxu0  ;;  %v8937_v56 = vadd.f32 %v17081_v20, %v17139_v40  ;;  %v12570_v40 = vld [vmem:[%s12889_s29 + $0x4] sm:$0xf] }
 0x477   : > { %v17316_v62 = vpop.f32.mrf.mxu1 }
 0x478   : > { %17960 = vst [vmem:[#allocation41_spill] sm:$0xff] %v17316_v62  ;;  %v8933_v62 = vadd.f32 %v17048_v50, %v17119_v44  ;;  %v9290_v50 = vadd.f32 %v9165_v3, %v8931_v17  ;;  %v10015_v5 = vadd.f32 %v9888_v53, %v9289_v57  ;;  %v9293_v17 = vadd.f32 %v17250_v36, %v8934_v33  ;;  %v12569_v53 = vld [vmem:[%s12889_s29 + $0xc] sm:$0xf]  ;;  %v12571_v33 = vld [vmem:[%s12889_s29 + $0x18] sm:$0xf] }
 0x479   : > { %v17320_v58 = vpop.f32.mrf.mxu1  ;;  %v10559_v24 = vunpack.c.l.bf16 %v12569_v53  ;;  %v10557_v36 = vunpack.c.l.bf16 %v12570_v40 }
 0x47a   : > { %17962 = vst [vmem:[#allocation37_spill] sm:$0xff] %v17320_v58  ;;  %v9292_v58 = vadd.f32 %v12327_v7, %v8933_v62  ;;  %v12567_v62 = vld [vmem:[%s12889_s29 + $0x8] sm:$0xf]  ;;  %v12568_v7 = vld [vmem:[%s12889_s29] sm:$0xf] }
 0x47b   : > { %v17324_v15 = vpop.f32.mrf.mxu1  ;;  %v10558_v38 = vunpack.c.l.bf16 %v12567_v62  ;;  %v17372_v62 = vpop.f32.mrf.mxu0 }
 0x47c   : > { %v10018_v3 = vadd.f32 %v17248_v8, %v9292_v58  ;;  %v8935_v58 = vadd.f32 %v17088_v0, %v17144_v46  ;;  %v10021_v8 = vadd.f32 %v17258_v11, %v9295_v21  ;;  %v8940_v46 = vadd.f32 %v17094_v14, %v17149_v18  ;;  %v12572_v18 = vld [vmem:[%s12889_s29 + $0x10] sm:$0xf] }
 0x47d   : > { %v17330_v27 = vpop.f32.mrf.mxu1 }
 0x47e   : > { %v9294_v0 = vadd.f32 %v17256_v63, %v8935_v58  ;;  %v8938_v63 = vadd.f32 %v17100_v16, %v17154_v28  ;;  %v8941_v16 = vadd.f32 %v17108_v61, %v17159_v59  ;;  %v12574_v59 = vld [vmem:[%s12889_s29 + $0x14] sm:$0xf] }
 0x47f   : > { %v17334_v54 = vpop.f32.mrf.mxu1  ;;  %v10561_v40 = vunpack.c.l.bf16 %v12574_v59  ;;  %v17970_v59 = vld [vmem:[#allocation22_spill] sm:$0xff] }
 0x480   : > { %17963 = vst [vmem:[#allocation42_spill] sm:$0xff] %v17334_v54  ;;  %v10556_v54 = vunpack.c.l.bf16 %v12568_v7  ;;  %v9299_v7 = vadd.f32 %v17260_v25, %v8940_v46  ;;  %v9297_v25 = vadd.f32 %v17262_v48, %v8938_v63  ;;  %v8939_v48 = vadd.f32 %v17116_v60, %v17164_v47 }
 0x481   : > { %v12394_v32 = vpop.f32.mrf.mxu1  ;;  %v8944_v60 = vadd.f32 %v17121_v49, %v17169_v10  ;;  %v12576_v10 = vld [vmem:[%s12889_s29 + $0x20] sm:$0xf] }
 0x482   : > { %v10487_v44 = vadd.f32 %v12394_v32, %v10017_v23  ;;  %v10016_v32 = vadd.f32 %v17252_v22, %v9290_v50 }
 0x483   : > { %v10358_v12 = vpop.f32.mrf.mxu1 }
 0x484   : > { %v10526_v6 = vadd.f32 %v17345_v45, %v10487_v44  ;;  %v10485_v4 = vadd.f32 %v10358_v12, %v10015_v5  ;;  %v9296_v44 = vadd.f32 %v17254_v13, %v8937_v56  ;;  %v10562_v12 = vunpack.c.l.bf16 %v12571_v33 }
 0x485   : > { %v12395_v57 = vpop.f32.mrf.mxu1 }
 0x486   : > { %v10590_v42 = vadd.f32 %v10558_v38, %v10526_v6  ;;  %v10524_v23 = vadd.f32 %v17345_v45, %v10485_v4  ;;  %v10488_v43 = vadd.f32 %v12395_v57, %v10018_v3  ;;  %v10019_v6 = vadd.f32 %v17264_v41, %v9293_v17  ;;  %v17388_v41 = vpop.f32.mrf.mxu0 }
 0x487   : > { %v10361_v20 = vpop.f32.mrf.mxu1  ;;  %v10560_v3 = vunpack.c.l.bf16 %v12572_v18  ;;  %v10022_v56 = vadd.f32 %v17270_v9, %v9296_v44  ;;  %v10020_v9 = vadd.f32 %v17276_v51, %v9294_v0 }
 0x488   : > { %v10622_v22 = vmax.f32 %v10590_v42, 0.0  ;;  %v10588_v50 = vadd.f32 %v10556_v54, %v10524_v23  ;;  %v10527_v13 = vadd.f32 %v17345_v45, %v10488_v43  ;;  %v10486_v38 = vadd.f32 %v10361_v20, %v10016_v32  ;;  %v12573_v42 = vld [vmem:[%s12889_s29 + $0x1c] sm:$0xf]  ;;  %v17406_v51 = vpop.f32.mrf.mxu0 }
 0x489   : > { %v12398_v5 = vpop.f32.mrf.mxu1  ;;  %v10563_v23 = vunpack.c.l.bf16 %v12573_v42  ;;  %v9300_v20 = vadd.f32 %v17266_v1, %v8941_v16  ;;  %v9298_v1 = vadd.f32 %v17268_v26, %v8939_v48  ;;  %v8942_v26 = vadd.f32 %v17126_v31, %v17174_v35  ;;  %v17965_v31 = vld [vmem:[#allocation47_spill] sm:$0xff] }
 0x48a   : > { %10654 = vst.msk [vmem:[%s17368_s30 + $0x10] sm:$0xff] %vm1241_vm5, %v10622_v22  ;;  %v10620_v11 = vmax.f32 %v10588_v50, 0.0  ;;  %v10591_v21 = vadd.f32 %v10559_v24, %v10527_v13  ;;  %v10525_v54 = vadd.f32 %v17345_v45, %v10486_v38  ;;  %v10491_v4 = vadd.f32 %v12398_v5, %v10021_v8  ;;  %v12575_v38 = vld [vmem:[%s12889_s29 + $0x28] sm:$0xf] }
 0x48b   : > { %v10374_v14 = vpop.f32.mrf.mxu1  ;;  %v10566_v0 = vunpack.c.l.bf16 %v12575_v38 }
 0x48c   : > { %10652 = vst.msk [vmem:[%s17368_s30] sm:$0xff] %vm1241_vm5, %v10620_v11  ;;  %v10623_v17 = vmax.f32 %v10591_v21, 0.0  ;;  %v10589_v57 = vadd.f32 %v10557_v36, %v10525_v54  ;;  %v10530_v53 = vadd.f32 %v17345_v45, %v10491_v4  ;;  %v10489_v24 = vadd.f32 %v10374_v14, %v10019_v6  ;;  %v17964_v14 = vld [vmem:[#allocation57_spill] sm:$0xff] }
 0x48d   : > { %v12399_v28 = vpop.f32.mrf.mxu1  ;;  %v10025_v36 = vadd.f32 %v17282_v29, %v9299_v7  ;;  %v10023_v29 = vadd.f32 %v17288_v52, %v9297_v25  ;;  %v9303_v6 = vadd.f32 %v17272_v39, %v8944_v60  ;;  %v10564_v11 = vunpack.c.l.bf16 %v12576_v10  ;;  %v17424_v52 = vpop.f32.mrf.mxu0  ;;  %v17966_v25 = vld [vmem:[#allocation40_spill] sm:$0xff]  ;;  %v17973_v60 = vld [vmem:[#allocation23_spill] sm:$0xff] }
 0x48e   : > { %10655 = vst.msk [vmem:[%s17368_s30 + $0x18] sm:$0xff] %vm1241_vm5, %v10623_v17  ;;  %v10621_v43 = vmax.f32 %v10589_v57, 0.0  ;;  %v10594_v32 = vadd.f32 %v10562_v12, %v10530_v53  ;;  %v10528_v44 = vadd.f32 %v17345_v45, %v10489_v24  ;;  %v10492_v58 = vadd.f32 %v12399_v28, %v10022_v56  ;;  %v17968_v28 = vld [vmem:[#allocation48_spill] sm:$0xff] }
 0x48f   : > { %v10377_v61 = vpop.f32.mrf.mxu1  ;;  %v10026_v21 = vadd.f32 %v17294_v37, %v9300_v20  ;;  %v9301_v39 = vadd.f32 %v17274_v19, %v8942_v26  ;;  %v8945_v35 = vadd.f32 %v17965_v31, %v17964_v14  ;;  %v10024_v37 = vadd.f32 %v17300_v30, %v9298_v1  ;;  %v17967_v19 = vld [vmem:[#allocation59_spill] sm:$0xff]  ;;  %v17442_v30 = vpop.f32.mrf.mxu0  ;;  %v12580_v10 = vld [vmem:[%s12889_s29 + $0x30] sm:$0xf]  ;;  %v17978_v31 = vld [vmem:[#allocation30_spill] sm:$0xff] }
 0x490   : > { %10653 = vst.msk [vmem:[%s17368_s30 + $0x8] sm:$0xff] %vm1241_vm5, %v10621_v43  ;;  %v10626_v8 = vmax.f32 %v10594_v32, 0.0  ;;  %v10592_v22 = vadd.f32 %v10560_v3, %v10528_v44  ;;  %v10531_v50 = vadd.f32 %v17345_v45, %v10492_v58  ;;  %v10490_v13 = vadd.f32 %v10377_v61, %v10020_v9  ;;  %v12577_v3 = vld [vmem:[%s12889_s29 + $0x2c] sm:$0xf]  ;;  %v12578_v9 = vld [vmem:[%s12889_s29 + $0x24] sm:$0xf] }
 0x491   : > { %v12402_v47 = vpop.f32.mrf.mxu1  ;;  %v10567_v56 = vunpack.c.l.bf16 %v12577_v3  ;;  %v9304_v16 = vadd.f32 %v17966_v25, %v8945_v35  ;;  %v8943_v42 = vadd.f32 %v17968_v28, %v17967_v19  ;;  %v10565_v43 = vunpack.c.l.bf16 %v12578_v9  ;;  %v17969_v32 = vld [vmem:[#allocation31_spill] sm:$0xff]  ;;  %v17981_v28 = vld [vmem:[#allocation21_spill] sm:$0xff]  ;;  %v17983_v9 = vld [vmem:[#allocation52_spill] sm:$0xff] }
 0x492   : > { %10658 = vst.msk [vmem:[%s17368_s30 + $0x30] sm:$0xff] %vm1241_vm5, %v10626_v8  ;;  %v10624_v46 = vmax.f32 %v10592_v22, 0.0  ;;  %v10595_v5 = vadd.f32 %v10563_v23, %v10531_v50  ;;  %v10529_v33 = vadd.f32 %v17345_v45, %v10490_v13  ;;  %v10495_v12 = vadd.f32 %v12402_v47, %v10025_v36  ;;  %v17971_v36 = vld [vmem:[#allocation58_spill] sm:$0xff]  ;;  %v17972_v8 = vld [vmem:[#allocation49_spill] sm:$0xff]  ;;  %v17980_v3 = vld [vmem:[#allocation51_spill] sm:$0xff] }
 0x493   : > { %v10390_v49 = vpop.f32.mrf.mxu1  ;;  %v10029_v44 = vadd.f32 %v17969_v32, %v9303_v6  ;;  %v8948_v22 = vadd.f32 %v17972_v8, %v17971_v36  ;;  %v12579_v13 = vld [vmem:[%s12889_s29 + $0x38] sm:$0xf]  ;;  %v10027_v47 = vadd.f32 %v17973_v60, %v9301_v39  ;;  %v17976_v6 = vld [vmem:[#allocation50_spill] sm:$0xff]  ;;  %v17984_v36 = vld [vmem:[#allocation24_spill] sm:$0xff] }
 0x494   : > { %10656 = vst.msk [vmem:[%s17368_s30 + $0x20] sm:$0xff] %vm1241_vm5, %v10624_v46  ;;  %v10627_v54 = vmax.f32 %v10595_v5, 0.0  ;;  %v10593_v4 = vadd.f32 %v10561_v40, %v10529_v33  ;;  %v10534_v7 = vadd.f32 %v17345_v45, %v10495_v12  ;;  %v10493_v63 = vadd.f32 %v10390_v49, %v10023_v29  ;;  %v17974_v5 = vld [vmem:[#allocation11_spill] sm:$0xff]  ;;  %v17975_v12 = vld [vmem:[#allocation62_spill] sm:$0xff] }
 0x495   : > { %v12403_v18 = vpop.f32.mrf.mxu1  ;;  %v9302_v40 = vadd.f32 %v17970_v59, %v8943_v42  ;;  %v10570_v1 = vunpack.c.l.bf16 %v12579_v13  ;;  %v9307_v33 = vadd.f32 %v17974_v5, %v8948_v22  ;;  %v8946_v26 = vadd.f32 %v17976_v6, %v17975_v12  ;;  %v17985_v22 = vld [vmem:[#allocation5_spill] sm:$0xff]  ;;  %v12583_v60 = vld [vmem:[%s12889_s29 + $0x48] sm:$0xf]  ;;  %v17987_v5 = vld [vmem:[#allocation32_spill] sm:$0xff] }
 0x496   : > { %10659 = vst.msk [vmem:[%s17368_s30 + $0x38] sm:$0xff] %vm1241_vm5, %v10627_v54  ;;  %v10625_v17 = vmax.f32 %v10593_v4, 0.0  ;;  %v10598_v57 = vadd.f32 %v10566_v0, %v10534_v7  ;;  %v10532_v53 = vadd.f32 %v17345_v45, %v10493_v63  ;;  %v10496_v24 = vadd.f32 %v12403_v18, %v10026_v21  ;;  %v17977_v21 = vld [vmem:[#allocation38_spill] sm:$0xff]  ;;  %v17460_v4 = vpop.f32.mrf.mxu0  ;;  %v17979_v18 = vld [vmem:[#allocation61_spill] sm:$0xff]  ;;  %v17988_v12 = vld [vmem:[#allocation7_spill] sm:$0xff] }
 0x497   : > { %v10393_v23 = vpop.f32.mrf.mxu1  ;;  %v10030_v54 = vadd.f32 %v17977_v21, %v9304_v16  ;;  %v9305_v35 = vadd.f32 %v17978_v31, %v8946_v26  ;;  %v17989_v6 = vld [vmem:[#allocation54_spill] sm:$0xff] }
 0x498   : > { %10657 = vst.msk [vmem:[%s17368_s30 + $0x28] sm:$0xff] %vm1241_vm5, %v10625_v17  ;;  %v10630_v58 = vmax.f32 %v10598_v57, 0.0  ;;  %v10596_v20 = vadd.f32 %v10564_v11, %v10532_v53  ;;  %v10535_v48 = vadd.f32 %v17345_v45, %v10496_v24  ;;  %v10494_v61 = vadd.f32 %v10393_v23, %v10024_v37  ;;  %v12581_v17 = vld [vmem:[%s12889_s29 + $0x3c] sm:$0xf] }
 0x499   : > { %v12406_v50 = vpop.f32.mrf.mxu1  ;;  %v10568_v11 = vunpack.c.l.bf16 %v12580_v10  ;;  %v10571_v57 = vunpack.c.l.bf16 %v12581_v17  ;;  %v10028_v53 = vadd.f32 %v17328_v2, %v9302_v40  ;;  %v17982_v23 = vld [vmem:[#allocation9_spill] sm:$0xff]  ;;  %v17478_v2 = vpop.f32.mrf.mxu0  ;;  %v8950_v26 = vadd.f32 %v17989_v6, %v17988_v12  ;;  %v12584_v10 = vld [vmem:[%s12889_s29 + $0x40] sm:$0xf]  ;;  %v12588_v6 = vld [vmem:[%s12889_s29 + $0x50] sm:$0xf] }
 0x49a   : > { %10662 = vst.msk [vmem:[%s17368_s30 + $0x50] sm:$0xff] %vm1241_vm5, %v10630_v58  ;;  %v10628_v38 = vmax.f32 %v10596_v20, 0.0  ;;  %v10599_v0 = vadd.f32 %v10567_v56, %v10535_v48  ;;  %v10533_v29 = vadd.f32 %v17345_v45, %v10494_v61  ;;  %v10499_v46 = vadd.f32 %v12406_v50, %v10029_v44  ;;  %v12582_v44 = vld [vmem:[%s12889_s29 + $0x34] sm:$0xf]  ;;  %v17986_v50 = vld [vmem:[#allocation53_spill] sm:$0xff] }
 0x49b   : > { %v10406_v49 = vpop.f32.mrf.mxu1  ;;  %v8949_v56 = vadd.f32 %v17980_v3, %v17979_v18  ;;  %v10569_v58 = vunpack.c.l.bf16 %v12582_v44  ;;  %v10033_v20 = vadd.f32 %v17338_v34, %v9307_v33  ;;  %v8952_v13 = vadd.f32 %v17986_v50, %v17985_v22  ;;  %v17992_v18 = vld [vmem:[#allocation55_spill] sm:$0xff] }
 0x49c   : > { %10660 = vst.msk [vmem:[%s17368_s30 + $0x40] sm:$0xff] %vm1241_vm5, %v10628_v38  ;;  %v10631_v7 = vmax.f32 %v10599_v0, 0.0  ;;  %v10597_v63 = vadd.f32 %v10565_v43, %v10533_v29  ;;  %v10538_v39 = vadd.f32 %v17345_v45, %v10499_v46  ;;  %v10497_v14 = vadd.f32 %v10406_v49, %v10027_v47 }
 0x49d   : > { %v12407_v37 = vpop.f32.mrf.mxu1  ;;  %v9308_v42 = vadd.f32 %v17981_v28, %v8949_v56  ;;  %v8947_v43 = vadd.f32 %v17983_v9, %v17982_v23  ;;  %v10574_v47 = vunpack.c.l.bf16 %v12583_v60  ;;  %v10031_v34 = vadd.f32 %v17350_v55, %v9305_v35  ;;  %v17496_v55 = vpop.f32.mrf.mxu0  ;;  %v17991_v35 = vld [vmem:[#allocation4_spill] sm:$0xff]  ;;  %v17994_v28 = vld [vmem:[#allocation34_spill] sm:$0xff] }
 0x49e   : > { %10663 = vst.msk [vmem:[%s17368_s30 + $0x58] sm:$0xff] %vm1241_vm5, %v10631_v7  ;;  %v10629_v24 = vmax.f32 %v10597_v63, 0.0  ;;  %v10602_v25 = vadd.f32 %v10570_v1, %v10538_v39  ;;  %v10536_v16 = vadd.f32 %v17345_v45, %v10497_v14  ;;  %v10500_v19 = vadd.f32 %v12407_v37, %v10030_v54  ;;  %v17990_v14 = vld [vmem:[#allocation25_spill] sm:$0xff]  ;;  %v12585_v37 = vld [vmem:[%s12889_s29 + $0x4c] sm:$0xf] }
 0x49f   : > { %v10409_v32 = vpop.f32.mrf.mxu1  ;;  %v9306_v8 = vadd.f32 %v17984_v36, %v8947_v43  ;;  %v9311_v33 = vadd.f32 %v17987_v5, %v8952_v13  ;;  %v10034_v21 = vadd.f32 %v17372_v62, %v9308_v42  ;;  %v9309_v31 = vadd.f32 %v17990_v14, %v8950_v26  ;;  %v17995_v42 = vld [vmem:[#allocation56_spill] sm:$0xff]  ;;  %v12586_v43 = vld [vmem:[%s12889_s29 + $0x44] sm:$0xf]  ;;  %v17997_v36 = vld [vmem:[#allocation13_spill] sm:$0xff] }
 0x4a0   : > { %10661 = vst.msk [vmem:[%s17368_s30 + $0x48] sm:$0xff] %vm1241_vm5, %v10629_v24  ;;  %v10634_v48 = vmax.f32 %v10602_v25, 0.0  ;;  %v10600_v61 = vadd.f32 %v10568_v11, %v10536_v16  ;;  %v10539_v59 = vadd.f32 %v17345_v45, %v10500_v19  ;;  %v10498_v40 = vadd.f32 %v10409_v32, %v10028_v53  ;;  %v17993_v16 = vld [vmem:[#allocation36_spill] sm:$0xff]  ;;  %v12587_v13 = vld [vmem:[%s12889_s29 + $0x58] sm:$0xf]  ;;  %v18001_v5 = vld [vmem:[#allocation10_spill] sm:$0xff] }
 0x4a1   : > { %v12410_v1 = vpop.f32.mrf.mxu1  ;;  %v10572_v11 = vunpack.c.l.bf16 %v12584_v10  ;;  %v8953_v3 = vadd.f32 %v17992_v18, %v17991_v35  ;;  %v10575_v17 = vunpack.c.l.bf16 %v12585_v37  ;;  %v10032_v62 = vadd.f32 %v17388_v41, %v9306_v8  ;;  %v17514_v41 = vpop.f32.mrf.mxu0  ;;  %v17998_v8 = vld [vmem:[#allocation60_spill] sm:$0xff]  ;;  %v18004_v14 = vld [vmem:[#allocation6_spill] sm:$0xff]  ;;  %v12589_v18 = vld [vmem:[%s12889_s29 + $0x5c] sm:$0xf] }
 0x4a2   : > { %10666 = vst.msk [vmem:[%s17368_s30 + $0x70] sm:$0xff] %vm1241_vm5, %v10634_v48  ;;  %v10632_v38 = vmax.f32 %v10600_v61, 0.0  ;;  %v10603_v0 = vadd.f32 %v10571_v57, %v10539_v59  ;;  %v10537_v29 = vadd.f32 %v17345_v45, %v10498_v40  ;;  %v10503_v46 = vadd.f32 %v12410_v1, %v10033_v20  ;;  %v17996_v59 = vld [vmem:[#allocation26_spill] sm:$0xff] }
 0x4a3   : > { %v10422_v49 = vpop.f32.mrf.mxu1  ;;  %v9312_v19 = vadd.f32 %v17993_v16, %v8953_v3  ;;  %v8951_v23 = vadd.f32 %v17995_v42, %v17994_v28  ;;  %v10573_v32 = vunpack.c.l.bf16 %v12586_v43  ;;  %v10037_v44 = vadd.f32 %v17406_v51, %v9311_v33  ;;  %v18007_v16 = vld [vmem:[#allocation8_spill] sm:$0xff] }
 0x4a4   : > { %10664 = vst.msk [vmem:[%s17368_s30 + $0x60] sm:$0xff] %vm1241_vm5, %v10632_v38  ;;  %v10635_v54 = vmax.f32 %v10603_v0, 0.0  ;;  %v10601_v7 = vadd.f32 %v10569_v58, %v10537_v29  ;;  %v10542_v63 = vadd.f32 %v17345_v45, %v10503_v46  ;;  %v10501_v39 = vadd.f32 %v10422_v49, %v10031_v34  ;;  %v17999_v0 = vld [vmem:[#allocation20_spill] sm:$0xff] }
 0x4a5   : > { %v12411_v56 = vpop.f32.mrf.mxu1  ;;  %v9310_v40 = vadd.f32 %v17996_v59, %v8951_v23  ;;  %v8956_v22 = vadd.f32 %v17998_v8, %v17997_v36  ;;  %v10578_v1 = vunpack.c.l.bf16 %v12587_v13  ;;  %v10035_v51 = vadd.f32 %v17424_v52, %v9309_v31  ;;  %v18000_v46 = vld [vmem:[#allocation28_spill] sm:$0xff]  ;;  %v9987_v52 = vpop.f32.mrf.mxu0  ;;  %v12591_v36 = vld [vmem:[%s12889_s29 + $0x68] sm:$0xf] }
 0x4a6   : > { %10667 = vst.msk [vmem:[%s17368_s30 + $0x78] sm:$0xff] %vm1241_vm5, %v10635_v54  ;;  %v10633_v57 = vmax.f32 %v10601_v7, 0.0  ;;  %v10606_v53 = vadd.f32 %v10574_v47, %v10542_v63  ;;  %v10540_v24 = vadd.f32 %v17345_v45, %v10501_v39  ;;  %v10504_v25 = vadd.f32 %v12411_v56, %v10034_v21  ;;  %v18002_v7 = vld [vmem:[#allocation14_spill] sm:$0xff]  ;;  %v18003_v39 = vld [vmem:[#allocation16_spill] sm:$0xff] }
 0x4a7   : > { %v10425_v9 = vpop.f32.mrf.mxu1  ;;  %v9315_v29 = vadd.f32 %v17999_v0, %v8956_v22  ;;  %v8954_v33 = vadd.f32 %v18001_v5, %v18000_v46  ;;  %v10576_v26 = vunpack.c.l.bf16 %v12588_v6  ;;  %v10038_v49 = vadd.f32 %v17442_v30, %v9312_v19  ;;  %v12388_v56 = vpop.f32.mrf.mxu0  ;;  %v12590_v42 = vld [vmem:[%s12889_s29 + $0x54] sm:$0xf]  ;;  %v12592_v46 = vld [vmem:[%s12889_s29 + $0x60] sm:$0xf] }
 0x4a8   : > { %10665 = vst.msk [vmem:[%s17368_s30 + $0x68] sm:$0xff] %vm1241_vm5, %v10633_v57  ;;  %v10638_v58 = vmax.f32 %v10606_v53, 0.0  ;;  %v10604_v20 = vadd.f32 %v10572_v11, %v10540_v24  ;;  %v10543_v48 = vadd.f32 %v17345_v45, %v10504_v25  ;;  %v10502_v61 = vadd.f32 %v10425_v9, %v10032_v62  ;;  %v18005_v53 = vld [vmem:[#allocation29_spill] sm:$0xff]  ;;  %v18006_v25 = vld [vmem:[#allocation18_spill] sm:$0xff] }
 0x4a9   : > { %v12414_v50 = vpop.f32.mrf.mxu1  ;;  %v9313_v63 = vadd.f32 %v18002_v7, %v8954_v33  ;;  %v8957_v31 = vadd.f32 %v18004_v14, %v18003_v39  ;;  %v10579_v3 = vunpack.c.l.bf16 %v12589_v18  ;;  %v10036_v30 = vadd.f32 %v17460_v4, %v9310_v40  ;;  %v12593_v7 = vld [vmem:[%s12889_s29 + $0x6c] sm:$0xf] }
 0x4aa   : > { %10670 = vst.msk [vmem:[%s17368_s30 + $0x90] sm:$0xff] %vm1241_vm5, %v10638_v58  ;;  %v10636_v60 = vmax.f32 %v10604_v20, 0.0  ;;  %v10607_v47 = vadd.f32 %v10575_v17, %v10543_v48  ;;  %v10541_v34 = vadd.f32 %v17345_v45, %v10502_v61  ;;  %v10507_v38 = vadd.f32 %v12414_v50, %v10037_v44  ;;  %v18008_v58 = vld [vmem:[#allocation41_spill] sm:$0xff]  ;;  %v18009_v48 = vld [vmem:[#allocation39_spill] sm:$0xff]  ;;  %v18010_v61 = vld [vmem:[#allocation12_spill] sm:$0xff] }
 0x4ab   : > { %v10438_v12 = vpop.f32.mrf.mxu1  ;;  %v9316_v24 = vadd.f32 %v18005_v53, %v8957_v31  ;;  %v8955_v19 = vadd.f32 %v18007_v16, %v18006_v25  ;;  %v10577_v23 = vunpack.c.l.bf16 %v12590_v42  ;;  %v10041_v4 = vadd.f32 %v17478_v2, %v9315_v29  ;;  %v10000_v2 = vpop.f32.mrf.mxu0  ;;  %v12595_v42 = vld [vmem:[%s12889_s29 + $0x78] sm:$0xf] }
 0x4ac   : > { %10668 = vst.msk [vmem:[%s17368_s30 + $0x80] sm:$0xff] %vm1241_vm5, %v10636_v60  ;;  %v10639_v10 = vmax.f32 %v10607_v47, 0.0  ;;  %v10605_v11 = vadd.f32 %v10573_v32, %v10541_v34  ;;  %v10546_v21 = vadd.f32 %v17345_v45, %v10507_v38  ;;  %v10505_v54 = vadd.f32 %v10438_v12, %v10035_v51  ;;  %v18011_v60 = vld [vmem:[#allocation37_spill] sm:$0xff]  ;;  %v18013_v38 = vld [vmem:[#allocation27_spill] sm:$0xff] }
 0x4ad   : > { %v12415_v35 = vpop.f32.mrf.mxu1  ;;  %v9314_v20 = vadd.f32 %v18008_v58, %v8955_v19  ;;  %v8960_v59 = vadd.f32 %v18010_v61, %v18009_v48  ;;  %v10582_v8 = vunpack.c.l.bf16 %v12591_v36  ;;  %v10039_v22 = vadd.f32 %v17496_v55, %v9313_v63  ;;  %v18012_v34 = vld [vmem:[#allocation33_spill] sm:$0xff]  ;;  %v12389_v14 = vpop.f32.mrf.mxu0  ;;  %v12596_v48 = vld [vmem:[%s12889_s29 + $0x70] sm:$0xf] }
 0x4ae   : > { %10671 = vst.msk [vmem:[%s17368_s30 + $0x98] sm:$0xff] %vm1241_vm5, %v10639_v10  ;;  %v10637_v37 = vmax.f32 %v10605_v11, 0.0  ;;  %v10610_v17 = vadd.f32 %v10578_v1, %v10546_v21  ;;  %v10544_v62 = vadd.f32 %v17345_v45, %v10505_v54  ;;  %v10508_v57 = vadd.f32 %v12415_v35, %v10038_v49  ;;  %v18014_v10 = vld [vmem:[#allocation35_spill] sm:$0xff] }
 0x4af   : > { %v10441_v28 = vpop.f32.mrf.mxu1  ;;  %v9319_v47 = vadd.f32 %v18011_v60, %v8960_v59  ;;  %v8958_v0 = vadd.f32 %v18013_v38, %v18012_v34  ;;  %v10580_v5 = vunpack.c.l.bf16 %v12592_v46  ;;  %v10042_v55 = vadd.f32 %v17514_v41, %v9316_v24  ;;  %v18015_v11 = vld [vmem:[#allocation19_spill] sm:$0xff]  ;;  %v12598_v38 = vld [vmem:[%s12889_s29 + $0x74] sm:$0xf] }
 0x4b0   : > { %10669 = vst.msk [vmem:[%s17368_s30 + $0x88] sm:$0xff] %vm1241_vm5, %v10637_v37  ;;  %v10642_v9 = vmax.f32 %v10610_v17, 0.0  ;;  %v10608_v43 = vadd.f32 %v10576_v26, %v10544_v62  ;;  %v10547_v32 = vadd.f32 %v17345_v45, %v10508_v57  ;;  %v10506_v44 = vadd.f32 %v10441_v28, %v10036_v30  ;;  %v18016_v30 = vld [vmem:[#allocation17_spill] sm:$0xff]  ;;  %v18017_v37 = vld [vmem:[#allocation15_spill] sm:$0xff]  ;;  %v12594_v57 = vld [vmem:[%s12889_s29 + $0x64] sm:$0xf] }
 0x4b1   : > { %v12418_v40 = vpop.f32.mrf.mxu1  ;;  %v9317_v49 = vadd.f32 %v17324_v15, %v8958_v0  ;;  %v8961_v21 = vadd.f32 %v18015_v11, %v18014_v10  ;;  %v10583_v63 = vunpack.c.l.bf16 %v12593_v7  ;;  %v10040_v39 = vadd.f32 %v9987_v52, %v9314_v20 }
 0x4b2   : > { %10674 = vst.msk [vmem:[%s17368_s30 + $0xb0] sm:$0xff] %vm1241_vm5, %v10642_v9  ;;  %v10640_v50 = vmax.f32 %v10608_v43, 0.0  ;;  %v10611_v13 = vadd.f32 %v10579_v3, %v10547_v32  ;;  %v10545_v1 = vadd.f32 %v17345_v45, %v10506_v44  ;;  %v10511_v51 = vadd.f32 %v12418_v40, %v10041_v4  ;;  %v10003_v4 = vpop.f32.mrf.mxu0 }
 0x4b3   : > { %v10454_v29 = vpop.f32.mrf.mxu1  ;;  %v10045_v3 = vadd.f32 %v12388_v56, %v9319_v47  ;;  %v9320_v15 = vadd.f32 %v17330_v27, %v8961_v21  ;;  %v8959_v17 = vadd.f32 %v18017_v37, %v18016_v30  ;;  %v10581_v53 = vunpack.c.l.bf16 %v12594_v57  ;;  %v18018_v56 = vld [vmem:[#allocation42_spill] sm:$0xff] }
 0x4b4   : > { %10672 = vst.msk [vmem:[%s17368_s30 + $0xa0] sm:$0xff] %vm1241_vm5, %v10640_v50  ;;  %v10643_v33 = vmax.f32 %v10611_v13, 0.0  ;;  %v10609_v12 = vadd.f32 %v10577_v23, %v10545_v1  ;;  %v10550_v6 = vadd.f32 %v17345_v45, %v10511_v51  ;;  %v10509_v26 = vadd.f32 %v10454_v29, %v10039_v22  ;;  %v12597_v50 = vld [vmem:[%s12889_s29 + $0x7c] sm:$0xf] }
 0x4b5   : > { %v12419_v54 = vpop.f32.mrf.mxu1  ;;  %v10043_v19 = vadd.f32 %v10000_v2, %v9317_v49  ;;  %v9318_v28 = vadd.f32 %v18018_v56, %v8959_v17  ;;  %v10586_v23 = vunpack.c.l.bf16 %v12595_v42  ;;  %v10046_v58 = vadd.f32 %v12389_v14, %v9320_v15 }
 0x4b6   : > { %10675 = vst.msk [vmem:[%s17368_s30 + $0xb8] sm:$0xff] %vm1241_vm5, %v10643_v33  ;;  %v10641_v41 = vmax.f32 %v10609_v12, 0.0  ;;  %v10614_v31 = vadd.f32 %v10582_v8, %v10550_v6  ;;  %v10548_v35 = vadd.f32 %v17345_v45, %v10509_v26  ;;  %v10512_v18 = vadd.f32 %v12419_v54, %v10042_v55 }
 0x4b7   : > { %v10457_v62 = vpop.f32.mrf.mxu1  ;;  %v10584_v61 = vunpack.c.l.bf16 %v12596_v48  ;;  %v10044_v22 = vadd.f32 %v10003_v4, %v9318_v28  ;;  %v10587_v13 = vunpack.c.l.bf16 %v12597_v50  ;;  %v10585_v0 = vunpack.c.l.bf16 %v12598_v38 }
 0x4b8   : > { %10673 = vst.msk [vmem:[%s17368_s30 + $0xa8] sm:$0xff] %vm1241_vm5, %v10641_v41  ;;  %v10646_v52 = vmax.f32 %v10614_v31, 0.0  ;;  %v10612_v24 = vadd.f32 %v10580_v5, %v10548_v35  ;;  %v10551_v25 = vadd.f32 %v17345_v45, %v10512_v18  ;;  %v10510_v16 = vadd.f32 %v10457_v62, %v10040_v39 }
 0x4b9   : > { %v12422_v27 = vpop.f32.mrf.mxu1 }
 0x4ba   : > { %10678 = vst.msk [vmem:[%s17368_s30 + $0xd0] sm:$0xff] %vm1241_vm5, %v10646_v52  ;;  %v10644_v9 = vmax.f32 %v10612_v24, 0.0  ;;  %v10615_v43 = vadd.f32 %v10583_v63, %v10551_v25  ;;  %v10549_v32 = vadd.f32 %v17345_v45, %v10510_v16  ;;  %v10515_v44 = vadd.f32 %v12422_v27, %v10045_v3 }
 0x4bb   : > { %v10470_v20 = vpop.f32.mrf.mxu1 }
 0x4bc   : > { %10676 = vst.msk [vmem:[%s17368_s30 + $0xc0] sm:$0xff] %vm1241_vm5, %v10644_v9  ;;  %v10647_v59 = vmax.f32 %v10615_v43, 0.0  ;;  %v10613_v40 = vadd.f32 %v10581_v53, %v10549_v32  ;;  %v10554_v36 = vadd.f32 %v17345_v45, %v10515_v44  ;;  %v10513_v8 = vadd.f32 %v10470_v20, %v10043_v19 }
 0x4bd   : > { %v12423_v2 = vpop.f32.mrf.mxu1 }
 0x4be   : > { %10679 = vst.msk [vmem:[%s17368_s30 + $0xd8] sm:$0xff] %vm1241_vm5, %v10647_v59  ;;  %v10645_v1 = vmax.f32 %v10613_v40, 0.0  ;;  %v10618_v51 = vadd.f32 %v10586_v23, %v10554_v36  ;;  %v10552_v60 = vadd.f32 %v17345_v45, %v10513_v8  ;;  %v10516_v47 = vadd.f32 %v12423_v2, %v10046_v58 }
 0x4bf   : > { %v10473_v34 = vpop.f32.mrf.mxu1 }
 0x4c0   : > { %10677 = vst.msk [vmem:[%s17368_s30 + $0xc8] sm:$0xff] %vm1241_vm5, %v10645_v1  ;;  %v10650_v29 = vmax.f32 %v10618_v51, 0.0  ;;  %v10616_v46 = vadd.f32 %v10584_v61, %v10552_v60  ;;  %v10555_v5 = vadd.f32 %v17345_v45, %v10516_v47  ;;  %v10514_v55 = vadd.f32 %v10473_v34, %v10044_v22 }
 0x4c2   : > { %10682 = vst.msk [vmem:[%s17368_s30 + $0xf0] sm:$0xff] %vm1241_vm5, %v10650_v29  ;;  %v10648_v33 = vmax.f32 %v10616_v46, 0.0  ;;  %v10619_v12 = vadd.f32 %v10587_v13, %v10555_v5  ;;  %v10553_v6 = vadd.f32 %v17345_v45, %v10514_v55 }
 0x4c4   : > { %10680 = vst.msk [vmem:[%s17368_s30 + $0xe0] sm:$0xff] %vm1241_vm5, %v10648_v33  ;;  %v10651_v26 = vmax.f32 %v10619_v12, 0.0  ;;  %v10617_v49 = vadd.f32 %v10585_v0, %v10553_v6 }
 0x4c6   : > { %10683 = vst.msk [vmem:[%s17368_s30 + $0xf8] sm:$0xff] %vm1241_vm5, %v10651_v26  ;;  %v10649_v10 = vmax.f32 %v10617_v49, 0.0 }
 0x4c8   : > { %10681 = vst.msk [vmem:[%s17368_s30 + $0xe8] sm:$0xff] %vm1241_vm5, %v10649_v10 }
 0x4c9 PF: > { %s15_s18 = sadd.s32 1, %s12605_s18  }
 0x4ca   : > { %p12_p4 = scmp.ge.s32.totalorder %s15_s18, 4  }
 0x4cc   :  { %14 = sbr.rel (!%p12_p4) target bundleno = 1 (0x1), region = 90 }

</bundles_post_ra>
